<compile_context>
chip_gen: v6e
topology: v6e:2x2x1
jax: 0.10.0
libtpu: 0.0.40
codegen_flags: <defaults>
</compile_context>

<pallas_src>
import functools
import math

import jax
import jax.numpy as jnp
import numpy as np
from jax.experimental import pallas as pl
from jax.experimental.pallas import tpu as pltpu


# ---------------------------------------------------------------------------
# Activation (forward semantics of CustomReLU / CustomGELU)
# ---------------------------------------------------------------------------
# TODO(synk): CustomReLU/CustomGELU only instrument autograd (grad_calls
# counters); their forward equals plain relu / exact gelu, which is what we
# fuse here.  The counters themselves have no forward-pass equivalent.
def _apply_act(x, act):
    if act == "relu":
        return jnp.maximum(x, 0.0)
    if act == "gelu":
        return 0.5 * x * (1.0 + jax.lax.erf(x * (1.0 / math.sqrt(2.0))))
    raise ValueError("activation must be 'relu' or 'gelu'")


# ---------------------------------------------------------------------------
# The fused per-image kernel (one grid step = one image)
# ---------------------------------------------------------------------------
def _hochuli_kernel(p1_ref, g2_ref, g3_ref,
                    w1_ref, b1_ref, w1d_ref, b1d_ref,
                    w2_ref, b2_ref, w2d_ref, b2d_ref,
                    w3_ref, b3_ref, w3d_ref, b3d_ref,
                    wf1_ref, bf1_ref, wf2_ref, bf2_ref,
                    out_ref, *, act):
    act_fn = lambda v: _apply_act(v, act)

    def dot(a, b):
        return jnp.dot(a, b, preferred_element_type=jnp.float32)

    # ---- block 1: conv1 (3x3 pad1) + conv1_down (2x2 stride2) -------------
    # p1 = subpixel-partitioned im2col patches of the padded input image,
    # rows ordered (subpixel=2*sy+sx, Y16, X16), cols (dy*3+dx)*3 + ci.
    a1 = act_fn(dot(p1_ref[...], w1_ref[...]) + b1_ref[...])     # [1024, 32]
    n1 = a1.shape[0] // 4
    d1 = jnp.concatenate(
        [a1[s * n1:(s + 1) * n1, :] for s in range(4)], axis=-1)  # [256, 128]
    a2 = act_fn(dot(d1, w1d_ref[...]) + b1d_ref[...])            # [256, 32]

    # ---- blocks 2 & 3: conv (3x3 pad1) + down-conv (2x2 stride2) ----------
    def conv_block(a_in, g_ref, w_ref, b_ref, wd_ref, bd_ref):
        # a_in : [S*S, Cin] activation image, rows (y, x) row-major.
        # g_ref: [16*(S/2)^2, S*S] stacked 0/1 gather matrices, one per
        #        offset (oy, ox) in {-1,0,1,2}^2.
        n_out = g_ref.shape[0] // 16
        taps_all = dot(g_ref[...], a_in)                          # [16*N, Cin]
        t = [taps_all[k * n_out:(k + 1) * n_out, :] for k in range(16)]
        f_subs = []
        for sy in range(2):
            for sx in range(2):
                taps = [t[(sy + dy) * 4 + (sx + dx)]
                        for dy in range(3) for dx in range(3)]
                p = jnp.concatenate(taps, axis=-1)                # [N, 9*Cin]
                f_subs.append(act_fn(dot(p, w_ref[...]) + b_ref[...]))
        d = jnp.concatenate(f_subs, axis=-1)                      # [N, 4*Cout]
        return act_fn(dot(d, wd_ref[...]) + bd_ref[...])          # [N, Cd]

    a3 = conv_block(a2, g2_ref, w2_ref, b2_ref, w2d_ref, b2d_ref)  # [64, 64]
    a4 = conv_block(a3, g3_ref, w3_ref, b3_ref, w3d_ref, b3d_ref)  # [16, 64]

    # ---- fc head -----------------------------------------------------------
    # flat[0, s*64 + c] = a4[s, c]; wf1 columns were pre-permuted to match.
    flat = jnp.concatenate([a4[s:s + 1, :] for s in range(16)], axis=-1)  # [1,1024]
    h = act_fn(dot(flat, wf1_ref[...]) + bf1_ref[...])                    # [1, 64]
    logits = dot(h, wf2_ref[...]) + bf2_ref[...]                          # [1, 10]
    logits = logits - jnp.max(logits, axis=-1, keepdims=True)
    e = jnp.exp(logits)
    out_ref[...] = (e / jnp.sum(e, axis=-1, keepdims=True)).astype(out_ref.dtype)


# ---------------------------------------------------------------------------
# Parameters (deterministic, PyTorch-default-style uniform init)
# ---------------------------------------------------------------------------
def _uniform(key, shape, bound):
    return jax.random.uniform(key, shape, jnp.float32, -bound, bound)


def init_params(key):
    conv_specs = {
        "conv1":      (32, 3, 3),
        "conv1_down": (32, 32, 2),
        "conv2":      (64, 32, 3),
        "conv2_down": (64, 64, 2),
        "conv3":      (64, 64, 3),
        "conv3_down": (64, 64, 2),
    }
    fc_specs = {"fc1": (64, 64 * 4 * 4), "fc2": (10, 64)}
    keys = jax.random.split(key, 2 * (len(conv_specs) + len(fc_specs)))
    params, i = {}, 0
    for name, (cout, cin, k) in conv_specs.items():
        bound = 1.0 / math.sqrt(cin * k * k)
        w = _uniform(keys[i], (cout, cin, k, k), bound); i += 1
        b = _uniform(keys[i], (cout,), bound); i += 1
        params[name] = (w, b)
    for name, (out_f, in_f) in fc_specs.items():
        bound = 1.0 / math.sqrt(in_f)
        w = _uniform(keys[i], (out_f, in_f), bound); i += 1
        b = _uniform(keys[i], (out_f,), bound); i += 1
        params[name] = (w, b)
    return params


# ---------------------------------------------------------------------------
# One-time constant / weight-layout preparation (batch-independent)
# ---------------------------------------------------------------------------
def _gather_mats(s):
    """Stacked 0/1 gather matrices for a 3x3/pad-1 conv evaluated on the
    stride-2 output sub-grid of one image.  For offset (oy, ox) in {-1..2}^2
    the k-th block (k = (oy+1)*4 + (ox+1)) maps the [s*s, C] activation
    (rows (y, x) row-major) to pixel (2Y+oy, 2X+ox) for every output cell
    (Y, X); rows hitting the zero padding are all-zero."""
    s2 = s // 2
    n_out, n_in = s2 * s2, s * s
    g = np.zeros((16, n_out, n_in), np.float32)
    for oy in range(-1, 3):
        for ox in range(-1, 3):
            k = (oy + 1) * 4 + (ox + 1)
            for yy in range(s2):
                for xx in range(s2):
                    iy, ix = 2 * yy + oy, 2 * xx + ox
                    if 0 <= iy < s and 0 <= ix < s:
                        g[k, yy * s2 + xx, iy * s + ix] = 1.0
    return g.reshape(16 * n_out, n_in)


def _conv_w(w):
    """[Cout, Cin, kh, kw] -> [kh*kw*Cin, Cout] (tap-major, matches kernel)."""
    co, ci, kh, kw = w.shape
    return jnp.transpose(w, (2, 3, 1, 0)).reshape(kh * kw * ci, co)


def prepare_operands(params):
    """Pre-fold all weight layout transforms and build the constant gather
    matrices so the jitted forward streams matmul-ready operands straight
    into the fused kernel.  Everything here is batch-independent."""
    w1, b1 = params["conv1"]
    w1d, b1d = params["conv1_down"]
    w2, b2 = params["conv2"]
    w2d, b2d = params["conv2_down"]
    w3, b3 = params["conv3"]
    w3d, b3d = params["conv3_down"]
    wf1, bf1 = params["fc1"]          # [64, 1024], [64]
    wf2, bf2 = params["fc2"]          # [10, 64],  [10]

    # fc1 consumes PyTorch's NCHW flatten (input index = c*16 + y*4 + x);
    # the kernel produces features ordered (spatial, channel) -> permute cols.
    wf1_mat = jnp.transpose(wf1.reshape(64, 64, 16), (2, 1, 0)).reshape(1024, 64)

    return dict(
        g2=jnp.asarray(_gather_mats(16)),   # [16*64, 256]
        g3=jnp.asarray(_gather_mats(8)),    # [16*16, 64]
        w1=_conv_w(w1), b1=b1.reshape(1, -1),
        w1d=_conv_w(w1d), b1d=b1d.reshape(1, -1),
        w2=_conv_w(w2), b2=b2.reshape(1, -1),
        w2d=_conv_w(w2d), b2d=b2d.reshape(1, -1),
        w3=_conv_w(w3), b3=b3.reshape(1, -1),
        w3d=_conv_w(w3d), b3d=b3d.reshape(1, -1),
        wf1=wf1_mat, bf1=bf1.reshape(1, -1),
        wf2=wf2.T, bf2=bf2.reshape(1, -1),
    )


# ---------------------------------------------------------------------------
# Forward pass
# ---------------------------------------------------------------------------
def _conv1_patches(x_nchw):
    """Subpixel-partitioned im2col of the padded network input (the only
    layout prep left to XLA; ~110 KB per image, done once per forward).
    Rows per image ordered (subpixel=2*sy+sx, Y16, X16); cols (dy*3+dx)*3+ci."""
    b = x_nchw.shape[0]
    x = jnp.transpose(x_nchw, (0, 2, 3, 1))                  # NHWC [B,32,32,3]
    xp = jnp.pad(x, ((0, 0), (1, 1), (1, 1), (0, 0)))        # [B,34,34,3]
    subs = []
    for sy in range(2):
        for sx in range(2):
            taps = [xp[:, sy + dy: sy + dy + 32: 2,
                       sx + dx: sx + dx + 32: 2, :]
                    for dy in range(3) for dx in range(3)]
            patch = jnp.concatenate(taps, axis=-1)           # [B,16,16,27]
            subs.append(patch.reshape(b, 256, 27))
    return jnp.concatenate(subs, axis=1)                     # [B, 1024, 27]


_WEIGHT_NAMES = ["g2", "g3",
                 "w1", "b1", "w1d", "b1d",
                 "w2", "b2", "w2d", "b2d",
                 "w3", "b3", "w3d", "b3d",
                 "wf1", "bf1", "wf2", "bf2"]


@functools.partial(jax.jit, static_argnames=("act",))
def hochuli_profunda(x_nchw, ops, act="relu"):
    batch = x_nchw.shape[0]
    p1 = _conv1_patches(x_nchw)
    weights = [ops[n] for n in _WEIGHT_NAMES]

    def const_spec(a):
        nd = a.ndim
        return pl.BlockSpec(a.shape, lambda b, nd=nd: (0,) * nd)

    in_specs = ([pl.BlockSpec((None, 1024, 27), lambda b: (b, 0, 0))]
                + [const_spec(a) for a in weights])

    kernel = functools.partial(_hochuli_kernel, act=act)
    out = pl.pallas_call(
        kernel,
        out_shape=jax.ShapeDtypeStruct((batch, 1, 10), jnp.float32),
        grid=(batch,),
        in_specs=in_specs,
        out_specs=pl.BlockSpec((None, 1, 10), lambda b: (b, 0, 0)),
        compiler_params=pltpu.CompilerParams(
            dimension_semantics=("parallel",),
            vmem_limit_bytes=32 * 1024 * 1024),
    )(p1, *weights)
    return out.reshape(batch, 10)


# ---------------------------------------------------------------------------
# Pure-JAX reference (mirrors the PyTorch module) for validation
# ---------------------------------------------------------------------------
def reference_forward(x_nchw, params, act="relu"):
    def conv(x, w, b, stride, pad):
        y = jax.lax.conv_general_dilated(
            x, w, window_strides=(stride, stride),
            padding=[(pad, pad), (pad, pad)],
            dimension_numbers=("NCHW", "OIHW", "NCHW"))
        return y + b.reshape(1, -1, 1, 1)

    a = lambda v: _apply_act(v, act)
    x = a(conv(x_nchw, *params["conv1"], 1, 1))
    x = a(conv(x, *params["conv1_down"], 2, 0))
    x = a(conv(x, *params["conv2"], 1, 1))
    x = a(conv(x, *params["conv2_down"], 2, 0))
    x = a(conv(x, *params["conv3"], 1, 1))
    x = a(conv(x, *params["conv3_down"], 2, 0))
    x = x.reshape(x.shape[0], -1)                         # NCHW flatten
    wf1, bf1 = params["fc1"]
    wf2, bf2 = params["fc2"]
    x = a(x @ wf1.T + bf1)
    x = x @ wf2.T + bf2
    return jax.nn.softmax(x, axis=-1)


if __name__ == "__main__":
    key = jax.random.PRNGKey(0)
    params = init_params(key)
    # Module forces 3 input channels and 32x32 spatial (fc1 expects 64*4*4).
    x = jax.random.normal(jax.random.fold_in(key, 999),
                          (2, 3, 32, 32), dtype=jnp.float32)

    ops = prepare_operands(params)
    out = hochuli_profunda(x, ops, act="relu")
    out = jax.block_until_ready(out)

    assert out.shape == (2, 10), out.shape
    assert bool(jnp.all(jnp.isfinite(out)))
    assert bool(jnp.allclose(jnp.sum(out, axis=1), 1.0, atol=1e-5))

    ref = jax.block_until_ready(reference_forward(x, params, act="relu"))
    max_diff = float(jnp.max(jnp.abs(out - ref)))
    assert bool(jnp.allclose(out, ref, atol=1e-3, rtol=1e-3)), max_diff

    print("KERNEL_OK")
</pallas_src>

<mosaic_0001>
module attributes {stable_mosaic.version = 11 : i64} {
  func.func @_hochuli_kernel(%arg0: i32, %arg1: memref<1x1024x27xf32, #tpu.memory_space<vmem>>, %arg2: memref<1024x256xf32, #tpu.memory_space<vmem>>, %arg3: memref<256x64xf32, #tpu.memory_space<vmem>>, %arg4: memref<27x32xf32, #tpu.memory_space<vmem>>, %arg5: memref<1x32xf32, #tpu.memory_space<vmem>>, %arg6: memref<128x32xf32, #tpu.memory_space<vmem>>, %arg7: memref<1x32xf32, #tpu.memory_space<vmem>>, %arg8: memref<288x64xf32, #tpu.memory_space<vmem>>, %arg9: memref<1x64xf32, #tpu.memory_space<vmem>>, %arg10: memref<256x64xf32, #tpu.memory_space<vmem>>, %arg11: memref<1x64xf32, #tpu.memory_space<vmem>>, %arg12: memref<576x64xf32, #tpu.memory_space<vmem>>, %arg13: memref<1x64xf32, #tpu.memory_space<vmem>>, %arg14: memref<256x64xf32, #tpu.memory_space<vmem>>, %arg15: memref<1x64xf32, #tpu.memory_space<vmem>>, %arg16: memref<1024x64xf32, #tpu.memory_space<vmem>>, %arg17: memref<1x64xf32, #tpu.memory_space<vmem>>, %arg18: memref<64x10xf32, #tpu.memory_space<vmem>>, %arg19: memref<1x10xf32, #tpu.memory_space<vmem>>, %arg20: memref<1x1x10xf32, #tpu.memory_space<vmem>>) attributes {dimension_semantics = [#tpu.dimension_semantics<parallel>], iteration_bounds = array<i64: 2>, scalar_prefetch = 0 : i64, scratch_operands = 0 : i64, tpu.core_type = #tpu.core_type<tc>, window_params = [{transform_indices = @transform_0, window_bounds = array<i64: 1, 1024, 27>}, {pipeline_mode = #tpu.pipeline_mode<synchronous>, transform_indices = @transform_1, window_bounds = array<i64: 1024, 256>}, {pipeline_mode = #tpu.pipeline_mode<synchronous>, transform_indices = @transform_2, window_bounds = array<i64: 256, 64>}, {pipeline_mode = #tpu.pipeline_mode<synchronous>, transform_indices = @transform_3, window_bounds = array<i64: 27, 32>}, {pipeline_mode = #tpu.pipeline_mode<synchronous>, transform_indices = @transform_4, window_bounds = array<i64: 1, 32>}, {pipeline_mode = #tpu.pipeline_mode<synchronous>, transform_indices = @transform_5, window_bounds = array<i64: 128, 32>}, {pipeline_mode = #tpu.pipeline_mode<synchronous>, transform_indices = @transform_6, window_bounds = array<i64: 1, 32>}, {pipeline_mode = #tpu.pipeline_mode<synchronous>, transform_indices = @transform_7, window_bounds = array<i64: 288, 64>}, {pipeline_mode = #tpu.pipeline_mode<synchronous>, transform_indices = @transform_8, window_bounds = array<i64: 1, 64>}, {pipeline_mode = #tpu.pipeline_mode<synchronous>, transform_indices = @transform_9, window_bounds = array<i64: 256, 64>}, {pipeline_mode = #tpu.pipeline_mode<synchronous>, transform_indices = @transform_10, window_bounds = array<i64: 1, 64>}, {pipeline_mode = #tpu.pipeline_mode<synchronous>, transform_indices = @transform_11, window_bounds = array<i64: 576, 64>}, {pipeline_mode = #tpu.pipeline_mode<synchronous>, transform_indices = @transform_12, window_bounds = array<i64: 1, 64>}, {pipeline_mode = #tpu.pipeline_mode<synchronous>, transform_indices = @transform_13, window_bounds = array<i64: 256, 64>}, {pipeline_mode = #tpu.pipeline_mode<synchronous>, transform_indices = @transform_14, window_bounds = array<i64: 1, 64>}, {pipeline_mode = #tpu.pipeline_mode<synchronous>, transform_indices = @transform_15, window_bounds = array<i64: 1024, 64>}, {pipeline_mode = #tpu.pipeline_mode<synchronous>, transform_indices = @transform_16, window_bounds = array<i64: 1, 64>}, {pipeline_mode = #tpu.pipeline_mode<synchronous>, transform_indices = @transform_17, window_bounds = array<i64: 64, 10>}, {pipeline_mode = #tpu.pipeline_mode<synchronous>, transform_indices = @transform_18, window_bounds = array<i64: 1, 10>}, {transform_indices = @transform_19, window_bounds = array<i64: 1, 1, 10>}]} {
    %c0 = arith.constant 0 : index
    %c0_0 = arith.constant 0 : index
    %c0_1 = arith.constant 0 : index
    %0 = vector.load %arg1[%c0, %c0_0, %c0_1] : memref<1x1024x27xf32, #tpu.memory_space<vmem>>, vector<1x1024x27xf32>
    %1 = vector.shape_cast %0 : vector<1x1024x27xf32> to vector<1024x27xf32>
    %c0_2 = arith.constant 0 : index
    %c0_3 = arith.constant 0 : index
    %2 = vector.load %arg4[%c0_2, %c0_3] : memref<27x32xf32, #tpu.memory_space<vmem>>, vector<27x32xf32>
    %cst = arith.constant dense<0.000000e+00> : vector<1024x32xf32>
    %3 = tpu.matmul %1, %2, %cst {dimension_numbers = #tpu.dot_dimension_numbers<[1], [0], [0], [1], [0, 0, 1, 1], [], []>} : vector<1024x27xf32>, vector<27x32xf32>, vector<1024x32xf32> -> vector<1024x32xf32>
    %c0_4 = arith.constant 0 : index
    %c0_5 = arith.constant 0 : index
    %4 = vector.load %arg5[%c0_4, %c0_5] : memref<1x32xf32, #tpu.memory_space<vmem>>, vector<1x32xf32>
    %5 = vector.broadcast %4 : vector<1x32xf32> to vector<1024x32xf32>
    %6 = arith.addf %3, %5 : vector<1024x32xf32>
    %cst_6 = arith.constant 0.000000e+00 : f32
    %7 = vector.broadcast %cst_6 : f32 to vector<1024x32xf32>
    %8 = arith.maximumf %6, %7 : vector<1024x32xf32>
    %9 = vector.extract_strided_slice %8 {offsets = [0, 0], sizes = [256, 32], strides = [1, 1]} : vector<1024x32xf32> to vector<256x32xf32>
    %10 = vector.extract_strided_slice %8 {offsets = [256, 0], sizes = [256, 32], strides = [1, 1]} : vector<1024x32xf32> to vector<256x32xf32>
    %11 = vector.extract_strided_slice %8 {offsets = [512, 0], sizes = [256, 32], strides = [1, 1]} : vector<1024x32xf32> to vector<256x32xf32>
    %12 = vector.extract_strided_slice %8 {offsets = [768, 0], sizes = [256, 32], strides = [1, 1]} : vector<1024x32xf32> to vector<256x32xf32>
    %13 = tpu.concatenate %9, %10, %11, %12 in 1 : vector<256x32xf32>, vector<256x32xf32>, vector<256x32xf32>, vector<256x32xf32> -> vector<256x128xf32>
    %c0_7 = arith.constant 0 : index
    %c0_8 = arith.constant 0 : index
    %14 = vector.load %arg6[%c0_7, %c0_8] : memref<128x32xf32, #tpu.memory_space<vmem>>, vector<128x32xf32>
    %cst_9 = arith.constant dense<0.000000e+00> : vector<256x32xf32>
    %15 = tpu.matmul %13, %14, %cst_9 {dimension_numbers = #tpu.dot_dimension_numbers<[1], [0], [0], [1], [0, 0, 1, 1], [], []>} : vector<256x128xf32>, vector<128x32xf32>, vector<256x32xf32> -> vector<256x32xf32>
    %c0_10 = arith.constant 0 : index
    %c0_11 = arith.constant 0 : index
    %16 = vector.load %arg7[%c0_10, %c0_11] : memref<1x32xf32, #tpu.memory_space<vmem>>, vector<1x32xf32>
    %17 = vector.broadcast %16 : vector<1x32xf32> to vector<256x32xf32>
    %18 = arith.addf %15, %17 : vector<256x32xf32>
    %cst_12 = arith.constant 0.000000e+00 : f32
    %19 = vector.broadcast %cst_12 : f32 to vector<256x32xf32>
    %20 = arith.maximumf %18, %19 : vector<256x32xf32>
    %c0_13 = arith.constant 0 : index
    %c0_14 = arith.constant 0 : index
    %21 = vector.load %arg2[%c0_13, %c0_14] : memref<1024x256xf32, #tpu.memory_space<vmem>>, vector<1024x256xf32>
    %cst_15 = arith.constant dense<0.000000e+00> : vector<1024x32xf32>
    %22 = tpu.matmul %21, %20, %cst_15 {dimension_numbers = #tpu.dot_dimension_numbers<[1], [0], [0], [1], [0, 0, 1, 1], [], []>} : vector<1024x256xf32>, vector<256x32xf32>, vector<1024x32xf32> -> vector<1024x32xf32>
    %23 = vector.extract_strided_slice %22 {offsets = [0, 0], sizes = [64, 32], strides = [1, 1]} : vector<1024x32xf32> to vector<64x32xf32>
    %24 = vector.extract_strided_slice %22 {offsets = [64, 0], sizes = [64, 32], strides = [1, 1]} : vector<1024x32xf32> to vector<64x32xf32>
    %25 = vector.extract_strided_slice %22 {offsets = [128, 0], sizes = [64, 32], strides = [1, 1]} : vector<1024x32xf32> to vector<64x32xf32>
    %26 = vector.extract_strided_slice %22 {offsets = [192, 0], sizes = [64, 32], strides = [1, 1]} : vector<1024x32xf32> to vector<64x32xf32>
    %27 = vector.extract_strided_slice %22 {offsets = [256, 0], sizes = [64, 32], strides = [1, 1]} : vector<1024x32xf32> to vector<64x32xf32>
    %28 = vector.extract_strided_slice %22 {offsets = [320, 0], sizes = [64, 32], strides = [1, 1]} : vector<1024x32xf32> to vector<64x32xf32>
    %29 = vector.extract_strided_slice %22 {offsets = [384, 0], sizes = [64, 32], strides = [1, 1]} : vector<1024x32xf32> to vector<64x32xf32>
    %30 = vector.extract_strided_slice %22 {offsets = [448, 0], sizes = [64, 32], strides = [1, 1]} : vector<1024x32xf32> to vector<64x32xf32>
    %31 = vector.extract_strided_slice %22 {offsets = [512, 0], sizes = [64, 32], strides = [1, 1]} : vector<1024x32xf32> to vector<64x32xf32>
    %32 = vector.extract_strided_slice %22 {offsets = [576, 0], sizes = [64, 32], strides = [1, 1]} : vector<1024x32xf32> to vector<64x32xf32>
    %33 = vector.extract_strided_slice %22 {offsets = [640, 0], sizes = [64, 32], strides = [1, 1]} : vector<1024x32xf32> to vector<64x32xf32>
    %34 = vector.extract_strided_slice %22 {offsets = [704, 0], sizes = [64, 32], strides = [1, 1]} : vector<1024x32xf32> to vector<64x32xf32>
    %35 = vector.extract_strided_slice %22 {offsets = [768, 0], sizes = [64, 32], strides = [1, 1]} : vector<1024x32xf32> to vector<64x32xf32>
    %36 = vector.extract_strided_slice %22 {offsets = [832, 0], sizes = [64, 32], strides = [1, 1]} : vector<1024x32xf32> to vector<64x32xf32>
    %37 = vector.extract_strided_slice %22 {offsets = [896, 0], sizes = [64, 32], strides = [1, 1]} : vector<1024x32xf32> to vector<64x32xf32>
    %38 = vector.extract_strided_slice %22 {offsets = [960, 0], sizes = [64, 32], strides = [1, 1]} : vector<1024x32xf32> to vector<64x32xf32>
    %39 = tpu.concatenate %23, %24, %25, %27, %28, %29, %31, %32, %33 in 1 : vector<64x32xf32>, vector<64x32xf32>, vector<64x32xf32>, vector<64x32xf32>, vector<64x32xf32>, vector<64x32xf32>, vector<64x32xf32>, vector<64x32xf32>, vector<64x32xf32> -> vector<64x288xf32>
    %c0_16 = arith.constant 0 : index
    %c0_17 = arith.constant 0 : index
    %40 = vector.load %arg8[%c0_16, %c0_17] : memref<288x64xf32, #tpu.memory_space<vmem>>, vector<288x64xf32>
    %cst_18 = arith.constant dense<0.000000e+00> : vector<64x64xf32>
    %41 = tpu.matmul %39, %40, %cst_18 {dimension_numbers = #tpu.dot_dimension_numbers<[1], [0], [0], [1], [0, 0, 1, 1], [], []>} : vector<64x288xf32>, vector<288x64xf32>, vector<64x64xf32> -> vector<64x64xf32>
    %c0_19 = arith.constant 0 : index
    %c0_20 = arith.constant 0 : index
    %42 = vector.load %arg9[%c0_19, %c0_20] : memref<1x64xf32, #tpu.memory_space<vmem>>, vector<1x64xf32>
    %43 = vector.broadcast %42 : vector<1x64xf32> to vector<64x64xf32>
    %44 = arith.addf %41, %43 : vector<64x64xf32>
    %cst_21 = arith.constant 0.000000e+00 : f32
    %45 = vector.broadcast %cst_21 : f32 to vector<64x64xf32>
    %46 = arith.maximumf %44, %45 : vector<64x64xf32>
    %47 = tpu.concatenate %24, %25, %26, %28, %29, %30, %32, %33, %34 in 1 : vector<64x32xf32>, vector<64x32xf32>, vector<64x32xf32>, vector<64x32xf32>, vector<64x32xf32>, vector<64x32xf32>, vector<64x32xf32>, vector<64x32xf32>, vector<64x32xf32> -> vector<64x288xf32>
    %c0_22 = arith.constant 0 : index
    %c0_23 = arith.constant 0 : index
    %48 = vector.load %arg8[%c0_22, %c0_23] : memref<288x64xf32, #tpu.memory_space<vmem>>, vector<288x64xf32>
    %cst_24 = arith.constant dense<0.000000e+00> : vector<64x64xf32>
    %49 = tpu.matmul %47, %48, %cst_24 {dimension_numbers = #tpu.dot_dimension_numbers<[1], [0], [0], [1], [0, 0, 1, 1], [], []>} : vector<64x288xf32>, vector<288x64xf32>, vector<64x64xf32> -> vector<64x64xf32>
    %c0_25 = arith.constant 0 : index
    %c0_26 = arith.constant 0 : index
    %50 = vector.load %arg9[%c0_25, %c0_26] : memref<1x64xf32, #tpu.memory_space<vmem>>, vector<1x64xf32>
    %51 = vector.broadcast %50 : vector<1x64xf32> to vector<64x64xf32>
    %52 = arith.addf %49, %51 : vector<64x64xf32>
    %cst_27 = arith.constant 0.000000e+00 : f32
    %53 = vector.broadcast %cst_27 : f32 to vector<64x64xf32>
    %54 = arith.maximumf %52, %53 : vector<64x64xf32>
    %55 = tpu.concatenate %27, %28, %29, %31, %32, %33, %35, %36, %37 in 1 : vector<64x32xf32>, vector<64x32xf32>, vector<64x32xf32>, vector<64x32xf32>, vector<64x32xf32>, vector<64x32xf32>, vector<64x32xf32>, vector<64x32xf32>, vector<64x32xf32> -> vector<64x288xf32>
    %c0_28 = arith.constant 0 : index
    %c0_29 = arith.constant 0 : index
    %56 = vector.load %arg8[%c0_28, %c0_29] : memref<288x64xf32, #tpu.memory_space<vmem>>, vector<288x64xf32>
    %cst_30 = arith.constant dense<0.000000e+00> : vector<64x64xf32>
    %57 = tpu.matmul %55, %56, %cst_30 {dimension_numbers = #tpu.dot_dimension_numbers<[1], [0], [0], [1], [0, 0, 1, 1], [], []>} : vector<64x288xf32>, vector<288x64xf32>, vector<64x64xf32> -> vector<64x64xf32>
    %c0_31 = arith.constant 0 : index
    %c0_32 = arith.constant 0 : index
    %58 = vector.load %arg9[%c0_31, %c0_32] : memref<1x64xf32, #tpu.memory_space<vmem>>, vector<1x64xf32>
    %59 = vector.broadcast %58 : vector<1x64xf32> to vector<64x64xf32>
    %60 = arith.addf %57, %59 : vector<64x64xf32>
    %cst_33 = arith.constant 0.000000e+00 : f32
    %61 = vector.broadcast %cst_33 : f32 to vector<64x64xf32>
    %62 = arith.maximumf %60, %61 : vector<64x64xf32>
    %63 = tpu.concatenate %28, %29, %30, %32, %33, %34, %36, %37, %38 in 1 : vector<64x32xf32>, vector<64x32xf32>, vector<64x32xf32>, vector<64x32xf32>, vector<64x32xf32>, vector<64x32xf32>, vector<64x32xf32>, vector<64x32xf32>, vector<64x32xf32> -> vector<64x288xf32>
    %c0_34 = arith.constant 0 : index
    %c0_35 = arith.constant 0 : index
    %64 = vector.load %arg8[%c0_34, %c0_35] : memref<288x64xf32, #tpu.memory_space<vmem>>, vector<288x64xf32>
    %cst_36 = arith.constant dense<0.000000e+00> : vector<64x64xf32>
    %65 = tpu.matmul %63, %64, %cst_36 {dimension_numbers = #tpu.dot_dimension_numbers<[1], [0], [0], [1], [0, 0, 1, 1], [], []>} : vector<64x288xf32>, vector<288x64xf32>, vector<64x64xf32> -> vector<64x64xf32>
    %c0_37 = arith.constant 0 : index
    %c0_38 = arith.constant 0 : index
    %66 = vector.load %arg9[%c0_37, %c0_38] : memref<1x64xf32, #tpu.memory_space<vmem>>, vector<1x64xf32>
    %67 = vector.broadcast %66 : vector<1x64xf32> to vector<64x64xf32>
    %68 = arith.addf %65, %67 : vector<64x64xf32>
    %cst_39 = arith.constant 0.000000e+00 : f32
    %69 = vector.broadcast %cst_39 : f32 to vector<64x64xf32>
    %70 = arith.maximumf %68, %69 : vector<64x64xf32>
    %71 = tpu.concatenate %46, %54, %62, %70 in 1 : vector<64x64xf32>, vector<64x64xf32>, vector<64x64xf32>, vector<64x64xf32> -> vector<64x256xf32>
    %c0_40 = arith.constant 0 : index
    %c0_41 = arith.constant 0 : index
    %72 = vector.load %arg10[%c0_40, %c0_41] : memref<256x64xf32, #tpu.memory_space<vmem>>, vector<256x64xf32>
    %cst_42 = arith.constant dense<0.000000e+00> : vector<64x64xf32>
    %73 = tpu.matmul %71, %72, %cst_42 {dimension_numbers = #tpu.dot_dimension_numbers<[1], [0], [0], [1], [0, 0, 1, 1], [], []>} : vector<64x256xf32>, vector<256x64xf32>, vector<64x64xf32> -> vector<64x64xf32>
    %c0_43 = arith.constant 0 : index
    %c0_44 = arith.constant 0 : index
    %74 = vector.load %arg11[%c0_43, %c0_44] : memref<1x64xf32, #tpu.memory_space<vmem>>, vector<1x64xf32>
    %75 = vector.broadcast %74 : vector<1x64xf32> to vector<64x64xf32>
    %76 = arith.addf %73, %75 : vector<64x64xf32>
    %cst_45 = arith.constant 0.000000e+00 : f32
    %77 = vector.broadcast %cst_45 : f32 to vector<64x64xf32>
    %78 = arith.maximumf %76, %77 : vector<64x64xf32>
    %c0_46 = arith.constant 0 : index
    %c0_47 = arith.constant 0 : index
    %79 = vector.load %arg3[%c0_46, %c0_47] : memref<256x64xf32, #tpu.memory_space<vmem>>, vector<256x64xf32>
    %cst_48 = arith.constant dense<0.000000e+00> : vector<256x64xf32>
    %80 = tpu.matmul %79, %78, %cst_48 {dimension_numbers = #tpu.dot_dimension_numbers<[1], [0], [0], [1], [0, 0, 1, 1], [], []>} : vector<256x64xf32>, vector<64x64xf32>, vector<256x64xf32> -> vector<256x64xf32>
    %81 = vector.extract_strided_slice %80 {offsets = [0, 0], sizes = [16, 64], strides = [1, 1]} : vector<256x64xf32> to vector<16x64xf32>
    %82 = vector.extract_strided_slice %80 {offsets = [16, 0], sizes = [16, 64], strides = [1, 1]} : vector<256x64xf32> to vector<16x64xf32>
    %83 = vector.extract_strided_slice %80 {offsets = [32, 0], sizes = [16, 64], strides = [1, 1]} : vector<256x64xf32> to vector<16x64xf32>
    %84 = vector.extract_strided_slice %80 {offsets = [48, 0], sizes = [16, 64], strides = [1, 1]} : vector<256x64xf32> to vector<16x64xf32>
    %85 = vector.extract_strided_slice %80 {offsets = [64, 0], sizes = [16, 64], strides = [1, 1]} : vector<256x64xf32> to vector<16x64xf32>
    %86 = vector.extract_strided_slice %80 {offsets = [80, 0], sizes = [16, 64], strides = [1, 1]} : vector<256x64xf32> to vector<16x64xf32>
    %87 = vector.extract_strided_slice %80 {offsets = [96, 0], sizes = [16, 64], strides = [1, 1]} : vector<256x64xf32> to vector<16x64xf32>
    %88 = vector.extract_strided_slice %80 {offsets = [112, 0], sizes = [16, 64], strides = [1, 1]} : vector<256x64xf32> to vector<16x64xf32>
    %89 = vector.extract_strided_slice %80 {offsets = [128, 0], sizes = [16, 64], strides = [1, 1]} : vector<256x64xf32> to vector<16x64xf32>
    %90 = vector.extract_strided_slice %80 {offsets = [144, 0], sizes = [16, 64], strides = [1, 1]} : vector<256x64xf32> to vector<16x64xf32>
    %91 = vector.extract_strided_slice %80 {offsets = [160, 0], sizes = [16, 64], strides = [1, 1]} : vector<256x64xf32> to vector<16x64xf32>
    %92 = vector.extract_strided_slice %80 {offsets = [176, 0], sizes = [16, 64], strides = [1, 1]} : vector<256x64xf32> to vector<16x64xf32>
    %93 = vector.extract_strided_slice %80 {offsets = [192, 0], sizes = [16, 64], strides = [1, 1]} : vector<256x64xf32> to vector<16x64xf32>
    %94 = vector.extract_strided_slice %80 {offsets = [208, 0], sizes = [16, 64], strides = [1, 1]} : vector<256x64xf32> to vector<16x64xf32>
    %95 = vector.extract_strided_slice %80 {offsets = [224, 0], sizes = [16, 64], strides = [1, 1]} : vector<256x64xf32> to vector<16x64xf32>
    %96 = vector.extract_strided_slice %80 {offsets = [240, 0], sizes = [16, 64], strides = [1, 1]} : vector<256x64xf32> to vector<16x64xf32>
    %97 = tpu.concatenate %81, %82, %83, %85, %86, %87, %89, %90, %91 in 1 : vector<16x64xf32>, vector<16x64xf32>, vector<16x64xf32>, vector<16x64xf32>, vector<16x64xf32>, vector<16x64xf32>, vector<16x64xf32>, vector<16x64xf32>, vector<16x64xf32> -> vector<16x576xf32>
    %c0_49 = arith.constant 0 : index
    %c0_50 = arith.constant 0 : index
    %98 = vector.load %arg12[%c0_49, %c0_50] : memref<576x64xf32, #tpu.memory_space<vmem>>, vector<576x64xf32>
    %cst_51 = arith.constant dense<0.000000e+00> : vector<16x64xf32>
    %99 = tpu.matmul %97, %98, %cst_51 {dimension_numbers = #tpu.dot_dimension_numbers<[1], [0], [0], [1], [0, 0, 1, 1], [], []>} : vector<16x576xf32>, vector<576x64xf32>, vector<16x64xf32> -> vector<16x64xf32>
    %c0_52 = arith.constant 0 : index
    %c0_53 = arith.constant 0 : index
    %100 = vector.load %arg13[%c0_52, %c0_53] : memref<1x64xf32, #tpu.memory_space<vmem>>, vector<1x64xf32>
    %101 = vector.broadcast %100 : vector<1x64xf32> to vector<16x64xf32>
    %102 = arith.addf %99, %101 : vector<16x64xf32>
    %cst_54 = arith.constant 0.000000e+00 : f32
    %103 = vector.broadcast %cst_54 : f32 to vector<16x64xf32>
    %104 = arith.maximumf %102, %103 : vector<16x64xf32>
    %105 = tpu.concatenate %82, %83, %84, %86, %87, %88, %90, %91, %92 in 1 : vector<16x64xf32>, vector<16x64xf32>, vector<16x64xf32>, vector<16x64xf32>, vector<16x64xf32>, vector<16x64xf32>, vector<16x64xf32>, vector<16x64xf32>, vector<16x64xf32> -> vector<16x576xf32>
    %c0_55 = arith.constant 0 : index
    %c0_56 = arith.constant 0 : index
    %106 = vector.load %arg12[%c0_55, %c0_56] : memref<576x64xf32, #tpu.memory_space<vmem>>, vector<576x64xf32>
    %cst_57 = arith.constant dense<0.000000e+00> : vector<16x64xf32>
    %107 = tpu.matmul %105, %106, %cst_57 {dimension_numbers = #tpu.dot_dimension_numbers<[1], [0], [0], [1], [0, 0, 1, 1], [], []>} : vector<16x576xf32>, vector<576x64xf32>, vector<16x64xf32> -> vector<16x64xf32>
    %c0_58 = arith.constant 0 : index
    %c0_59 = arith.constant 0 : index
    %108 = vector.load %arg13[%c0_58, %c0_59] : memref<1x64xf32, #tpu.memory_space<vmem>>, vector<1x64xf32>
    %109 = vector.broadcast %108 : vector<1x64xf32> to vector<16x64xf32>
    %110 = arith.addf %107, %109 : vector<16x64xf32>
    %cst_60 = arith.constant 0.000000e+00 : f32
    %111 = vector.broadcast %cst_60 : f32 to vector<16x64xf32>
    %112 = arith.maximumf %110, %111 : vector<16x64xf32>
    %113 = tpu.concatenate %85, %86, %87, %89, %90, %91, %93, %94, %95 in 1 : vector<16x64xf32>, vector<16x64xf32>, vector<16x64xf32>, vector<16x64xf32>, vector<16x64xf32>, vector<16x64xf32>, vector<16x64xf32>, vector<16x64xf32>, vector<16x64xf32> -> vector<16x576xf32>
    %c0_61 = arith.constant 0 : index
    %c0_62 = arith.constant 0 : index
    %114 = vector.load %arg12[%c0_61, %c0_62] : memref<576x64xf32, #tpu.memory_space<vmem>>, vector<576x64xf32>
    %cst_63 = arith.constant dense<0.000000e+00> : vector<16x64xf32>
    %115 = tpu.matmul %113, %114, %cst_63 {dimension_numbers = #tpu.dot_dimension_numbers<[1], [0], [0], [1], [0, 0, 1, 1], [], []>} : vector<16x576xf32>, vector<576x64xf32>, vector<16x64xf32> -> vector<16x64xf32>
    %c0_64 = arith.constant 0 : index
    %c0_65 = arith.constant 0 : index
    %116 = vector.load %arg13[%c0_64, %c0_65] : memref<1x64xf32, #tpu.memory_space<vmem>>, vector<1x64xf32>
    %117 = vector.broadcast %116 : vector<1x64xf32> to vector<16x64xf32>
    %118 = arith.addf %115, %117 : vector<16x64xf32>
    %cst_66 = arith.constant 0.000000e+00 : f32
    %119 = vector.broadcast %cst_66 : f32 to vector<16x64xf32>
    %120 = arith.maximumf %118, %119 : vector<16x64xf32>
    %121 = tpu.concatenate %86, %87, %88, %90, %91, %92, %94, %95, %96 in 1 : vector<16x64xf32>, vector<16x64xf32>, vector<16x64xf32>, vector<16x64xf32>, vector<16x64xf32>, vector<16x64xf32>, vector<16x64xf32>, vector<16x64xf32>, vector<16x64xf32> -> vector<16x576xf32>
    %c0_67 = arith.constant 0 : index
    %c0_68 = arith.constant 0 : index
    %122 = vector.load %arg12[%c0_67, %c0_68] : memref<576x64xf32, #tpu.memory_space<vmem>>, vector<576x64xf32>
    %cst_69 = arith.constant dense<0.000000e+00> : vector<16x64xf32>
    %123 = tpu.matmul %121, %122, %cst_69 {dimension_numbers = #tpu.dot_dimension_numbers<[1], [0], [0], [1], [0, 0, 1, 1], [], []>} : vector<16x576xf32>, vector<576x64xf32>, vector<16x64xf32> -> vector<16x64xf32>
    %c0_70 = arith.constant 0 : index
    %c0_71 = arith.constant 0 : index
    %124 = vector.load %arg13[%c0_70, %c0_71] : memref<1x64xf32, #tpu.memory_space<vmem>>, vector<1x64xf32>
    %125 = vector.broadcast %124 : vector<1x64xf32> to vector<16x64xf32>
    %126 = arith.addf %123, %125 : vector<16x64xf32>
    %cst_72 = arith.constant 0.000000e+00 : f32
    %127 = vector.broadcast %cst_72 : f32 to vector<16x64xf32>
    %128 = arith.maximumf %126, %127 : vector<16x64xf32>
    %129 = tpu.concatenate %104, %112, %120, %128 in 1 : vector<16x64xf32>, vector<16x64xf32>, vector<16x64xf32>, vector<16x64xf32> -> vector<16x256xf32>
    %c0_73 = arith.constant 0 : index
    %c0_74 = arith.constant 0 : index
    %130 = vector.load %arg14[%c0_73, %c0_74] : memref<256x64xf32, #tpu.memory_space<vmem>>, vector<256x64xf32>
    %cst_75 = arith.constant dense<0.000000e+00> : vector<16x64xf32>
    %131 = tpu.matmul %129, %130, %cst_75 {dimension_numbers = #tpu.dot_dimension_numbers<[1], [0], [0], [1], [0, 0, 1, 1], [], []>} : vector<16x256xf32>, vector<256x64xf32>, vector<16x64xf32> -> vector<16x64xf32>
    %c0_76 = arith.constant 0 : index
    %c0_77 = arith.constant 0 : index
    %132 = vector.load %arg15[%c0_76, %c0_77] : memref<1x64xf32, #tpu.memory_space<vmem>>, vector<1x64xf32>
    %133 = vector.broadcast %132 : vector<1x64xf32> to vector<16x64xf32>
    %134 = arith.addf %131, %133 : vector<16x64xf32>
    %cst_78 = arith.constant 0.000000e+00 : f32
    %135 = vector.broadcast %cst_78 : f32 to vector<16x64xf32>
    %136 = arith.maximumf %134, %135 : vector<16x64xf32>
    %137 = vector.extract_strided_slice %136 {offsets = [0, 0], sizes = [1, 64], strides = [1, 1]} : vector<16x64xf32> to vector<1x64xf32>
    %138 = vector.extract_strided_slice %136 {offsets = [1, 0], sizes = [1, 64], strides = [1, 1]} : vector<16x64xf32> to vector<1x64xf32>
    %139 = vector.extract_strided_slice %136 {offsets = [2, 0], sizes = [1, 64], strides = [1, 1]} : vector<16x64xf32> to vector<1x64xf32>
    %140 = vector.extract_strided_slice %136 {offsets = [3, 0], sizes = [1, 64], strides = [1, 1]} : vector<16x64xf32> to vector<1x64xf32>
    %141 = vector.extract_strided_slice %136 {offsets = [4, 0], sizes = [1, 64], strides = [1, 1]} : vector<16x64xf32> to vector<1x64xf32>
    %142 = vector.extract_strided_slice %136 {offsets = [5, 0], sizes = [1, 64], strides = [1, 1]} : vector<16x64xf32> to vector<1x64xf32>
    %143 = vector.extract_strided_slice %136 {offsets = [6, 0], sizes = [1, 64], strides = [1, 1]} : vector<16x64xf32> to vector<1x64xf32>
    %144 = vector.extract_strided_slice %136 {offsets = [7, 0], sizes = [1, 64], strides = [1, 1]} : vector<16x64xf32> to vector<1x64xf32>
    %145 = vector.extract_strided_slice %136 {offsets = [8, 0], sizes = [1, 64], strides = [1, 1]} : vector<16x64xf32> to vector<1x64xf32>
    %146 = vector.extract_strided_slice %136 {offsets = [9, 0], sizes = [1, 64], strides = [1, 1]} : vector<16x64xf32> to vector<1x64xf32>
    %147 = vector.extract_strided_slice %136 {offsets = [10, 0], sizes = [1, 64], strides = [1, 1]} : vector<16x64xf32> to vector<1x64xf32>
    %148 = vector.extract_strided_slice %136 {offsets = [11, 0], sizes = [1, 64], strides = [1, 1]} : vector<16x64xf32> to vector<1x64xf32>
    %149 = vector.extract_strided_slice %136 {offsets = [12, 0], sizes = [1, 64], strides = [1, 1]} : vector<16x64xf32> to vector<1x64xf32>
    %150 = vector.extract_strided_slice %136 {offsets = [13, 0], sizes = [1, 64], strides = [1, 1]} : vector<16x64xf32> to vector<1x64xf32>
    %151 = vector.extract_strided_slice %136 {offsets = [14, 0], sizes = [1, 64], strides = [1, 1]} : vector<16x64xf32> to vector<1x64xf32>
    %152 = vector.extract_strided_slice %136 {offsets = [15, 0], sizes = [1, 64], strides = [1, 1]} : vector<16x64xf32> to vector<1x64xf32>
    %153 = tpu.concatenate %137, %138, %139, %140, %141, %142, %143, %144, %145, %146, %147, %148, %149, %150, %151, %152 in 1 : vector<1x64xf32>, vector<1x64xf32>, vector<1x64xf32>, vector<1x64xf32>, vector<1x64xf32>, vector<1x64xf32>, vector<1x64xf32>, vector<1x64xf32>, vector<1x64xf32>, vector<1x64xf32>, vector<1x64xf32>, vector<1x64xf32>, vector<1x64xf32>, vector<1x64xf32>, vector<1x64xf32>, vector<1x64xf32> -> vector<1x1024xf32>
    %c0_79 = arith.constant 0 : index
    %c0_80 = arith.constant 0 : index
    %154 = vector.load %arg16[%c0_79, %c0_80] : memref<1024x64xf32, #tpu.memory_space<vmem>>, vector<1024x64xf32>
    %cst_81 = arith.constant dense<0.000000e+00> : vector<1x64xf32>
    %155 = tpu.matmul %153, %154, %cst_81 {dimension_numbers = #tpu.dot_dimension_numbers<[1], [0], [0], [1], [0, 0, 1, 1], [], []>} : vector<1x1024xf32>, vector<1024x64xf32>, vector<1x64xf32> -> vector<1x64xf32>
    %c0_82 = arith.constant 0 : index
    %c0_83 = arith.constant 0 : index
    %156 = vector.load %arg17[%c0_82, %c0_83] : memref<1x64xf32, #tpu.memory_space<vmem>>, vector<1x64xf32>
    %157 = arith.addf %155, %156 : vector<1x64xf32>
    %cst_84 = arith.constant 0.000000e+00 : f32
    %158 = vector.broadcast %cst_84 : f32 to vector<1x64xf32>
    %159 = arith.maximumf %157, %158 : vector<1x64xf32>
    %c0_85 = arith.constant 0 : index
    %c0_86 = arith.constant 0 : index
    %160 = vector.load %arg18[%c0_85, %c0_86] : memref<64x10xf32, #tpu.memory_space<vmem>>, vector<64x10xf32>
    %cst_87 = arith.constant dense<0.000000e+00> : vector<1x10xf32>
    %161 = tpu.matmul %159, %160, %cst_87 {dimension_numbers = #tpu.dot_dimension_numbers<[1], [0], [0], [1], [0, 0, 1, 1], [], []>} : vector<1x64xf32>, vector<64x10xf32>, vector<1x10xf32> -> vector<1x10xf32>
    %c0_88 = arith.constant 0 : index
    %c0_89 = arith.constant 0 : index
    %162 = vector.load %arg19[%c0_88, %c0_89] : memref<1x10xf32, #tpu.memory_space<vmem>>, vector<1x10xf32>
    %163 = arith.addf %161, %162 : vector<1x10xf32>
    %cst_90 = arith.constant dense<0xFF800000> : vector<1xf32>
    %164 = vector.multi_reduction <maximumf>, %163, %cst_90 [1] : vector<1x10xf32> to vector<1xf32>
    %165 = vector.shape_cast %164 : vector<1xf32> to vector<1x1xf32>
    %166 = vector.broadcast %165 : vector<1x1xf32> to vector<1x10xf32>
    %167 = arith.subf %163, %166 : vector<1x10xf32>
    %168 = math.exp %167 : vector<1x10xf32>
    %cst_91 = arith.constant dense<0.000000e+00> : vector<1xf32>
    %169 = vector.multi_reduction <add>, %168, %cst_91 [1] : vector<1x10xf32> to vector<1xf32>
    %170 = vector.shape_cast %169 : vector<1xf32> to vector<1x1xf32>
    %171 = vector.broadcast %170 : vector<1x1xf32> to vector<1x10xf32>
    %172 = arith.divf %168, %171 : vector<1x10xf32>
    %c0_92 = arith.constant 0 : index
    %c0_93 = arith.constant 0 : index
    %c0_94 = arith.constant 0 : index
    %173 = vector.load %arg20[%c0_92, %c0_93, %c0_94] : memref<1x1x10xf32, #tpu.memory_space<vmem>>, vector<1x1x10xf32>
    %174 = vector.shape_cast %173 : vector<1x1x10xf32> to vector<1x10xf32>
    %175 = vector.shape_cast %172 : vector<1x10xf32> to vector<1x1x10xf32>
    tpu.vector_store %arg20[%c0_92, %c0_93, %c0_94], %175 {strides = array<i32>} : memref<1x1x10xf32, #tpu.memory_space<vmem>>, vector<1x1x10xf32>,
    return
  }
  func.func @transform_0(%arg0: i32) -> (i32, i32, i32) {
    %c0_i32 = arith.constant 0 : i32
    %c0_i32_0 = arith.constant 0 : i32
    %c0_i32_1 = arith.constant 0 : i32
    return %arg0, %c0_i32, %c0_i32_0 : i32, i32, i32
  }
  func.func @transform_1(%arg0: i32) -> (i32, i32) {
    %c0_i32 = arith.constant 0 : i32
    %c0_i32_0 = arith.constant 0 : i32
    %c0_i32_1 = arith.constant 0 : i32
    return %c0_i32, %c0_i32_0 : i32, i32
  }
  func.func @transform_2(%arg0: i32) -> (i32, i32) {
    %c0_i32 = arith.constant 0 : i32
    %c0_i32_0 = arith.constant 0 : i32
    %c0_i32_1 = arith.constant 0 : i32
    return %c0_i32, %c0_i32_0 : i32, i32
  }
  func.func @transform_3(%arg0: i32) -> (i32, i32) {
    %c0_i32 = arith.constant 0 : i32
    %c0_i32_0 = arith.constant 0 : i32
    %c0_i32_1 = arith.constant 0 : i32
    return %c0_i32, %c0_i32_0 : i32, i32
  }
  func.func @transform_4(%arg0: i32) -> (i32, i32) {
    %c0_i32 = arith.constant 0 : i32
    %c0_i32_0 = arith.constant 0 : i32
    %c0_i32_1 = arith.constant 0 : i32
    return %c0_i32, %c0_i32_0 : i32, i32
  }
  func.func @transform_5(%arg0: i32) -> (i32, i32) {
    %c0_i32 = arith.constant 0 : i32
    %c0_i32_0 = arith.constant 0 : i32
    %c0_i32_1 = arith.constant 0 : i32
    return %c0_i32, %c0_i32_0 : i32, i32
  }
  func.func @transform_6(%arg0: i32) -> (i32, i32) {
    %c0_i32 = arith.constant 0 : i32
    %c0_i32_0 = arith.constant 0 : i32
    %c0_i32_1 = arith.constant 0 : i32
    return %c0_i32, %c0_i32_0 : i32, i32
  }
  func.func @transform_7(%arg0: i32) -> (i32, i32) {
    %c0_i32 = arith.constant 0 : i32
    %c0_i32_0 = arith.constant 0 : i32
    %c0_i32_1 = arith.constant 0 : i32
    return %c0_i32, %c0_i32_0 : i32, i32
  }
  func.func @transform_8(%arg0: i32) -> (i32, i32) {
    %c0_i32 = arith.constant 0 : i32
    %c0_i32_0 = arith.constant 0 : i32
    %c0_i32_1 = arith.constant 0 : i32
    return %c0_i32, %c0_i32_0 : i32, i32
  }
  func.func @transform_9(%arg0: i32) -> (i32, i32) {
    %c0_i32 = arith.constant 0 : i32
    %c0_i32_0 = arith.constant 0 : i32
    %c0_i32_1 = arith.constant 0 : i32
    return %c0_i32, %c0_i32_0 : i32, i32
  }
  func.func @transform_10(%arg0: i32) -> (i32, i32) {
    %c0_i32 = arith.constant 0 : i32
    %c0_i32_0 = arith.constant 0 : i32
    %c0_i32_1 = arith.constant 0 : i32
    return %c0_i32, %c0_i32_0 : i32, i32
  }
  func.func @transform_11(%arg0: i32) -> (i32, i32) {
    %c0_i32 = arith.constant 0 : i32
    %c0_i32_0 = arith.constant 0 : i32
    %c0_i32_1 = arith.constant 0 : i32
    return %c0_i32, %c0_i32_0 : i32, i32
  }
  func.func @transform_12(%arg0: i32) -> (i32, i32) {
    %c0_i32 = arith.constant 0 : i32
    %c0_i32_0 = arith.constant 0 : i32
    %c0_i32_1 = arith.constant 0 : i32
    return %c0_i32, %c0_i32_0 : i32, i32
  }
  func.func @transform_13(%arg0: i32) -> (i32, i32) {
    %c0_i32 = arith.constant 0 : i32
    %c0_i32_0 = arith.constant 0 : i32
    %c0_i32_1 = arith.constant 0 : i32
    return %c0_i32, %c0_i32_0 : i32, i32
  }
  func.func @transform_14(%arg0: i32) -> (i32, i32) {
    %c0_i32 = arith.constant 0 : i32
    %c0_i32_0 = arith.constant 0 : i32
    %c0_i32_1 = arith.constant 0 : i32
    return %c0_i32, %c0_i32_0 : i32, i32
  }
  func.func @transform_15(%arg0: i32) -> (i32, i32) {
    %c0_i32 = arith.constant 0 : i32
    %c0_i32_0 = arith.constant 0 : i32
    %c0_i32_1 = arith.constant 0 : i32
    return %c0_i32, %c0_i32_0 : i32, i32
  }
  func.func @transform_16(%arg0: i32) -> (i32, i32) {
    %c0_i32 = arith.constant 0 : i32
    %c0_i32_0 = arith.constant 0 : i32
    %c0_i32_1 = arith.constant 0 : i32
    return %c0_i32, %c0_i32_0 : i32, i32
  }
  func.func @transform_17(%arg0: i32) -> (i32, i32) {
    %c0_i32 = arith.constant 0 : i32
    %c0_i32_0 = arith.constant 0 : i32
    %c0_i32_1 = arith.constant 0 : i32
    return %c0_i32, %c0_i32_0 : i32, i32
  }
  func.func @transform_18(%arg0: i32) -> (i32, i32) {
    %c0_i32 = arith.constant 0 : i32
    %c0_i32_0 = arith.constant 0 : i32
    %c0_i32_1 = arith.constant 0 : i32
    return %c0_i32, %c0_i32_0 : i32, i32
  }
  func.func @transform_19(%arg0: i32) -> (i32, i32, i32) {
    %c0_i32 = arith.constant 0 : i32
    %c0_i32_0 = arith.constant 0 : i32
    %c0_i32_1 = arith.constant 0 : i32
    return %arg0, %c0_i32, %c0_i32_0 : i32, i32, i32
  }
}

</mosaic_0001>

<bundles_post_ra>
// kernel: hochuli_profunda.1
= control target key start
LH: loop header
LB: loop body
LE: loop exit
PB: predicated region body
PF: predicated region fallthrough
CT: control target
= control target key end

     0   :  { %s16174_s0 = inlined_call_operand.vmem [shape: f32[2,1024,27], index: 0, kind: input, shape index: {}]   ;;  %s16175_s1 = inlined_call_operand.vmem [shape: f32[1024,256], index: 1, kind: input, shape index: {}]   ;;  %s16176_s2 = inlined_call_operand.vmem [shape: f32[256,64], index: 2, kind: input, shape index: {}]   ;;  %s16177_s3 = inlined_call_operand.vmem [shape: f32[27,32], index: 3, kind: input, shape index: {}]   ;;  %s16178_s4 = inlined_call_operand.vmem [shape: f32[1,32], index: 4, kind: input, shape index: {}]   ;;  %s16179_s5 = inlined_call_operand.vmem [shape: f32[128,32], index: 5, kind: input, shape index: {}]   ;;  %s16180_s6 = inlined_call_operand.vmem [shape: f32[1,32], index: 6, kind: input, shape index: {}]   ;;  %s16181_s7 = inlined_call_operand.vmem [shape: f32[288,64], index: 7, kind: input, shape index: {}]   ;;  %s16182_s8 = inlined_call_operand.vmem [shape: f32[1,64], index: 8, kind: input, shape index: {}]   ;;  %s16183_s9 = inlined_call_operand.vmem [shape: f32[256,64], index: 9, kind: input, shape index: {}]   ;;  %s16184_s10 = inlined_call_operand.vmem [shape: f32[1,64], index: 10, kind: input, shape index: {}]   ;;  %s16185_s11 = inlined_call_operand.vmem [shape: f32[576,64], index: 11, kind: input, shape index: {}]   ;;  %s16186_s12 = inlined_call_operand.vmem [shape: f32[1,64], index: 12, kind: input, shape index: {}]   ;;  %s16187_s13 = inlined_call_operand.vmem [shape: f32[256,64], index: 13, kind: input, shape index: {}]   ;;  %s16188_s14 = inlined_call_operand.vmem [shape: f32[1,64], index: 14, kind: input, shape index: {}]   ;;  %s16189_s15 = inlined_call_operand.vmem [shape: f32[1024,64], index: 15, kind: input, shape index: {}]   ;;  %s16190_s16 = inlined_call_operand.vmem [shape: f32[1,64], index: 16, kind: input, shape index: {}]   ;;  %s16191_s17 = inlined_call_operand.vmem [shape: f32[64,10], index: 17, kind: input, shape index: {}]   ;;  %s16192_s18 = inlined_call_operand.vmem [shape: f32[1,10], index: 18, kind: input, shape index: {}]   ;;  %s16193_s19 = inlined_call_operand.hbm [shape: f32[2,1,10], index: 19, kind: output, shape index: {}]  }
   0x1   :  { %16415 = sst [smem:[#allocation86_spill]] %s16174_s0 }
   0x2   :  { %16416 = sst [smem:[#allocation87_spill]] %s16175_s1 }
   0x3   :  { %16417 = sst [smem:[#allocation88_spill]] %s16176_s2 }
   0x4   :  { %16418 = sst [smem:[#allocation89_spill]] %s16177_s3 }
   0x5   :  { %16419 = sst [smem:[#allocation90_spill]] %s16178_s4 }
   0x6   :  { %16420 = sst [smem:[#allocation91_spill]] %s16179_s5 }
   0x7   :  { %16421 = sst [smem:[#allocation92_spill]] %s16180_s6 }
   0x8   :  { %16422 = sst [smem:[#allocation93_spill]] %s16181_s7 }
   0x9   :  { %24 = vsyncpa [#allocation3], 0 }
   0xa   :  { %26 = vsyncpa [#allocation3 + $0x1], 0  ;;  %s10859_s0 = smov 0   ;;  %s10861_s30 = smov 0  }
   0xb   :  { %s10863_s20 = smov 0   ;;  %s10865_s21 = smov 0  }
   0xc LB: > { %16423 = sst [smem:[#allocation5_spill]] %s10739_s0  ;;  %s10880_s1 = sadd.s32 4294967295, %s10751_s21   ;;  %s10751_s21 = sphi %s10865_s21, %s16818_s21   ;;  %s10747_s20 = sphi %s10863_s20, %s16820_s20   ;;  %s10743_s30 = sphi %s10861_s30, %s16822_s30   ;;  %s10739_s0 = sphi %s10859_s0, %s16821_s0  }
   0xd   : > { %16424 = sst [smem:[#allocation6_spill]] %s10747_s20  ;;  %s7973_s22 = sadd.s32 4294967294, %s10751_s21  }
   0xe   : > { %s10884_s2 = sadd.s32 1, %s10751_s21   ;;  %s443_s23 = sadd.s32 1, %s10747_s20 }
   0xf   : > { %16425 = sst [smem:[#allocation7_spill]] %s10884_s2  ;;  %s440_s24 = ssub.s32 %s10751_s21, %s10884_s2 }
  0x10   : > { %p453_p0 = scmp.ne.s32.totalorder %s10747_s20, %s10743_s30  ;;  %p441_p1 = scmp.eq.s32.totalorder %s440_s24, 0 }
  0x11   : > { %p454_p2 = scmp.eq.s32.totalorder %s10880_s1, 1  ;;  %p459_p3 = scmp.ne.s32.totalorder %s10743_s30, %s10739_s0 }
  0x12   : > { %p460_p4 = scmp.eq.s32.totalorder %s7973_s22, 1  ;;  %p7976_p7 = scmp.ge.s32.totalorder %s10751_s21, 1 }
  0x13   : > { %s10895_s25 = scalar_select %p441_p1, %s10747_s20, %s443_s23  }
  0x14   : > { %p10897_p5 = por %p454_p2, %p453_p0  ;;  %p10901_p6 = por %p460_p4, %p459_p3 }
  0x15   : > { %16426 = sst [smem:[#allocation8_spill]] %s10895_s25  ;;  %p540_p8 = scmp.lt.s32.totalorder %s10751_s21, 3 }
  0x16   : > { %s16428_s26 = scalar_select %p10901_p6, 1, 0 }
  0x17   : > { %p541_p9 = pnand %p7976_p7, %p540_p8 }
  0x18   : > { %16429 = sst [smem:[#allocation9_spill]] %s16428_s26 }
  0x19   : > { %544 = sbr.rel (%p541_p9) target bundleno = 4133 (0x1025), region = 96 }
  0x1e   : > { %s16430_s29 = sld [smem:[#allocation89_spill]]  ;;  %vm1124_vm0 = vcmask 1042432   ;;  %p595_p10 = scmp.lt.s32.totalorder %s10880_s1, 1  ;;  %vm739_vm1 = vcmask 220160   ;;  %vm2345_vm2 = vcmask 261120   ;;  %vm2378_vm3 = vcmask 523264  }
  0x1f   : > { %s16431_s23 = sld [smem:[#allocation86_spill]]  ;;  %s16204_s25 = smov 64   ;;  %vm2411_vm4 = vcmask 785408   ;;  %vm10757_vm5 = vmmov 0   ;;  %vm7892_vm6 = vcmask 73728  }
  0x20   : > { %s596_s20 = scalar_select %p595_p10, %s10880_s1, 1 }
  0x21   : > { %s16445_s4 = sld [smem:[#allocation90_spill]]  ;;  %s16202_s26 = smov 96  }
  0x22   : > { %s8190_s28 = sshll.u32 %s596_s20, 10  ;;  %s16446_s5 = sld [smem:[#allocation91_spill]] }
  0x23   : > { %s16461_s6 = sld [smem:[#allocation92_spill]]  ;;  %s16502_s27 = smov 96  }
  0x24   : > { %v731_v0 = vld [vmem:[%s16430_s29 + $0x18] sm:$0x7]  ;;  %v730_v1 = vld [vmem:[%s16430_s29 + $0x10] sm:$0xff]  ;;  %v729_v2 = vld [vmem:[%s16430_s29 + $0x8] sm:$0xff]  ;;  %s16474_s7 = sld [smem:[#allocation93_spill]]  ;;  %s593_s2 = sand.u32 1, %s10743_s30  }
  0x25   : > { %9270 = vmatprep.subr.msk.mxu0 %vm1124_vm0, %v731_v0  ;;  %v728_v3 = vld [vmem:[%s16430_s29] sm:$0xff]  ;;  %s10924_s0 = scalar_lea.vmem %s16431_s23, %s8190_s28  ;;  %s16460_s23 = sld [smem:[#allocation87_spill]] }
  0x26   : > { %9271 = vmatpush3.msk.msra.mxu0 %vm1124_vm0, %v731_v0  ;;  %v600_v4 = vld [vmem:[%s10924_s0] sm:$0xff]  ;;  %v601_v5 = vld [vmem:[%s10924_s0 + $0x8] sm:$0xff]  ;;  %v602_v6 = vld [vmem:[%s10924_s0 + $0x10] sm:$0xff]  ;;  %s16496_s28 = smov 64   ;;  %s10758_s20 = smov [#allocation2]  }
  0x27   : > { %9272 = vmatprep.subr.mxu0 %v730_v1  ;;  %9278 = vmatprep.mubr.msk.f32.mxu0 %vm739_vm1, %v600_v4  ;;  %v603_v7 = vld [vmem:[%s10924_s0 + $0x18] sm:$0xff]  ;;  %v604_v8 = vld [vmem:[%s10924_s0 + $0x20] sm:$0xff]  ;;  %v605_v9 = vld [vmem:[%s10924_s0 + $0x28] sm:$0xff] }
  0x28   : > { %9273 = vmatpush3.msra.mxu0 %v730_v1  ;;  %v606_v10 = vld [vmem:[%s10924_s0 + $0x30] sm:$0xff]  ;;  %v607_v11 = vld [vmem:[%s10924_s0 + $0x38] sm:$0xff]  ;;  %v608_v12 = vld [vmem:[%s10924_s0 + $0x40] sm:$0xff] }
  0x29   : > { %9274 = vmatprep.subr.mxu0 %v729_v2  ;;  %v609_v13 = vld [vmem:[%s10924_s0 + $0x48] sm:$0xff]  ;;  %v610_v14 = vld [vmem:[%s10924_s0 + $0x50] sm:$0xff]  ;;  %v611_v15 = vld [vmem:[%s10924_s0 + $0x58] sm:$0xff] }
  0x2a   : > { %9275 = vmatpush3.msra.mxu0 %v729_v2  ;;  %v612_v16 = vld [vmem:[%s10924_s0 + $0x60] sm:$0xff]  ;;  %v613_v17 = vld [vmem:[%s10924_s0 + $0x68] sm:$0xff]  ;;  %v614_v18 = vld [vmem:[%s10924_s0 + $0x70] sm:$0xff] }
  0x2b   : > { %9276 = vmatprep.subr.mxu0 %v728_v3  ;;  %v615_v19 = vld [vmem:[%s10924_s0 + $0x78] sm:$0xff]  ;;  %v616_v20 = vld [vmem:[%s10924_s0 + $0x80] sm:$0xff]  ;;  %v617_v21 = vld [vmem:[%s10924_s0 + $0x88] sm:$0xff] }
  0x2c   : > { %9277 = vmatpush3.msra.mxu0 %v728_v3  ;;  %v618_v22 = vld [vmem:[%s10924_s0 + $0x90] sm:$0xff]  ;;  %v619_v23 = vld [vmem:[%s10924_s0 + $0x98] sm:$0xff]  ;;  %v620_v24 = vld [vmem:[%s10924_s0 + $0xa0] sm:$0xff] }
  0x2d   : > { %9279 = vmatmul.mubr.msk.f32.vlgmr.msra.gmra.mxu0 %vm739_vm1, %v601_v5  ;;  %v621_v25 = vld [vmem:[%s10924_s0 + $0xa8] sm:$0xff]  ;;  %v622_v26 = vld [vmem:[%s10924_s0 + $0xb0] sm:$0xff]  ;;  %v623_v27 = vld [vmem:[%s10924_s0 + $0xb8] sm:$0xff] }
  0x2e   : > { %9281 = vmatprep.mubr.msk.f32.mxu0 %vm739_vm1, %v602_v6  ;;  %v624_v28 = vld [vmem:[%s10924_s0 + $0xc0] sm:$0xff]  ;;  %v625_v29 = vld [vmem:[%s10924_s0 + $0xc8] sm:$0xff]  ;;  %v626_v30 = vld [vmem:[%s10924_s0 + $0xd0] sm:$0xff] }
  0x2f   : > { %v627_v31 = vld [vmem:[%s10924_s0 + $0xd8] sm:$0xff]  ;;  %v628_v32 = vld [vmem:[%s10924_s0 + $0xe0] sm:$0xff]  ;;  %v629_v33 = vld [vmem:[%s10924_s0 + $0xe8] sm:$0xff] }
  0x30   : > { %v630_v34 = vld [vmem:[%s10924_s0 + $0xf0] sm:$0xff]  ;;  %v631_v35 = vld [vmem:[%s10924_s0 + $0xf8] sm:$0xff]  ;;  %v632_v36 = vld [vmem:[%s10924_s0 + $0x100] sm:$0xff] }
  0x31   : > { %9282 = vmatmul.mubr.msk.f32.gmra.mxu0 %vm739_vm1, %v603_v7  ;;  %v633_v37 = vld [vmem:[%s10924_s0 + $0x108] sm:$0xff]  ;;  %v634_v38 = vld [vmem:[%s10924_s0 + $0x110] sm:$0xff]  ;;  %v635_v39 = vld [vmem:[%s10924_s0 + $0x118] sm:$0xff] }
  0x32   : > { %9284 = vmatprep.mubr.msk.f32.mxu0 %vm739_vm1, %v604_v8  ;;  %v636_v40 = vld [vmem:[%s10924_s0 + $0x120] sm:$0xff]  ;;  %v637_v41 = vld [vmem:[%s10924_s0 + $0x128] sm:$0xff]  ;;  %v638_v42 = vld [vmem:[%s10924_s0 + $0x130] sm:$0xff] }
  0x33   : > { %v639_v43 = vld [vmem:[%s10924_s0 + $0x138] sm:$0xff]  ;;  %v640_v44 = vld [vmem:[%s10924_s0 + $0x140] sm:$0xff]  ;;  %v641_v45 = vld [vmem:[%s10924_s0 + $0x148] sm:$0xff] }
  0x34   : > { %v642_v46 = vld [vmem:[%s10924_s0 + $0x150] sm:$0xff]  ;;  %v643_v47 = vld [vmem:[%s10924_s0 + $0x158] sm:$0xff]  ;;  %v644_v48 = vld [vmem:[%s10924_s0 + $0x160] sm:$0xff] }
  0x35   : > { %9285 = vmatmul.mubr.msk.f32.gmra.mxu0 %vm739_vm1, %v605_v9  ;;  %v645_v49 = vld [vmem:[%s10924_s0 + $0x168] sm:$0xff]  ;;  %v646_v50 = vld [vmem:[%s10924_s0 + $0x170] sm:$0xff]  ;;  %v647_v51 = vld [vmem:[%s10924_s0 + $0x178] sm:$0xff] }
  0x36   : > { %9287 = vmatprep.mubr.msk.f32.mxu0 %vm739_vm1, %v606_v10  ;;  %v648_v52 = vld [vmem:[%s10924_s0 + $0x180] sm:$0xff]  ;;  %v649_v53 = vld [vmem:[%s10924_s0 + $0x188] sm:$0xff]  ;;  %v650_v54 = vld [vmem:[%s10924_s0 + $0x190] sm:$0xff] }
  0x37   : > { %v651_v55 = vld [vmem:[%s10924_s0 + $0x198] sm:$0xff]  ;;  %v652_v56 = vld [vmem:[%s10924_s0 + $0x1a0] sm:$0xff]  ;;  %v653_v57 = vld [vmem:[%s10924_s0 + $0x1a8] sm:$0xff] }
  0x38   : > { %v654_v58 = vld [vmem:[%s10924_s0 + $0x1b0] sm:$0xff]  ;;  %v655_v59 = vld [vmem:[%s10924_s0 + $0x1b8] sm:$0xff]  ;;  %v656_v60 = vld [vmem:[%s10924_s0 + $0x1c0] sm:$0xff] }
  0x39   : > { %9288 = vmatmul.mubr.msk.f32.gmra.mxu0 %vm739_vm1, %v607_v11  ;;  %v657_v61 = vld [vmem:[%s10924_s0 + $0x1c8] sm:$0xff]  ;;  %v658_v62 = vld [vmem:[%s10924_s0 + $0x1d0] sm:$0xff]  ;;  %v659_v63 = vld [vmem:[%s10924_s0 + $0x1d8] sm:$0xff] }
  0x3a   : > { %9290 = vmatprep.mubr.msk.f32.mxu0 %vm739_vm1, %v608_v12  ;;  %v660_v0 = vld [vmem:[%s10924_s0 + $0x1e0] sm:$0xff]  ;;  %v661_v1 = vld [vmem:[%s10924_s0 + $0x1e8] sm:$0xff]  ;;  %v662_v2 = vld [vmem:[%s10924_s0 + $0x1f0] sm:$0xff] }
  0x3b   : > { %v663_v3 = vld [vmem:[%s10924_s0 + $0x1f8] sm:$0xff]  ;;  %v664_v4 = vld [vmem:[%s10924_s0 + $0x200] sm:$0xff]  ;;  %v665_v5 = vld [vmem:[%s10924_s0 + $0x208] sm:$0xff] }
  0x3c   : > { %v666_v6 = vld [vmem:[%s10924_s0 + $0x210] sm:$0xff]  ;;  %v667_v7 = vld [vmem:[%s10924_s0 + $0x218] sm:$0xff]  ;;  %v668_v8 = vld [vmem:[%s10924_s0 + $0x220] sm:$0xff] }
  0x3d   : > { %9291 = vmatmul.mubr.msk.f32.gmra.mxu0 %vm739_vm1, %v609_v13  ;;  %v669_v9 = vld [vmem:[%s10924_s0 + $0x228] sm:$0xff]  ;;  %v670_v10 = vld [vmem:[%s10924_s0 + $0x230] sm:$0xff]  ;;  %v671_v11 = vld [vmem:[%s10924_s0 + $0x238] sm:$0xff] }
  0x3e   : > { %9293 = vmatprep.mubr.msk.f32.mxu0 %vm739_vm1, %v610_v14  ;;  %v672_v12 = vld [vmem:[%s10924_s0 + $0x240] sm:$0xff]  ;;  %v673_v13 = vld [vmem:[%s10924_s0 + $0x248] sm:$0xff]  ;;  %v674_v14 = vld [vmem:[%s10924_s0 + $0x250] sm:$0xff] }
  0x41   : > { %9294 = vmatmul.mubr.msk.f32.gmra.mxu0 %vm739_vm1, %v611_v15  ;;  %v675_v15 = vld [vmem:[%s10924_s0 + $0x258] sm:$0xff] }
  0x42   : > { %9296 = vmatprep.mubr.msk.f32.mxu0 %vm739_vm1, %v612_v16  ;;  %v676_v16 = vld [vmem:[%s10924_s0 + $0x260] sm:$0xff] }
  0x45   : > { %9297 = vmatmul.mubr.msk.f32.gmra.mxu0 %vm739_vm1, %v613_v17  ;;  %v677_v17 = vld [vmem:[%s10924_s0 + $0x268] sm:$0xff] }
  0x46   : > { %9299 = vmatprep.mubr.msk.f32.mxu0 %vm739_vm1, %v614_v18  ;;  %v678_v18 = vld [vmem:[%s10924_s0 + $0x270] sm:$0xff] }
  0x49   : > { %9300 = vmatmul.mubr.msk.f32.gmra.mxu0 %vm739_vm1, %v615_v19  ;;  %v679_v19 = vld [vmem:[%s10924_s0 + $0x278] sm:$0xff] }
  0x4a   : > { %9302 = vmatprep.mubr.msk.f32.mxu0 %vm739_vm1, %v616_v20  ;;  %v680_v20 = vld [vmem:[%s10924_s0 + $0x280] sm:$0xff] }
  0x4d   : > { %9303 = vmatmul.mubr.msk.f32.gmra.mxu0 %vm739_vm1, %v617_v21  ;;  %v681_v21 = vld [vmem:[%s10924_s0 + $0x288] sm:$0xff] }
  0x4e   : > { %9305 = vmatprep.mubr.msk.f32.mxu0 %vm739_vm1, %v618_v22  ;;  %v682_v22 = vld [vmem:[%s10924_s0 + $0x290] sm:$0xff] }
  0x51   : > { %9306 = vmatmul.mubr.msk.f32.gmra.mxu0 %vm739_vm1, %v619_v23  ;;  %v683_v23 = vld [vmem:[%s10924_s0 + $0x298] sm:$0xff] }
  0x52   : > { %9308 = vmatprep.mubr.msk.f32.mxu0 %vm739_vm1, %v620_v24  ;;  %v684_v24 = vld [vmem:[%s10924_s0 + $0x2a0] sm:$0xff] }
  0x55   : > { %9309 = vmatmul.mubr.msk.f32.gmra.mxu0 %vm739_vm1, %v621_v25  ;;  %v685_v25 = vld [vmem:[%s10924_s0 + $0x2a8] sm:$0xff] }
  0x56   : > { %9311 = vmatprep.mubr.msk.f32.mxu0 %vm739_vm1, %v622_v26  ;;  %v686_v26 = vld [vmem:[%s10924_s0 + $0x2b0] sm:$0xff] }
  0x59   : > { %9312 = vmatmul.mubr.msk.f32.gmra.mxu0 %vm739_vm1, %v623_v27  ;;  %v687_v27 = vld [vmem:[%s10924_s0 + $0x2b8] sm:$0xff] }
  0x5a   : > { %9314 = vmatprep.mubr.msk.f32.mxu0 %vm739_vm1, %v624_v28  ;;  %v688_v28 = vld [vmem:[%s10924_s0 + $0x2c0] sm:$0xff] }
  0x5d   : > { %9315 = vmatmul.mubr.msk.f32.gmra.mxu0 %vm739_vm1, %v625_v29  ;;  %v689_v29 = vld [vmem:[%s10924_s0 + $0x2c8] sm:$0xff] }
  0x5e   : > { %9317 = vmatprep.mubr.msk.f32.mxu0 %vm739_vm1, %v626_v30  ;;  %v690_v30 = vld [vmem:[%s10924_s0 + $0x2d0] sm:$0xff] }
  0x61   : > { %9318 = vmatmul.mubr.msk.f32.gmra.mxu0 %vm739_vm1, %v627_v31  ;;  %v691_v31 = vld [vmem:[%s10924_s0 + $0x2d8] sm:$0xff] }
  0x62   : > { %9320 = vmatprep.mubr.msk.f32.mxu0 %vm739_vm1, %v628_v32  ;;  %v692_v32 = vld [vmem:[%s10924_s0 + $0x2e0] sm:$0xff] }
  0x65   : > { %9321 = vmatmul.mubr.msk.f32.gmra.mxu0 %vm739_vm1, %v629_v33  ;;  %v693_v33 = vld [vmem:[%s10924_s0 + $0x2e8] sm:$0xff] }
  0x66   : > { %9323 = vmatprep.mubr.msk.f32.mxu0 %vm739_vm1, %v630_v34  ;;  %v694_v34 = vld [vmem:[%s10924_s0 + $0x2f0] sm:$0xff] }
  0x69   : > { %9324 = vmatmul.mubr.msk.f32.gmra.mxu0 %vm739_vm1, %v631_v35  ;;  %v695_v35 = vld [vmem:[%s10924_s0 + $0x2f8] sm:$0xff] }
  0x6a   : > { %9326 = vmatprep.mubr.msk.f32.mxu0 %vm739_vm1, %v632_v36  ;;  %v696_v36 = vld [vmem:[%s10924_s0 + $0x300] sm:$0xff] }
  0x6d   : > { %9327 = vmatmul.mubr.msk.f32.gmra.mxu0 %vm739_vm1, %v633_v37  ;;  %v697_v37 = vld [vmem:[%s10924_s0 + $0x308] sm:$0xff] }
  0x6e   : > { %9329 = vmatprep.mubr.msk.f32.mxu0 %vm739_vm1, %v634_v38  ;;  %v698_v38 = vld [vmem:[%s10924_s0 + $0x310] sm:$0xff] }
  0x71   : > { %9330 = vmatmul.mubr.msk.f32.gmra.mxu0 %vm739_vm1, %v635_v39 }
  0x72   : > { %9332 = vmatprep.mubr.msk.f32.mxu0 %vm739_vm1, %v636_v40  ;;  %v699_v40 = vld [vmem:[%s10924_s0 + $0x318] sm:$0xff] }
  0x75   : > { %9333 = vmatmul.mubr.msk.f32.gmra.mxu0 %vm739_vm1, %v637_v41 }
  0x76   : > { %9335 = vmatprep.mubr.msk.f32.mxu0 %vm739_vm1, %v638_v42  ;;  %v700_v42 = vld [vmem:[%s10924_s0 + $0x320] sm:$0xff] }
  0x79   : > { %9336 = vmatmul.mubr.msk.f32.gmra.mxu0 %vm739_vm1, %v639_v43 }
  0x7a   : > { %9338 = vmatprep.mubr.msk.f32.mxu0 %vm739_vm1, %v640_v44  ;;  %v701_v44 = vld [vmem:[%s10924_s0 + $0x328] sm:$0xff] }
  0x7d   : > { %9339 = vmatmul.mubr.msk.f32.gmra.mxu0 %vm739_vm1, %v641_v45 }
  0x7e   : > { %9341 = vmatprep.mubr.msk.f32.mxu0 %vm739_vm1, %v642_v46  ;;  %v702_v46 = vld [vmem:[%s10924_s0 + $0x330] sm:$0xff] }
  0x81   : > { %9342 = vmatmul.mubr.msk.f32.gmra.mxu0 %vm739_vm1, %v643_v47 }
  0x82   : > { %9344 = vmatprep.mubr.msk.f32.mxu0 %vm739_vm1, %v644_v48  ;;  %v703_v48 = vld [vmem:[%s10924_s0 + $0x338] sm:$0xff] }
  0x85   : > { %9345 = vmatmul.mubr.msk.f32.gmra.mxu0 %vm739_vm1, %v645_v49 }
  0x86   : > { %9347 = vmatprep.mubr.msk.f32.mxu0 %vm739_vm1, %v646_v50  ;;  %v704_v50 = vld [vmem:[%s10924_s0 + $0x340] sm:$0xff] }
  0x89   : > { %9348 = vmatmul.mubr.msk.f32.gmra.mxu0 %vm739_vm1, %v647_v51 }
  0x8a   : > { %9350 = vmatprep.mubr.msk.f32.mxu0 %vm739_vm1, %v648_v52  ;;  %v705_v52 = vld [vmem:[%s10924_s0 + $0x348] sm:$0xff] }
  0x8d   : > { %9351 = vmatmul.mubr.msk.f32.gmra.mxu0 %vm739_vm1, %v649_v53 }
  0x8e   : > { %9353 = vmatprep.mubr.msk.f32.mxu0 %vm739_vm1, %v650_v54  ;;  %v706_v54 = vld [vmem:[%s10924_s0 + $0x350] sm:$0xff] }
  0x91   : > { %9354 = vmatmul.mubr.msk.f32.gmra.mxu0 %vm739_vm1, %v651_v55 }
  0x92   : > { %9356 = vmatprep.mubr.msk.f32.mxu0 %vm739_vm1, %v652_v56  ;;  %v707_v56 = vld [vmem:[%s10924_s0 + $0x358] sm:$0xff] }
  0x95   : > { %9357 = vmatmul.mubr.msk.f32.gmra.mxu0 %vm739_vm1, %v653_v57 }
  0x96   : > { %9359 = vmatprep.mubr.msk.f32.mxu0 %vm739_vm1, %v654_v58  ;;  %v708_v58 = vld [vmem:[%s10924_s0 + $0x360] sm:$0xff] }
  0x99   : > { %9360 = vmatmul.mubr.msk.f32.gmra.mxu0 %vm739_vm1, %v655_v59 }
  0x9a   : > { %9362 = vmatprep.mubr.msk.f32.mxu0 %vm739_vm1, %v656_v60  ;;  %v709_v60 = vld [vmem:[%s10924_s0 + $0x368] sm:$0xff] }
  0x9d   : > { %9363 = vmatmul.mubr.msk.f32.gmra.mxu0 %vm739_vm1, %v657_v61 }
  0x9e   : > { %9365 = vmatprep.mubr.msk.f32.mxu0 %vm739_vm1, %v658_v62  ;;  %v710_v62 = vld [vmem:[%s10924_s0 + $0x370] sm:$0xff] }
  0xa1   : > { %9366 = vmatmul.mubr.msk.f32.gmra.mxu0 %vm739_vm1, %v659_v63 }
  0xa2   : > { %9368 = vmatprep.mubr.msk.f32.mxu0 %vm739_vm1, %v660_v0  ;;  %v711_v0 = vld [vmem:[%s10924_s0 + $0x378] sm:$0xff] }
  0xa5   : > { %9369 = vmatmul.mubr.msk.f32.gmra.mxu0 %vm739_vm1, %v661_v1 }
  0xa6   : > { %9371 = vmatprep.mubr.msk.f32.mxu0 %vm739_vm1, %v662_v2  ;;  %v712_v2 = vld [vmem:[%s10924_s0 + $0x380] sm:$0xff] }
  0xa9   : > { %9372 = vmatmul.mubr.msk.f32.gmra.mxu0 %vm739_vm1, %v663_v3 }
  0xaa   : > { %9374 = vmatprep.mubr.msk.f32.mxu0 %vm739_vm1, %v664_v4  ;;  %v713_v4 = vld [vmem:[%s10924_s0 + $0x388] sm:$0xff] }
  0xad   : > { %9375 = vmatmul.mubr.msk.f32.gmra.mxu0 %vm739_vm1, %v665_v5 }
  0xae   : > { %9377 = vmatprep.mubr.msk.f32.mxu0 %vm739_vm1, %v666_v6  ;;  %v714_v6 = vld [vmem:[%s10924_s0 + $0x390] sm:$0xff] }
  0xb1   : > { %9378 = vmatmul.mubr.msk.f32.gmra.mxu0 %vm739_vm1, %v667_v7 }
  0xb2   : > { %9380 = vmatprep.mubr.msk.f32.mxu0 %vm739_vm1, %v668_v8  ;;  %v715_v8 = vld [vmem:[%s10924_s0 + $0x398] sm:$0xff] }
  0xb5   : > { %9381 = vmatmul.mubr.msk.f32.gmra.mxu0 %vm739_vm1, %v669_v9 }
  0xb6   : > { %9383 = vmatprep.mubr.msk.f32.mxu0 %vm739_vm1, %v670_v10  ;;  %v716_v10 = vld [vmem:[%s10924_s0 + $0x3a0] sm:$0xff] }
  0xb9   : > { %9384 = vmatmul.mubr.msk.f32.gmra.mxu0 %vm739_vm1, %v671_v11 }
  0xba   : > { %9386 = vmatprep.mubr.msk.f32.mxu0 %vm739_vm1, %v672_v12  ;;  %v717_v12 = vld [vmem:[%s10924_s0 + $0x3a8] sm:$0xff] }
  0xbd   : > { %9387 = vmatmul.mubr.msk.f32.gmra.mxu0 %vm739_vm1, %v673_v13 }
  0xbe   : > { %9389 = vmatprep.mubr.msk.f32.mxu0 %vm739_vm1, %v674_v14  ;;  %v718_v14 = vld [vmem:[%s10924_s0 + $0x3b0] sm:$0xff] }
  0xc1   : > { %9390 = vmatmul.mubr.msk.f32.gmra.mxu0 %vm739_vm1, %v675_v15 }
  0xc2   : > { %9392 = vmatprep.mubr.msk.f32.mxu0 %vm739_vm1, %v676_v16  ;;  %v719_v16 = vld [vmem:[%s10924_s0 + $0x3b8] sm:$0xff] }
  0xc5   : > { %9393 = vmatmul.mubr.msk.f32.gmra.mxu0 %vm739_vm1, %v677_v17 }
  0xc6   : > { %9395 = vmatprep.mubr.msk.f32.mxu0 %vm739_vm1, %v678_v18  ;;  %v720_v18 = vld [vmem:[%s10924_s0 + $0x3c0] sm:$0xff] }
  0xc9   : > { %9396 = vmatmul.mubr.msk.f32.gmra.mxu0 %vm739_vm1, %v679_v19 }
  0xca   : > { %9398 = vmatprep.mubr.msk.f32.mxu0 %vm739_vm1, %v680_v20  ;;  %v721_v20 = vld [vmem:[%s10924_s0 + $0x3c8] sm:$0xff] }
  0xcd   : > { %9399 = vmatmul.mubr.msk.f32.gmra.mxu0 %vm739_vm1, %v681_v21 }
  0xce   : > { %9401 = vmatprep.mubr.msk.f32.mxu0 %vm739_vm1, %v682_v22  ;;  %v722_v22 = vld [vmem:[%s10924_s0 + $0x3d0] sm:$0xff] }
  0xd1   : > { %9402 = vmatmul.mubr.msk.f32.gmra.mxu0 %vm739_vm1, %v683_v23 }
  0xd2   : > { %9404 = vmatprep.mubr.msk.f32.mxu0 %vm739_vm1, %v684_v24  ;;  %v723_v24 = vld [vmem:[%s10924_s0 + $0x3d8] sm:$0xff] }
  0xd5   : > { %9405 = vmatmul.mubr.msk.f32.gmra.mxu0 %vm739_vm1, %v685_v25 }
  0xd6   : > { %9407 = vmatprep.mubr.msk.f32.mxu0 %vm739_vm1, %v686_v26  ;;  %v724_v26 = vld [vmem:[%s10924_s0 + $0x3e0] sm:$0xff] }
  0xd9   : > { %9408 = vmatmul.mubr.msk.f32.gmra.mxu0 %vm739_vm1, %v687_v27 }
  0xda   : > { %9410 = vmatprep.mubr.msk.f32.mxu0 %vm739_vm1, %v688_v28  ;;  %v725_v28 = vld [vmem:[%s10924_s0 + $0x3e8] sm:$0xff] }
  0xdd   : > { %9411 = vmatmul.mubr.msk.f32.gmra.mxu0 %vm739_vm1, %v689_v29 }
  0xde   : > { %9413 = vmatprep.mubr.msk.f32.mxu0 %vm739_vm1, %v690_v30  ;;  %v726_v30 = vld [vmem:[%s10924_s0 + $0x3f0] sm:$0xff] }
  0xe1   : > { %9414 = vmatmul.mubr.msk.f32.gmra.mxu0 %vm739_vm1, %v691_v31 }
  0xe2   : > { %9416 = vmatprep.mubr.msk.f32.mxu0 %vm739_vm1, %v692_v32  ;;  %v727_v32 = vld [vmem:[%s10924_s0 + $0x3f8] sm:$0xff]  ;;  %s16206_s0 = smov 32  }
  0xe5   : > { %9417 = vmatmul.mubr.msk.f32.gmra.mxu0 %vm739_vm1, %v693_v33 }
  0xe6   : > { %9419 = vmatprep.mubr.msk.f32.mxu0 %vm739_vm1, %v694_v34 }
  0xe9   : > { %9420 = vmatmul.mubr.msk.f32.gmra.mxu0 %vm739_vm1, %v695_v35 }
  0xea   : > { %9422 = vmatprep.mubr.msk.f32.mxu0 %vm739_vm1, %v696_v36  ;;  %v11249_v36 = vld [vmem:[%s16445_s4] ss:$0 sm:$0xff] }
  0xed   : > { %v11122_v39 = vpop.f32.mrf.mxu0  ;;  %9423 = vmatmul.mubr.msk.f32.gmra.mxu0 %vm739_vm1, %v697_v37 }
  0xee   : > { %9425 = vmatprep.mubr.msk.f32.mxu0 %vm739_vm1, %v698_v38 }
  0xef   : > { %v11127_v41 = vpop.f32.mrf.mxu0 }
  0xf1   : > { %v11130_v43 = vpop.f32.mrf.mxu0  ;;  %9426 = vmatmul.mubr.msk.f32.gmra.mxu0 %vm739_vm1, %v699_v40 }
  0xf2   : > { %9428 = vmatprep.mubr.msk.f32.mxu0 %vm739_vm1, %v700_v42 }
  0xf3   : > { %v11135_v45 = vpop.f32.mrf.mxu0 }
  0xf5   : > { %v11138_v47 = vpop.f32.mrf.mxu0  ;;  %9429 = vmatmul.mubr.msk.f32.gmra.mxu0 %vm739_vm1, %v701_v44 }
  0xf6   : > { %9431 = vmatprep.mubr.msk.f32.mxu0 %vm739_vm1, %v702_v46 }
  0xf7   : > { %v11143_v49 = vpop.f32.mrf.mxu0 }
  0xf9   : > { %v11146_v51 = vpop.f32.mrf.mxu0  ;;  %9432 = vmatmul.mubr.msk.f32.gmra.mxu0 %vm739_vm1, %v703_v48 }
  0xfa   : > { %9434 = vmatprep.mubr.msk.f32.mxu0 %vm739_vm1, %v704_v50 }
  0xfb   : > { %v11151_v53 = vpop.f32.mrf.mxu0 }
  0xfd   : > { %v11154_v55 = vpop.f32.mrf.mxu0  ;;  %9435 = vmatmul.mubr.msk.f32.gmra.mxu0 %vm739_vm1, %v705_v52 }
  0xfe   : > { %9437 = vmatprep.mubr.msk.f32.mxu0 %vm739_vm1, %v706_v54 }
  0xff   : > { %v11159_v57 = vpop.f32.mrf.mxu0 }
 0x101   : > { %v11162_v59 = vpop.f32.mrf.mxu0  ;;  %9438 = vmatmul.mubr.msk.f32.gmra.mxu0 %vm739_vm1, %v707_v56 }
 0x102   : > { %9440 = vmatprep.mubr.msk.f32.mxu0 %vm739_vm1, %v708_v58 }
 0x103   : > { %v11167_v61 = vpop.f32.mrf.mxu0 }
 0x105   : > { %v11170_v63 = vpop.f32.mrf.mxu0  ;;  %9441 = vmatmul.mubr.msk.f32.gmra.mxu0 %vm739_vm1, %v709_v60 }
 0x106   : > { %9443 = vmatprep.mubr.msk.f32.mxu0 %vm739_vm1, %v710_v62 }
 0x107   : > { %v11175_v1 = vpop.f32.mrf.mxu0 }
 0x109   : > { %v11178_v3 = vpop.f32.mrf.mxu0  ;;  %9444 = vmatmul.mubr.msk.f32.gmra.mxu0 %vm739_vm1, %v711_v0 }
 0x10a   : > { %9446 = vmatprep.mubr.msk.f32.mxu0 %vm739_vm1, %v712_v2 }
 0x10b   : > { %v11183_v5 = vpop.f32.mrf.mxu0 }
 0x10d   : > { %v11186_v7 = vpop.f32.mrf.mxu0  ;;  %9447 = vmatmul.mubr.msk.f32.gmra.mxu0 %vm739_vm1, %v713_v4 }
 0x10e   : > { %9449 = vmatprep.mubr.msk.f32.mxu0 %vm739_vm1, %v714_v6 }
 0x10f   : > { %v11191_v9 = vpop.f32.mrf.mxu0 }
 0x111   : > { %v11194_v11 = vpop.f32.mrf.mxu0  ;;  %9450 = vmatmul.mubr.msk.f32.gmra.mxu0 %vm739_vm1, %v715_v8 }
 0x112   : > { %9452 = vmatprep.mubr.msk.f32.mxu0 %vm739_vm1, %v716_v10 }
 0x113   : > { %v11199_v13 = vpop.f32.mrf.mxu0 }
 0x114   : > { %16432 = vst [vmem:[#allocation10_spill] sm:$0xff] %v11199_v13 }
 0x115   : > { %v11202_v15 = vpop.f32.mrf.mxu0  ;;  %9453 = vmatmul.mubr.msk.f32.gmra.mxu0 %vm739_vm1, %v717_v12 }
 0x116   : > { %16433 = vst [vmem:[#allocation11_spill] sm:$0xff] %v11202_v15  ;;  %9455 = vmatprep.mubr.msk.f32.mxu0 %vm739_vm1, %v718_v14 }
 0x117   : > { %v11207_v17 = vpop.f32.mrf.mxu0 }
 0x118   : > { %16434 = vst [vmem:[#allocation12_spill] sm:$0xff] %v11207_v17 }
 0x119   : > { %v11210_v19 = vpop.f32.mrf.mxu0  ;;  %9456 = vmatmul.mubr.msk.f32.gmra.mxu0 %vm739_vm1, %v719_v16 }
 0x11a   : > { %16435 = vst [vmem:[#allocation13_spill] sm:$0xff] %v11210_v19  ;;  %9458 = vmatprep.mubr.msk.f32.mxu0 %vm739_vm1, %v720_v18 }
 0x11b   : > { %v11215_v21 = vpop.f32.mrf.mxu0 }
 0x11c   : > { %16436 = vst [vmem:[#allocation14_spill] sm:$0xff] %v11215_v21 }
 0x11d   : > { %v11218_v23 = vpop.f32.mrf.mxu0  ;;  %9459 = vmatmul.mubr.msk.f32.gmra.mxu0 %vm739_vm1, %v721_v20 }
 0x11e   : > { %16437 = vst [vmem:[#allocation15_spill] sm:$0xff] %v11218_v23  ;;  %9461 = vmatprep.mubr.msk.f32.mxu0 %vm739_vm1, %v722_v22 }
 0x11f   : > { %v11223_v25 = vpop.f32.mrf.mxu0 }
 0x120   : > { %16438 = vst [vmem:[#allocation16_spill] sm:$0xff] %v11223_v25 }
 0x121   : > { %v11226_v27 = vpop.f32.mrf.mxu0  ;;  %9462 = vmatmul.mubr.msk.f32.gmra.mxu0 %vm739_vm1, %v723_v24 }
 0x122   : > { %16439 = vst [vmem:[#allocation17_spill] sm:$0xff] %v11226_v27  ;;  %9464 = vmatprep.mubr.msk.f32.mxu0 %vm739_vm1, %v724_v26 }
 0x123   : > { %v11231_v29 = vpop.f32.mrf.mxu0 }
 0x124   : > { %16440 = vst [vmem:[#allocation18_spill] sm:$0xff] %v11231_v29 }
 0x125   : > { %v11234_v31 = vpop.f32.mrf.mxu0  ;;  %9465 = vmatmul.mubr.msk.f32.gmra.mxu0 %vm739_vm1, %v725_v28 }
 0x126   : > { %16441 = vst [vmem:[#allocation19_spill] sm:$0xff] %v11234_v31  ;;  %9467 = vmatprep.mubr.msk.f32.mxu0 %vm739_vm1, %v726_v30 }
 0x127   : > { %v11239_v33 = vpop.f32.mrf.mxu0 }
 0x128   : > { %16442 = vst [vmem:[#allocation20_spill] sm:$0xff] %v11239_v33 }
 0x129   : > { %v11241_v34 = vpop.f32.mrf.mxu0  ;;  %9468 = vmatmul.mubr.msk.f32.gmra.mxu0 %vm739_vm1, %v727_v32 }
 0x12a   : > { %16443 = vst [vmem:[#allocation21_spill] sm:$0xff] %v11241_v34 }
 0x12b   : > { %v11244_v35 = vpop.f32.mrf.mxu0 }
 0x12c   : > { %16444 = vst [vmem:[#allocation22_spill] sm:$0xff] %v11244_v35 }
 0x12d   : > { %v9328_v37 = vpop.f32.mrf.mxu0 }
 0x12e   : > { %v1360_v38 = vadd.f32 %v9328_v37, %v11249_v36 }
 0x12f   : > { %v1354_v40 = vpop.f32.mrf.mxu0 }
 0x130   : > { %v1355_v42 = vadd.f32 %v11249_v36, %v1354_v40  ;;  %v1866_v46 = vmax.f32 %v1360_v38, 0.0 }
 0x131   : > { %v9331_v44 = vpop.f32.mrf.mxu0 }
 0x132   : > { %v1865_v48 = vmax.f32 %v1355_v42, 0.0  ;;  %v1370_v50 = vadd.f32 %v9331_v44, %v11249_v36 }
 0x133   : > { %v1364_v52 = vpop.f32.mrf.mxu0 }
 0x134   : > { %v1365_v54 = vadd.f32 %v11249_v36, %v1364_v52  ;;  %v9833_v56 = vpack.i.bf16 %v1866_v46, %v1865_v48  ;;  %v1868_v60 = vmax.f32 %v1370_v50, 0.0 }
 0x135   : > { %v9334_v58 = vpop.f32.mrf.mxu0 }
 0x136   : > { %v1867_v62 = vmax.f32 %v1365_v54, 0.0  ;;  %v1380_v0 = vadd.f32 %v9334_v58, %v11249_v36  ;;  %9834 = vrot.lane.b32.xlu0 %v9833_v56, %s16206_s0 }
 0x137   : > { %v1374_v2 = vpop.f32.mrf.mxu0 }
 0x138   : > { %v1375_v4 = vadd.f32 %v11249_v36, %v1374_v2  ;;  %v9838_v6 = vpack.i.bf16 %v1868_v60, %v1867_v62  ;;  %v1870_v10 = vmax.f32 %v1380_v0, 0.0 }
 0x139   : > { %v9337_v8 = vpop.f32.mrf.mxu0 }
 0x13a   : > { %v1869_v12 = vmax.f32 %v1375_v4, 0.0  ;;  %v1390_v14 = vadd.f32 %v9337_v8, %v11249_v36  ;;  %9839 = vrot.lane.b32.xlu1 %v9838_v6, %s16206_s0 }
 0x13b   : > { %v1384_v16 = vpop.f32.mrf.mxu0 }
 0x13c   : > { %v1385_v18 = vadd.f32 %v11249_v36, %v1384_v16  ;;  %v9843_v20 = vpack.i.bf16 %v1870_v10, %v1869_v12  ;;  %v1872_v24 = vmax.f32 %v1390_v14, 0.0 }
 0x13d   : > { %v9340_v22 = vpop.f32.mrf.mxu0 }
 0x13e   : > { %v1871_v26 = vmax.f32 %v1385_v18, 0.0  ;;  %v1400_v28 = vadd.f32 %v9340_v22, %v11249_v36  ;;  %9844 = vrot.lane.b32.xlu0 %v9843_v20, %s16206_s0 }
 0x13f   : > { %v1394_v30 = vpop.f32.mrf.mxu0 }
 0x140   : > { %v1395_v32 = vadd.f32 %v11249_v36, %v1394_v30  ;;  %v9848_v37 = vpack.i.bf16 %v1872_v24, %v1871_v26  ;;  %v1874_v40 = vmax.f32 %v1400_v28, 0.0 }
 0x141   : > { %v9343_v38 = vpop.f32.mrf.mxu0 }
 0x142   : > { %v1873_v42 = vmax.f32 %v1395_v32, 0.0  ;;  %v1410_v44 = vadd.f32 %v9343_v38, %v11249_v36  ;;  %9849 = vrot.lane.b32.xlu1 %v9848_v37, %s16206_s0 }
 0x143   : > { %v1404_v46 = vpop.f32.mrf.mxu0 }
 0x144   : > { %v1405_v48 = vadd.f32 %v11249_v36, %v1404_v46  ;;  %v9853_v50 = vpack.i.bf16 %v1874_v40, %v1873_v42  ;;  %v1876_v54 = vmax.f32 %v1410_v44, 0.0 }
 0x145   : > { %v9346_v52 = vpop.f32.mrf.mxu0 }
 0x146   : > { %v1875_v56 = vmax.f32 %v1405_v48, 0.0  ;;  %v1420_v58 = vadd.f32 %v9346_v52, %v11249_v36  ;;  %9854 = vrot.lane.b32.xlu0 %v9853_v50, %s16206_s0 }
 0x147   : > { %v1414_v60 = vpop.f32.mrf.mxu0 }
 0x148   : > { %v1415_v62 = vadd.f32 %v11249_v36, %v1414_v60  ;;  %v9858_v0 = vpack.i.bf16 %v1876_v54, %v1875_v56  ;;  %v1878_v4 = vmax.f32 %v1420_v58, 0.0 }
 0x149   : > { %v9349_v2 = vpop.f32.mrf.mxu0 }
 0x14a   : > { %v1877_v6 = vmax.f32 %v1415_v62, 0.0  ;;  %v1430_v8 = vadd.f32 %v9349_v2, %v11249_v36  ;;  %9859 = vrot.lane.b32.xlu1 %v9858_v0, %s16206_s0 }
 0x14b   : > { %v1424_v10 = vpop.f32.mrf.mxu0 }
 0x14c   : > { %v1425_v12 = vadd.f32 %v11249_v36, %v1424_v10  ;;  %v9863_v14 = vpack.i.bf16 %v1878_v4, %v1877_v6  ;;  %v1880_v18 = vmax.f32 %v1430_v8, 0.0 }
 0x14d   : > { %v9352_v16 = vpop.f32.mrf.mxu0 }
 0x14e   : > { %v1879_v20 = vmax.f32 %v1425_v12, 0.0  ;;  %v1440_v22 = vadd.f32 %v9352_v16, %v11249_v36  ;;  %9864 = vrot.lane.b32.xlu0 %v9863_v14, %s16206_s0 }
 0x14f   : > { %v1434_v24 = vpop.f32.mrf.mxu0 }
 0x150   : > { %v1435_v26 = vadd.f32 %v11249_v36, %v1434_v24  ;;  %v9868_v28 = vpack.i.bf16 %v1880_v18, %v1879_v20  ;;  %v1882_v32 = vmax.f32 %v1440_v22, 0.0 }
 0x151   : > { %v11276_v30 = vpop.f32.mrf.mxu0 }
 0x152   : > { %v1881_v37 = vmax.f32 %v1435_v26, 0.0  ;;  %9869 = vrot.lane.b32.xlu1 %v9868_v28, %s16206_s0 }
 0x153   : > { %v11279_v38 = vpop.f32.mrf.mxu0 }
 0x154   : > { %v9873_v40 = vpack.i.bf16 %v1882_v32, %v1881_v37  ;;  %v1445_v23 = vadd.f32 %v11249_v36, %v11279_v38 }
 0x155   : > { %v11281_v42 = vpop.f32.mrf.mxu0 }
 0x156   : > { %9874 = vrot.lane.b32.xlu0 %v9873_v40, %s16206_s0 }
 0x157   : > { %v11284_v44 = vpop.f32.mrf.mxu0 }
 0x159   : > { %v11286_v46 = vpop.f32.mrf.mxu0 }
 0x15b   : > { %v11288_v48 = vpop.f32.mrf.mxu0 }
 0x15d   : > { %v11290_v50 = vpop.f32.mrf.mxu0 }
 0x15f   : > { %v11292_v52 = vpop.f32.mrf.mxu0 }
 0x161   : > { %v11294_v54 = vpop.f32.mrf.mxu0 }
 0x163   : > { %v11296_v56 = vpop.f32.mrf.mxu0 }
 0x165   : > { %v11298_v58 = vpop.f32.mrf.mxu0 }
 0x167   : > { %v11300_v60 = vpop.f32.mrf.mxu0 }
 0x169   : > { %v11302_v62 = vpop.f32.mrf.mxu0 }
 0x16b   : > { %v11304_v0 = vpop.f32.mrf.mxu0 }
 0x16d   : > { %v9376_v2 = vpop.f32.mrf.mxu0 }
 0x16e   : > { %v1520_v4 = vadd.f32 %v9376_v2, %v11249_v36 }
 0x16f   : > { %v1514_v6 = vpop.f32.mrf.mxu0 }
 0x170   : > { %v1515_v8 = vadd.f32 %v11249_v36, %v1514_v6  ;;  %v1898_v12 = vmax.f32 %v1520_v4, 0.0 }
 0x171   : > { %v9379_v10 = vpop.f32.mrf.mxu0 }
 0x172   : > { %v1897_v14 = vmax.f32 %v1515_v8, 0.0  ;;  %v1530_v16 = vadd.f32 %v9379_v10, %v11249_v36 }
 0x173   : > { %v1524_v18 = vpop.f32.mrf.mxu0 }
 0x174   : > { %v1525_v20 = vadd.f32 %v11249_v36, %v1524_v18  ;;  %v9878_v22 = vpack.i.bf16 %v1898_v12, %v1897_v14  ;;  %v1900_v26 = vmax.f32 %v1530_v16, 0.0 }
 0x175   : > { %v9382_v24 = vpop.f32.mrf.mxu0 }
 0x176   : > { %v1899_v28 = vmax.f32 %v1525_v20, 0.0  ;;  %v1540_v32 = vadd.f32 %v9382_v24, %v11249_v36  ;;  %9879 = vrot.lane.b32.xlu0 %v9878_v22, %s16204_s25 }
 0x177   : > { %v1534_v37 = vpop.f32.mrf.mxu0 }
 0x178   : > { %v1535_v40 = vadd.f32 %v11249_v36, %v1534_v37  ;;  %v9883_v2 = vpack.i.bf16 %v1900_v26, %v1899_v28  ;;  %v1902_v6 = vmax.f32 %v1540_v32, 0.0 }
 0x179   : > { %v9385_v4 = vpop.f32.mrf.mxu0 }
 0x17a   : > { %v1901_v8 = vmax.f32 %v1535_v40, 0.0  ;;  %v1550_v10 = vadd.f32 %v9385_v4, %v11249_v36  ;;  %9884 = vrot.lane.b32.xlu0 %v9883_v2, %s16204_s25 }
 0x17b   : > { %v1544_v12 = vpop.f32.mrf.mxu0 }
 0x17c   : > { %v1545_v14 = vadd.f32 %v11249_v36, %v1544_v12  ;;  %v9888_v16 = vpack.i.bf16 %v1902_v6, %v1901_v8  ;;  %v1904_v20 = vmax.f32 %v1550_v10, 0.0 }
 0x17d   : > { %v9388_v18 = vpop.f32.mrf.mxu0 }
 0x17e   : > { %v1903_v24 = vmax.f32 %v1545_v14, 0.0  ;;  %v1560_v22 = vadd.f32 %v9388_v18, %v11249_v36  ;;  %9889 = vrot.lane.b32.xlu1 %v9888_v16, %s16204_s25 }
 0x17f   : > { %v1554_v37 = vpop.f32.mrf.mxu0 }
 0x180   : > { %v1555_v26 = vadd.f32 %v11249_v36, %v1554_v37  ;;  %v9893_v28 = vpack.i.bf16 %v1904_v20, %v1903_v24  ;;  %v1906_v40 = vmax.f32 %v1560_v22, 0.0 }
 0x181   : > { %v9391_v32 = vpop.f32.mrf.mxu0 }
 0x182   : > { %v1905_v4 = vmax.f32 %v1555_v26, 0.0  ;;  %v1570_v2 = vadd.f32 %v9391_v32, %v11249_v36  ;;  %9894 = vrot.lane.b32.xlu0 %v9893_v28, %s16204_s25  ;;  %v2459_v26 = vld [vmem:[%s16446_s5 + $0x78] sm:$0xff]  ;;  %v2458_v28 = vld [vmem:[%s16446_s5 + $0x70] sm:$0xff] }
 0x183   : > { %v1564_v12 = vpop.f32.mrf.mxu0  ;;  %9470 = vmatprep.subr.mxu1 %v2459_v26 }
 0x184   : > { %v1565_v6 = vadd.f32 %v11249_v36, %v1564_v12  ;;  %v9898_v8 = vpack.i.bf16 %v1906_v40, %v1905_v4  ;;  %v1908_v14 = vmax.f32 %v1570_v2, 0.0  ;;  %9471 = vmatpush3.msra.mxu1 %v2459_v26  ;;  %v2457_v12 = vld [vmem:[%s16446_s5 + $0x68] sm:$0xff] }
 0x185   : > { %v9394_v10 = vpop.f32.mrf.mxu0  ;;  %9472 = vmatprep.subr.mxu1 %v2458_v28 }
 0x186   : > { %v1907_v18 = vmax.f32 %v1565_v6, 0.0  ;;  %v1580_v16 = vadd.f32 %v9394_v10, %v11249_v36  ;;  %9899 = vrot.lane.b32.xlu1 %v9898_v8, %s16204_s25  ;;  %9473 = vmatpush3.msra.mxu1 %v2458_v28 }
 0x187   : > { %v1574_v37 = vpop.f32.mrf.mxu0  ;;  %9474 = vmatprep.subr.mxu1 %v2457_v12 }
 0x188   : > { %v1575_v20 = vadd.f32 %v11249_v36, %v1574_v37  ;;  %v9903_v24 = vpack.i.bf16 %v1908_v14, %v1907_v18  ;;  %v1910_v32 = vmax.f32 %v1580_v16, 0.0  ;;  %v2456_v14 = vld [vmem:[%s16446_s5 + $0x60] sm:$0xff]  ;;  %9475 = vmatpush3.msra.mxu1 %v2457_v12  ;;  %v2453_v12 = vld [vmem:[%s16446_s5 + $0x48] sm:$0xff] }
 0x189   : > { %v9397_v22 = vpop.f32.mrf.mxu0  ;;  %9476 = vmatprep.subr.mxu1 %v2456_v14 }
 0x18a   : > { %v1909_v40 = vmax.f32 %v1575_v20, 0.0  ;;  %v1590_v4 = vadd.f32 %v9397_v22, %v11249_v36  ;;  %9904 = vrot.lane.b32.xlu0 %v9903_v24, %s16204_s25  ;;  %v2455_v24 = vld [vmem:[%s16446_s5 + $0x58] sm:$0xff]  ;;  %9477 = vmatpush3.msra.mxu1 %v2456_v14 }
 0x18b   : > { %v1584_v2 = vpop.f32.mrf.mxu0  ;;  %9478 = vmatprep.subr.mxu1 %v2455_v24 }
 0x18c   : > { %v1585_v6 = vadd.f32 %v11249_v36, %v1584_v2  ;;  %v9908_v8 = vpack.i.bf16 %v1910_v32, %v1909_v40  ;;  %v1912_v18 = vmax.f32 %v1590_v4, 0.0  ;;  %v2454_v32 = vld [vmem:[%s16446_s5 + $0x50] sm:$0xff]  ;;  %9479 = vmatpush3.msra.mxu1 %v2455_v24  ;;  %v2449_v24 = vld [vmem:[%s16446_s5 + $0x28] sm:$0xff] }
 0x18d   : > { %v9400_v10 = vpop.f32.mrf.mxu0  ;;  %9480 = vmatprep.subr.mxu1 %v2454_v32 }
 0x18e   : > { %v1911_v16 = vmax.f32 %v1585_v6, 0.0  ;;  %v1600_v37 = vadd.f32 %v9400_v10, %v11249_v36  ;;  %9909 = vrot.lane.b32.xlu1 %v9908_v8, %s16204_s25  ;;  %9481 = vmatpush3.msra.mxu1 %v2454_v32  ;;  %v2452_v10 = vld [vmem:[%s16446_s5 + $0x40] sm:$0xff] }
 0x18f   : > { %v1594_v20 = vpop.f32.mrf.mxu0  ;;  %9482 = vmatprep.subr.mxu1 %v2453_v12 }
 0x190   : > { %v1595_v22 = vadd.f32 %v11249_v36, %v1594_v20  ;;  %v9913_v26 = vpack.i.bf16 %v1912_v18, %v1911_v16  ;;  %v1914_v40 = vmax.f32 %v1600_v37, 0.0  ;;  %9483 = vmatpush3.msra.mxu1 %v2453_v12  ;;  %v2451_v18 = vld [vmem:[%s16446_s5 + $0x38] sm:$0xff]  ;;  %v2450_v37 = vld [vmem:[%s16446_s5 + $0x30] sm:$0xff] }
 0x191   : > { %v11346_v28 = vpop.f32.mrf.mxu0  ;;  %9484 = vmatprep.subr.mxu1 %v2452_v10  ;;  %v2446_v12 = vld [vmem:[%s16446_s5 + $0x10] sm:$0xff] }
 0x192   : > { %v1913_v4 = vmax.f32 %v1595_v22, 0.0  ;;  %9914 = vrot.lane.b32.xlu0 %v9913_v26, %s16204_s25  ;;  %9485 = vmatpush3.msra.mxu1 %v2452_v10  ;;  %v2448_v26 = vld [vmem:[%s16446_s5 + $0x20] sm:$0xff] }
 0x193   : > { %v11352_v2 = vpop.f32.mrf.mxu0  ;;  %9486 = vmatprep.subr.mxu1 %v2451_v18 }
 0x194   : > { %v9918_v6 = vpack.i.bf16 %v1914_v40, %v1913_v4  ;;  %9487 = vmatpush3.msra.mxu1 %v2451_v18  ;;  %v2447_v40 = vld [vmem:[%s16446_s5 + $0x18] sm:$0xff]  ;;  %v1605_v38 = vadd.f32 %v11249_v36, %v11352_v2 }
 0x195   : > { %v11357_v8 = vpop.f32.mrf.mxu0  ;;  %9488 = vmatprep.subr.mxu1 %v2450_v37 }
 0x196   : > { %9919 = vrot.lane.b32.xlu1 %v9918_v6, %s16204_s25  ;;  %9489 = vmatpush3.msra.mxu1 %v2450_v37  ;;  %v2445_v37 = vld [vmem:[%s16446_s5 + $0x8] sm:$0xff]  ;;  %v1915_v13 = vmax.f32 %v1605_v38, 0.0 }
 0x197   : > { %v11363_v14 = vpop.f32.mrf.mxu0  ;;  %9490 = vmatprep.subr.mxu1 %v2449_v24 }
 0x198   : > { %9491 = vmatpush3.msra.mxu1 %v2449_v24  ;;  %v1615_v2 = vadd.f32 %v11249_v36, %v11363_v14 }
 0x199   : > { %v11368_v16 = vpop.f32.mrf.mxu0  ;;  %9492 = vmatprep.subr.mxu1 %v2448_v26 }
 0x19a   : > { %9493 = vmatpush3.msra.mxu1 %v2448_v26  ;;  %v2444_v26 = vld [vmem:[%s16446_s5] sm:$0xff]  ;;  %v1917_v38 = vmax.f32 %v1615_v2, 0.0 }
 0x19b   : > { %v11373_v20 = vpop.f32.mrf.mxu0  ;;  %9494 = vmatprep.subr.mxu1 %v2447_v40 }
 0x19c   : > { %9495 = vmatpush3.msra.mxu1 %v2447_v40 }
 0x19d   : > { %v11378_v22 = vpop.f32.mrf.mxu0  ;;  %9496 = vmatprep.subr.mxu1 %v2446_v12 }
 0x19e   : > { %9497 = vmatpush3.msra.mxu1 %v2446_v12 }
 0x19f   : > { %v11383_v32 = vpop.f32.mrf.mxu0  ;;  %9498 = vmatprep.subr.mxu1 %v2445_v37 }
 0x1a0   : > { %9499 = vmatpush3.msra.mxu1 %v2445_v37 }
 0x1a1   : > { %v11388_v4 = vpop.f32.mrf.mxu0  ;;  %9500 = vmatprep.subr.mxu1 %v2444_v26 }
 0x1a2   : > { %9501 = vmatpush3.msra.mxu1 %v2444_v26  ;;  %v1450_v26 = vadd.f32 %v11276_v30, %v11249_v36 }
 0x1a3   : > { %v11393_v6 = vpop.f32.mrf.mxu0 }
 0x1a5   : > { %v11395_v10 = vpop.f32.mrf.mxu0 }
 0x1a7   : > { %v11397_v18 = vpop.f32.mrf.mxu0 }
 0x1a9   : > { %v11402_v24 = vpop.f32.mrf.mxu0 }
 0x1ab   : > { %v11407_v35 = vpop.f32.mrf.mxu0 }
 0x1ad   : > { %v9424_v40 = vpop.f32.mrf.mxu0 }
 0x1ae   : > { %v1680_v12 = vadd.f32 %v9424_v40, %v11249_v36 }
 0x1af   : > { %v1674_v34 = vpop.f32.mrf.mxu0 }
 0x1b0   : > { %v1675_v33 = vadd.f32 %v11249_v36, %v1674_v34  ;;  %v1930_v29 = vmax.f32 %v1680_v12, 0.0 }
 0x1b1   : > { %v9427_v31 = vpop.f32.mrf.mxu0 }
 0x1b2   : > { %v1929_v27 = vmax.f32 %v1675_v33, 0.0  ;;  %v1690_v25 = vadd.f32 %v9427_v31, %v11249_v36  ;;  %v1883_v33 = vmax.f32 %v1445_v23, 0.0 }
 0x1b3   : > { %v1684_v21 = vpop.f32.mrf.mxu0 }
 0x1b4   : > { %v1685_v37 = vadd.f32 %v11249_v36, %v1684_v21  ;;  %v9923_v19 = vpack.i.bf16 %v1930_v29, %v1929_v27  ;;  %v1932_v40 = vmax.f32 %v1690_v25, 0.0  ;;  %v1884_v27 = vmax.f32 %v1450_v26, 0.0 }
 0x1b5   : > { %v9430_v17 = vpop.f32.mrf.mxu0  ;;  %v1610_v29 = vadd.f32 %v11346_v28, %v11249_v36  ;;  %v1620_v28 = vadd.f32 %v11357_v8, %v11249_v36  ;;  %v1460_v8 = vadd.f32 %v11281_v42, %v11249_v36  ;;  %v1470_v42 = vadd.f32 %v11286_v46, %v11249_v36 }
 0x1b6   : > { %v1931_v15 = vmax.f32 %v1685_v37, 0.0  ;;  %v1700_v34 = vadd.f32 %v9430_v17, %v11249_v36  ;;  %9924 = vrot.lane.b32.xlu1 %v9923_v19, %s16202_s26  ;;  %v9933_v23 = vpack.i.bf16 %v1884_v27, %v1883_v33  ;;  %v1455_v33 = vadd.f32 %v11249_v36, %v11284_v44 }
 0x1b7   : > { %v1694_v31 = vpop.f32.mrf.mxu0  ;;  %v1916_v26 = vmax.f32 %v1610_v29, 0.0  ;;  %v1465_v44 = vadd.f32 %v11249_v36, %v11288_v48  ;;  %v1888_v46 = vmax.f32 %v1470_v42, 0.0 }
 0x1b8   : > { %v1695_v12 = vadd.f32 %v11249_v36, %v1694_v31  ;;  %v9928_v21 = vpack.i.bf16 %v1932_v40, %v1931_v15  ;;  %v1934_v25 = vmax.f32 %v1700_v34, 0.0 }
 0x1b9   : > { %v9433_v30 = vpop.f32.mrf.mxu0  ;;  %v9943_v29 = vpack.i.bf16 %v1916_v26, %v1915_v13  ;;  %v1887_v48 = vmax.f32 %v1465_v44, 0.0  ;;  %v1635_v44 = vadd.f32 %v11249_v36, %v11383_v32 }
 0x1ba   : > { %v1933_v37 = vmax.f32 %v1695_v12, 0.0  ;;  %v1710_v17 = vadd.f32 %v9433_v30, %v11249_v36  ;;  %9929 = vrot.lane.b32.xlu1 %v9928_v21, %s16202_s26 }
 0x1bb   : > { %v1704_v19 = vpop.f32.mrf.mxu0 }
 0x1bc   : > { %v1705_v31 = vadd.f32 %v11249_v36, %v1704_v19  ;;  %v9938_v15 = vpack.i.bf16 %v1934_v25, %v1933_v37  ;;  %v1936_v34 = vmax.f32 %v1710_v17, 0.0  ;;  %v1918_v37 = vmax.f32 %v1620_v28, 0.0 }
 0x1bd   : > { %v9436_v40 = vpop.f32.mrf.mxu0  ;;  %v1886_v28 = vmax.f32 %v1460_v8, 0.0 }
 0x1be   : > { %v1935_v12 = vmax.f32 %v1705_v31, 0.0  ;;  %v1720_v30 = vadd.f32 %v9436_v40, %v11249_v36  ;;  %9934 = vrot.lane.b32.xlu1 %v9933_v23, %s16206_s0  ;;  %9939 = vrot.lane.b32.xlu0 %v9938_v15, %s16202_s26  ;;  %v1885_v31 = vmax.f32 %v1455_v33, 0.0  ;;  %v9963_v15 = vpack.i.bf16 %v1918_v37, %v1917_v38 }
 0x1bf   : > { %v1714_v14 = vpop.f32.mrf.mxu0  ;;  %v1625_v33 = vadd.f32 %v11249_v36, %v11373_v20 }
 0x1c0   : > { %v1715_v21 = vadd.f32 %v11249_v36, %v1714_v14  ;;  %v9948_v27 = vpack.i.bf16 %v1936_v34, %v1935_v12  ;;  %v1938_v17 = vmax.f32 %v1720_v30, 0.0 }
 0x1c1   : > { %v9439_v25 = vpop.f32.mrf.mxu0  ;;  %v1919_v20 = vmax.f32 %v1625_v33, 0.0 }
 0x1c2   : > { %v1937_v19 = vmax.f32 %v1715_v21, 0.0  ;;  %v1730_v23 = vadd.f32 %v9439_v25, %v11249_v36  ;;  %9949 = vrot.lane.b32.xlu1 %v9948_v27, %s16202_s26  ;;  %9944 = vrot.lane.b32.xlu0 %v9943_v29, %s16204_s25  ;;  %v9958_v27 = vpack.i.bf16 %v1886_v28, %v1885_v31  ;;  %v1630_v29 = vadd.f32 %v11368_v16, %v11249_v36 }
 0x1c3   : > { %v1724_v2 = vpop.f32.mrf.mxu0  ;;  %v1475_v28 = vadd.f32 %v11249_v36, %v11292_v52  ;;  %v1485_v52 = vadd.f32 %v11249_v36, %v11296_v56 }
 0x1c4   : > { %v1725_v13 = vadd.f32 %v11249_v36, %v1724_v2  ;;  %v9953_v26 = vpack.i.bf16 %v1938_v17, %v1937_v19  ;;  %v1940_v34 = vmax.f32 %v1730_v23, 0.0  ;;  %v9973_v23 = vpack.i.bf16 %v1888_v46, %v1887_v48 }
 0x1c5   : > { %v9442_v40 = vpop.f32.mrf.mxu0  ;;  %v1891_v56 = vmax.f32 %v1485_v52, 0.0  ;;  %v1495_v52 = vadd.f32 %v11249_v36, %v11300_v60  ;;  %v1505_v60 = vadd.f32 %v11249_v36, %v11304_v0 }
 0x1c6   : > { %v1939_v12 = vmax.f32 %v1725_v13, 0.0  ;;  %v1740_v30 = vadd.f32 %v9442_v40, %v11249_v36  ;;  %9964 = vrot.lane.b32.xlu1 %v9963_v15, %s16204_s25  ;;  %9954 = vrot.lane.b32.xlu0 %v9953_v26, %s16202_s26  ;;  %v1920_v13 = vmax.f32 %v1630_v29, 0.0  ;;  %v1640_v15 = vadd.f32 %v11378_v22, %v11249_v36 }
 0x1c7   : > { %v1734_v14 = vpop.f32.mrf.mxu0  ;;  %v1480_v22 = vadd.f32 %v11290_v50, %v11249_v36  ;;  %v1889_v29 = vmax.f32 %v1475_v28, 0.0  ;;  %v1490_v50 = vadd.f32 %v11294_v54, %v11249_v36  ;;  %v1895_v0 = vmax.f32 %v1505_v60, 0.0 }
 0x1c8   : > { %v1735_v38 = vadd.f32 %v11249_v36, %v1734_v14  ;;  %v9968_v21 = vpack.i.bf16 %v1940_v34, %v1939_v12  ;;  %v1942_v25 = vmax.f32 %v1740_v30, 0.0  ;;  %v1921_v34 = vmax.f32 %v1635_v44, 0.0 }
 0x1c9   : > { %v9445_v8 = vpop.f32.mrf.mxu0  ;;  %v9983_v48 = vpack.i.bf16 %v1920_v13, %v1919_v20  ;;  %v1922_v33 = vmax.f32 %v1640_v15, 0.0  ;;  %v1892_v54 = vmax.f32 %v1490_v50, 0.0 }
 0x1ca   : > { %v1941_v37 = vmax.f32 %v1735_v38, 0.0  ;;  %v1750_v17 = vadd.f32 %v9445_v8, %v11249_v36  ;;  %9969 = vrot.lane.b32.xlu1 %v9968_v21, %s16202_s26  ;;  %9959 = vrot.lane.b32.xlu0 %v9958_v27, %s16206_s0 }
 0x1cb   : > { %v1744_v19 = vpop.f32.mrf.mxu0 }
 0x1cc   : > { %v1745_v2 = vadd.f32 %v11249_v36, %v1744_v19  ;;  %v9978_v31 = vpack.i.bf16 %v1942_v25, %v1941_v37  ;;  %v1944_v26 = vmax.f32 %v1750_v17, 0.0  ;;  %v10003_v25 = vpack.i.bf16 %v1922_v33, %v1921_v34 }
 0x1cd   : > { %v9448_v16 = vpop.f32.mrf.mxu0  ;;  %v1890_v19 = vmax.f32 %v1480_v22, 0.0  ;;  %v1660_v33 = vadd.f32 %v11395_v10, %v11249_v36  ;;  %v1500_v10 = vadd.f32 %v11298_v58, %v11249_v36  ;;  %v1510_v58 = vadd.f32 %v11302_v62, %v11249_v36 }
 0x1ce   : > { %v1943_v42 = vmax.f32 %v1745_v2, 0.0  ;;  %v1760_v40 = vadd.f32 %v9448_v16, %v11249_v36  ;;  %9974 = vrot.lane.b32.xlu1 %v9973_v23, %s16206_s0  ;;  %9979 = vrot.lane.b32.xlu0 %v9978_v31, %s16202_s26  ;;  %v1645_v31 = vadd.f32 %v11249_v36, %v11393_v6 }
 0x1cf   : > { %v1754_v32 = vpop.f32.mrf.mxu0  ;;  %v9998_v15 = vpack.i.bf16 %v1890_v19, %v1889_v29  ;;  %v1926_v50 = vmax.f32 %v1660_v33, 0.0  ;;  %v1896_v62 = vmax.f32 %v1510_v58, 0.0  ;;  %v1210_v58 = vadd.f32 %v11130_v43, %v11249_v36 }
 0x1d0   : > { %v1755_v12 = vadd.f32 %v11249_v36, %v1754_v32  ;;  %v9988_v30 = vpack.i.bf16 %v1944_v26, %v1943_v42  ;;  %v1946_v38 = vmax.f32 %v1760_v40, 0.0  ;;  %v1650_v26 = vadd.f32 %v11388_v4, %v11249_v36 }
 0x1d1   : > { %v9451_v14 = vpop.f32.mrf.mxu0  ;;  %v1923_v6 = vmax.f32 %v1645_v31, 0.0  ;;  %v1215_v43 = vadd.f32 %v11249_v36, %v11143_v49 }
 0x1d2   : > { %v1945_v21 = vmax.f32 %v1755_v12, 0.0  ;;  %v1770_v27 = vadd.f32 %v9451_v14, %v11249_v36  ;;  %9989 = vrot.lane.b32.xlu1 %v9988_v30, %s16202_s26  ;;  %9984 = vrot.lane.b32.xlu0 %v9983_v48, %s16204_s25  ;;  %v10013_v12 = vpack.i.bf16 %v1892_v54, %v1891_v56  ;;  %v1655_v30 = vadd.f32 %v11249_v36, %v11397_v18 }
 0x1d3   : > { %v1764_v46 = vpop.f32.mrf.mxu0  ;;  %v1924_v14 = vmax.f32 %v1650_v26, 0.0 }
 0x1d4   : > { %v1765_v8 = vadd.f32 %v11249_v36, %v1764_v46  ;;  %v9993_v37 = vpack.i.bf16 %v1946_v38, %v1945_v21  ;;  %v1948_v23 = vmax.f32 %v1770_v27, 0.0  ;;  %v1925_v46 = vmax.f32 %v1655_v30, 0.0 }
 0x1d5   : > { %v9454_v17 = vpop.f32.mrf.mxu0 }
 0x1d6   : > { %v1947_v20 = vmax.f32 %v1765_v8, 0.0  ;;  %v1780_v44 = vadd.f32 %v9454_v17, %v11249_v36  ;;  %10004 = vrot.lane.b32.xlu1 %v10003_v25, %s16204_s25  ;;  %9994 = vrot.lane.b32.xlu0 %v9993_v37, %s16202_s26  ;;  %v10023_v25 = vpack.i.bf16 %v1924_v14, %v1923_v6  ;;  %v1670_v6 = vadd.f32 %v11402_v24, %v11249_v36 }
 0x1d7   : > { %v1774_v2 = vpop.f32.mrf.mxu0 }
 0x1d8   : > { %v1775_v13 = vadd.f32 %v11249_v36, %v1774_v2  ;;  %v10008_v16 = vpack.i.bf16 %v1948_v23, %v1947_v20  ;;  %v1950_v40 = vmax.f32 %v1780_v44, 0.0  ;;  %v1893_v44 = vmax.f32 %v1495_v52, 0.0 }
 0x1d9   : > { %v9457_v42 = vpop.f32.mrf.mxu0  ;;  %v10043_v2 = vpack.i.bf16 %v1926_v50, %v1925_v46  ;;  %v9835_v46 = vpop.permute.xlu0 %9834 }
 0x1da   : > { %v1949_v28 = vmax.f32 %v1775_v13, 0.0  ;;  %v1790_v32 = vadd.f32 %v9457_v42, %v11249_v36  ;;  %10009 = vrot.lane.b32.xlu1 %v10008_v16, %s16202_s26  ;;  %9999 = vrot.lane.b32.xlu0 %v9998_v15, %s16206_s0  ;;  %v1894_v16 = vmax.f32 %v1500_v10, 0.0 }
 0x1db   : > { %v1784_v34 = vpop.f32.mrf.mxu0 }
 0x1dc   : > { %v1785_v48 = vadd.f32 %v11249_v36, %v1784_v34  ;;  %v10018_v22 = vpack.i.bf16 %v1950_v40, %v1949_v28  ;;  %v1952_v38 = vmax.f32 %v1790_v32, 0.0  ;;  %v1665_v40 = vadd.f32 %v11249_v36, %v11407_v35 }
 0x1dd   : > { %v9460_v4 = vpop.f32.mrf.mxu0  ;;  %v10038_v34 = vpack.i.bf16 %v1894_v16, %v1893_v44  ;;  %v9837_v16 = vunpack.i.h.bf16 %v9835_v46 }
 0x1de   : > { %v1951_v21 = vmax.f32 %v1785_v48, 0.0  ;;  %v1800_v27 = vadd.f32 %v9460_v4, %v11249_v36  ;;  %10014 = vrot.lane.b32.xlu1 %v10013_v12, %s16206_s0  ;;  %10019 = vrot.lane.b32.xlu0 %v10018_v22, %s16202_s26  ;;  %v10053_v4 = vpack.i.bf16 %v1896_v62, %v1895_v0  ;;  %v1927_v35 = vmax.f32 %v1665_v40, 0.0 }
 0x1df   : > { %v1794_v18 = vpop.f32.mrf.mxu0  ;;  %v1836_v40 = vmax.f32 %v1210_v58, 0.0 }
 0x1e0   : > { %v1795_v29 = vadd.f32 %v11249_v36, %v1794_v18  ;;  %v10028_v8 = vpack.i.bf16 %v1952_v38, %v1951_v21  ;;  %v1954_v17 = vmax.f32 %v1800_v27, 0.0  ;;  %v1928_v27 = vmax.f32 %v1670_v6, 0.0 }
 0x1e1   : > { %v9463_v37 = vpop.f32.mrf.mxu0 }
 0x1e2   : > { %v1953_v19 = vmax.f32 %v1795_v29, 0.0  ;;  %v1810_v23 = vadd.f32 %v9463_v37, %v11249_v36  ;;  %10029 = vrot.lane.b32.xlu1 %v10028_v8, %s16202_s26  ;;  %10024 = vrot.lane.b32.xlu0 %v10023_v25, %s16204_s25  ;;  %v10063_v18 = vpack.i.bf16 %v1928_v27, %v1927_v35  ;;  %v11527_v29 = vpop.permute.xlu1 %9839  ;;  %v11529_v8 = vpop.permute.xlu0 %9844 }
 0x1e3   : > { %v1804_v20 = vpop.f32.mrf.mxu0  ;;  %v9841_v49 = vunpack.i.l.bf16 %v11527_v29 }
 0x1e4   : > { %v1805_v56 = vadd.f32 %v11249_v36, %v1804_v20  ;;  %v10033_v31 = vpack.i.bf16 %v1954_v17, %v1953_v19  ;;  %v1956_v15 = vmax.f32 %v1810_v23, 0.0 }
 0x1e5   : > { %v9466_v13 = vpop.f32.mrf.mxu0 }
 0x1e6   : > { %v1955_v54 = vmax.f32 %v1805_v56, 0.0  ;;  %v1820_v26 = vadd.f32 %v9466_v13, %v11249_v36  ;;  %10044 = vrot.lane.b32.xlu1 %v10043_v2, %s16204_s25  ;;  %10034 = vrot.lane.b32.xlu0 %v10033_v31, %s16202_s26  ;;  %v11531_v25 = vpop.permute.xlu1 %9849  ;;  %v11533_v10 = vpop.permute.xlu0 %9854  ;;  %v1200_v2 = vadd.f32 %v11122_v39, %v11249_v36  ;;  %v1195_v31 = vadd.f32 %v11249_v36, %v11127_v41 }
 0x1e7   : > { %v1814_v42 = vpop.f32.mrf.mxu0  ;;  %v1205_v13 = vadd.f32 %v11249_v36, %v11135_v45  ;;  %v1220_v41 = vadd.f32 %v11138_v47, %v11249_v36  ;;  %v11567_v45 = vadd.f32 %v11146_v51, %v11249_v36 }
 0x1e8   : > { %v1815_v28 = vadd.f32 %v11249_v36, %v1814_v42  ;;  %v10048_v32 = vpack.i.bf16 %v1956_v15, %v1955_v54  ;;  %v1958_v30 = vmax.f32 %v1820_v26, 0.0  ;;  %v9836_v15 = vunpack.i.l.bf16 %v9835_v46 }
 0x1e9   : > { %v9469_v12 = vpop.f32.mrf.mxu0  ;;  %v1834_v0 = vmax.f32 %v1200_v2, 0.0  ;;  %v1833_v42 = vmax.f32 %v1195_v31, 0.0  ;;  %v1835_v39 = vmax.f32 %v1205_v13, 0.0  ;;  %v1838_v35 = vmax.f32 %v1220_v41, 0.0 }
 0x1ea   : > { %v1957_v48 = vmax.f32 %v1815_v28, 0.0  ;;  %v1830_v22 = vadd.f32 %v9469_v12, %v11249_v36  ;;  %10049 = vrot.lane.b32.xlu1 %v10048_v32, %s16202_s26  ;;  %10039 = vrot.lane.b32.xlu0 %v10038_v34, %s16206_s0  ;;  %v11535_v37 = vpop.permute.xlu1 %9859  ;;  %v11537_v50 = vpop.permute.xlu0 %9864  ;;  %v11571_v34 = vadd.f32 %v11249_v36, %v11151_v53  ;;  %v1840_v27 = vmax.f32 %v11567_v45, 0.0 }
 0x1eb   : > { %v1824_v14 = vpop.f32.mrf.mxu0  ;;  %v2346_v6 = vsel %vm2345_vm2, %v1833_v42, %v9836_v15  ;;  %v2347_v47 = vsel %vm2345_vm2, %v1834_v0, %v9837_v16  ;;  %v2348_v2 = vsel %vm2345_vm2, %v1835_v39, %v9841_v49  ;;  %v1235_v0 = vadd.f32 %v11249_v36, %v11159_v57 }
 0x1ec   : > { %v1960_v33 = vmax.f32 %v1830_v22, 0.0  ;;  %v1825_v38 = vadd.f32 %v11249_v36, %v1824_v14  ;;  %v10058_v21 = vpack.i.bf16 %v1958_v30, %v1957_v48  ;;  %v9842_v30 = vunpack.i.h.bf16 %v11527_v29 }
 0x1ed   : > { %v9852_v41 = vunpack.i.h.bf16 %v11531_v25 }
 0x1ee   : > { %v1959_v52 = vmax.f32 %v1825_v38, 0.0  ;;  %10054 = vrot.lane.b32.xlu1 %v10053_v4, %s16206_s0  ;;  %10059 = vrot.lane.b32.xlu0 %v10058_v21, %s16202_s26  ;;  %v11539_v17 = vpop.permute.xlu1 %9869  ;;  %v11541_v19 = vpop.permute.xlu0 %9874  ;;  %v2349_v31 = vsel %vm2345_vm2, %v1836_v40, %v9842_v30  ;;  %v11603_v40 = vadd.f32 %v11162_v59, %v11249_v36  ;;  %s7906_s0 = scalar_lea.sflag [#allocation3], %s593_s2 }
 0x1f0   : > { %v10068_v24 = vpack.i.bf16 %v1960_v33, %v1959_v52  ;;  %v1837_v33 = vmax.f32 %v1215_v43, 0.0  ;;  %v1839_v52 = vmax.f32 %v11571_v34, 0.0  ;;  %v9851_v43 = vunpack.i.l.bf16 %v11531_v25 }
 0x1f2   : > { %10069 = vrot.lane.b32.xlu1 %v10068_v24, %s16202_s26  ;;  %10064 = vrot.lane.b32.xlu0 %v10063_v18, %s16204_s25  ;;  %v11543_v23 = vpop.permute.xlu1 %9889  ;;  %v9880_v60 = vpop.permute.xlu0 %9879  ;;  %v9847_v24 = vunpack.i.h.bf16 %v11529_v8  ;;  %v9846_v18 = vunpack.i.l.bf16 %v11529_v8  ;;  %v1240_v8 = vadd.f32 %v11154_v55, %v11249_v36  ;;  %s16679_s25 = sld [smem:[#allocation88_spill]]  ;;  %s594_s26 = scalar_lea.vmem [#allocation2], %s593_s2 }
 0x1f3   : > { %v9882_v28 = vunpack.i.h.bf16 %v9880_v60  ;;  %v9881_v32 = vunpack.i.l.bf16 %v9880_v60  ;;  %v9892_v58 = vunpack.i.h.bf16 %v11543_v23  ;;  %v9891_v13 = vunpack.i.l.bf16 %v11543_v23  ;;  %s7918_s5 = sshll.u32 %s594_s26, 4  ;;  %s7919_s5 = int_to_ptr.vmem [resolvable:$true] %s7918_s5 }
 0x1f4   : > { %v11607_v23 = vadd.f32 %v11249_v36, %v11167_v61  ;;  %v2350_v55 = vsel %vm2345_vm2, %v1837_v33, %v9846_v18  ;;  %v2351_v57 = vsel %vm2345_vm2, %v1838_v35, %v9847_v24  ;;  %v2352_v35 = vsel %vm2345_vm2, %v1839_v52, %v9851_v43  ;;  %s10691_s22 = scalar_lea.vmem %s7919_s5, 16 }
 0x1f5   : > { %v2379_v4 = vsel %vm2378_vm3, %v2346_v6, %v9881_v32  ;;  %v2380_v53 = vsel %vm2378_vm3, %v2347_v47, %v9882_v28  ;;  %v2383_v36 = vsel %vm2378_vm3, %v2350_v55, %v9891_v13  ;;  %v1842_v6 = vmax.f32 %v1240_v8, 0.0  ;;  %p10692_p11 = scmp.ne.s32.totalorder %s7919_s5, %s10691_s22 }
 0x1f6   : > { %v9885_v44 = vpop.permute.xlu0 %9884  ;;  %v1841_v47 = vmax.f32 %v1235_v0, 0.0  ;;  %v1843_v25 = vmax.f32 %v11607_v23, 0.0  ;;  %v2353_v33 = vsel %vm2345_vm2, %v1840_v27, %v9852_v41  ;;  %v9861_v13 = vunpack.i.l.bf16 %v11535_v37 }
 0x1f7   : > { %v9887_v22 = vunpack.i.h.bf16 %v9885_v44  ;;  %v9886_v14 = vunpack.i.l.bf16 %v9885_v44  ;;  %v9867_v55 = vunpack.i.h.bf16 %v11537_v50  ;;  %p10693_p12 = pnand %p10692_p11, %p10897_p5 }
 0x1f8   : > { %v11545_v20 = vpop.permute.xlu1 %9899 }
 0x1f9   : > { %v2381_v16 = vsel %vm2378_vm3, %v2348_v2, %v9886_v14  ;;  %v2382_v15 = vsel %vm2378_vm3, %v2349_v31, %v9887_v22  ;;  %v9856_v22 = vunpack.i.l.bf16 %v11533_v10  ;;  %p10694_p13 = pneg %p10693_p12 }
 0x1fa   : > { %v11557_v54 = vpop.permute.xlu0 %9894 }
 0x1fb   : > { %v9897_v59 = vunpack.i.h.bf16 %v11557_v54  ;;  %v9896_v61 = vunpack.i.l.bf16 %v11557_v54 }
 0x1fd   : > { %v2385_v24 = vsel %vm2378_vm3, %v2352_v35, %v9896_v61  ;;  %v2386_v18 = vsel %vm2378_vm3, %v2353_v33, %v9897_v59 }
 0x1fe   : > { %v11573_v62 = vpop.permute.xlu0 %9904 }
 0x200   : > { %v11547_v56 = vpop.permute.xlu1 %9909 }
 0x201   : > { %v9912_v61 = vunpack.i.h.bf16 %v11547_v56 }
 0x204   : > { %v11587_v46 = vpop.permute.xlu0 %9914 }
 0x205   : > { %v9916_v33 = vunpack.i.l.bf16 %v11587_v46 }
 0x208   : > { %v11559_v26 = vpop.permute.xlu1 %9919 }
 0x228   : > { %v9925_v12 = vpop.permute.xlu1 %9924 }
 0x229   : > { %v9927_v48 = vunpack.i.h.bf16 %v9925_v12  ;;  %v9926_v51 = vunpack.i.l.bf16 %v9925_v12  ;;  %v2384_v12 = vsel %vm2378_vm3, %v2351_v57, %v9892_v58  ;;  %v9862_v58 = vunpack.i.h.bf16 %v11535_v37 }
 0x22a   : > { %v9866_v57 = vunpack.i.l.bf16 %v11537_v50 }
 0x22b   : > { %v2412_v38 = vsel %vm2411_vm4, %v2379_v4, %v9926_v51  ;;  %v2413_v21 = vsel %vm2411_vm4, %v2380_v53, %v9927_v48  ;;  %v1844_v48 = vmax.f32 %v11603_v40, 0.0  ;;  %v9857_v51 = vunpack.i.h.bf16 %v11533_v10  ;;  %v11636_v10 = vld [vmem:[%s16445_s4] ss:$0 sm:$0xff]  ;;  %s16487_s4 = smov 32  }
 0x22c   : > { %v9930_v29 = vpop.permute.xlu1 %9929  ;;  %9502 = vmatprep.mubr.f32.mxu1 %v2412_v38  ;;  %v9902_v38 = vunpack.i.h.bf16 %v11545_v20  ;;  %v1255_v52 = vadd.f32 %v11636_v10, %v11175_v1  ;;  %v1280_v50 = vadd.f32 %v11636_v10, %v11186_v7 }
 0x22d   : > { %v9932_v60 = vunpack.i.h.bf16 %v9930_v29  ;;  %v9931_v44 = vunpack.i.l.bf16 %v9930_v29  ;;  %9503 = vmatmul.mubr.f32.vlgmr.msra.gmra.mxu1 %v2413_v21  ;;  %v9901_v21 = vunpack.i.l.bf16 %v11545_v20  ;;  %v1260_v29 = vadd.f32 %v11636_v10, %v11170_v63 }
 0x22e   : > { %v11646_v20 = vadd.f32 %v11636_v10, %v11178_v3  ;;  %v2354_v63 = vsel %vm2345_vm2, %v1841_v47, %v9856_v22  ;;  %v2355_v1 = vsel %vm2345_vm2, %v1842_v6, %v9857_v51  ;;  %v9907_v3 = vunpack.i.h.bf16 %v11573_v62 }
 0x22f   : > { %v2414_v42 = vsel %vm2411_vm4, %v2381_v16, %v9931_v44  ;;  %v2415_v39 = vsel %vm2411_vm4, %v2382_v15, %v9932_v60  ;;  %v11650_v44 = vadd.f32 %v11636_v10, %v11183_v5  ;;  %v9906_v5 = vunpack.i.l.bf16 %v11573_v62 }
 0x230   : > { %v11609_v28 = vpop.permute.xlu1 %9934  ;;  %v9940_v32 = vpop.permute.xlu0 %9939  ;;  %9505 = vmatprep.mubr.f32.mxu1 %v2414_v42  ;;  %v2387_v8 = vsel %vm2378_vm3, %v2354_v63, %v9901_v21  ;;  %v2388_v0 = vsel %vm2378_vm3, %v2355_v1, %v9902_v38  ;;  %v1846_v42 = vmax.f32 %v1260_v29, 0.0  ;;  %v2357_v59 = vsel %vm2345_vm2, %v1844_v48, %v9862_v58 }
 0x231   : > { %v9942_v45 = vunpack.i.h.bf16 %v9940_v32  ;;  %v9941_v34 = vunpack.i.l.bf16 %v9940_v32  ;;  %9506 = vmatmul.mubr.f32.gmra.mxu1 %v2415_v39  ;;  %v1845_v39 = vmax.f32 %v1255_v52, 0.0  ;;  %v1848_v32 = vmax.f32 %v11646_v20, 0.0 }
 0x232   : > { %v1847_v37 = vmax.f32 %v11650_v44, 0.0  ;;  %v2390_v6 = vsel %vm2378_vm3, %v2357_v59, %v9907_v3  ;;  %v1275_v47 = vadd.f32 %v11636_v10, %v11191_v9  ;;  %v11684_v48 = vadd.f32 %v11636_v10, %v11194_v11 }
 0x233   : > { %v2416_v30 = vsel %vm2411_vm4, %v2383_v36, %v9941_v34  ;;  %v2417_v49 = vsel %vm2411_vm4, %v2384_v12, %v9942_v45  ;;  %v2356_v34 = vsel %vm2345_vm2, %v1843_v25, %v9861_v13  ;;  %v9911_v36 = vunpack.i.l.bf16 %v11547_v56  ;;  %v16447_v25 = vld [vmem:[#allocation10_spill] sm:$0xff] }
 0x234   : > { %v9950_v14 = vpop.permute.xlu1 %9949  ;;  %v11625_v54 = vpop.permute.xlu0 %9944  ;;  %9508 = vmatprep.mubr.f32.mxu1 %v2416_v30  ;;  %v2389_v12 = vsel %vm2378_vm3, %v2356_v34, %v9906_v5  ;;  %v11688_v56 = vadd.f32 %v11636_v10, %v16447_v25  ;;  %v2358_v7 = vsel %vm2345_vm2, %v1845_v39, %v9866_v57  ;;  %v2359_v9 = vsel %vm2345_vm2, %v1846_v42, %v9867_v55 }
 0x235   : > { %v9952_v4 = vunpack.i.h.bf16 %v9950_v14  ;;  %v9951_v53 = vunpack.i.l.bf16 %v9950_v14  ;;  %9509 = vmatmul.mubr.f32.gmra.mxu1 %v2417_v49  ;;  %v9872_v14 = vunpack.i.h.bf16 %v11539_v17  ;;  %v9917_v11 = vunpack.i.h.bf16 %v11587_v46 }
 0x236   : > { %v2391_v38 = vsel %vm2378_vm3, %v2358_v7, %v9911_v36  ;;  %v2392_v21 = vsel %vm2378_vm3, %v2359_v9, %v9912_v61  ;;  %v9876_v20 = vunpack.i.l.bf16 %v11541_v19  ;;  %v9922_v13 = vunpack.i.h.bf16 %v11559_v26 }
 0x237   : > { %v2418_v27 = vsel %vm2411_vm4, %v2385_v24, %v9951_v53  ;;  %v2419_v60 = vsel %vm2411_vm4, %v2386_v18, %v9952_v4  ;;  %v9871_v4 = vunpack.i.l.bf16 %v11539_v17  ;;  %v1850_v24 = vmax.f32 %v1280_v50, 0.0 }
 0x238   : > { %v11652_v2 = vpop.permute.xlu1 %9964  ;;  %v9955_v31 = vpop.permute.xlu0 %9954  ;;  %9511 = vmatprep.mubr.f32.mxu1 %v2418_v27  ;;  %v1849_v18 = vmax.f32 %v1275_v47, 0.0  ;;  %v1852_v27 = vmax.f32 %v11684_v48, 0.0  ;;  %v1851_v17 = vmax.f32 %v11688_v56, 0.0  ;;  %v2361_v58 = vsel %vm2345_vm2, %v1848_v32, %v9872_v14  ;;  %v16451_v32 = vld [vmem:[#allocation14_spill] sm:$0xff] }
 0x239   : > { %v9957_v16 = vunpack.i.h.bf16 %v9955_v31  ;;  %v9956_v15 = vunpack.i.l.bf16 %v9955_v31  ;;  %9512 = vmatmul.mubr.f32.gmra.mxu1 %v2419_v60  ;;  %v9877_v60 = vunpack.i.h.bf16 %v11541_v19  ;;  %v2360_v1 = vsel %vm2345_vm2, %v1847_v37, %v9871_v4  ;;  %v16448_v19 = vld [vmem:[#allocation11_spill] sm:$0xff] }
 0x23a   : > { %v2394_v3 = vsel %vm2378_vm3, %v2361_v58, %v9917_v11  ;;  %v1300_v5 = vadd.f32 %v11636_v10, %v16448_v19  ;;  %v2362_v57 = vsel %vm2345_vm2, %v1849_v18, %v9876_v20  ;;  %v9947_v61 = vunpack.i.h.bf16 %v11625_v54  ;;  %v16453_v18 = vld [vmem:[#allocation16_spill] sm:$0xff] }
 0x23b   : > { %v2420_v40 = vsel %vm2411_vm4, %v2387_v8, %v9956_v15  ;;  %v2421_v23 = vsel %vm2411_vm4, %v2388_v0, %v9957_v16  ;;  %v9921_v16 = vunpack.i.l.bf16 %v11559_v26  ;;  %v2393_v15 = vsel %vm2378_vm3, %v2360_v1, %v9916_v33  ;;  %v16449_v8 = vld [vmem:[#allocation12_spill] sm:$0xff] }
 0x23c   : > { %v9970_v41 = vpop.permute.xlu1 %9969  ;;  %v11668_v62 = vpop.permute.xlu0 %9959  ;;  %9514 = vmatprep.mubr.f32.mxu1 %v2420_v40  ;;  %v1295_v0 = vadd.f32 %v11636_v10, %v16449_v8  ;;  %v16450_v40 = vld [vmem:[#allocation13_spill] sm:$0xff]  ;;  %v11726_v26 = vadd.f32 %v11636_v10, %v16451_v32  ;;  %v9946_v36 = vunpack.i.l.bf16 %v11625_v54 }
 0x23d   : > { %v9972_v43 = vunpack.i.h.bf16 %v9970_v41  ;;  %v9971_v45 = vunpack.i.l.bf16 %v9970_v41  ;;  %9515 = vmatmul.mubr.f32.gmra.mxu1 %v2421_v23  ;;  %v11722_v23 = vadd.f32 %v11636_v10, %v16450_v40  ;;  %v2363_v41 = vsel %vm2345_vm2, %v1850_v24, %v9877_v60 }
 0x23e   : > { %v9962_v50 = vunpack.i.h.bf16 %v11668_v62  ;;  %v9961_v47 = vunpack.i.l.bf16 %v11668_v62  ;;  %v1853_v48 = vmax.f32 %v1295_v0, 0.0  ;;  %v1855_v62 = vmax.f32 %v11726_v26, 0.0 }
 0x23f   : > { %v2422_v30 = vsel %vm2411_vm4, %v2389_v12, %v9971_v45  ;;  %v2423_v49 = vsel %vm2411_vm4, %v2390_v6, %v9972_v43  ;;  %v9937_v43 = vunpack.i.h.bf16 %v11609_v28  ;;  %v9936_v45 = vunpack.i.l.bf16 %v11609_v28 }
 0x240   : > { %v11690_v51 = vpop.permute.xlu1 %9974  ;;  %v9980_v22 = vpop.permute.xlu0 %9979  ;;  %9517 = vmatprep.mubr.f32.mxu1 %v2422_v30  ;;  %v2395_v12 = vsel %vm2378_vm3, %v2362_v57, %v9921_v16  ;;  %v2396_v6 = vsel %vm2378_vm3, %v2363_v41, %v9922_v13  ;;  %v1854_v28 = vmax.f32 %v1300_v5, 0.0  ;;  %v1856_v14 = vmax.f32 %v11722_v23, 0.0  ;;  %v16456_v57 = vld [vmem:[#allocation19_spill] sm:$0xff] }
 0x241   : > { %v9982_v53 = vunpack.i.h.bf16 %v9980_v22  ;;  %v9981_v35 = vunpack.i.l.bf16 %v9980_v22  ;;  %9518 = vmatmul.mubr.f32.gmra.mxu1 %v2423_v49  ;;  %v2364_v54 = vsel %vm2345_vm2, %v1851_v17, %v9936_v45  ;;  %v2365_v9 = vsel %vm2345_vm2, %v1852_v27, %v9937_v43  ;;  %v16457_v43 = vld [vmem:[#allocation20_spill] sm:$0xff] }
 0x242   : > { %v2397_v4 = vsel %vm2378_vm3, %v2364_v54, %v9946_v36  ;;  %v2366_v33 = vsel %vm2345_vm2, %v1853_v48, %v9961_v47  ;;  %v9966_v27 = vunpack.i.l.bf16 %v11652_v2  ;;  %v9977_v20 = vunpack.i.h.bf16 %v11690_v51 }
 0x243   : > { %v2424_v29 = vsel %vm2411_vm4, %v2391_v38, %v9981_v35  ;;  %v2425_v52 = vsel %vm2411_vm4, %v2392_v21, %v9982_v53  ;;  %v2398_v53 = vsel %vm2378_vm3, %v2365_v9, %v9947_v61  ;;  %v2367_v38 = vsel %vm2345_vm2, %v1854_v28, %v9962_v50  ;;  %v16452_v21 = vld [vmem:[#allocation15_spill] sm:$0xff] }
 0x244   : > { %v9990_v44 = vpop.permute.xlu1 %9989  ;;  %v11706_v46 = vpop.permute.xlu0 %9984  ;;  %9520 = vmatprep.mubr.f32.mxu1 %v2424_v29  ;;  %v1320_v24 = vadd.f32 %v11636_v10, %v16452_v21  ;;  %v1315_v29 = vadd.f32 %v11636_v10, %v16453_v18  ;;  %v2399_v13 = vsel %vm2378_vm3, %v2366_v33, %v9966_v27  ;;  %v1340_v41 = vadd.f32 %v11636_v10, %v16456_v57 }
 0x245   : > { %v9992_v31 = vunpack.i.h.bf16 %v9990_v44  ;;  %v9991_v63 = vunpack.i.l.bf16 %v9990_v44  ;;  %9521 = vmatmul.mubr.f32.gmra.mxu1 %v2425_v52  ;;  %v9967_v52 = vunpack.i.h.bf16 %v11652_v2  ;;  %v9976_v44 = vunpack.i.l.bf16 %v11690_v51  ;;  %v16454_v51 = vld [vmem:[#allocation17_spill] sm:$0xff] }
 0x246   : > { %v9987_v1 = vunpack.i.h.bf16 %v11706_v46  ;;  %v9986_v58 = vunpack.i.l.bf16 %v11706_v46  ;;  %v1858_v5 = vmax.f32 %v1320_v24, 0.0  ;;  %v1857_v8 = vmax.f32 %v1315_v29, 0.0 }
 0x247   : > { %v2426_v42 = vsel %vm2411_vm4, %v2393_v15, %v9991_v63  ;;  %v2427_v39 = vsel %vm2411_vm4, %v2394_v3, %v9992_v31  ;;  %v2400_v16 = vsel %vm2378_vm3, %v2367_v38, %v9967_v52  ;;  %v1330_v0 = vadd.f32 %v11636_v10, %v16454_v51 }
 0x248   : > { %v11728_v37 = vpop.permute.xlu1 %10004  ;;  %v9995_v55 = vpop.permute.xlu0 %9994  ;;  %9523 = vmatprep.mubr.f32.mxu1 %v2426_v42  ;;  %v16455_v42 = vld [vmem:[#allocation18_spill] sm:$0xff]  ;;  %v2368_v26 = vsel %vm2345_vm2, %v1855_v62, %v9976_v44  ;;  %v1335_v45 = vadd.f32 %v11636_v10, %v16457_v43 }
 0x249   : > { %v9997_v34 = vunpack.i.h.bf16 %v9995_v55  ;;  %v9996_v59 = vunpack.i.l.bf16 %v9995_v55  ;;  %9524 = vmatmul.mubr.f32.gmra.mxu1 %v2427_v39  ;;  %v1325_v39 = vadd.f32 %v11636_v10, %v16455_v42  ;;  %v2369_v55 = vsel %vm2345_vm2, %v1856_v14, %v9977_v20 }
 0x24a   : > { %v10007_v50 = vunpack.i.h.bf16 %v11728_v37  ;;  %v10006_v47 = vunpack.i.l.bf16 %v11728_v37 }
 0x24b   : > { %v2428_v30 = vsel %vm2411_vm4, %v2395_v12, %v9996_v59  ;;  %v2429_v49 = vsel %vm2411_vm4, %v2396_v6, %v9997_v34  ;;  %v2401_v34 = vsel %vm2378_vm3, %v2368_v26, %v9986_v58  ;;  %v2402_v59 = vsel %vm2378_vm3, %v2369_v55, %v9987_v1  ;;  %v16459_v58 = vld [vmem:[#allocation22_spill] sm:$0xff] }
 0x24c   : > { %v10010_v25 = vpop.permute.xlu1 %10009  ;;  %v10000_v56 = vpop.permute.xlu0 %9999  ;;  %9526 = vmatprep.mubr.f32.mxu1 %v2428_v30 }
 0x24d   : > { %v10012_v22 = vunpack.i.h.bf16 %v10010_v25  ;;  %v10011_v7 = vunpack.i.l.bf16 %v10010_v25  ;;  %9527 = vmatmul.mubr.f32.gmra.mxu1 %v2429_v49  ;;  %v10002_v15 = vunpack.i.h.bf16 %v10000_v56  ;;  %v10001_v2 = vunpack.i.l.bf16 %v10000_v56 }
 0x24e   : > { %v1860_v25 = vmax.f32 %v1330_v0, 0.0  ;;  %v1859_v56 = vmax.f32 %v1325_v39, 0.0 }
 0x24f   : > { %v2430_v35 = vsel %vm2411_vm4, %v2397_v4, %v10011_v7  ;;  %v2431_v11 = vsel %vm2411_vm4, %v2398_v53, %v10012_v22  ;;  %v2370_v12 = vsel %vm2345_vm2, %v1857_v8, %v10001_v2  ;;  %v2371_v6 = vsel %vm2345_vm2, %v1858_v5, %v10002_v15 }
 0x250   : > { %v10015_v17 = vpop.permute.xlu1 %10014  ;;  %v10020_v60 = vpop.permute.xlu0 %10019  ;;  %9529 = vmatprep.mubr.f32.mxu1 %v2430_v35  ;;  %v2403_v14 = vsel %vm2378_vm3, %v2370_v12, %v10006_v47  ;;  %v2404_v62 = vsel %vm2378_vm3, %v2371_v6, %v10007_v50  ;;  %v1862_v53 = vmax.f32 %v1340_v41, 0.0  ;;  %v1861_v35 = vmax.f32 %v1335_v45, 0.0  ;;  %v2725_v6 = vld [vmem:[%s16460_s23 + $0x8] sm:$0xff] }
 0x251   : > { %v10022_v31 = vunpack.i.h.bf16 %v10020_v60  ;;  %v10021_v63 = vunpack.i.l.bf16 %v10020_v60  ;;  %9530 = vmatmul.mubr.f32.gmra.mxu1 %v2431_v11  ;;  %v10017_v30 = vunpack.i.h.bf16 %v10015_v17  ;;  %v10016_v49 = vunpack.i.l.bf16 %v10015_v17 }
 0x252   : > { %v16208_v12 = vmov 0.0  }
 0x253   : > { %v2432_v3 = vsel %vm2411_vm4, %v2399_v13, %v10021_v63  ;;  %v2433_v19 = vsel %vm2411_vm4, %v2400_v16, %v10022_v31  ;;  %v2372_v38 = vsel %vm2345_vm2, %v1859_v56, %v10016_v49  ;;  %v2373_v21 = vsel %vm2345_vm2, %v1860_v25, %v10017_v30  ;;  %v16458_v63 = vld [vmem:[#allocation21_spill] sm:$0xff]  ;;  %2980 = vmatprep.subr.mxu1 %v16208_v12 }
 0x254   : > { %v10030_v40 = vpop.permute.xlu1 %10029  ;;  %v10025_v46 = vpop.permute.xlu0 %10024  ;;  %9532 = vmatprep.mubr.f32.mxu1 %v2432_v3  ;;  %v1350_v1 = vadd.f32 %v11636_v10, %v16458_v63  ;;  %v1345_v13 = vadd.f32 %v11636_v10, %v16459_v58 }
 0x255   : > { %v10032_v23 = vunpack.i.h.bf16 %v10030_v40  ;;  %v10031_v32 = vunpack.i.l.bf16 %v10030_v40  ;;  %9533 = vmatmul.mubr.f32.gmra.mxu1 %v2433_v19  ;;  %v10027_v54 = vunpack.i.h.bf16 %v10025_v46  ;;  %v10026_v9 = vunpack.i.l.bf16 %v10025_v46 }
 0x256   : > { %v1864_v46 = vmax.f32 %v1350_v1, 0.0  ;;  %v1863_v10 = vmax.f32 %v1345_v13, 0.0 }
 0x257   : > { %v2434_v61 = vsel %vm2411_vm4, %v2401_v34, %v10031_v32  ;;  %v2435_v36 = vsel %vm2411_vm4, %v2402_v59, %v10032_v23  ;;  %v2405_v27 = vsel %vm2378_vm3, %v2372_v38, %v10026_v9  ;;  %v2406_v17 = vsel %vm2378_vm3, %v2373_v21, %v10027_v54 }
 0x258   : > { %v10045_v28 = vpop.permute.xlu1 %10044  ;;  %v10035_v48 = vpop.permute.xlu0 %10034  ;;  %9535 = vmatprep.mubr.f32.mxu1 %v2434_v61 }
 0x259   : > { %v10037_v22 = vunpack.i.h.bf16 %v10035_v48  ;;  %v10036_v7 = vunpack.i.l.bf16 %v10035_v48  ;;  %9536 = vmatmul.mubr.f32.gmra.mxu1 %v2435_v36  ;;  %v10047_v16 = vunpack.i.h.bf16 %v10045_v28  ;;  %v10046_v15 = vunpack.i.l.bf16 %v10045_v28 }
 0x25b   : > { %v2436_v4 = vsel %vm2411_vm4, %v2403_v14, %v10036_v7  ;;  %v2437_v37 = vsel %vm2411_vm4, %v2404_v62, %v10037_v22 }
 0x25c   : > { %v10050_v11 = vpop.permute.xlu1 %10049  ;;  %v10040_v33 = vpop.permute.xlu0 %10039  ;;  %9538 = vmatprep.mubr.f32.mxu1 %v2436_v4  ;;  %v11825_v4 = vld [vmem:[%s16461_s6] ss:$0 sm:$0xff]  ;;  %s10695_s6 = sshll.u32 %s10758_s20, 4  ;;  %s10696_s6 = int_to_ptr.vmem [resolvable:$false] %s10695_s6 }
 0x25d   : > { %v10052_v24 = vunpack.i.h.bf16 %v10050_v11  ;;  %v10051_v18 = vunpack.i.l.bf16 %v10050_v11  ;;  %v10042_v29 = vunpack.i.h.bf16 %v10040_v33  ;;  %v10041_v52 = vunpack.i.l.bf16 %v10040_v33  ;;  %9539 = vmatmul.mubr.f32.gmra.mxu1 %v2437_v37  ;;  %p10698_p0 = scmp.lt.s32.totalorder %s7919_s5, %s10696_s6 }
 0x25f   : > { %v2438_v60 = vsel %vm2411_vm4, %v2405_v27, %v10051_v18  ;;  %v2439_v20 = vsel %vm2411_vm4, %v2406_v17, %v10052_v24  ;;  %v2374_v44 = vsel %vm2345_vm2, %v1861_v35, %v10041_v52  ;;  %v2375_v31 = vsel %vm2345_vm2, %v1862_v53, %v10042_v29 }
 0x260   : > { %v10055_v2 = vpop.permute.xlu1 %10054  ;;  %v10060_v3 = vpop.permute.xlu0 %10059  ;;  %9541 = vmatprep.mubr.f32.mxu1 %v2438_v60  ;;  %v2407_v0 = vsel %vm2378_vm3, %v2374_v44, %v10046_v15  ;;  %v2408_v42 = vsel %vm2378_vm3, %v2375_v31, %v10047_v16 }
 0x261   : > { %v10062_v19 = vunpack.i.h.bf16 %v10060_v3  ;;  %v10061_v5 = vunpack.i.l.bf16 %v10060_v3  ;;  %9542 = vmatmul.mubr.f32.gmra.mxu1 %v2439_v20  ;;  %v10057_v8 = vunpack.i.h.bf16 %v10055_v2  ;;  %v10056_v51 = vunpack.i.l.bf16 %v10055_v2 }
 0x263   : > { %v2440_v39 = vsel %vm2411_vm4, %v2407_v0, %v10061_v5  ;;  %v2441_v40 = vsel %vm2411_vm4, %v2408_v42, %v10062_v19  ;;  %v2376_v43 = vsel %vm2345_vm2, %v1863_v10, %v10056_v51  ;;  %v2377_v45 = vsel %vm2345_vm2, %v1864_v46, %v10057_v8 }
 0x264   : > { %v10070_v23 = vpop.permute.xlu1 %10069  ;;  %v10065_v32 = vpop.permute.xlu0 %10064  ;;  %9544 = vmatprep.mubr.f32.mxu1 %v2440_v39 }
 0x265   : > { %v10072_v26 = vunpack.i.h.bf16 %v10070_v23  ;;  %v10071_v55 = vunpack.i.l.bf16 %v10070_v23  ;;  %v10067_v57 = vunpack.i.h.bf16 %v10065_v32  ;;  %v10066_v41 = vunpack.i.l.bf16 %v10065_v32  ;;  %9545 = vmatmul.mubr.f32.gmra.mxu1 %v2441_v40 }
 0x267   : > { %v2409_v34 = vsel %vm2378_vm3, %v2376_v43, %v10066_v41  ;;  %v2410_v59 = vsel %vm2378_vm3, %v2377_v45, %v10067_v57 }
 0x268   : > { %v2442_v61 = vsel %vm2411_vm4, %v2409_v34, %v10071_v55  ;;  %v2443_v36 = vsel %vm2411_vm4, %v2410_v59, %v10072_v26 }
 0x269   : > { %9547 = vmatprep.mubr.f32.mxu1 %v2442_v61 }
 0x26a   : > { %9548 = vmatmul.mubr.f32.gmra.mxu1 %v2443_v36 }
 0x26b   : > { %3044 = vmatprep.mubr.f32.mxu1 %v2725_v6 }
 0x2ed   : > { %v11814_v50 = vpop.f32.mrf.mxu1 }
 0x2ee   : > { %v2539_v41 = vadd.f32 %v11814_v50, %v11825_v4 }
 0x2ef   : > { %v11816_v47 = vpop.f32.mrf.mxu1 }
 0x2f0   : > { %v2534_v34 = vadd.f32 %v11825_v4, %v11816_v47  ;;  %v2693_v36 = vmax.f32 %v2539_v41, 0.0  ;;  %v2747_v41 = vld [vmem:[%s16460_s23 + $0xb8] sm:$0xff] }
 0x2f1   : > { %v11818_v30 = vpop.f32.mrf.mxu1 }
 0x2f2   : > { %v2549_v10 = vadd.f32 %v11818_v30, %v11825_v4  ;;  %v2692_v6 = vmax.f32 %v2534_v34, 0.0  ;;  %v2748_v34 = vld [vmem:[%s16460_s23 + $0xc0] sm:$0xff] }
 0x2f3   : > { %v11820_v49 = vpop.f32.mrf.mxu1 }
 0x2f4   : > { %v2544_v26 = vadd.f32 %v11825_v4, %v11820_v49  ;;  %v2695_v43 = vmax.f32 %v2549_v10, 0.0  ;;  %v2741_v10 = vld [vmem:[%s16460_s23 + $0x88] sm:$0xff] }
 0x2f5   : > { %v9510_v28 = vpop.f32.mrf.mxu1 }
 0x2f6   : > { %v2559_v51 = vadd.f32 %v9510_v28, %v11825_v4  ;;  %v2694_v59 = vmax.f32 %v2544_v26, 0.0  ;;  %v2742_v26 = vld [vmem:[%s16460_s23 + $0x90] sm:$0xff] }
 0x2f7   : > { %v2553_v48 = vpop.f32.mrf.mxu1 }
 0x2f8   : > { %v2554_v39 = vadd.f32 %v11825_v4, %v2553_v48  ;;  %v2697_v23 = vmax.f32 %v2559_v51, 0.0  ;;  %v2735_v51 = vld [vmem:[%s16460_s23 + $0x58] sm:$0xff] }
 0x2f9   : > { %v9513_v25 = vpop.f32.mrf.mxu1 }
 0x2fa   : > { %v2569_v15 = vadd.f32 %v9513_v25, %v11825_v4  ;;  %v2696_v55 = vmax.f32 %v2554_v39, 0.0  ;;  %v2736_v39 = vld [vmem:[%s16460_s23 + $0x60] sm:$0xff] }
 0x2fb   : > { %v2563_v56 = vpop.f32.mrf.mxu1 }
 0x2fc   : > { %v2564_v19 = vadd.f32 %v11825_v4, %v2563_v56  ;;  %v2699_v0 = vmax.f32 %v2569_v15, 0.0  ;;  %v2729_v15 = vld [vmem:[%s16460_s23 + $0x28] sm:$0xff] }
 0x2fd   : > { %v9516_v22 = vpop.f32.mrf.mxu1 }
 0x2fe   : > { %v2579_v31 = vadd.f32 %v9516_v22, %v11825_v4  ;;  %v2698_v40 = vmax.f32 %v2564_v19, 0.0  ;;  %v2730_v19 = vld [vmem:[%s16460_s23 + $0x30] sm:$0xff] }
 0x2ff   : > { %v2573_v7 = vpop.f32.mrf.mxu1 }
 0x300   : > { %v2574_v58 = vadd.f32 %v11825_v4, %v2573_v7  ;;  %v2701_v2 = vmax.f32 %v2579_v31, 0.0 }
 0x301   : > { %v9519_v54 = vpop.f32.mrf.mxu1 }
 0x302   : > { %v2589_v52 = vadd.f32 %v9519_v54, %v11825_v4  ;;  %v2700_v5 = vmax.f32 %v2574_v58, 0.0 }
 0x303   : > { %v2583_v9 = vpop.f32.mrf.mxu1 }
 0x304   : > { %v2584_v60 = vadd.f32 %v11825_v4, %v2583_v9  ;;  %v2703_v63 = vmax.f32 %v2589_v52, 0.0 }
 0x305   : > { %v9522_v14 = vpop.f32.mrf.mxu1 }
 0x306   : > { %v2599_v11 = vadd.f32 %v9522_v14, %v11825_v4  ;;  %v2702_v13 = vmax.f32 %v2584_v60, 0.0 }
 0x307   : > { %v2593_v62 = vpop.f32.mrf.mxu1 }
 0x308   : > { %v2594_v24 = vadd.f32 %v11825_v4, %v2593_v62  ;;  %v2705_v27 = vmax.f32 %v2599_v11, 0.0 }
 0x309   : > { %v9525_v37 = vpop.f32.mrf.mxu1 }
 0x30a   : > { %v2609_v53 = vadd.f32 %v9525_v37, %v11825_v4  ;;  %v2704_v20 = vmax.f32 %v2594_v24, 0.0 }
 0x30b   : > { %v2603_v35 = vpop.f32.mrf.mxu1 }
 0x30c   : > { %v2707_v33 = vmax.f32 %v2609_v53, 0.0  ;;  %v2604_v38 = vadd.f32 %v11825_v4, %v2603_v35 }
 0x30d   : > { %v11830_v21 = vpop.f32.mrf.mxu1 }
 0x30e   : > { %v2706_v18 = vmax.f32 %v2604_v38, 0.0  ;;  %2981 = vmatpush1.msra.mxu1 %v2707_v33 }
 0x30f   : > { %v11833_v29 = vpop.f32.mrf.mxu1  ;;  %2982 = vmatprep.subr.mxu1 %v16208_v12 }
 0x310   : > { %2983 = vmatpush1.msra.mxu1 %v2706_v18 }
 0x311   : > { %v11837_v17 = vpop.f32.mrf.mxu1  ;;  %2984 = vmatprep.subr.mxu1 %v16208_v12 }
 0x312   : > { %2985 = vmatpush1.msra.mxu1 %v2705_v27  ;;  %v2629_v60 = vadd.f32 %v11837_v17, %v11825_v4  ;;  %v2614_v17 = vadd.f32 %v11825_v4, %v11833_v29  ;;  %v2726_v29 = vld [vmem:[%s16460_s23 + $0x10] sm:$0xff] }
 0x313   : > { %v11841_v44 = vpop.f32.mrf.mxu1  ;;  %2986 = vmatprep.subr.mxu1 %v16208_v12 }
 0x314   : > { %2987 = vmatpush1.msra.mxu1 %v2704_v20  ;;  %v2624_v31 = vadd.f32 %v11825_v4, %v11841_v44  ;;  %v2711_v58 = vmax.f32 %v2629_v60, 0.0  ;;  %v2708_v44 = vmax.f32 %v2614_v17, 0.0  ;;  %v2779_v60 = vld [vmem:[%s16460_s23 + $0x1b8] sm:$0xff]  ;;  %v2785_v17 = vld [vmem:[%s16460_s23 + $0x1e8] sm:$0xff] }
 0x315   : > { %v11845_v1 = vpop.f32.mrf.mxu1  ;;  %2988 = vmatprep.subr.mxu1 %v16208_v12 }
 0x316   : > { %2989 = vmatpush1.msra.mxu1 %v2703_v63  ;;  %v2639_v24 = vadd.f32 %v11845_v1, %v11825_v4  ;;  %v2619_v1 = vadd.f32 %v11830_v21, %v11825_v4  ;;  %v2724_v21 = vld [vmem:[%s16460_s23] sm:$0xff] }
 0x317   : > { %v11849_v16 = vpop.f32.mrf.mxu1  ;;  %2990 = vmatprep.subr.mxu1 %v16208_v12 }
 0x318   : > { %2991 = vmatpush1.msra.mxu1 %v2702_v13  ;;  %v2634_v52 = vadd.f32 %v11825_v4, %v11849_v16  ;;  %v2713_v20 = vmax.f32 %v2639_v24, 0.0  ;;  %v2710_v13 = vmax.f32 %v2624_v31, 0.0  ;;  %v2709_v16 = vmax.f32 %v2619_v1, 0.0  ;;  %v2775_v24 = vld [vmem:[%s16460_s23 + $0x198] sm:$0xff]  ;;  %v2781_v31 = vld [vmem:[%s16460_s23 + $0x1c8] sm:$0xff] }
 0x319   : > { %v11853_v3 = vpop.f32.mrf.mxu1  ;;  %2992 = vmatprep.subr.mxu1 %v16208_v12  ;;  %v2783_v1 = vld [vmem:[%s16460_s23 + $0x1d8] sm:$0xff] }
 0x31a   : > { %2993 = vmatpush1.msra.mxu1 %v2701_v2  ;;  %v2649_v35 = vadd.f32 %v11853_v3, %v11825_v4  ;;  %v2712_v63 = vmax.f32 %v2634_v52, 0.0  ;;  %v2728_v2 = vld [vmem:[%s16460_s23 + $0x20] sm:$0xff]  ;;  %v2731_v3 = vld [vmem:[%s16460_s23 + $0x38] sm:$0xff]  ;;  %v2777_v52 = vld [vmem:[%s16460_s23 + $0x1a8] sm:$0xff] }
 0x31b   : > { %v11857_v8 = vpop.f32.mrf.mxu1  ;;  %2994 = vmatprep.subr.mxu1 %v16208_v12 }
 0x31c   : > { %2995 = vmatpush1.msra.mxu1 %v2700_v5  ;;  %v2644_v33 = vadd.f32 %v11825_v4, %v11857_v8  ;;  %v2715_v18 = vmax.f32 %v2649_v35, 0.0  ;;  %v2733_v5 = vld [vmem:[%s16460_s23 + $0x48] sm:$0xff]  ;;  %v2732_v8 = vld [vmem:[%s16460_s23 + $0x40] sm:$0xff]  ;;  %v2771_v35 = vld [vmem:[%s16460_s23 + $0x178] sm:$0xff] }
 0x31d   : > { %v9540_v42 = vpop.f32.mrf.mxu1  ;;  %2996 = vmatprep.subr.mxu1 %v16208_v12 }
 0x31e   : > { %2997 = vmatpush1.msra.mxu1 %v2699_v0  ;;  %v2659_v14 = vadd.f32 %v9540_v42, %v11825_v4  ;;  %v2714_v27 = vmax.f32 %v2644_v33, 0.0  ;;  %v2734_v0 = vld [vmem:[%s16460_s23 + $0x50] sm:$0xff]  ;;  %v2737_v42 = vld [vmem:[%s16460_s23 + $0x68] sm:$0xff] }
 0x31f   : > { %v2653_v46 = vpop.f32.mrf.mxu1  ;;  %2998 = vmatprep.subr.mxu1 %v16208_v12  ;;  %v2773_v33 = vld [vmem:[%s16460_s23 + $0x188] sm:$0xff] }
 0x320   : > { %2999 = vmatpush1.msra.mxu1 %v2698_v40  ;;  %v2654_v37 = vadd.f32 %v11825_v4, %v2653_v46  ;;  %v2717_v11 = vmax.f32 %v2659_v14, 0.0  ;;  %v2739_v40 = vld [vmem:[%s16460_s23 + $0x78] sm:$0xff]  ;;  %v2738_v46 = vld [vmem:[%s16460_s23 + $0x70] sm:$0xff] }
 0x321   : > { %v9543_v32 = vpop.f32.mrf.mxu1  ;;  %3000 = vmatprep.subr.mxu1 %v16208_v12  ;;  %v2767_v14 = vld [vmem:[%s16460_s23 + $0x158] sm:$0xff] }
 0x322   : > { %3001 = vmatpush1.msra.mxu1 %v2697_v23  ;;  %v2669_v22 = vadd.f32 %v9543_v32, %v11825_v4  ;;  %v2716_v38 = vmax.f32 %v2654_v37, 0.0  ;;  %v2740_v23 = vld [vmem:[%s16460_s23 + $0x80] sm:$0xff]  ;;  %v2743_v32 = vld [vmem:[%s16460_s23 + $0x98] sm:$0xff]  ;;  %v2769_v37 = vld [vmem:[%s16460_s23 + $0x168] sm:$0xff] }
 0x323   : > { %v2663_v57 = vpop.f32.mrf.mxu1  ;;  %3002 = vmatprep.subr.mxu1 %v16208_v12 }
 0x324   : > { %3003 = vmatpush1.msra.mxu1 %v2696_v55  ;;  %v2664_v54 = vadd.f32 %v11825_v4, %v2663_v57  ;;  %v2719_v62 = vmax.f32 %v2669_v22, 0.0  ;;  %v2745_v55 = vld [vmem:[%s16460_s23 + $0xa8] sm:$0xff]  ;;  %v2744_v57 = vld [vmem:[%s16460_s23 + $0xa0] sm:$0xff]  ;;  %v2763_v22 = vld [vmem:[%s16460_s23 + $0x138] sm:$0xff] }
 0x325   : > { %v9546_v45 = vpop.f32.mrf.mxu1  ;;  %3004 = vmatprep.subr.mxu1 %v16208_v12 }
 0x326   : > { %3005 = vmatpush1.msra.mxu1 %v2695_v43  ;;  %v2679_v47 = vadd.f32 %v9546_v45, %v11825_v4  ;;  %v2718_v53 = vmax.f32 %v2664_v54, 0.0  ;;  %v2746_v43 = vld [vmem:[%s16460_s23 + $0xb0] sm:$0xff]  ;;  %v2749_v45 = vld [vmem:[%s16460_s23 + $0xc8] sm:$0xff] }
 0x327   : > { %v2673_v61 = vpop.f32.mrf.mxu1  ;;  %3006 = vmatprep.subr.mxu1 %v16208_v12  ;;  %v2765_v54 = vld [vmem:[%s16460_s23 + $0x148] sm:$0xff] }
 0x328   : > { %3007 = vmatpush1.msra.mxu1 %v2694_v59  ;;  %v2674_v25 = vadd.f32 %v11825_v4, %v2673_v61  ;;  %v2721_v7 = vmax.f32 %v2679_v47, 0.0  ;;  %v2751_v59 = vld [vmem:[%s16460_s23 + $0xd8] sm:$0xff]  ;;  %v2750_v61 = vld [vmem:[%s16460_s23 + $0xd0] sm:$0xff]  ;;  %v2756_v47 = vld [vmem:[%s16460_s23 + $0x100] sm:$0xff] }
 0x329   : > { %3008 = vmatprep.subr.mxu1 %v16208_v12 }
 0x32a   : > { %v9549_v30 = vpop.f32.mrf.mxu1  ;;  %3009 = vmatpush1.msra.mxu1 %v2693_v36  ;;  %v2720_v9 = vmax.f32 %v2674_v25, 0.0  ;;  %v2753_v36 = vld [vmem:[%s16460_s23 + $0xe8] sm:$0xff] }
 0x32b   : > { %v2689_v50 = vadd.f32 %v9549_v30, %v11825_v4  ;;  %3010 = vmatprep.subr.mxu1 %v16208_v12  ;;  %v2755_v30 = vld [vmem:[%s16460_s23 + $0xf8] sm:$0xff]  ;;  %v2761_v25 = vld [vmem:[%s16460_s23 + $0x128] sm:$0xff] }
 0x32c   : > { %v2683_v49 = vpop.f32.mrf.mxu1  ;;  %3011 = vmatpush1.msra.mxu1 %v2692_v6  ;;  %v2752_v6 = vld [vmem:[%s16460_s23 + $0xe0] sm:$0xff] }
 0x32d   : > { %v2723_v28 = vmax.f32 %v2689_v50, 0.0  ;;  %v2684_v48 = vadd.f32 %v11825_v4, %v2683_v49  ;;  %3012 = vmatprep.subr.mxu1 %v16208_v12  ;;  %v2727_v4 = vld [vmem:[%s16460_s23 + $0x18] sm:$0xff]  ;;  %v2754_v50 = vld [vmem:[%s16460_s23 + $0xf0] sm:$0xff]  ;;  %v2757_v49 = vld [vmem:[%s16460_s23 + $0x108] sm:$0xff] }
 0x32f   : > { %v2722_v56 = vmax.f32 %v2684_v48, 0.0  ;;  %3013 = vmatpush2.msra.mxu1 %v2723_v28  ;;  %v2759_v28 = vld [vmem:[%s16460_s23 + $0x118] sm:$0xff]  ;;  %v2758_v48 = vld [vmem:[%s16460_s23 + $0x110] sm:$0xff] }
 0x330   : > { %3014 = vmatprep.subr.mxu1 %v16208_v12 }
 0x331   : > { %3015 = vmatpush2.msra.mxu1 %v2722_v56  ;;  %v2760_v56 = vld [vmem:[%s16460_s23 + $0x120] sm:$0xff] }
 0x332   : > { %3016 = vmatprep.subr.mxu1 %v16208_v12 }
 0x333   : > { %3017 = vmatpush2.msra.mxu1 %v2721_v7  ;;  %v2762_v7 = vld [vmem:[%s16460_s23 + $0x130] sm:$0xff] }
 0x334   : > { %3018 = vmatprep.subr.mxu1 %v16208_v12 }
 0x335   : > { %3019 = vmatpush2.msra.mxu1 %v2720_v9  ;;  %v2764_v9 = vld [vmem:[%s16460_s23 + $0x140] sm:$0xff] }
 0x336   : > { %3020 = vmatprep.subr.mxu1 %v16208_v12 }
 0x337   : > { %3021 = vmatpush2.msra.mxu1 %v2719_v62  ;;  %v2766_v62 = vld [vmem:[%s16460_s23 + $0x150] sm:$0xff] }
 0x338   : > { %3022 = vmatprep.subr.mxu1 %v16208_v12 }
 0x339   : > { %3023 = vmatpush2.msra.mxu1 %v2718_v53  ;;  %v2768_v53 = vld [vmem:[%s16460_s23 + $0x160] sm:$0xff] }
 0x33a   : > { %3024 = vmatprep.subr.mxu1 %v16208_v12 }
 0x33b   : > { %3025 = vmatpush2.msra.mxu1 %v2717_v11  ;;  %v2770_v11 = vld [vmem:[%s16460_s23 + $0x170] sm:$0xff] }
 0x33c   : > { %3026 = vmatprep.subr.mxu1 %v16208_v12 }
 0x33d   : > { %3027 = vmatpush2.msra.mxu1 %v2716_v38  ;;  %v2772_v38 = vld [vmem:[%s16460_s23 + $0x180] sm:$0xff] }
 0x33e   : > { %3028 = vmatprep.subr.mxu1 %v16208_v12 }
 0x33f   : > { %3029 = vmatpush2.msra.mxu1 %v2715_v18  ;;  %v2774_v18 = vld [vmem:[%s16460_s23 + $0x190] sm:$0xff] }
 0x340   : > { %3030 = vmatprep.subr.mxu1 %v16208_v12 }
 0x341   : > { %3031 = vmatpush2.msra.mxu1 %v2714_v27  ;;  %v2776_v27 = vld [vmem:[%s16460_s23 + $0x1a0] sm:$0xff] }
 0x342   : > { %3032 = vmatprep.subr.mxu1 %v16208_v12 }
 0x343   : > { %3033 = vmatpush2.msra.mxu1 %v2713_v20  ;;  %v2778_v20 = vld [vmem:[%s16460_s23 + $0x1b0] sm:$0xff] }
 0x344   : > { %3034 = vmatprep.subr.mxu1 %v16208_v12 }
 0x345   : > { %3035 = vmatpush2.msra.mxu1 %v2712_v63  ;;  %v2780_v63 = vld [vmem:[%s16460_s23 + $0x1c0] sm:$0xff] }
 0x346   : > { %3036 = vmatprep.subr.mxu1 %v16208_v12 }
 0x347   : > { %3037 = vmatpush2.msra.mxu1 %v2711_v58  ;;  %v2782_v58 = vld [vmem:[%s16460_s23 + $0x1d0] sm:$0xff] }
 0x348   : > { %3038 = vmatprep.subr.mxu1 %v16208_v12 }
 0x349   : > { %3039 = vmatpush2.msra.mxu1 %v2710_v13  ;;  %v2784_v13 = vld [vmem:[%s16460_s23 + $0x1e0] sm:$0xff] }
 0x34a   : > { %3040 = vmatprep.subr.mxu1 %v16208_v12 }
 0x34b   : > { %3041 = vmatpush2.msra.mxu1 %v2709_v16  ;;  %v2787_v16 = vld [vmem:[%s16460_s23 + $0x1f8] sm:$0xff] }
 0x34c   : > { %3042 = vmatprep.subr.mxu1 %v16208_v12 }
 0x34d   : > { %3043 = vmatpush2.msra.mxu1 %v2708_v44  ;;  %v2786_v44 = vld [vmem:[%s16460_s23 + $0x1f0] sm:$0xff] }
 0x34e   : > { %3045 = vmatmul.mubr.f32.vlgmr.msra.gmra.mxu1 %v2724_v21  ;;  %v2789_v21 = vld [vmem:[%s16460_s23 + $0x208] sm:$0xff] }
 0x34f   : > { %3049 = vmatprep.mubr.f32.mxu1 %v2727_v4  ;;  %v2788_v4 = vld [vmem:[%s16460_s23 + $0x200] sm:$0xff] }
 0x352   : > { %3050 = vmatmul.mubr.f32.gmra.mxu1 %v2726_v29  ;;  %v2791_v29 = vld [vmem:[%s16460_s23 + $0x218] sm:$0xff] }
 0x353   : > { %3054 = vmatprep.mubr.f32.mxu1 %v2729_v15  ;;  %v2790_v15 = vld [vmem:[%s16460_s23 + $0x210] sm:$0xff] }
 0x356   : > { %3055 = vmatmul.mubr.f32.gmra.mxu1 %v2728_v2  ;;  %v2793_v2 = vld [vmem:[%s16460_s23 + $0x228] sm:$0xff] }
 0x357   : > { %3059 = vmatprep.mubr.f32.mxu1 %v2731_v3  ;;  %v2792_v3 = vld [vmem:[%s16460_s23 + $0x220] sm:$0xff] }
 0x35a   : > { %3060 = vmatmul.mubr.f32.gmra.mxu1 %v2730_v19  ;;  %v2795_v19 = vld [vmem:[%s16460_s23 + $0x238] sm:$0xff] }
 0x35b   : > { %3064 = vmatprep.mubr.f32.mxu1 %v2733_v5  ;;  %v2794_v5 = vld [vmem:[%s16460_s23 + $0x230] sm:$0xff] }
 0x35e   : > { %3065 = vmatmul.mubr.f32.gmra.mxu1 %v2732_v8  ;;  %v2797_v8 = vld [vmem:[%s16460_s23 + $0x248] sm:$0xff] }
 0x35f   : > { %3069 = vmatprep.mubr.f32.mxu1 %v2735_v51  ;;  %v2796_v51 = vld [vmem:[%s16460_s23 + $0x240] sm:$0xff] }
 0x362   : > { %3070 = vmatmul.mubr.f32.gmra.mxu1 %v2734_v0  ;;  %v2799_v0 = vld [vmem:[%s16460_s23 + $0x258] sm:$0xff] }
 0x363   : > { %3074 = vmatprep.mubr.f32.mxu1 %v2737_v42  ;;  %v2798_v42 = vld [vmem:[%s16460_s23 + $0x250] sm:$0xff] }
 0x366   : > { %3075 = vmatmul.mubr.f32.gmra.mxu1 %v2736_v39  ;;  %v2801_v39 = vld [vmem:[%s16460_s23 + $0x268] sm:$0xff] }
 0x367   : > { %3079 = vmatprep.mubr.f32.mxu1 %v2739_v40  ;;  %v2800_v40 = vld [vmem:[%s16460_s23 + $0x260] sm:$0xff] }
 0x36a   : > { %3080 = vmatmul.mubr.f32.gmra.mxu1 %v2738_v46  ;;  %v2803_v46 = vld [vmem:[%s16460_s23 + $0x278] sm:$0xff] }
 0x36b   : > { %3084 = vmatprep.mubr.f32.mxu1 %v2741_v10  ;;  %v2802_v10 = vld [vmem:[%s16460_s23 + $0x270] sm:$0xff] }
 0x36e   : > { %3085 = vmatmul.mubr.f32.gmra.mxu1 %v2740_v23  ;;  %v2805_v23 = vld [vmem:[%s16460_s23 + $0x288] sm:$0xff] }
 0x36f   : > { %3089 = vmatprep.mubr.f32.mxu1 %v2743_v32  ;;  %v2804_v32 = vld [vmem:[%s16460_s23 + $0x280] sm:$0xff] }
 0x372   : > { %3090 = vmatmul.mubr.f32.gmra.mxu1 %v2742_v26  ;;  %v2807_v26 = vld [vmem:[%s16460_s23 + $0x298] sm:$0xff] }
 0x373   : > { %3094 = vmatprep.mubr.f32.mxu1 %v2745_v55  ;;  %v2806_v55 = vld [vmem:[%s16460_s23 + $0x290] sm:$0xff] }
 0x376   : > { %3095 = vmatmul.mubr.f32.gmra.mxu1 %v2744_v57  ;;  %v2809_v57 = vld [vmem:[%s16460_s23 + $0x2a8] sm:$0xff] }
 0x377   : > { %3099 = vmatprep.mubr.f32.mxu1 %v2747_v41  ;;  %v2808_v41 = vld [vmem:[%s16460_s23 + $0x2a0] sm:$0xff] }
 0x37a   : > { %3100 = vmatmul.mubr.f32.gmra.mxu1 %v2746_v43  ;;  %v2811_v43 = vld [vmem:[%s16460_s23 + $0x2b8] sm:$0xff] }
 0x37b   : > { %3104 = vmatprep.mubr.f32.mxu1 %v2749_v45  ;;  %v2810_v45 = vld [vmem:[%s16460_s23 + $0x2b0] sm:$0xff] }
 0x37e   : > { %3105 = vmatmul.mubr.f32.gmra.mxu1 %v2748_v34  ;;  %v2813_v34 = vld [vmem:[%s16460_s23 + $0x2c8] sm:$0xff] }
 0x37f   : > { %3109 = vmatprep.mubr.f32.mxu1 %v2751_v59  ;;  %v2812_v59 = vld [vmem:[%s16460_s23 + $0x2c0] sm:$0xff] }
 0x382   : > { %3110 = vmatmul.mubr.f32.gmra.mxu1 %v2750_v61  ;;  %v2815_v61 = vld [vmem:[%s16460_s23 + $0x2d8] sm:$0xff] }
 0x383   : > { %3114 = vmatprep.mubr.f32.mxu1 %v2753_v36  ;;  %v2814_v36 = vld [vmem:[%s16460_s23 + $0x2d0] sm:$0xff] }
 0x386   : > { %3115 = vmatmul.mubr.f32.gmra.mxu1 %v2752_v6  ;;  %v2817_v6 = vld [vmem:[%s16460_s23 + $0x2e8] sm:$0xff] }
 0x387   : > { %3119 = vmatprep.mubr.f32.mxu1 %v2755_v30  ;;  %v2816_v30 = vld [vmem:[%s16460_s23 + $0x2e0] sm:$0xff] }
 0x38a   : > { %3120 = vmatmul.mubr.f32.gmra.mxu1 %v2754_v50  ;;  %v2819_v50 = vld [vmem:[%s16460_s23 + $0x2f8] sm:$0xff] }
 0x38b   : > { %3124 = vmatprep.mubr.f32.mxu1 %v2757_v49  ;;  %v2818_v49 = vld [vmem:[%s16460_s23 + $0x2f0] sm:$0xff] }
 0x38e   : > { %3125 = vmatmul.mubr.f32.gmra.mxu1 %v2756_v47  ;;  %v2821_v47 = vld [vmem:[%s16460_s23 + $0x308] sm:$0xff] }
 0x38f   : > { %3129 = vmatprep.mubr.f32.mxu1 %v2759_v28  ;;  %v2820_v28 = vld [vmem:[%s16460_s23 + $0x300] sm:$0xff] }
 0x392   : > { %3130 = vmatmul.mubr.f32.gmra.mxu1 %v2758_v48  ;;  %v2823_v48 = vld [vmem:[%s16460_s23 + $0x318] sm:$0xff] }
 0x393   : > { %3134 = vmatprep.mubr.f32.mxu1 %v2761_v25 }
 0x396   : > { %3135 = vmatmul.mubr.f32.gmra.mxu1 %v2760_v56  ;;  %v2822_v56 = vld [vmem:[%s16460_s23 + $0x310] sm:$0xff] }
 0x397   : > { %3139 = vmatprep.mubr.f32.mxu1 %v2763_v22 }
 0x39a   : > { %3140 = vmatmul.mubr.f32.gmra.mxu1 %v2762_v7  ;;  %v2825_v7 = vld [vmem:[%s16460_s23 + $0x328] sm:$0xff] }
 0x39b   : > { %3144 = vmatprep.mubr.f32.mxu1 %v2765_v54 }
 0x39e   : > { %3145 = vmatmul.mubr.f32.gmra.mxu1 %v2764_v9  ;;  %v2824_v9 = vld [vmem:[%s16460_s23 + $0x320] sm:$0xff] }
 0x39f   : > { %3149 = vmatprep.mubr.f32.mxu1 %v2767_v14 }
 0x3a2   : > { %3150 = vmatmul.mubr.f32.gmra.mxu1 %v2766_v62  ;;  %v2827_v62 = vld [vmem:[%s16460_s23 + $0x338] sm:$0xff] }
 0x3a3   : > { %3154 = vmatprep.mubr.f32.mxu1 %v2769_v37 }
 0x3a6   : > { %3155 = vmatmul.mubr.f32.gmra.mxu1 %v2768_v53  ;;  %v2826_v53 = vld [vmem:[%s16460_s23 + $0x330] sm:$0xff] }
 0x3a7   : > { %3159 = vmatprep.mubr.f32.mxu1 %v2771_v35 }
 0x3aa   : > { %3160 = vmatmul.mubr.f32.gmra.mxu1 %v2770_v11  ;;  %v2829_v11 = vld [vmem:[%s16460_s23 + $0x348] sm:$0xff] }
 0x3ab   : > { %3164 = vmatprep.mubr.f32.mxu1 %v2773_v33 }
 0x3ae   : > { %3165 = vmatmul.mubr.f32.gmra.mxu1 %v2772_v38  ;;  %v2828_v38 = vld [vmem:[%s16460_s23 + $0x340] sm:$0xff] }
 0x3af   : > { %3169 = vmatprep.mubr.f32.mxu1 %v2775_v24 }
 0x3b2   : > { %3170 = vmatmul.mubr.f32.gmra.mxu1 %v2774_v18  ;;  %v2831_v18 = vld [vmem:[%s16460_s23 + $0x358] sm:$0xff] }
 0x3b3   : > { %3174 = vmatprep.mubr.f32.mxu1 %v2777_v52 }
 0x3b6   : > { %3175 = vmatmul.mubr.f32.gmra.mxu1 %v2776_v27  ;;  %v2830_v27 = vld [vmem:[%s16460_s23 + $0x350] sm:$0xff] }
 0x3b7   : > { %3179 = vmatprep.mubr.f32.mxu1 %v2779_v60 }
 0x3ba   : > { %3180 = vmatmul.mubr.f32.gmra.mxu1 %v2778_v20  ;;  %v2833_v20 = vld [vmem:[%s16460_s23 + $0x368] sm:$0xff] }
 0x3bb   : > { %3184 = vmatprep.mubr.f32.mxu1 %v2781_v31 }
 0x3be   : > { %3185 = vmatmul.mubr.f32.gmra.mxu1 %v2780_v63  ;;  %v2832_v63 = vld [vmem:[%s16460_s23 + $0x360] sm:$0xff] }
 0x3bf   : > { %3189 = vmatprep.mubr.f32.mxu1 %v2783_v1 }
 0x3c2   : > { %3190 = vmatmul.mubr.f32.gmra.mxu1 %v2782_v58  ;;  %v2835_v58 = vld [vmem:[%s16460_s23 + $0x378] sm:$0xff] }
 0x3c3   : > { %3194 = vmatprep.mubr.f32.mxu1 %v2785_v17 }
 0x3c6   : > { %3195 = vmatmul.mubr.f32.gmra.mxu1 %v2784_v13  ;;  %v2834_v13 = vld [vmem:[%s16460_s23 + $0x370] sm:$0xff] }
 0x3c7   : > { %3199 = vmatprep.mubr.f32.mxu1 %v2787_v16 }
 0x3ca   : > { %3200 = vmatmul.mubr.f32.gmra.mxu1 %v2786_v44  ;;  %v2837_v44 = vld [vmem:[%s16460_s23 + $0x388] sm:$0xff] }
 0x3cb   : > { %3204 = vmatprep.mubr.f32.mxu1 %v2789_v21 }
 0x3ce   : > { %3205 = vmatmul.mubr.f32.gmra.mxu1 %v2788_v4  ;;  %v2836_v4 = vld [vmem:[%s16460_s23 + $0x380] sm:$0xff] }
 0x3cf   : > { %3209 = vmatprep.mubr.f32.mxu1 %v2791_v29 }
 0x3d2   : > { %3210 = vmatmul.mubr.f32.gmra.mxu1 %v2790_v15  ;;  %v2839_v15 = vld [vmem:[%s16460_s23 + $0x398] sm:$0xff] }
 0x3d3   : > { %3214 = vmatprep.mubr.f32.mxu1 %v2793_v2 }
 0x3d6   : > { %3215 = vmatmul.mubr.f32.gmra.mxu1 %v2792_v3  ;;  %v2838_v3 = vld [vmem:[%s16460_s23 + $0x390] sm:$0xff] }
 0x3d7   : > { %3219 = vmatprep.mubr.f32.mxu1 %v2795_v19 }
 0x3da   : > { %3220 = vmatmul.mubr.f32.gmra.mxu1 %v2794_v5  ;;  %v2841_v5 = vld [vmem:[%s16460_s23 + $0x3a8] sm:$0xff] }
 0x3db   : > { %3224 = vmatprep.mubr.f32.mxu1 %v2797_v8 }
 0x3de   : > { %3225 = vmatmul.mubr.f32.gmra.mxu1 %v2796_v51  ;;  %v2840_v51 = vld [vmem:[%s16460_s23 + $0x3a0] sm:$0xff] }
 0x3df   : > { %3229 = vmatprep.mubr.f32.mxu1 %v2799_v0 }
 0x3e2   : > { %3230 = vmatmul.mubr.f32.gmra.mxu1 %v2798_v42  ;;  %v2843_v42 = vld [vmem:[%s16460_s23 + $0x3b8] sm:$0xff] }
 0x3e3   : > { %3234 = vmatprep.mubr.f32.mxu1 %v2801_v39 }
 0x3e6   : > { %3235 = vmatmul.mubr.f32.gmra.mxu1 %v2800_v40  ;;  %v2842_v40 = vld [vmem:[%s16460_s23 + $0x3b0] sm:$0xff] }
 0x3e7   : > { %3239 = vmatprep.mubr.f32.mxu1 %v2803_v46 }
 0x3ea   : > { %3240 = vmatmul.mubr.f32.gmra.mxu1 %v2802_v10  ;;  %v2845_v10 = vld [vmem:[%s16460_s23 + $0x3c8] sm:$0xff] }
 0x3eb   : > { %3244 = vmatprep.mubr.f32.mxu1 %v2805_v23 }
 0x3ee   : > { %3245 = vmatmul.mubr.f32.gmra.mxu1 %v2804_v32  ;;  %v3956_v32 = vld [vmem:[%s16474_s7 + $0xf8] sm:$0xff] }
 0x3ef   : > { %3249 = vmatprep.mubr.f32.mxu1 %v2807_v26  ;;  %v2844_v26 = vld [vmem:[%s16460_s23 + $0x3c0] sm:$0xff]  ;;  %8371 = vmatprep.subr.mxu0 %v3956_v32 }
 0x3f2   : > { %3250 = vmatmul.mubr.f32.gmra.mxu1 %v2806_v55 }
 0x3f3   : > { %3254 = vmatprep.mubr.f32.mxu1 %v2809_v57  ;;  %v2847_v57 = vld [vmem:[%s16460_s23 + $0x3d8] sm:$0xff] }
 0x3f6   : > { %3255 = vmatmul.mubr.f32.gmra.mxu1 %v2808_v41  ;;  %v3940_v41 = vld [vmem:[%s16474_s7 + $0x78] sm:$0xff] }
 0x3f7   : > { %3259 = vmatprep.mubr.f32.mxu1 %v2811_v43  ;;  %8372 = vmatpush3.msra.mxu0 %v3940_v41  ;;  %v3953_v41 = vld [vmem:[%s16474_s7 + $0xe0] sm:$0xff] }
 0x3fa   : > { %3260 = vmatmul.mubr.f32.gmra.mxu1 %v2810_v45  ;;  %v2846_v45 = vld [vmem:[%s16460_s23 + $0x3d0] sm:$0xff] }
 0x3fb   : > { %3264 = vmatprep.mubr.f32.mxu1 %v2813_v34 }
 0x3fe   : > { %3265 = vmatmul.mubr.f32.gmra.mxu1 %v2812_v59  ;;  %v2849_v59 = vld [vmem:[%s16460_s23 + $0x3e8] sm:$0xff] }
 0x3ff   : > { %3269 = vmatprep.mubr.f32.mxu1 %v2815_v61 }
 0x402   : > { %3270 = vmatmul.mubr.f32.gmra.mxu1 %v2814_v36  ;;  %v2848_v36 = vld [vmem:[%s16460_s23 + $0x3e0] sm:$0xff] }
 0x403   : > { %3274 = vmatprep.mubr.f32.mxu1 %v2817_v6 }
 0x406   : > { %3275 = vmatmul.mubr.f32.gmra.mxu1 %v2816_v30  ;;  %v2851_v30 = vld [vmem:[%s16460_s23 + $0x3f8] sm:$0xff] }
 0x407   : > { %3279 = vmatprep.mubr.f32.mxu1 %v2819_v50 }
 0x40a   : > { %3280 = vmatmul.mubr.f32.gmra.mxu1 %v2818_v49  ;;  %v2850_v49 = vld [vmem:[%s16460_s23 + $0x3f0] sm:$0xff] }
 0x40b   : > { %3284 = vmatprep.mubr.f32.mxu1 %v2821_v47 }
 0x40e   : > { %v12212_v25 = vpop.f32.mrf.mxu1  ;;  %3285 = vmatmul.mubr.f32.gmra.mxu1 %v2820_v28  ;;  %v2853_v28 = vld [vmem:[%s16460_s23 + $0x408] sm:$0xff] }
 0x40f   : > { %16462 = vst [vmem:[#allocation10_spill] sm:$0xff] %v12212_v25  ;;  %3289 = vmatprep.mubr.f32.mxu1 %v2823_v48 }
 0x410   : > { %v3048_v22 = vpop.f32.mrf.mxu1 }
 0x411   : > { %v2852_v22 = vld [vmem:[%s16460_s23 + $0x400] sm:$0xff] }
 0x412   : > { %v12220_v54 = vpop.f32.mrf.mxu1  ;;  %3290 = vmatmul.mubr.f32.gmra.mxu1 %v2822_v56  ;;  %v3955_v56 = vld [vmem:[%s16474_s7 + $0xf0] sm:$0xff] }
 0x413   : > { %16463 = vst [vmem:[#allocation11_spill] sm:$0xff] %v12220_v54  ;;  %3294 = vmatprep.mubr.f32.mxu1 %v2825_v7  ;;  %8373 = vmatprep.subr.mxu0 %v3955_v56 }
 0x414   : > { %v3053_v14 = vpop.f32.mrf.mxu1 }
 0x415   : > { %v3939_v14 = vld [vmem:[%s16474_s7 + $0x70] sm:$0xff] }
 0x416   : > { %v12228_v37 = vpop.f32.mrf.mxu1  ;;  %3295 = vmatmul.mubr.f32.gmra.mxu1 %v2824_v9  ;;  %v2855_v9 = vld [vmem:[%s16460_s23 + $0x418] sm:$0xff]  ;;  %8374 = vmatpush3.msra.mxu0 %v3939_v14 }
 0x417   : > { %16464 = vst [vmem:[#allocation12_spill] sm:$0xff] %v12228_v37  ;;  %3299 = vmatprep.mubr.f32.mxu1 %v2827_v62 }
 0x418   : > { %v3058_v35 = vpop.f32.mrf.mxu1 }
 0x41a   : > { %v12236_v33 = vpop.f32.mrf.mxu1  ;;  %3300 = vmatmul.mubr.f32.gmra.mxu1 %v2826_v53  ;;  %v2854_v53 = vld [vmem:[%s16460_s23 + $0x410] sm:$0xff] }
 0x41b   : > { %16465 = vst [vmem:[#allocation13_spill] sm:$0xff] %v12236_v33  ;;  %3304 = vmatprep.mubr.f32.mxu1 %v2829_v11  ;;  %v2857_v11 = vld [vmem:[%s16460_s23 + $0x428] sm:$0xff] }
 0x41c   : > { %v3063_v24 = vpop.f32.mrf.mxu1 }
 0x41d   : > { %v2856_v24 = vld [vmem:[%s16460_s23 + $0x420] sm:$0xff] }
 0x41e   : > { %v12244_v52 = vpop.f32.mrf.mxu1  ;;  %3305 = vmatmul.mubr.f32.gmra.mxu1 %v2828_v38 }
 0x41f   : > { %16466 = vst [vmem:[#allocation14_spill] sm:$0xff] %v12244_v52  ;;  %3309 = vmatprep.mubr.f32.mxu1 %v2831_v18 }
 0x420   : > { %v3068_v60 = vpop.f32.mrf.mxu1 }
 0x422   : > { %v12252_v31 = vpop.f32.mrf.mxu1  ;;  %3310 = vmatmul.mubr.f32.gmra.mxu1 %v2830_v27  ;;  %v2859_v27 = vld [vmem:[%s16460_s23 + $0x438] sm:$0xff] }
 0x423   : > { %16467 = vst [vmem:[#allocation15_spill] sm:$0xff] %v12252_v31  ;;  %3314 = vmatprep.mubr.f32.mxu1 %v2833_v20  ;;  %v2858_v20 = vld [vmem:[%s16460_s23 + $0x430] sm:$0xff] }
 0x424   : > { %v3073_v1 = vpop.f32.mrf.mxu1  ;;  %v3927_v31 = vld [vmem:[%s16474_s7 + $0x10] sm:$0xff] }
 0x425   : > { %v2861_v1 = vld [vmem:[%s16460_s23 + $0x448] sm:$0xff] }
 0x426   : > { %v12260_v17 = vpop.f32.mrf.mxu1  ;;  %3315 = vmatmul.mubr.f32.gmra.mxu1 %v2832_v63 }
 0x427   : > { %16468 = vst [vmem:[#allocation16_spill] sm:$0xff] %v12260_v17  ;;  %3319 = vmatprep.mubr.f32.mxu1 %v2835_v58 }
 0x428   : > { %v3078_v16 = vpop.f32.mrf.mxu1 }
 0x429   : > { %v3954_v16 = vld [vmem:[%s16474_s7 + $0xe8] sm:$0xff] }
 0x42a   : > { %v12268_v21 = vpop.f32.mrf.mxu1  ;;  %3320 = vmatmul.mubr.f32.gmra.mxu1 %v2834_v13  ;;  %v2860_v13 = vld [vmem:[%s16460_s23 + $0x440] sm:$0xff]  ;;  %8375 = vmatprep.subr.mxu0 %v3954_v16  ;;  %v2881_v16 = vld [vmem:[%s16460_s23 + $0x4e8] sm:$0xff] }
 0x42b   : > { %16469 = vst [vmem:[#allocation17_spill] sm:$0xff] %v12268_v21  ;;  %3324 = vmatprep.mubr.f32.mxu1 %v2837_v44 }
 0x42c   : > { %v3083_v29 = vpop.f32.mrf.mxu1 }
 0x42d   : > { %v3938_v29 = vld [vmem:[%s16474_s7 + $0x68] sm:$0xff] }
 0x42e   : > { %v12276_v2 = vpop.f32.mrf.mxu1  ;;  %3325 = vmatmul.mubr.f32.gmra.mxu1 %v2836_v4  ;;  %v2863_v4 = vld [vmem:[%s16460_s23 + $0x458] sm:$0xff]  ;;  %8376 = vmatpush3.msra.mxu0 %v3938_v29 }
 0x42f   : > { %16470 = vst [vmem:[#allocation18_spill] sm:$0xff] %v12276_v2  ;;  %3329 = vmatprep.mubr.f32.mxu1 %v2839_v15  ;;  %8377 = vmatprep.subr.mxu0 %v3953_v41  ;;  %v3935_v41 = vld [vmem:[%s16474_s7 + $0x50] sm:$0xff] }
 0x430   : > { %v3088_v19 = vpop.f32.mrf.mxu1 }
 0x432   : > { %v12284_v8 = vpop.f32.mrf.mxu1  ;;  %3330 = vmatmul.mubr.f32.gmra.mxu1 %v2838_v3  ;;  %v2862_v3 = vld [vmem:[%s16460_s23 + $0x450] sm:$0xff] }
 0x433   : > { %16471 = vst [vmem:[#allocation19_spill] sm:$0xff] %v12284_v8  ;;  %3334 = vmatprep.mubr.f32.mxu1 %v2841_v5  ;;  %v2865_v5 = vld [vmem:[%s16460_s23 + $0x468] sm:$0xff] }
 0x434   : > { %v3093_v0 = vpop.f32.mrf.mxu1 }
 0x435   : > { %v2864_v0 = vld [vmem:[%s16460_s23 + $0x460] sm:$0xff] }
 0x436   : > { %v12292_v39 = vpop.f32.mrf.mxu1  ;;  %3335 = vmatmul.mubr.f32.gmra.mxu1 %v2840_v51 }
 0x437   : > { %16472 = vst [vmem:[#allocation20_spill] sm:$0xff] %v12292_v39  ;;  %3339 = vmatprep.mubr.f32.mxu1 %v2843_v42 }
 0x438   : > { %v3098_v46 = vpop.f32.mrf.mxu1 }
 0x43a   : > { %v12300_v23 = vpop.f32.mrf.mxu1  ;;  %3340 = vmatmul.mubr.f32.gmra.mxu1 %v2842_v40  ;;  %v2867_v40 = vld [vmem:[%s16460_s23 + $0x478] sm:$0xff] }
 0x43b   : > { %16473 = vst [vmem:[#allocation21_spill] sm:$0xff] %v12300_v23  ;;  %3344 = vmatprep.mubr.f32.mxu1 %v2845_v10  ;;  %v2866_v10 = vld [vmem:[%s16460_s23 + $0x470] sm:$0xff] }
 0x43c   : > { %v3103_v55 = vpop.f32.mrf.mxu1 }
 0x43e   : > { %v12314_v43 = vpop.f32.mrf.mxu1  ;;  %3345 = vmatmul.mubr.f32.gmra.mxu1 %v2844_v26  ;;  %v2869_v26 = vld [vmem:[%s16460_s23 + $0x488] sm:$0xff] }
 0x43f   : > { %16475 = vst [vmem:[#allocation22_spill] sm:$0xff] %v12314_v43  ;;  %3349 = vmatprep.mubr.f32.mxu1 %v2847_v57  ;;  %v2868_v57 = vld [vmem:[%s16460_s23 + $0x480] sm:$0xff] }
 0x440   : > { %v3108_v34 = vpop.f32.mrf.mxu1 }
 0x441   : > { %v2871_v34 = vld [vmem:[%s16460_s23 + $0x498] sm:$0xff] }
 0x442   : > { %v12322_v61 = vpop.f32.mrf.mxu1  ;;  %3350 = vmatmul.mubr.f32.gmra.mxu1 %v2846_v45 }
 0x443   : > { %16476 = vst [vmem:[#allocation23_spill] sm:$0xff] %v12322_v61  ;;  %3354 = vmatprep.mubr.f32.mxu1 %v2849_v59  ;;  %v3937_v59 = vld [vmem:[%s16474_s7 + $0x60] sm:$0xff] }
 0x444   : > { %v3113_v6 = vpop.f32.mrf.mxu1  ;;  %8378 = vmatpush3.msra.mxu0 %v3937_v59 }
 0x445   : > { %v2870_v6 = vld [vmem:[%s16460_s23 + $0x490] sm:$0xff] }
 0x446   : > { %v12330_v50 = vpop.f32.mrf.mxu1  ;;  %3355 = vmatmul.mubr.f32.gmra.mxu1 %v2848_v36 }
 0x447   : > { %16477 = vst [vmem:[#allocation24_spill] sm:$0xff] %v12330_v50  ;;  %3359 = vmatprep.mubr.f32.mxu1 %v2851_v30 }
 0x448   : > { %v3118_v47 = vpop.f32.mrf.mxu1 }
 0x44a   : > { %v12338_v48 = vpop.f32.mrf.mxu1  ;;  %3360 = vmatmul.mubr.f32.gmra.mxu1 %v2850_v49  ;;  %v2873_v49 = vld [vmem:[%s16460_s23 + $0x4a8] sm:$0xff] }
 0x44b   : > { %16478 = vst [vmem:[#allocation25_spill] sm:$0xff] %v12338_v48  ;;  %3364 = vmatprep.mubr.f32.mxu1 %v2853_v28  ;;  %v2872_v28 = vld [vmem:[%s16460_s23 + $0x4a0] sm:$0xff] }
 0x44c   : > { %v3123_v7 = vpop.f32.mrf.mxu1 }
 0x44e   : > { %v12352_v62 = vpop.f32.mrf.mxu1  ;;  %3365 = vmatmul.mubr.f32.gmra.mxu1 %v2852_v22  ;;  %v2875_v22 = vld [vmem:[%s16460_s23 + $0x4b8] sm:$0xff] }
 0x44f   : > { %3369 = vmatprep.mubr.f32.mxu1 %v2855_v9  ;;  %v2874_v9 = vld [vmem:[%s16460_s23 + $0x4b0] sm:$0xff] }
 0x450   : > { %v3128_v35 = vpop.f32.mrf.mxu1 }
 0x452   : > { %v12360_v38 = vpop.f32.mrf.mxu1  ;;  %3370 = vmatmul.mubr.f32.gmra.mxu1 %v2854_v53  ;;  %v2877_v53 = vld [vmem:[%s16460_s23 + $0x4c8] sm:$0xff] }
 0x453   : > { %3374 = vmatprep.mubr.f32.mxu1 %v2857_v11  ;;  %v2876_v11 = vld [vmem:[%s16460_s23 + $0x4c0] sm:$0xff] }
 0x454   : > { %v3133_v18 = vpop.f32.mrf.mxu1 }
 0x456   : > { %v12368_v60 = vpop.f32.mrf.mxu1  ;;  %3375 = vmatmul.mubr.f32.gmra.mxu1 %v2856_v24  ;;  %v3952_v24 = vld [vmem:[%s16474_s7 + $0xd8] sm:$0xff] }
 0x457   : > { %3379 = vmatprep.mubr.f32.mxu1 %v2859_v27  ;;  %v2879_v27 = vld [vmem:[%s16460_s23 + $0x4d8] sm:$0xff]  ;;  %8379 = vmatprep.subr.mxu0 %v3952_v24  ;;  %v2892_v24 = vld [vmem:[%s16460_s23 + $0x540] sm:$0xff] }
 0x458   : > { %v3138_v63 = vpop.f32.mrf.mxu1 }
 0x45a   : > { %v12376_v58 = vpop.f32.mrf.mxu1  ;;  %3380 = vmatmul.mubr.f32.gmra.mxu1 %v2858_v20  ;;  %v3936_v20 = vld [vmem:[%s16474_s7 + $0x58] sm:$0xff] }
 0x45b   : > { %3384 = vmatprep.mubr.f32.mxu1 %v2861_v1  ;;  %8380 = vmatpush3.msra.mxu0 %v3936_v20  ;;  %v2878_v1 = vld [vmem:[%s16460_s23 + $0x4d0] sm:$0xff]  ;;  %v2895_v20 = vld [vmem:[%s16460_s23 + $0x558] sm:$0xff] }
 0x45c   : > { %v3143_v44 = vpop.f32.mrf.mxu1 }
 0x45e   : > { %v12390_v15 = vpop.f32.mrf.mxu1  ;;  %3385 = vmatmul.mubr.f32.gmra.mxu1 %v2860_v13 }
 0x45f   : > { %3389 = vmatprep.mubr.f32.mxu1 %v2863_v4  ;;  %v2880_v4 = vld [vmem:[%s16460_s23 + $0x4e0] sm:$0xff] }
 0x460   : > { %v3148_v19 = vpop.f32.mrf.mxu1 }
 0x462   : > { %v12398_v51 = vpop.f32.mrf.mxu1  ;;  %3390 = vmatmul.mubr.f32.gmra.mxu1 %v2862_v3  ;;  %v2883_v3 = vld [vmem:[%s16460_s23 + $0x4f8] sm:$0xff] }
 0x463   : > { %3394 = vmatprep.mubr.f32.mxu1 %v2865_v5  ;;  %v2882_v5 = vld [vmem:[%s16460_s23 + $0x4f0] sm:$0xff] }
 0x464   : > { %v3153_v42 = vpop.f32.mrf.mxu1 }
 0x465   : > { %v2885_v42 = vld [vmem:[%s16460_s23 + $0x508] sm:$0xff] }
 0x466   : > { %v12406_v46 = vpop.f32.mrf.mxu1  ;;  %3395 = vmatmul.mubr.f32.gmra.mxu1 %v2864_v0 }
 0x467   : > { %3399 = vmatprep.mubr.f32.mxu1 %v2867_v40 }
 0x468   : > { %v3158_v32 = vpop.f32.mrf.mxu1 }
 0x469   : > { %v3951_v32 = vld [vmem:[%s16474_s7 + $0xd0] sm:$0xff] }
 0x46a   : > { %v12414_v55 = vpop.f32.mrf.mxu1  ;;  %3400 = vmatmul.mubr.f32.gmra.mxu1 %v2866_v10  ;;  %v2884_v10 = vld [vmem:[%s16460_s23 + $0x500] sm:$0xff]  ;;  %8381 = vmatprep.subr.mxu0 %v3951_v32  ;;  %v2898_v32 = vld [vmem:[%s16460_s23 + $0x570] sm:$0xff] }
 0x46b   : > { %3404 = vmatprep.mubr.f32.mxu1 %v2869_v26  ;;  %8382 = vmatpush3.msra.mxu0 %v3935_v41 }
 0x46c   : > { %v3163_v45 = vpop.f32.mrf.mxu1 }
 0x46e   : > { %v12428_v36 = vpop.f32.mrf.mxu1  ;;  %3405 = vmatmul.mubr.f32.gmra.mxu1 %v2868_v57  ;;  %v2887_v57 = vld [vmem:[%s16460_s23 + $0x518] sm:$0xff] }
 0x46f   : > { %3409 = vmatprep.mubr.f32.mxu1 %v2871_v34  ;;  %v2886_v34 = vld [vmem:[%s16460_s23 + $0x510] sm:$0xff] }
 0x470   : > { %v3168_v30 = vpop.f32.mrf.mxu1 }
 0x472   : > { %v12436_v47 = vpop.f32.mrf.mxu1  ;;  %3410 = vmatmul.mubr.f32.gmra.mxu1 %v2870_v6  ;;  %v2889_v6 = vld [vmem:[%s16460_s23 + $0x528] sm:$0xff] }
 0x473   : > { %3414 = vmatprep.mubr.f32.mxu1 %v2873_v49  ;;  %v2888_v49 = vld [vmem:[%s16460_s23 + $0x520] sm:$0xff] }
 0x474   : > { %v3173_v56 = vpop.f32.mrf.mxu1 }
 0x475   : > { %v2891_v56 = vld [vmem:[%s16460_s23 + $0x538] sm:$0xff] }
 0x476   : > { %v12444_v7 = vpop.f32.mrf.mxu1  ;;  %3415 = vmatmul.mubr.f32.gmra.mxu1 %v2872_v28 }
 0x477   : > { %3419 = vmatprep.mubr.f32.mxu1 %v2875_v22 }
 0x478   : > { %v3178_v14 = vpop.f32.mrf.mxu1 }
 0x47a   : > { %v12452_v35 = vpop.f32.mrf.mxu1  ;;  %3420 = vmatmul.mubr.f32.gmra.mxu1 %v2874_v9  ;;  %v2890_v9 = vld [vmem:[%s16460_s23 + $0x530] sm:$0xff] }
 0x47b   : > { %3424 = vmatprep.mubr.f32.mxu1 %v2877_v53  ;;  %v2893_v53 = vld [vmem:[%s16460_s23 + $0x548] sm:$0xff] }
 0x47c   : > { %v3183_v18 = vpop.f32.mrf.mxu1 }
 0x47d   : > { %v3950_v18 = vld [vmem:[%s16474_s7 + $0xc8] sm:$0xff] }
 0x47e   : > { %v12466_v63 = vpop.f32.mrf.mxu1  ;;  %3425 = vmatmul.mubr.f32.gmra.mxu1 %v2876_v11  ;;  %8383 = vmatprep.subr.mxu0 %v3950_v18  ;;  %v2904_v18 = vld [vmem:[%s16460_s23 + $0x5a0] sm:$0xff] }
 0x47f   : > { %3429 = vmatprep.mubr.f32.mxu1 %v2879_v27 }
 0x480   : > { %v3188_v13 = vpop.f32.mrf.mxu1 }
 0x482   : > { %v12474_v44 = vpop.f32.mrf.mxu1  ;;  %3430 = vmatmul.mubr.f32.gmra.mxu1 %v2878_v1  ;;  %v3934_v1 = vld [vmem:[%s16474_s7 + $0x48] sm:$0xff] }
 0x483   : > { %3434 = vmatprep.mubr.f32.mxu1 %v2881_v16  ;;  %8384 = vmatpush3.msra.mxu0 %v3934_v1  ;;  %v2894_v16 = vld [vmem:[%s16460_s23 + $0x550] sm:$0xff] }
 0x484   : > { %v3193_v29 = vpop.f32.mrf.mxu1 }
 0x485   : > { %v2897_v29 = vld [vmem:[%s16460_s23 + $0x568] sm:$0xff] }
 0x486   : > { %v12482_v19 = vpop.f32.mrf.mxu1  ;;  %3435 = vmatmul.mubr.f32.gmra.mxu1 %v2880_v4 }
 0x487   : > { %3439 = vmatprep.mubr.f32.mxu1 %v2883_v3 }
 0x488   : > { %v3198_v0 = vpop.f32.mrf.mxu1 }
 0x48a   : > { %v12490_v40 = vpop.f32.mrf.mxu1  ;;  %3440 = vmatmul.mubr.f32.gmra.mxu1 %v2882_v5  ;;  %v2896_v5 = vld [vmem:[%s16460_s23 + $0x560] sm:$0xff] }
 0x48b   : > { %3444 = vmatprep.mubr.f32.mxu1 %v2885_v42  ;;  %v2899_v42 = vld [vmem:[%s16460_s23 + $0x578] sm:$0xff] }
 0x48c   : > { %v3203_v26 = vpop.f32.mrf.mxu1 }
 0x48e   : > { %v12504_v45 = vpop.f32.mrf.mxu1  ;;  %3445 = vmatmul.mubr.f32.gmra.mxu1 %v2884_v10 }
 0x48f   : > { %16479 = vst [vmem:[#allocation26_spill] sm:$0xff] %v12504_v45  ;;  %3449 = vmatprep.mubr.f32.mxu1 %v2887_v57  ;;  %v2901_v57 = vld [vmem:[%s16460_s23 + $0x588] sm:$0xff] }
 0x490   : > { %v3208_v59 = vpop.f32.mrf.mxu1 }
 0x491   : > { %v3949_v59 = vld [vmem:[%s16474_s7 + $0xc0] sm:$0xff] }
 0x492   : > { %v12512_v30 = vpop.f32.mrf.mxu1  ;;  %3450 = vmatmul.mubr.f32.gmra.mxu1 %v2886_v34  ;;  %v2900_v34 = vld [vmem:[%s16460_s23 + $0x580] sm:$0xff]  ;;  %8385 = vmatprep.subr.mxu0 %v3949_v59  ;;  %v2910_v59 = vld [vmem:[%s16460_s23 + $0x5d0] sm:$0xff] }
 0x493   : > { %16480 = vst [vmem:[#allocation27_spill] sm:$0xff] %v12512_v30  ;;  %3454 = vmatprep.mubr.f32.mxu1 %v2889_v6 }
 0x494   : > { %v3213_v28 = vpop.f32.mrf.mxu1 }
 0x495   : > { %v3933_v28 = vld [vmem:[%s16474_s7 + $0x40] sm:$0xff] }
 0x496   : > { %v12520_v22 = vpop.f32.mrf.mxu1  ;;  %3455 = vmatmul.mubr.f32.gmra.mxu1 %v2888_v49  ;;  %v2903_v49 = vld [vmem:[%s16460_s23 + $0x598] sm:$0xff]  ;;  %8386 = vmatpush3.msra.mxu0 %v3933_v28 }
 0x497   : > { %16481 = vst [vmem:[#allocation28_spill] sm:$0xff] %v12520_v22  ;;  %3459 = vmatprep.mubr.f32.mxu1 %v2891_v56 }
 0x498   : > { %v3218_v14 = vpop.f32.mrf.mxu1 }
 0x49a   : > { %v12528_v11 = vpop.f32.mrf.mxu1  ;;  %3460 = vmatmul.mubr.f32.gmra.mxu1 %v2890_v9  ;;  %v2902_v9 = vld [vmem:[%s16460_s23 + $0x590] sm:$0xff] }
 0x49b   : > { %16482 = vst [vmem:[#allocation29_spill] sm:$0xff] %v12528_v11  ;;  %3464 = vmatprep.mubr.f32.mxu1 %v2893_v53  ;;  %v2905_v53 = vld [vmem:[%s16460_s23 + $0x5a8] sm:$0xff] }
 0x49c   : > { %v3223_v27 = vpop.f32.mrf.mxu1 }
 0x49e   : > { %v12542_v13 = vpop.f32.mrf.mxu1  ;;  %3465 = vmatmul.mubr.f32.gmra.mxu1 %v2892_v24 }
 0x49f   : > { %16483 = vst [vmem:[#allocation30_spill] sm:$0xff] %v12542_v13  ;;  %3469 = vmatprep.mubr.f32.mxu1 %v2895_v20  ;;  %v2907_v20 = vld [vmem:[%s16460_s23 + $0x5b8] sm:$0xff] }
 0x4a0   : > { %v3228_v4 = vpop.f32.mrf.mxu1 }
 0x4a2   : > { %v12550_v3 = vpop.f32.mrf.mxu1  ;;  %3470 = vmatmul.mubr.f32.gmra.mxu1 %v2894_v16  ;;  %v2906_v16 = vld [vmem:[%s16460_s23 + $0x5b0] sm:$0xff] }
 0x4a3   : > { %16484 = vst [vmem:[#allocation31_spill] sm:$0xff] %v12550_v3  ;;  %3474 = vmatprep.mubr.f32.mxu1 %v2897_v29  ;;  %v2909_v29 = vld [vmem:[%s16460_s23 + $0x5c8] sm:$0xff] }
 0x4a4   : > { %v3233_v0 = vpop.f32.mrf.mxu1 }
 0x4a5   : > { %v2908_v0 = vld [vmem:[%s16460_s23 + $0x5c0] sm:$0xff] }
 0x4a6   : > { %v12558_v10 = vpop.f32.mrf.mxu1  ;;  %3475 = vmatmul.mubr.f32.gmra.mxu1 %v2896_v5 }
 0x4a7   : > { %16485 = vst [vmem:[#allocation32_spill] sm:$0xff] %v12558_v10  ;;  %3479 = vmatprep.mubr.f32.mxu1 %v2899_v42  ;;  %v3948_v42 = vld [vmem:[%s16474_s7 + $0xb8] sm:$0xff] }
 0x4a8   : > { %v3238_v26 = vpop.f32.mrf.mxu1  ;;  %8387 = vmatprep.subr.mxu0 %v3948_v42 }
 0x4a9   : > { %v2911_v26 = vld [vmem:[%s16460_s23 + $0x5d8] sm:$0xff] }
 0x4aa   : > { %v12566_v41 = vpop.f32.mrf.mxu1  ;;  %3480 = vmatmul.mubr.f32.gmra.mxu1 %v2898_v32 }
 0x4ab   : > { %16486 = vst [vmem:[#allocation33_spill] sm:$0xff] %v12566_v41  ;;  %3484 = vmatprep.mubr.f32.mxu1 %v2901_v57  ;;  %v3932_v57 = vld [vmem:[%s16474_s7 + $0x38] sm:$0xff] }
 0x4ac   : > { %v3243_v6 = vpop.f32.mrf.mxu1  ;;  %8388 = vmatpush3.msra.mxu0 %v3932_v57 }
 0x4ae   : > { %v12580_v56 = vpop.f32.mrf.mxu1  ;;  %3485 = vmatmul.mubr.f32.gmra.mxu1 %v2900_v34 }
 0x4af   : > { %3489 = vmatprep.mubr.f32.mxu1 %v2903_v49  ;;  %v2913_v49 = vld [vmem:[%s16460_s23 + $0x5e8] sm:$0xff] }
 0x4b0   : > { %v3248_v14 = vpop.f32.mrf.mxu1 }
 0x4b2   : > { %v12588_v24 = vpop.f32.mrf.mxu1  ;;  %3490 = vmatmul.mubr.f32.gmra.mxu1 %v2902_v9  ;;  %v2912_v9 = vld [vmem:[%s16460_s23 + $0x5e0] sm:$0xff] }
 0x4b3   : > { %3494 = vmatprep.mubr.f32.mxu1 %v2905_v53  ;;  %v2915_v53 = vld [vmem:[%s16460_s23 + $0x5f8] sm:$0xff] }
 0x4b4   : > { %v3253_v27 = vpop.f32.mrf.mxu1 }
 0x4b5   : > { %v2914_v27 = vld [vmem:[%s16460_s23 + $0x5f0] sm:$0xff] }
 0x4b6   : > { %v12596_v1 = vpop.f32.mrf.mxu1  ;;  %3495 = vmatmul.mubr.f32.gmra.mxu1 %v2904_v18 }
 0x4b7   : > { %3499 = vmatprep.mubr.f32.mxu1 %v2907_v20 }
 0x4b8   : > { %v3258_v4 = vpop.f32.mrf.mxu1 }
 0x4ba   : > { %v12604_v5 = vpop.f32.mrf.mxu1  ;;  %3500 = vmatmul.mubr.f32.gmra.mxu1 %v2906_v16  ;;  %v2917_v16 = vld [vmem:[%s16460_s23 + $0x608] sm:$0xff] }
 0x4bb   : > { %3504 = vmatprep.mubr.f32.mxu1 %v2909_v29  ;;  %v2916_v29 = vld [vmem:[%s16460_s23 + $0x600] sm:$0xff] }
 0x4bc   : > { %v3263_v32 = vpop.f32.mrf.mxu1 }
 0x4bd   : > { %v2919_v32 = vld [vmem:[%s16460_s23 + $0x618] sm:$0xff] }
 0x4be   : > { %v12618_v34 = vpop.f32.mrf.mxu1  ;;  %3505 = vmatmul.mubr.f32.gmra.mxu1 %v2908_v0  ;;  %v3947_v0 = vld [vmem:[%s16474_s7 + $0xb0] sm:$0xff] }
 0x4bf   : > { %3509 = vmatprep.mubr.f32.mxu1 %v2911_v26  ;;  %8389 = vmatprep.subr.mxu0 %v3947_v0  ;;  %v3931_v26 = vld [vmem:[%s16474_s7 + $0x30] sm:$0xff] }
 0x4c0   : > { %v3268_v6 = vpop.f32.mrf.mxu1  ;;  %8390 = vmatpush3.msra.mxu0 %v3931_v26  ;;  %v2925_v26 = vld [vmem:[%s16460_s23 + $0x648] sm:$0xff] }
 0x4c1   : > { %v2918_v6 = vld [vmem:[%s16460_s23 + $0x610] sm:$0xff] }
 0x4c2   : > { %v12626_v28 = vpop.f32.mrf.mxu1  ;;  %3510 = vmatmul.mubr.f32.gmra.mxu1 %v2910_v59 }
 0x4c3   : > { %3514 = vmatprep.mubr.f32.mxu1 %v2913_v49 }
 0x4c4   : > { %v3273_v14 = vpop.f32.mrf.mxu1 }
 0x4c6   : > { %v12634_v18 = vpop.f32.mrf.mxu1  ;;  %3515 = vmatmul.mubr.f32.gmra.mxu1 %v2912_v9  ;;  %v2921_v9 = vld [vmem:[%s16460_s23 + $0x628] sm:$0xff] }
 0x4c7   : > { %3519 = vmatprep.mubr.f32.mxu1 %v2915_v53 }
 0x4c8   : > { %v3278_v20 = vpop.f32.mrf.mxu1 }
 0x4ca   : > { %v12642_v4 = vpop.f32.mrf.mxu1  ;;  %3520 = vmatmul.mubr.f32.gmra.mxu1 %v2914_v27  ;;  %v2920_v27 = vld [vmem:[%s16460_s23 + $0x620] sm:$0xff] }
 0x4cb   : > { %3524 = vmatprep.mubr.f32.mxu1 %v2917_v16  ;;  %v2923_v16 = vld [vmem:[%s16460_s23 + $0x638] sm:$0xff] }
 0x4cc   : > { %v3283_v42 = vpop.f32.mrf.mxu1 }
 0x4cd   : > { %v2922_v42 = vld [vmem:[%s16460_s23 + $0x630] sm:$0xff] }
 0x4ce   : > { %v12656_v57 = vpop.f32.mrf.mxu1  ;;  %3525 = vmatmul.mubr.f32.gmra.mxu1 %v2916_v29 }
 0x4cf   : > { %v10073_v59 = vpack.i.bf16 %v12276_v2, %v12656_v57  ;;  %3529 = vmatprep.mubr.f32.mxu1 %v2919_v32 }
 0x4d0   : > { %v3288_v49 = vpop.f32.mrf.mxu1 }
 0x4d1   : > { %10074 = vrot.lane.b32.xlu0 %v10073_v59, %s16487_s4  ;;  %v2924_v49 = vld [vmem:[%s16460_s23 + $0x640] sm:$0xff] }
 0x4d2   : > { %v12667_v14 = vpop.f32.mrf.mxu1  ;;  %3530 = vmatmul.mubr.f32.gmra.mxu1 %v2918_v6 }
 0x4d3   : > { %16488 = vst [vmem:[#allocation34_spill] sm:$0xff] %v12667_v14  ;;  %v10078_v53 = vpack.i.bf16 %v12284_v8, %v12667_v14  ;;  %3534 = vmatprep.mubr.f32.mxu1 %v2921_v9  ;;  %v3946_v9 = vld [vmem:[%s16474_s7 + $0xa8] sm:$0xff]  ;;  %v3928_v8 = vld [vmem:[%s16474_s7 + $0x18] sm:$0xff] }
 0x4d4   : > { %v3293_v20 = vpop.f32.mrf.mxu1  ;;  %8391 = vmatprep.subr.mxu0 %v3946_v9 }
 0x4d5   : > { %10079 = vrot.lane.b32.xlu1 %v10078_v53, %s16487_s4  ;;  %v3930_v20 = vld [vmem:[%s16474_s7 + $0x28] sm:$0xff] }
 0x4d6   : > { %v12678_v29 = vpop.f32.mrf.mxu1  ;;  %3535 = vmatmul.mubr.f32.gmra.mxu1 %v2920_v27  ;;  %v2927_v27 = vld [vmem:[%s16460_s23 + $0x658] sm:$0xff]  ;;  %8392 = vmatpush3.msra.mxu0 %v3930_v20 }
 0x4d7   : > { %16489 = vst [vmem:[#allocation35_spill] sm:$0xff] %v12678_v29  ;;  %v10083_v0 = vpack.i.bf16 %v12292_v39, %v12678_v29  ;;  %3539 = vmatprep.mubr.f32.mxu1 %v2923_v16 }
 0x4d8   : > { %v3298_v32 = vpop.f32.mrf.mxu1 }
 0x4d9   : > { %10084 = vrot.lane.b32.xlu0 %v10083_v0, %s16487_s4  ;;  %v2926_v0 = vld [vmem:[%s16460_s23 + $0x650] sm:$0xff]  ;;  %v2929_v32 = vld [vmem:[%s16460_s23 + $0x668] sm:$0xff] }
 0x4da   : > { %v12689_v59 = vpop.f32.mrf.mxu1  ;;  %3540 = vmatmul.mubr.f32.gmra.mxu1 %v2922_v42 }
 0x4db   : > { %16490 = vst [vmem:[#allocation36_spill] sm:$0xff] %v12689_v59  ;;  %v10088_v6 = vpack.i.bf16 %v12300_v23, %v12689_v59  ;;  %3544 = vmatprep.mubr.f32.mxu1 %v2925_v26 }
 0x4dc   : > { %v3303_v53 = vpop.f32.mrf.mxu1 }
 0x4dd   : > { %10089 = vrot.lane.b32.xlu1 %v10088_v6, %s16487_s4  ;;  %v2928_v6 = vld [vmem:[%s16460_s23 + $0x660] sm:$0xff] }
 0x4de   : > { %v12706_v16 = vpop.f32.mrf.mxu1  ;;  %3545 = vmatmul.mubr.f32.gmra.mxu1 %v2924_v49  ;;  %v2931_v49 = vld [vmem:[%s16460_s23 + $0x678] sm:$0xff] }
 0x4df   : > { %16491 = vst [vmem:[#allocation37_spill] sm:$0xff] %v12706_v16  ;;  %3549 = vmatprep.mubr.f32.mxu1 %v2927_v27  ;;  %v2930_v27 = vld [vmem:[%s16460_s23 + $0x670] sm:$0xff] }
 0x4e0   : > { %v3308_v42 = vpop.f32.mrf.mxu1 }
 0x4e2   : > { %v12714_v26 = vpop.f32.mrf.mxu1  ;;  %3550 = vmatmul.mubr.f32.gmra.mxu1 %v2926_v0  ;;  %v2933_v0 = vld [vmem:[%s16460_s23 + $0x688] sm:$0xff] }
 0x4e3   : > { %3554 = vmatprep.mubr.f32.mxu1 %v2929_v32  ;;  %v2932_v32 = vld [vmem:[%s16460_s23 + $0x680] sm:$0xff] }
 0x4e4   : > { %v3313_v9 = vpop.f32.mrf.mxu1 }
 0x4e6   : > { %v12722_v53 = vpop.f32.mrf.mxu1  ;;  %3555 = vmatmul.mubr.f32.gmra.mxu1 %v2928_v6  ;;  %v3945_v6 = vld [vmem:[%s16474_s7 + $0xa0] sm:$0xff] }
 0x4e7   : > { %3559 = vmatprep.mubr.f32.mxu1 %v2931_v49  ;;  %v2935_v49 = vld [vmem:[%s16460_s23 + $0x698] sm:$0xff]  ;;  %8393 = vmatprep.subr.mxu0 %v3945_v6  ;;  %v2936_v6 = vld [vmem:[%s16460_s23 + $0x6a0] sm:$0xff] }
 0x4e8   : > { %v3318_v20 = vpop.f32.mrf.mxu1 }
 0x4e9   : > { %v3929_v20 = vld [vmem:[%s16474_s7 + $0x20] sm:$0xff] }
 0x4ea   : > { %v12730_v42 = vpop.f32.mrf.mxu1  ;;  %3560 = vmatmul.mubr.f32.gmra.mxu1 %v2930_v27  ;;  %8394 = vmatpush3.msra.mxu0 %v3929_v20 }
 0x4eb   : > { %3564 = vmatprep.mubr.f32.mxu1 %v2933_v0  ;;  %v2934_v0 = vld [vmem:[%s16460_s23 + $0x690] sm:$0xff] }
 0x4ec   : > { %v3323_v9 = vpop.f32.mrf.mxu1 }
 0x4ed   : > { %v2937_v9 = vld [vmem:[%s16460_s23 + $0x6a8] sm:$0xff] }
 0x4ee   : > { %v12744_v27 = vpop.f32.mrf.mxu1  ;;  %3565 = vmatmul.mubr.f32.gmra.mxu1 %v2932_v32  ;;  %v2939_v32 = vld [vmem:[%s16460_s23 + $0x6b8] sm:$0xff] }
 0x4ef   : > { %3569 = vmatprep.mubr.f32.mxu1 %v2935_v49 }
 0x4f0   : > { %v3328_v12 = vpop.f32.mrf.mxu1 }
 0x4f1   : > { %v2938_v12 = vld [vmem:[%s16460_s23 + $0x6b0] sm:$0xff] }
 0x4f2   : > { %v12752_v23 = vpop.f32.mrf.mxu1  ;;  %3570 = vmatmul.mubr.f32.gmra.mxu1 %v2934_v0  ;;  %v2941_v0 = vld [vmem:[%s16460_s23 + $0x6c8] sm:$0xff] }
 0x4f3   : > { %3574 = vmatprep.mubr.f32.mxu1 %v2937_v9 }
 0x4f4   : > { %v3333_v20 = vpop.f32.mrf.mxu1 }
 0x4f5   : > { %v2940_v20 = vld [vmem:[%s16460_s23 + $0x6c0] sm:$0xff] }
 0x4f6   : > { %v12760_v49 = vpop.f32.mrf.mxu1  ;;  %3575 = vmatmul.mubr.f32.gmra.mxu1 %v2936_v6  ;;  %v3944_v6 = vld [vmem:[%s16474_s7 + $0x98] sm:$0xff] }
 0x4f7   : > { %3579 = vmatprep.mubr.f32.mxu1 %v2939_v32  ;;  %8395 = vmatprep.subr.mxu0 %v3944_v6 }
 0x4f8   : > { %v3338_v39 = vpop.f32.mrf.mxu1  ;;  %8396 = vmatpush3.msra.mxu0 %v3928_v8  ;;  %v2944_v8 = vld [vmem:[%s16460_s23 + $0x6e0] sm:$0xff] }
 0x4f9   : > { %v2943_v39 = vld [vmem:[%s16460_s23 + $0x6d8] sm:$0xff] }
 0x4fa   : > { %v12768_v9 = vpop.f32.mrf.mxu1  ;;  %3580 = vmatmul.mubr.f32.gmra.mxu1 %v2938_v12 }
 0x4fb   : > { %3584 = vmatprep.mubr.f32.mxu1 %v2941_v0  ;;  %v2942_v0 = vld [vmem:[%s16460_s23 + $0x6d0] sm:$0xff] }
 0x4fc   : > { %v3343_v32 = vpop.f32.mrf.mxu1 }
 0x4fd   : > { %v2945_v32 = vld [vmem:[%s16460_s23 + $0x6e8] sm:$0xff] }
 0x4fe   : > { %v12782_v12 = vpop.f32.mrf.mxu1  ;;  %3585 = vmatmul.mubr.f32.gmra.mxu1 %v2940_v20  ;;  %v2947_v20 = vld [vmem:[%s16460_s23 + $0x6f8] sm:$0xff] }
 0x4ff   : > { %3589 = vmatprep.mubr.f32.mxu1 %v2943_v39 }
 0x500   : > { %v3348_v2 = vpop.f32.mrf.mxu1 }
 0x501   : > { %v2946_v2 = vld [vmem:[%s16460_s23 + $0x6f0] sm:$0xff] }
 0x502   : > { %v12790_v21 = vpop.f32.mrf.mxu1  ;;  %3590 = vmatmul.mubr.f32.gmra.mxu1 %v2942_v0  ;;  %v2949_v0 = vld [vmem:[%s16460_s23 + $0x708] sm:$0xff] }
 0x503   : > { %16492 = vst [vmem:[#allocation38_spill] sm:$0xff] %v12790_v21  ;;  %3594 = vmatprep.mubr.f32.mxu1 %v2945_v32 }
 0x504   : > { %v3353_v6 = vpop.f32.mrf.mxu1 }
 0x505   : > { %v2948_v6 = vld [vmem:[%s16460_s23 + $0x700] sm:$0xff] }
 0x506   : > { %v12798_v39 = vpop.f32.mrf.mxu1  ;;  %3595 = vmatmul.mubr.f32.gmra.mxu1 %v2944_v8  ;;  %v3943_v8 = vld [vmem:[%s16474_s7 + $0x90] sm:$0xff] }
 0x507   : > { %16493 = vst [vmem:[#allocation39_spill] sm:$0xff] %v12798_v39  ;;  %3599 = vmatprep.mubr.f32.mxu1 %v2947_v20  ;;  %8397 = vmatprep.subr.mxu0 %v3943_v8  ;;  %v2953_v8 = vld [vmem:[%s16460_s23 + $0x728] sm:$0xff] }
 0x508   : > { %v3358_v17 = vpop.f32.mrf.mxu1  ;;  %8398 = vmatpush3.msra.mxu0 %v3927_v31 }
 0x509   : > { %v2951_v17 = vld [vmem:[%s16460_s23 + $0x718] sm:$0xff] }
 0x50a   : > { %v12806_v32 = vpop.f32.mrf.mxu1  ;;  %3600 = vmatmul.mubr.f32.gmra.mxu1 %v2946_v2 }
 0x50b   : > { %16494 = vst [vmem:[#allocation40_spill] sm:$0xff] %v12806_v32  ;;  %3604 = vmatprep.mubr.f32.mxu1 %v2949_v0 }
 0x50c   : > { %v3363_v20 = vpop.f32.mrf.mxu1 }
 0x50d   : > { %v2950_v20 = vld [vmem:[%s16460_s23 + $0x710] sm:$0xff] }
 0x50e   : > { %v12820_v2 = vpop.f32.mrf.mxu1  ;;  %3605 = vmatmul.mubr.f32.gmra.mxu1 %v2948_v6  ;;  %v2952_v6 = vld [vmem:[%s16460_s23 + $0x720] sm:$0xff] }
 0x50f   : > { %16495 = vst [vmem:[#allocation41_spill] sm:$0xff] %v12820_v2  ;;  %v10093_v0 = vpack.i.bf16 %v12352_v62, %v12820_v2  ;;  %3609 = vmatprep.mubr.f32.mxu1 %v2951_v17 }
 0x510   : > { %v3368_v52 = vpop.f32.mrf.mxu1 }
 0x511   : > { %10094 = vrot.lane.b32.xlu1 %v10093_v0, %s16496_s28  ;;  %v2955_v52 = vld [vmem:[%s16460_s23 + $0x738] sm:$0xff] }
 0x512   : > { %v12831_v33 = vpop.f32.mrf.mxu1  ;;  %3610 = vmatmul.mubr.f32.gmra.mxu1 %v2950_v20  ;;  %v2954_v20 = vld [vmem:[%s16460_s23 + $0x730] sm:$0xff] }
 0x513   : > { %16497 = vst [vmem:[#allocation42_spill] sm:$0xff] %v12831_v33  ;;  %v10098_v31 = vpack.i.bf16 %v12360_v38, %v12831_v33  ;;  %3614 = vmatprep.mubr.f32.mxu1 %v2953_v8 }
 0x514   : > { %v3373_v17 = vpop.f32.mrf.mxu1 }
 0x515   : > { %10099 = vrot.lane.b32.xlu0 %v10098_v31, %s16496_s28  ;;  %v2957_v17 = vld [vmem:[%s16460_s23 + $0x748] sm:$0xff] }
 0x516   : > { %v12842_v2 = vpop.f32.mrf.mxu1  ;;  %3615 = vmatmul.mubr.f32.gmra.mxu1 %v2952_v6  ;;  %v2956_v6 = vld [vmem:[%s16460_s23 + $0x740] sm:$0xff] }
 0x517   : > { %16498 = vst [vmem:[#allocation43_spill] sm:$0xff] %v12842_v2  ;;  %v10103_v0 = vpack.i.bf16 %v12368_v60, %v12842_v2  ;;  %3619 = vmatprep.mubr.f32.mxu1 %v2955_v52  ;;  %v3942_v52 = vld [vmem:[%s16474_s7 + $0x88] sm:$0xff] }
 0x518   : > { %v3378_v8 = vpop.f32.mrf.mxu1  ;;  %8399 = vmatprep.subr.mxu0 %v3942_v52  ;;  %v2961_v52 = vld [vmem:[%s16460_s23 + $0x768] sm:$0xff] }
 0x519   : > { %10104 = vrot.lane.b32.xlu1 %v10103_v0, %s16496_s28  ;;  %v2959_v0 = vld [vmem:[%s16460_s23 + $0x758] sm:$0xff] }
 0x51a   : > { %v12853_v33 = vpop.f32.mrf.mxu1  ;;  %3620 = vmatmul.mubr.f32.gmra.mxu1 %v2954_v20  ;;  %v3926_v20 = vld [vmem:[%s16474_s7 + $0x8] sm:$0xff] }
 0x51b   : > { %16499 = vst [vmem:[#allocation44_spill] sm:$0xff] %v12853_v33  ;;  %v10108_v31 = vpack.i.bf16 %v12376_v58, %v12853_v33  ;;  %3624 = vmatprep.mubr.f32.mxu1 %v2957_v17  ;;  %8400 = vmatpush3.msra.mxu0 %v3926_v20  ;;  %v2963_v20 = vld [vmem:[%s16460_s23 + $0x778] sm:$0xff] }
 0x51c   : > { %v3383_v8 = vpop.f32.mrf.mxu1 }
 0x51d   : > { %10109 = vrot.lane.b32.xlu0 %v10108_v31, %s16496_s28  ;;  %v2958_v8 = vld [vmem:[%s16460_s23 + $0x750] sm:$0xff] }
 0x51e   : > { %v12870_v17 = vpop.f32.mrf.mxu1  ;;  %3625 = vmatmul.mubr.f32.gmra.mxu1 %v2956_v6  ;;  %v2960_v6 = vld [vmem:[%s16460_s23 + $0x760] sm:$0xff] }
 0x51f   : > { %16500 = vst [vmem:[#allocation45_spill] sm:$0xff] %v12870_v17  ;;  %v10123_v33 = vpack.i.bf16 %v12390_v15, %v12870_v17  ;;  %3629 = vmatprep.mubr.f32.mxu1 %v2959_v0 }
 0x520   : > { %v3388_v2 = vpop.f32.mrf.mxu1 }
 0x521   : > { %10124 = vrot.lane.b32.xlu1 %v10123_v33, %s16496_s28  ;;  %v3941_v2 = vld [vmem:[%s16474_s7 + $0x80] sm:$0xff] }
 0x522   : > { %v12881_v31 = vpop.f32.mrf.mxu1  ;;  %3630 = vmatmul.mubr.f32.gmra.mxu1 %v2958_v8  ;;  %8401 = vmatprep.subr.mxu0 %v3941_v2  ;;  %v3925_v33 = vld [vmem:[%s16474_s7] sm:$0xff]  ;;  %v2962_v8 = vld [vmem:[%s16460_s23 + $0x770] sm:$0xff] }
 0x523   : > { %3634 = vmatprep.mubr.f32.mxu1 %v2961_v52  ;;  %8402 = vmatpush3.msra.mxu0 %v3925_v33 }
 0x524   : > { %v3393_v0 = vpop.f32.mrf.mxu1 }
 0x526   : > { %v12892_v17 = vpop.f32.mrf.mxu1  ;;  %3635 = vmatmul.mubr.f32.gmra.mxu1 %v2960_v6 }
 0x527   : > { %3639 = vmatprep.mubr.f32.mxu1 %v2963_v20  ;;  %v10118_v20 = vpack.i.bf16 %v12314_v43, %v12706_v16 }
 0x528   : > { %v3398_v52 = vpop.f32.mrf.mxu1 }
 0x52a   : > { %v12900_v0 = vpop.f32.mrf.mxu1  ;;  %3640 = vmatmul.mubr.f32.gmra.mxu1 %v2962_v8 }
 0x52c   : > { %v3403_v37 = vpop.f32.mrf.mxu1 }
 0x52d   : > { %v2965_v37 = vld [vmem:[%s16460_s23 + $0x788] sm:$0xff] }
 0x52e   : > { %v12902_v54 = vpop.f32.mrf.mxu1  ;;  %3644 = vmatprep.mubr.f32.mxu1 %v2965_v37 }
 0x52f   : > { %16501 = vst [vmem:[#allocation46_spill] sm:$0xff] %v12902_v54  ;;  %v10113_v6 = vpack.i.bf16 %v12504_v45, %v12902_v54  ;;  %v2970_v45 = vld [vmem:[%s16460_s23 + $0x7b0] sm:$0xff] }
 0x530   : > { %v3408_v2 = vpop.f32.mrf.mxu1 }
 0x531   : > { %10114 = vrot.lane.b32.xlu0 %v10113_v6, %s16502_s27  ;;  %v2964_v6 = vld [vmem:[%s16460_s23 + $0x780] sm:$0xff]  ;;  %v10133_v2 = vpack.i.bf16 %v12322_v61, %v12714_v26 }
 0x532   : > { %v12907_v25 = vpop.f32.mrf.mxu1  ;;  %3645 = vmatmul.mubr.f32.gmra.mxu1 %v2964_v6 }
 0x533   : > { %16503 = vst [vmem:[#allocation47_spill] sm:$0xff] %v12907_v25  ;;  %v10128_v33 = vpack.i.bf16 %v12512_v30, %v12907_v25  ;;  %v2966_v30 = vld [vmem:[%s16460_s23 + $0x790] sm:$0xff] }
 0x534   : > { %v3413_v52 = vpop.f32.mrf.mxu1 }
 0x535   : > { %10119 = vrot.lane.b32.xlu0 %v10118_v20, %s16487_s4  ;;  %10129 = vrot.lane.b32.xlu1 %v10128_v33, %s16502_s27  ;;  %v2967_v33 = vld [vmem:[%s16460_s23 + $0x798] sm:$0xff] }
 0x536   : > { %v12918_v8 = vpop.f32.mrf.mxu1  ;;  %3649 = vmatprep.mubr.f32.mxu1 %v2967_v33 }
 0x537   : > { %16504 = vst [vmem:[#allocation48_spill] sm:$0xff] %v12918_v8  ;;  %v10138_v52 = vpack.i.bf16 %v12520_v22, %v12918_v8  ;;  %v10143_v22 = vpack.i.bf16 %v12398_v51, %v12881_v31  ;;  %3650 = vmatmul.mubr.f32.gmra.mxu1 %v2966_v30  ;;  %v2968_v30 = vld [vmem:[%s16460_s23 + $0x7a0] sm:$0xff] }
 0x538   : > { %v3418_v20 = vpop.f32.mrf.mxu1 }
 0x539   : > { %10134 = vrot.lane.b32.xlu1 %v10133_v2, %s16487_s4  ;;  %10139 = vrot.lane.b32.xlu0 %v10138_v52, %s16502_s27  ;;  %v12944_v2 = vld [vmem:[%s16474_s7 + $0x118] sm:$0xff]  ;;  %v2969_v20 = vld [vmem:[%s16460_s23 + $0x7a8] sm:$0xff] }
 0x53a   : > { %v12932_v37 = vpop.f32.mrf.mxu1  ;;  %9550 = vmatprep.subr.mxu0 %v12944_v2  ;;  %3654 = vmatprep.mubr.f32.mxu1 %v2969_v20 }
 0x53b   : > { %16505 = vst [vmem:[#allocation49_spill] sm:$0xff] %v12932_v37  ;;  %v10148_v6 = vpack.i.bf16 %v12528_v11, %v12932_v37  ;;  %3655 = vmatmul.mubr.f32.gmra.mxu1 %v2968_v30 }
 0x53c   : > { %v3423_v52 = vpop.f32.mrf.mxu1 }
 0x53d   : > { %10144 = vrot.lane.b32.xlu0 %v10143_v22, %s16496_s28  ;;  %10149 = vrot.lane.b32.xlu1 %v10148_v6, %s16502_s27  ;;  %v10163_v52 = vpack.i.bf16 %v12406_v46, %v12892_v17  ;;  %v2971_v6 = vld [vmem:[%s16460_s23 + $0x7b8] sm:$0xff] }
 0x53e   : > { %v12952_v33 = vpop.f32.mrf.mxu1  ;;  %3659 = vmatprep.mubr.f32.mxu1 %v2971_v6  ;;  %v10173_v6 = vpack.i.bf16 %v12338_v48, %v12730_v42 }
 0x53f   : > { %16506 = vst [vmem:[#allocation50_spill] sm:$0xff] %v12952_v33  ;;  %v10153_v11 = vpack.i.bf16 %v12542_v13, %v12952_v33  ;;  %v10158_v13 = vpack.i.bf16 %v12330_v50, %v12722_v53  ;;  %3660 = vmatmul.mubr.f32.gmra.mxu1 %v2970_v45  ;;  %v2972_v45 = vld [vmem:[%s16460_s23 + $0x7c0] sm:$0xff] }
 0x540   : > { %v3428_v22 = vpop.f32.mrf.mxu1 }
 0x541   : > { %10164 = vrot.lane.b32.xlu1 %v10163_v52, %s16496_s28  ;;  %10154 = vrot.lane.b32.xlu0 %v10153_v11, %s16502_s27  ;;  %v2973_v22 = vld [vmem:[%s16460_s23 + $0x7c8] sm:$0xff] }
 0x542   : > { %v12966_v20 = vpop.f32.mrf.mxu1  ;;  %3664 = vmatprep.mubr.f32.mxu1 %v2973_v22 }
 0x543   : > { %16507 = vst [vmem:[#allocation51_spill] sm:$0xff] %v12966_v20  ;;  %v10168_v30 = vpack.i.bf16 %v12550_v3, %v12966_v20  ;;  %3665 = vmatmul.mubr.f32.gmra.mxu1 %v2972_v45  ;;  %v2974_v45 = vld [vmem:[%s16460_s23 + $0x7d0] sm:$0xff]  ;;  %v10198_v3 = vpack.i.bf16 %v12428_v36, %v12902_v54  ;;  %v10208_v36 = vpack.i.bf16 %v12436_v47, %v12907_v25 }
 0x544   : > { %v3433_v52 = vpop.f32.mrf.mxu1  ;;  %v10218_v47 = vpack.i.bf16 %v12444_v7, %v12918_v8  ;;  %v10243_v7 = vpack.i.bf16 %v12466_v63, %v12952_v33 }
 0x545   : > { %10159 = vrot.lane.b32.xlu0 %v10158_v13, %s16487_s4  ;;  %10169 = vrot.lane.b32.xlu1 %v10168_v30, %s16502_s27  ;;  %v2975_v52 = vld [vmem:[%s16460_s23 + $0x7d8] sm:$0xff] }
 0x546   : > { %v12977_v11 = vpop.f32.mrf.mxu1  ;;  %3669 = vmatprep.mubr.f32.mxu1 %v2975_v52  ;;  %v2977_v52 = vld [vmem:[%s16460_s23 + $0x7e8] sm:$0xff] }
 0x547   : > { %16508 = vst [vmem:[#allocation52_spill] sm:$0xff] %v12977_v11  ;;  %v10178_v50 = vpack.i.bf16 %v12558_v10, %v12977_v11  ;;  %v10183_v10 = vpack.i.bf16 %v12414_v55, %v12900_v0  ;;  %3670 = vmatmul.mubr.f32.gmra.mxu1 %v2974_v45  ;;  %v10080_v8 = vpop.permute.xlu1 %10079 }
 0x548   : > { %v3438_v13 = vpop.f32.mrf.mxu1  ;;  %3674 = vmatprep.mubr.f32.mxu1 %v2977_v52 }
 0x549   : > { %10174 = vrot.lane.b32.xlu1 %v10173_v6, %s16487_s4  ;;  %10179 = vrot.lane.b32.xlu0 %v10178_v50, %s16502_s27  ;;  %v10193_v13 = vpack.i.bf16 %v12352_v62, %v12744_v27  ;;  %v10203_v62 = vpack.i.bf16 %v12360_v38, %v12752_v23  ;;  %v10213_v38 = vpack.i.bf16 %v12368_v60, %v12760_v49 }
 0x54a   : > { %v12991_v30 = vpop.f32.mrf.mxu1 }
 0x54b   : > { %16509 = vst [vmem:[#allocation53_spill] sm:$0xff] %v12991_v30  ;;  %v10188_v22 = vpack.i.bf16 %v12566_v41, %v12991_v30 }
 0x54c   : > { %v3443_v6 = vpop.f32.mrf.mxu1 }
 0x54d   : > { %10184 = vrot.lane.b32.xlu0 %v10183_v10, %s16496_s28  ;;  %10189 = vrot.lane.b32.xlu1 %v10188_v22, %s16502_s27  ;;  %v2976_v10 = vld [vmem:[%s16460_s23 + $0x7e0] sm:$0xff] }
 0x54e   : > { %v13005_v50 = vpop.f32.mrf.mxu1  ;;  %3675 = vmatmul.mubr.f32.gmra.mxu1 %v2976_v10  ;;  %v10223_v10 = vpack.i.bf16 %v12376_v58, %v12768_v9 }
 0x54f   : > { %16510 = vst [vmem:[#allocation54_spill] sm:$0xff] %v13005_v50 }
 0x550   : > { %v3448_v41 = vpop.f32.mrf.mxu1 }
 0x551   : > { %10194 = vrot.lane.b32.xlu0 %v10193_v13, %s16487_s4  ;;  %10199 = vrot.lane.b32.xlu1 %v10198_v3, %s16496_s28  ;;  %v2979_v41 = vld [vmem:[%s16460_s23 + $0x7f8] sm:$0xff]  ;;  %v2978_v3 = vld [vmem:[%s16460_s23 + $0x7f0] sm:$0xff] }
 0x552   : > { %v13019_v22 = vpop.f32.mrf.mxu1  ;;  %3679 = vmatprep.mubr.f32.mxu1 %v2979_v41 }
 0x553   : > { %16511 = vst [vmem:[#allocation55_spill] sm:$0xff] %v13019_v22  ;;  %3680 = vmatmul.mubr.f32.gmra.mxu1 %v2978_v3  ;;  %v10248_v3 = vpack.i.bf16 %v12588_v24, %v13019_v22 }
 0x554   : > { %v3453_v45 = vpop.f32.mrf.mxu1 }
 0x555   : > { %10209 = vrot.lane.b32.xlu0 %v10208_v36, %s16496_s28  ;;  %10204 = vrot.lane.b32.xlu1 %v10203_v62, %s16487_s4  ;;  %v10228_v62 = vpack.i.bf16 %v12452_v35, %v12932_v37  ;;  %v10233_v45 = vpack.i.bf16 %v12580_v56, %v13005_v50  ;;  %v10238_v35 = vpack.i.bf16 %v12390_v15, %v12782_v12 }
 0x556   : > { %v13033_v6 = vpop.f32.mrf.mxu1 }
 0x557   : > { %16512 = vst [vmem:[#allocation56_spill] sm:$0xff] %v13033_v6 }
 0x558   : > { %v3458_v13 = vpop.f32.mrf.mxu1 }
 0x559   : > { %10214 = vrot.lane.b32.xlu0 %v10213_v38, %s16487_s4  ;;  %10219 = vrot.lane.b32.xlu1 %v10218_v47, %s16496_s28  ;;  %v10253_v47 = vpack.i.bf16 %v12398_v51, %v12790_v21  ;;  %v10258_v13 = vpack.i.bf16 %v12596_v1, %v13033_v6 }
 0x55a   : > { %v13041_v52 = vpop.f32.mrf.mxu1 }
 0x55b   : > { %16513 = vst [vmem:[#allocation57_spill] sm:$0xff] %v13041_v52 }
 0x55c   : > { %v3463_v36 = vpop.f32.mrf.mxu1 }
 0x55d   : > { %10229 = vrot.lane.b32.xlu0 %v10228_v62, %s16496_s28  ;;  %10224 = vrot.lane.b32.xlu1 %v10223_v10, %s16487_s4  ;;  %v10263_v62 = vpack.i.bf16 %v12474_v44, %v12966_v20  ;;  %v10268_v36 = vpack.i.bf16 %v12604_v5, %v13041_v52 }
 0x55e   : > { %v13049_v60 = vpop.f32.mrf.mxu1 }
 0x55f   : > { %16514 = vst [vmem:[#allocation58_spill] sm:$0xff] %v13049_v60 }
 0x560   : > { %v3468_v41 = vpop.f32.mrf.mxu1 }
 0x561   : > { %10244 = vrot.lane.b32.xlu1 %v10243_v7, %s16496_s28  ;;  %10234 = vrot.lane.b32.xlu0 %v10233_v45, %s16502_s27  ;;  %v10283_v41 = vpack.i.bf16 %v12482_v19, %v12977_v11 }
 0x562   : > { %v13057_v58 = vpop.f32.mrf.mxu1 }
 0x563   : > { %16515 = vst [vmem:[#allocation59_spill] sm:$0xff] %v13057_v58 }
 0x564   : > { %v3473_v38 = vpop.f32.mrf.mxu1 }
 0x565   : > { %10239 = vrot.lane.b32.xlu0 %v10238_v35, %s16487_s4  ;;  %10249 = vrot.lane.b32.xlu1 %v10248_v3, %s16502_s27  ;;  %v13087_v35 = vpack.i.bf16 %v12618_v34, %v13049_v60 }
 0x566   : > { %v13065_v63 = vpop.f32.mrf.mxu1 }
 0x567   : > { %16516 = vst [vmem:[#allocation60_spill] sm:$0xff] %v13065_v63 }
 0x568   : > { %v3478_v10 = vpop.f32.mrf.mxu1 }
 0x569   : > { %10254 = vrot.lane.b32.xlu1 %v10253_v47, %s16487_s4  ;;  %10259 = vrot.lane.b32.xlu0 %v10258_v13, %s16502_s27  ;;  %v10278_v47 = vpack.i.bf16 %v12406_v46, %v12798_v39  ;;  %v13098_v10 = vpack.i.bf16 %v12626_v28, %v13057_v58 }
 0x56a   : > { %v13073_v15 = vpop.f32.mrf.mxu1 }
 0x56b   : > { %16517 = vst [vmem:[#allocation61_spill] sm:$0xff] %v13073_v15 }
 0x56c   : > { %v3483_v7 = vpop.f32.mrf.mxu1 }
 0x56d   : > { %10264 = vrot.lane.b32.xlu0 %v10263_v62, %s16496_s28  ;;  %10269 = vrot.lane.b32.xlu1 %v10268_v36, %s16502_s27  ;;  %v10293_v7 = vpack.i.bf16 %v12414_v55, %v12806_v32 }
 0x56e   : > { %v13081_v51 = vpop.f32.mrf.mxu1 }
 0x570   : > { %v3488_v38 = vpop.f32.mrf.mxu1 }
 0x571   : > { %10284 = vrot.lane.b32.xlu1 %v10283_v41, %s16496_s28  ;;  %10274 = vrot.lane.b32.xlu0 %v13087_v35, %s16502_s27  ;;  %v13109_v41 = vpack.i.bf16 %v12634_v18, %v13065_v63 }
 0x572   : > { %v13092_v44 = vpop.f32.mrf.mxu1 }
 0x574   : > { %v3493_v19 = vpop.f32.mrf.mxu1 }
 0x575   : > { %10279 = vrot.lane.b32.xlu0 %v10278_v47, %s16487_s4  ;;  %10289 = vrot.lane.b32.xlu1 %v13098_v10, %s16502_s27  ;;  %v10303_v47 = vpack.i.bf16 %v12490_v40, %v12991_v30  ;;  %v13120_v19 = vpack.i.bf16 %v12642_v4, %v13073_v15 }
 0x576   : > { %v13103_v62 = vpop.f32.mrf.mxu1 }
 0x578   : > { %v3498_v46 = vpop.f32.mrf.mxu1 }
 0x579   : > { %10294 = vrot.lane.b32.xlu1 %v10293_v7, %s16487_s4  ;;  %10299 = vrot.lane.b32.xlu0 %v13109_v41, %s16502_s27 }
 0x57a   : > { %v13114_v38 = vpop.f32.mrf.mxu1 }
 0x57c   : > { %v3503_v55 = vpop.f32.mrf.mxu1 }
 0x57d   : > { %10304 = vrot.lane.b32.xlu0 %v10303_v47, %s16496_s28  ;;  %10309 = vrot.lane.b32.xlu1 %v13120_v19, %s16502_s27 }
 0x57e   : > { %v13125_v46 = vpop.f32.mrf.mxu1 }
 0x580   : > { %v3508_v7 = vpop.f32.mrf.mxu1 }
 0x581   : > { %10314 = vrot.lane.b32.xlu0 %v10233_v45, %s16487_s4  ;;  %10319 = vrot.lane.b32.xlu1 %v10248_v3, %s16487_s4  ;;  %v10075_v3 = vpop.permute.xlu0 %10074 }
 0x582   : > { %v13129_v11 = vpop.f32.mrf.mxu1 }
 0x584   : > { %v3513_v40 = vpop.f32.mrf.mxu1 }
 0x585   : > { %10324 = vrot.lane.b32.xlu0 %v10258_v13, %s16487_s4  ;;  %10329 = vrot.lane.b32.xlu1 %v10268_v36, %s16487_s4  ;;  %v13141_v25 = vpop.permute.xlu0 %10084 }
 0x586   : > { %v13133_v55 = vpop.f32.mrf.mxu1 }
 0x587   : > { %16518 = vst [vmem:[#allocation62_spill] sm:$0xff] %v13133_v55 }
 0x588   : > { %v3518_v47 = vpop.f32.mrf.mxu1 }
 0x589   : > { %v13143_v47 = vpop.permute.xlu1 %10089 }
 0x58a   : > { %v13135_v30 = vpop.f32.mrf.mxu1 }
 0x58b   : > { %16519 = vst [vmem:[#allocation63_spill] sm:$0xff] %v13135_v30 }
 0x58c   : > { %v3523_v20 = vpop.f32.mrf.mxu1 }
 0x58e   : > { %v3526_v33 = vpop.f32.mrf.mxu1 }
 0x58f   : > { %v10333_v7 = vpack.i.bf16 %v12656_v57, %v3526_v33  ;;  %v10095_v33 = vpop.permute.xlu1 %10094 }
 0x590   : > { %v3528_v37 = vpop.f32.mrf.mxu1  ;;  %v10097_v30 = vunpack.i.h.bf16 %v10095_v33 }
 0x591   : > { %10334 = vrot.lane.b32.xlu1 %v10333_v7, %s16496_s28  ;;  %v10100_v7 = vpop.permute.xlu0 %10099 }
 0x592   : > { %v3531_v45 = vpop.f32.mrf.mxu1  ;;  %v10102_v39 = vunpack.i.h.bf16 %v10100_v7 }
 0x593   : > { %v10338_v40 = vpack.i.bf16 %v12667_v14, %v3531_v45  ;;  %v13149_v43 = vpop.permute.xlu1 %10104  ;;  %v10101_v14 = vunpack.i.l.bf16 %v10100_v7  ;;  %v13187_v7 = vld [vmem:[%s16474_s7 + $0x110] sm:$0xff] }
 0x594   : > { %v3533_v13 = vpop.f32.mrf.mxu1 }
 0x595   : > { %10339 = vrot.lane.b32.xlu0 %v10338_v40, %s16496_s28  ;;  %v10077_v40 = vunpack.i.h.bf16 %v10075_v3  ;;  %v10076_v13 = vunpack.i.l.bf16 %v10075_v3  ;;  %v13151_v32 = vpop.permute.xlu0 %10109 }
 0x596   : > { %v3536_v36 = vpop.f32.mrf.mxu1 }
 0x597   : > { %v10343_v20 = vpack.i.bf16 %v12678_v29, %v3536_v36  ;;  %v13165_v3 = vsel %vm2345_vm2, %v12580_v56, %v10076_v13  ;;  %v10082_v29 = vunpack.i.h.bf16 %v10080_v8  ;;  %v10086_v13 = vunpack.i.l.bf16 %v13141_v25 }
 0x598   : > { %v3538_v54 = vpop.f32.mrf.mxu1  ;;  %16522 = vst [vmem:[#allocation64_spill] sm:$0xff] %v13165_v3 }
 0x599   : > { %10344 = vrot.lane.b32.xlu1 %v10343_v20, %s16496_s28  ;;  %v10096_v20 = vunpack.i.l.bf16 %v10095_v33 }
 0x59a   : > { %v3541_v37 = vpop.f32.mrf.mxu1 }
 0x59b   : > { %v10348_v48 = vpack.i.bf16 %v12689_v59, %v3541_v37  ;;  %v16520_v37 = vld [vmem:[#allocation10_spill] sm:$0xff] }
 0x59c   : > { %v3543_v61 = vpop.f32.mrf.mxu1 }
 0x59d   : > { %10349 = vrot.lane.b32.xlu0 %v10348_v48, %s16496_s28  ;;  %v3877_v61 = vsel %vm2345_vm2, %v16520_v37, %v10077_v40  ;;  %v13159_v48 = vpop.permute.xlu1 %10124  ;;  %v3909_v40 = vsel %vm2378_vm3, %v13165_v3, %v10096_v20 }
 0x59e   : > { %v3546_v45 = vpop.f32.mrf.mxu1 }
 0x59f   : > { %v10363_v36 = vpack.i.bf16 %v12706_v16, %v3546_v45  ;;  %v10081_v45 = vunpack.i.l.bf16 %v10080_v8  ;;  %v3885_v16 = vsel %vm2378_vm3, %v3877_v61, %v10097_v30  ;;  %v10087_v8 = vunpack.i.h.bf16 %v13141_v25  ;;  %v16525_v25 = vld [vmem:[#allocation11_spill] sm:$0xff] }
 0x5a0   : > { %v3548_v54 = vpop.f32.mrf.mxu1 }
 0x5a1   : > { %10364 = vrot.lane.b32.xlu1 %v10363_v36, %s16496_s28 }
 0x5a2   : > { %v13155_v55 = vpop.f32.mrf.mxu1 }
 0x5a3   : > { %v13161_v59 = vpop.permute.xlu0 %10114 }
 0x5a4   : > { %16521 = vst [vmem:[#allocation10_spill] sm:$0xff] %v13161_v59  ;;  %v10117_v54 = vunpack.i.h.bf16 %v13161_v59  ;;  %v16248_v33 = vunpack.i.l.bf16 %v13161_v59  ;;  %v3553_v36 = vpop.f32.mrf.mxu1 }
 0x5a6   : > { %v3893_v37 = vsel %vm2411_vm4, %v3885_v16, %v10117_v54  ;;  %v13173_v21 = vpop.f32.mrf.mxu1  ;;  %v3917_v56 = vsel %vm2411_vm4, %v3909_v40, %v16248_v33  ;;  %v13193_v54 = vsel %vm2345_vm2, %v12588_v24, %v10081_v45  ;;  %v3878_v40 = vsel %vm2345_vm2, %v16525_v25, %v10082_v29 }
 0x5a7   : > { %v13180_v36 = vpop.permute.xlu0 %10119  ;;  %4056 = vmatprep.mubr.f32.mxu0 %v3917_v56  ;;  %v13182_v30 = vpop.permute.xlu1 %10129  ;;  %16524 = vst [vmem:[#allocation66_spill] sm:$0xff] %v13193_v54  ;;  %v10107_v56 = vunpack.i.h.bf16 %v13149_v43  ;;  %v10106_v33 = vunpack.i.l.bf16 %v13149_v43  ;;  %v3910_v59 = vsel %vm2378_vm3, %v13193_v54, %v10101_v14  ;;  %v3886_v3 = vsel %vm2378_vm3, %v3878_v40, %v10102_v39 }
 0x5a8   : > { %16523 = vst [vmem:[#allocation65_spill] sm:$0xff] %v13182_v30  ;;  %v10132_v16 = vunpack.i.h.bf16 %v13182_v30  ;;  %v16251_v20 = vunpack.i.l.bf16 %v13182_v30  ;;  %v3558_v61 = vpop.f32.mrf.mxu1  ;;  %4057 = vmatmul.mubr.f32.vlgmr.msra.gmra.mxu0 %v3893_v37  ;;  %v13206_v37 = vld [vmem:[%s16474_s7 + $0x108] sm:$0xff]  ;;  %v13221_v45 = vsel %vm2345_vm2, %v12596_v1, %v10086_v13  ;;  %v10111_v13 = vunpack.i.l.bf16 %v13151_v32 }
 0x5a9   : > { %9551 = vmatpush3.msra.mxu0 %v12944_v2  ;;  %16527 = vst [vmem:[#allocation67_spill] sm:$0xff] %v13221_v45  ;;  %v16528_v61 = vld [vmem:[#allocation12_spill] sm:$0xff]  ;;  %v10121_v30 = vunpack.i.l.bf16 %v13180_v36 }
 0x5aa   : > { %v13208_v24 = vpop.f32.mrf.mxu1  ;;  %v3918_v29 = vsel %vm2411_vm4, %v3910_v59, %v16251_v20  ;;  %v3894_v43 = vsel %vm2411_vm4, %v3886_v3, %v10132_v16  ;;  %9552 = vmatprep.subr.mxu0 %v13187_v7  ;;  %v3879_v25 = vsel %vm2345_vm2, %v16528_v61, %v10087_v8  ;;  %v13229_v59 = vld [vmem:[%s16474_s7 + $0x100] sm:$0xff]  ;;  %v10092_v3 = vunpack.i.h.bf16 %v13143_v47 }
 0x5ab   : > { %v13215_v14 = vpop.permute.xlu1 %10134  ;;  %4061 = vmatprep.mubr.f32.mxu0 %v3918_v29  ;;  %v13217_v39 = vpop.permute.xlu0 %10139  ;;  %9553 = vmatpush3.msra.mxu0 %v13187_v7  ;;  %v10091_v16 = vunpack.i.l.bf16 %v13143_v47  ;;  %v10112_v8 = vunpack.i.h.bf16 %v13151_v32  ;;  %v3911_v61 = vsel %vm2378_vm3, %v13221_v45, %v10106_v33  ;;  %v3887_v20 = vsel %vm2378_vm3, %v3879_v25, %v10107_v56  ;;  %v16530_v32 = vld [vmem:[#allocation41_spill] sm:$0xff] }
 0x5ac   : > { %16526 = vst [vmem:[#allocation11_spill] sm:$0xff] %v13217_v39  ;;  %v10142_v40 = vunpack.i.h.bf16 %v13217_v39  ;;  %v3563_v1 = vpop.f32.mrf.mxu1  ;;  %4062 = vmatmul.mubr.f32.gmra.mxu0 %v3894_v43  ;;  %9554 = vmatprep.subr.mxu0 %v13206_v37  ;;  %v10122_v47 = vunpack.i.h.bf16 %v13180_v36  ;;  %v16529_v43 = vunpack.i.l.bf16 %v13217_v39 }
 0x5ad   : > { %9555 = vmatpush3.msra.mxu0 %v13206_v37 }
 0x5ae   : > { %v13244_v29 = vpop.f32.mrf.mxu1  ;;  %v3919_v1 = vsel %vm2411_vm4, %v3911_v61, %v16529_v43  ;;  %v3895_v54 = vsel %vm2411_vm4, %v3887_v20, %v10142_v40  ;;  %9556 = vmatprep.subr.mxu0 %v13229_v59  ;;  %v13260_v20 = vsel %vm2345_vm2, %v12604_v5, %v10091_v16  ;;  %v16533_v40 = vld [vmem:[#allocation13_spill] sm:$0xff] }
 0x5af   : > { %v10353_v33 = vpack.i.bf16 %v16530_v32, %v13244_v29  ;;  %v10145_v56 = vpop.permute.xlu0 %10144  ;;  %4066 = vmatprep.mubr.f32.mxu0 %v3919_v1  ;;  %v13253_v25 = vpop.permute.xlu1 %10149  ;;  %9557 = vmatpush3.msra.mxu0 %v13229_v59  ;;  %16532 = vst [vmem:[#allocation41_spill] sm:$0xff] %v13260_v20  ;;  %v3880_v61 = vsel %vm2345_vm2, %v16533_v40, %v10092_v3  ;;  %v13267_v43 = vld [vmem:[%s16474_s7 + $0xf8] sm:$0xff]  ;;  %v10127_v1 = vunpack.i.h.bf16 %v13159_v48  ;;  %v16536_v40 = vld [vmem:[#allocation14_spill] sm:$0xff] }
 0x5b0   : > { %16531 = vst [vmem:[#allocation12_spill] sm:$0xff] %v13253_v25  ;;  %v10152_v36 = vunpack.i.h.bf16 %v13253_v25  ;;  %v16260_v45 = vunpack.i.l.bf16 %v13253_v25  ;;  %v3568_v39 = vpop.f32.mrf.mxu1  ;;  %4067 = vmatmul.mubr.f32.gmra.mxu0 %v3895_v54  ;;  %16534 = vst [vmem:[#allocation13_spill] sm:$0xff] %v13267_v43  ;;  %8439 = vmatprep.subr.mxu0 %v13267_v43  ;;  %v3912_v54 = vsel %vm2378_vm3, %v13260_v20, %v10111_v13  ;;  %v10126_v43 = vunpack.i.l.bf16 %v13159_v48 }
 0x5b1   : > { %10354 = vrot.lane.b32.xlu0 %v10353_v33, %s16502_s27  ;;  %v3888_v5 = vsel %vm2378_vm3, %v3880_v61, %v10112_v8  ;;  %v13283_v32 = vsel %vm2345_vm2, %v12618_v34, %v10121_v30  ;;  %v3881_v33 = vsel %vm2345_vm2, %v16536_v40, %v10122_v47  ;;  %v10137_v13 = vunpack.i.h.bf16 %v13215_v14  ;;  %v16537_v61 = vld [vmem:[#allocation42_spill] sm:$0xff] }
 0x5b2   : > { %v13275_v39 = vpop.f32.mrf.mxu1  ;;  %v3920_v3 = vsel %vm2411_vm4, %v3912_v54, %v16260_v45  ;;  %v3896_v16 = vsel %vm2411_vm4, %v3888_v5, %v10152_v36  ;;  %16535 = vst [vmem:[#allocation68_spill] sm:$0xff] %v13283_v32  ;;  %v10136_v8 = vunpack.i.l.bf16 %v13215_v14  ;;  %v10147_v47 = vunpack.i.h.bf16 %v10145_v56 }
 0x5b3   : > { %v10368_v25 = vpack.i.bf16 %v16537_v61, %v13275_v39  ;;  %v10165_v20 = vpop.permute.xlu1 %10164  ;;  %4071 = vmatprep.mubr.f32.mxu0 %v3920_v3  ;;  %v13292_v54 = vpop.permute.xlu0 %10154  ;;  %v10146_v5 = vunpack.i.l.bf16 %v10145_v56  ;;  %v3913_v48 = vsel %vm2378_vm3, %v13283_v32, %v10126_v43  ;;  %v3889_v14 = vsel %vm2378_vm3, %v3881_v33, %v10127_v1  ;;  %v16539_v56 = vld [vmem:[#allocation43_spill] sm:$0xff] }
 0x5b4   : > { %16538 = vst [vmem:[#allocation14_spill] sm:$0xff] %v13292_v54  ;;  %v10157_v36 = vunpack.i.h.bf16 %v13292_v54  ;;  %v16262_v34 = vunpack.i.l.bf16 %v13292_v54  ;;  %v3573_v30 = vpop.f32.mrf.mxu1  ;;  %4072 = vmatmul.mubr.f32.gmra.mxu0 %v3896_v16  ;;  %v16542_v43 = vld [vmem:[#allocation15_spill] sm:$0xff] }
 0x5b5   : > { %10359 = vrot.lane.b32.xlu0 %v13087_v35, %s16487_s4  ;;  %10369 = vrot.lane.b32.xlu1 %v10368_v25, %s16502_s27  ;;  %v13314_v25 = vsel %vm2345_vm2, %v12626_v28, %v10136_v8  ;;  %v3882_v1 = vsel %vm2345_vm2, %v16542_v43, %v10137_v13  ;;  %v16545_v43 = vld [vmem:[#allocation44_spill] sm:$0xff]  ;;  %v13527_v54 = vld [vmem:[%s16474_s7 + $0xc8] sm:$0xff] }
 0x5b6   : > { %v13302_v3 = vpop.f32.mrf.mxu1  ;;  %v3921_v40 = vsel %vm2411_vm4, %v3913_v48, %v16262_v34  ;;  %v3897_v16 = vsel %vm2411_vm4, %v3889_v14, %v10157_v36  ;;  %16541 = vst [vmem:[#allocation43_spill] sm:$0xff] %v13314_v25  ;;  %v3914_v28 = vsel %vm2378_vm3, %v13314_v25, %v10146_v5  ;;  %v3890_v8 = vsel %vm2378_vm3, %v3882_v1, %v10147_v47  ;;  %v13584_v32 = vld [vmem:[%s16474_s7 + $0xb0] sm:$0xff] }
 0x5b7   : > { %v10378_v61 = vpack.i.bf16 %v16539_v56, %v13302_v3  ;;  %v10160_v30 = vpop.permute.xlu0 %10159  ;;  %4076 = vmatprep.mubr.f32.mxu0 %v3921_v40  ;;  %v13310_v35 = vpop.permute.xlu1 %10169  ;;  %v10383_v5 = vpack.i.bf16 %v12714_v26, %v13155_v55  ;;  %v10166_v47 = vunpack.i.l.bf16 %v10165_v20  ;;  %16558 = vst [vmem:[#allocation75_spill] sm:$0xff] %v13584_v32 }
 0x5b8   : > { %16540 = vst [vmem:[#allocation42_spill] sm:$0xff] %v13310_v35  ;;  %v10162_v33 = vunpack.i.h.bf16 %v10160_v30  ;;  %v10161_v45 = vunpack.i.l.bf16 %v10160_v30  ;;  %v10172_v48 = vunpack.i.h.bf16 %v13310_v35  ;;  %v16261_v36 = vunpack.i.l.bf16 %v13310_v35  ;;  %v3578_v14 = vpop.f32.mrf.mxu1  ;;  %4077 = vmatmul.mubr.f32.gmra.mxu0 %v3897_v16 }
 0x5b9   : > { %10374 = vrot.lane.b32.xlu1 %v13098_v10, %s16487_s4  ;;  %10379 = vrot.lane.b32.xlu0 %v10378_v61, %s16502_s27  ;;  %v16544_v10 = vld [vmem:[#allocation16_spill] sm:$0xff]  ;;  %v10167_v30 = vunpack.i.h.bf16 %v10165_v20 }
 0x5ba   : > { %v13326_v40 = vpop.f32.mrf.mxu1  ;;  %v3922_v13 = vsel %vm2411_vm4, %v3914_v28, %v16261_v36  ;;  %v3898_v56 = vsel %vm2411_vm4, %v3890_v8, %v10172_v48  ;;  %v13334_v16 = vsel %vm2345_vm2, %v12634_v18, %v10161_v45  ;;  %v3883_v61 = vsel %vm2345_vm2, %v16544_v10, %v10162_v33 }
 0x5bb   : > { %16543 = vst [vmem:[#allocation15_spill] sm:$0xff] %v13334_v16  ;;  %v10388_v1 = vpack.i.bf16 %v16545_v43, %v13326_v40  ;;  %v10175_v14 = vpop.permute.xlu1 %10174  ;;  %4081 = vmatprep.mubr.f32.mxu0 %v3922_v13  ;;  %v13342_v28 = vpop.permute.xlu0 %10179  ;;  %v3915_v55 = vsel %vm2378_vm3, %v13334_v16, %v10166_v47  ;;  %v3891_v20 = vsel %vm2378_vm3, %v3883_v61, %v10167_v30 }
 0x5bc   : > { %16546 = vst [vmem:[#allocation16_spill] sm:$0xff] %v13342_v28  ;;  %v10182_v48 = vunpack.i.h.bf16 %v13342_v28  ;;  %v16264_v18 = vunpack.i.l.bf16 %v13342_v28  ;;  %v3583_v45 = vpop.f32.mrf.mxu1  ;;  %4082 = vmatmul.mubr.f32.gmra.mxu0 %v3898_v56  ;;  %v10177_v8 = vunpack.i.h.bf16 %v10175_v14  ;;  %v10176_v33 = vunpack.i.l.bf16 %v10175_v14 }
 0x5bd   : > { %10384 = vrot.lane.b32.xlu0 %v10383_v5, %s16496_s28  ;;  %10389 = vrot.lane.b32.xlu1 %v10388_v1, %s16502_s27  ;;  %v10403_v56 = vpack.i.bf16 %v12722_v53, %v13173_v21  ;;  %v16547_v5 = vld [vmem:[#allocation45_spill] sm:$0xff] }
 0x5be   : > { %v13351_v13 = vpop.f32.mrf.mxu1  ;;  %v3923_v10 = vsel %vm2411_vm4, %v3915_v55, %v16264_v18  ;;  %v3899_v43 = vsel %vm2411_vm4, %v3891_v20, %v10182_v48  ;;  %v16549_v55 = vld [vmem:[#allocation17_spill] sm:$0xff]  ;;  %v13371_v21 = vsel %vm2345_vm2, %v12642_v4, %v10176_v33 }
 0x5bf   : > { %v10393_v14 = vpack.i.bf16 %v16547_v5, %v13351_v13  ;;  %v10185_v1 = vpop.permute.xlu0 %10184  ;;  %4086 = vmatprep.mubr.f32.mxu0 %v3923_v10  ;;  %v13361_v45 = vpop.permute.xlu1 %10189  ;;  %v3884_v48 = vsel %vm2345_vm2, %v16549_v55, %v10177_v8  ;;  %16550 = vst [vmem:[#allocation45_spill] sm:$0xff] %v13371_v21  ;;  %v13421_v55 = vld [vmem:[%s16474_s7 + $0xf0] sm:$0xff] }
 0x5c0   : > { %16548 = vst [vmem:[#allocation44_spill] sm:$0xff] %v13361_v45  ;;  %v10187_v47 = vunpack.i.h.bf16 %v10185_v1  ;;  %v10186_v61 = vunpack.i.l.bf16 %v10185_v1  ;;  %v10192_v30 = vunpack.i.h.bf16 %v13361_v45  ;;  %v16263_v36 = vunpack.i.l.bf16 %v13361_v45  ;;  %v3588_v34 = vpop.f32.mrf.mxu1  ;;  %4087 = vmatmul.mubr.f32.gmra.mxu0 %v3899_v43  ;;  %v13481_v45 = vld [vmem:[%s16474_s7 + $0xd8] sm:$0xff] }
 0x5c1   : > { %10404 = vrot.lane.b32.xlu1 %v10403_v56, %s16496_s28  ;;  %10394 = vrot.lane.b32.xlu0 %v10393_v14, %s16502_s27 }
 0x5c2   : > { %v13373_v20 = vpop.f32.mrf.mxu1  ;;  %v3916_v10 = vsel %vm2378_vm3, %v13371_v21, %v10186_v61  ;;  %v3892_v5 = vsel %vm2378_vm3, %v3884_v48, %v10187_v47  ;;  %v13491_v21 = vld [vmem:[%s16474_s7 + $0x58] sm:$0xff] }
 0x5c3   : > { %v10408_v34 = vpack.i.bf16 %v12881_v31, %v13373_v20  ;;  %v13380_v43 = vpop.permute.xlu0 %10194  ;;  %v13382_v8 = vpop.permute.xlu1 %10199  ;;  %v3924_v56 = vsel %vm2411_vm4, %v3916_v10, %v16263_v36  ;;  %v3900_v4 = vsel %vm2411_vm4, %v3892_v5, %v10192_v30  ;;  %v10438_v36 = vpack.i.bf16 %v12744_v27, %v13244_v29 }
 0x5c4   : > { %v3593_v33 = vpop.f32.mrf.mxu1  ;;  %4091 = vmatprep.mubr.f32.mxu0 %v3924_v56  ;;  %v10201_v18 = vunpack.i.l.bf16 %v13382_v8 }
 0x5c5   : > { %4092 = vmatmul.mubr.f32.gmra.mxu0 %v3900_v4  ;;  %10399 = vrot.lane.b32.xlu0 %v13109_v41, %s16487_s4  ;;  %v13407_v41 = vld [vmem:[%s16474_s7 + $0x78] sm:$0xff]  ;;  %v10196_v4 = vunpack.i.l.bf16 %v13380_v43 }
 0x5c6   : > { %10409 = vrot.lane.b32.xlu1 %v10408_v34, %s16502_s27  ;;  %v13391_v14 = vpop.f32.mrf.mxu1  ;;  %9558 = vmatprep.mubr.msk.f32.mxu0 %vm2345_vm2, %v13005_v50  ;;  %v13439_v34 = vld [vmem:[%s16474_s7 + $0xe8] sm:$0xff] }
 0x5c7   : > { %v10418_v31 = vpack.i.bf16 %v12892_v17, %v13391_v14  ;;  %v13397_v1 = vpop.permute.xlu0 %10209  ;;  %v13399_v47 = vpop.permute.xlu1 %10204  ;;  %v4402_v28 = vsel %vm2345_vm2, %v12656_v57, %v10196_v4  ;;  %v10443_v57 = vpack.i.bf16 %v12752_v23, %v13275_v39 }
 0x5c8   : > { %v3598_v61 = vpop.f32.mrf.mxu1  ;;  %v4410_v4 = vsel %vm2378_vm3, %v4402_v28, %v10201_v18 }
 0x5c9   : > { %9559 = vmatmul.mubr.msk.f32.vlgmr.msra.gmra.mxu0 %vm2345_vm2, %v13019_v22  ;;  %10419 = vrot.lane.b32.xlu0 %v10418_v31, %s16502_s27  ;;  %v13464_v61 = vld [vmem:[%s16474_s7 + $0xe0] sm:$0xff] }
 0x5ca   : > { %8440 = vmatpush3.msra.mxu0 %v13407_v41  ;;  %10414 = vrot.lane.b32.xlu1 %v13120_v19, %s16487_s4  ;;  %v13412_v17 = vpop.f32.mrf.mxu1  ;;  %v10423_v19 = vpack.i.bf16 %v12730_v42, %v13208_v24  ;;  %v13447_v24 = vld [vmem:[%s16474_s7 + $0x68] sm:$0xff]  ;;  %v13617_v22 = vld [vmem:[%s16474_s7 + $0xa0] sm:$0xff] }
 0x5cb   : > { %v10428_v30 = vpack.i.bf16 %v12900_v0, %v13412_v17  ;;  %9561 = vmatprep.mubr.msk.f32.mxu0 %vm2345_vm2, %v13033_v6  ;;  %8441 = vmatprep.subr.mxu0 %v13421_v55  ;;  %v13424_v48 = vpop.permute.xlu0 %10214  ;;  %v13426_v10 = vpop.permute.xlu1 %10219  ;;  %v13433_v0 = vld [vmem:[%s16474_s7 + $0x70] sm:$0xff]  ;;  %v10197_v6 = vunpack.i.h.bf16 %v13380_v43  ;;  %16563 = vst [vmem:[#allocation80_spill] sm:$0xff] %v13617_v22  ;;  %v10473_v43 = vpack.i.bf16 %v13129_v11, %v13125_v46 }
 0x5cc   : > { %8442 = vmatpush3.msra.mxu0 %v13433_v0  ;;  %v3603_v5 = vpop.f32.mrf.mxu1 }
 0x5cd   : > { %8443 = vmatprep.subr.mxu0 %v13439_v34  ;;  %9562 = vmatmul.mubr.msk.f32.gmra.mxu0 %vm2345_vm2, %v13041_v52  ;;  %v10433_v5 = vpack.i.bf16 %v13092_v44, %v13081_v51 }
 0x5ce   : > { %8444 = vmatpush3.msra.mxu0 %v13447_v24  ;;  %10424 = vrot.lane.b32.xlu0 %v10423_v19, %s16496_s28  ;;  %v13451_v56 = vpop.f32.mrf.mxu1 }
 0x5cf   : > { %16551 = vst [vmem:[#allocation17_spill] sm:$0xff] %v13451_v56  ;;  %10429 = vrot.lane.b32.xlu1 %v10428_v30, %s16502_s27  ;;  %9564 = vmatprep.mubr.msk.f32.mxu0 %vm2345_vm2, %v13049_v60  ;;  %v13457_v33 = vpop.permute.xlu0 %10229  ;;  %v13459_v31 = vpop.permute.xlu1 %10224  ;;  %v13472_v30 = vld [vmem:[%s16474_s7 + $0x60] sm:$0xff]  ;;  %v10463_v60 = vpack.i.bf16 %v12768_v9, %v13326_v40  ;;  %v13608_v9 = vld [vmem:[%s16474_s7 + $0x28] sm:$0xff] }
 0x5d0   : > { %8445 = vmatprep.subr.mxu0 %v13464_v61  ;;  %v3608_v19 = vpop.f32.mrf.mxu1  ;;  %16562 = vst [vmem:[#allocation79_spill] sm:$0xff] %v13608_v9 }
 0x5d1   : > { %8446 = vmatpush3.msra.mxu0 %v13472_v30 }
 0x5d2   : > { %8447 = vmatprep.subr.mxu0 %v13481_v45  ;;  %9565 = vmatmul.mubr.msk.f32.gmra.mxu0 %vm2345_vm2, %v13057_v58  ;;  %v13486_v19 = vpop.f32.mrf.mxu1 }
 0x5d3   : > { %16552 = vst [vmem:[#allocation69_spill] sm:$0xff] %v13486_v19  ;;  %8448 = vmatpush3.msra.mxu0 %v13491_v21  ;;  %10434 = vrot.lane.b32.xlu0 %v10433_v5, %s16487_s4  ;;  %v13495_v27 = vpop.permute.xlu1 %10244  ;;  %v13497_v29 = vpop.permute.xlu0 %10234  ;;  %v10448_v25 = vpack.i.bf16 %v13486_v19, %v13451_v56  ;;  %v13510_v5 = vld [vmem:[%s16474_s7 + $0xd0] sm:$0xff]  ;;  %v13647_v19 = vld [vmem:[%s16474_s7 + $0x18] sm:$0xff] }
 0x5d4   : > { %10439 = vrot.lane.b32.xlu1 %v10438_v36, %s16496_s28  ;;  %9567 = vmatprep.mubr.msk.f32.mxu0 %vm2345_vm2, %v13065_v63  ;;  %v10236_v16 = vunpack.i.l.bf16 %v13497_v29  ;;  %v3613_v35 = vpop.f32.mrf.mxu1  ;;  %v13518_v36 = vld [vmem:[%s16474_s7 + $0x50] sm:$0xff]  ;;  %v13538_v63 = vld [vmem:[%s16474_s7 + $0x48] sm:$0xff]  ;;  %16567 = vst [vmem:[#allocation84_spill] sm:$0xff] %v13647_v19 }
 0x5d5   : > { %8449 = vmatprep.subr.mxu0 %v13510_v5 }
 0x5d6   : > { %8450 = vmatpush3.msra.mxu0 %v13518_v36  ;;  %v13521_v35 = vpop.f32.mrf.mxu1  ;;  %v4418_v39 = vsel %vm2411_vm4, %v4410_v4, %v10236_v16  ;;  %v10458_v16 = vpack.i.bf16 %v12760_v49, %v13302_v3  ;;  %v13556_v4 = vld [vmem:[%s16474_s7 + $0x40] sm:$0xff]  ;;  %v13574_v3 = vld [vmem:[%s16474_s7 + $0x38] sm:$0xff] }
 0x5d7   : > { %16553 = vst [vmem:[#allocation70_spill] sm:$0xff] %v13521_v35  ;;  %8451 = vmatprep.subr.mxu0 %v13527_v54  ;;  %9568 = vmatmul.mubr.msk.f32.gmra.mxu0 %vm2345_vm2, %v13073_v15  ;;  %v13532_v23 = vpop.permute.xlu0 %10239  ;;  %v13542_v28 = vpop.permute.xlu1 %10249  ;;  %v13548_v15 = vld [vmem:[%s16474_s7 + $0xc0] sm:$0xff]  ;;  %16554 = vst [vmem:[#allocation71_spill] sm:$0xff] %v13556_v4 }
 0x5d8   : > { %8452 = vmatpush3.msra.mxu0 %v13538_v63  ;;  %10444 = vrot.lane.b32.xlu1 %v10443_v57, %s16496_s28  ;;  %v3618_v18 = vpop.f32.mrf.mxu1  ;;  %16557 = vst [vmem:[#allocation74_spill] sm:$0xff] %v13574_v3 }
 0x5d9   : > { %10449 = vrot.lane.b32.xlu0 %v10448_v25, %s16502_s27  ;;  %8453 = vmatprep.subr.mxu0 %v13548_v15  ;;  %v10453_v25 = vpack.i.bf16 %v13114_v38, %v13103_v62  ;;  %v13566_v18 = vld [vmem:[%s16474_s7 + $0xb8] sm:$0xff] }
 0x5da   : > { %8454 = vmatpush3.msra.mxu0 %v13556_v4  ;;  %4514 = vmatprep.mubr.f32.mxu0 %v4418_v39  ;;  %v13559_v57 = vpop.f32.mrf.mxu1  ;;  %16556 = vst [vmem:[#allocation73_spill] sm:$0xff] %v13566_v18 }
 0x5db   : > { %16555 = vst [vmem:[#allocation72_spill] sm:$0xff] %v13559_v57  ;;  %8455 = vmatprep.subr.mxu0 %v13566_v18  ;;  %v13569_v49 = vpop.permute.xlu0 %10259  ;;  %v10468_v58 = vpack.i.bf16 %v13559_v57, %v13521_v35  ;;  %v13589_v52 = vpop.permute.xlu1 %10254  ;;  %v10478_v57 = vpack.i.bf16 %v12782_v12, %v13351_v13  ;;  %v13638_v35 = vld [vmem:[%s16474_s7 + $0x98] sm:$0xff]  ;;  %v10202_v12 = vunpack.i.h.bf16 %v13382_v8  ;;  %v10222_v18 = vunpack.i.h.bf16 %v13426_v10 }
 0x5dc   : > { %8456 = vmatpush3.msra.mxu0 %v13574_v3  ;;  %10459 = vrot.lane.b32.xlu1 %v10458_v16, %s16496_s28  ;;  %v3623_v39 = vpop.f32.mrf.mxu1  ;;  %v13594_v16 = vld [vmem:[%s16474_s7 + $0x30] sm:$0xff]  ;;  %16566 = vst [vmem:[#allocation83_spill] sm:$0xff] %v13638_v35 }
 0x5dd   : > { %10454 = vrot.lane.b32.xlu0 %v10453_v25, %s16487_s4  ;;  %8457 = vmatprep.subr.mxu0 %v13584_v32  ;;  %16559 = vst [vmem:[#allocation76_spill] sm:$0xff] %v13594_v16  ;;  %v13602_v39 = vld [vmem:[%s16474_s7 + $0xa8] sm:$0xff] }
 0x5de   : > { %8458 = vmatpush3.msra.mxu0 %v13594_v16  ;;  %v13597_v25 = vpop.f32.mrf.mxu1  ;;  %16561 = vst [vmem:[#allocation78_spill] sm:$0xff] %v13602_v39  ;;  %v13693_v16 = vld [vmem:[%s16474_s7 + $0x8] sm:$0xff] }
 0x5df   : > { %16560 = vst [vmem:[#allocation77_spill] sm:$0xff] %v13597_v25  ;;  %8459 = vmatprep.subr.mxu0 %v13602_v39  ;;  %v13620_v50 = vpop.permute.xlu0 %10264  ;;  %v13642_v13 = vpop.permute.xlu1 %10269  ;;  %v16576_v3 = vld [vmem:[#allocation19_spill] sm:$0xff] }
 0x5e0   : > { %8460 = vmatpush3.msra.mxu0 %v13608_v9  ;;  %10464 = vrot.lane.b32.xlu1 %v10463_v60, %s16496_s28  ;;  %v3628_v40 = vpop.f32.mrf.mxu1  ;;  %v13627_v60 = vld [vmem:[%s16474_s7 + $0x20] sm:$0xff]  ;;  %v10207_v9 = vunpack.i.h.bf16 %v13399_v47 }
 0x5e1   : > { %10469 = vrot.lane.b32.xlu0 %v10468_v58, %s16502_s27  ;;  %8461 = vmatprep.subr.mxu0 %v13617_v22  ;;  %16564 = vst [vmem:[#allocation81_spill] sm:$0xff] %v13627_v60  ;;  %v10206_v40 = vunpack.i.l.bf16 %v13399_v47  ;;  %v10237_v47 = vunpack.i.h.bf16 %v13497_v29  ;;  %v16573_v29 = vld [vmem:[#allocation34_spill] sm:$0xff] }
 0x5e2   : > { %8462 = vmatpush3.msra.mxu0 %v13627_v60  ;;  %v13630_v58 = vpop.f32.mrf.mxu1  ;;  %v16568_v60 = vld [vmem:[#allocation18_spill] sm:$0xff]  ;;  %16575 = vst [vmem:[#allocation34_spill] sm:$0xff] %v13693_v16 }
 0x5e3   : > { %16565 = vst [vmem:[#allocation82_spill] sm:$0xff] %v13630_v58  ;;  %8463 = vmatprep.subr.mxu0 %v13638_v35  ;;  %v4378_v22 = vsel %vm2345_vm2, %v16568_v60, %v10197_v6  ;;  %v10488_v8 = vpack.i.bf16 %v13630_v58, %v13597_v25  ;;  %v13660_v35 = vld [vmem:[%s16474_s7 + $0x90] sm:$0xff]  ;;  %v10216_v6 = vunpack.i.l.bf16 %v13424_v48  ;;  %v10251_v58 = vunpack.i.l.bf16 %v13542_v28  ;;  %v13677_v25 = vpop.permute.xlu0 %10274 }
 0x5e4   : > { %8464 = vmatpush3.msra.mxu0 %v13647_v19  ;;  %10479 = vrot.lane.b32.xlu1 %v10478_v57, %s16496_s28  ;;  %v3633_v56 = vpop.f32.mrf.mxu1  ;;  %16569 = vst [vmem:[#allocation18_spill] sm:$0xff] %v13660_v35  ;;  %v16570_v57 = vld [vmem:[#allocation38_spill] sm:$0xff]  ;;  %v10211_v19 = vunpack.i.l.bf16 %v13397_v1  ;;  %v13671_v60 = vld [vmem:[%s16474_s7 + $0x10] sm:$0xff] }
 0x5e5   : > { %10474 = vrot.lane.b32.xlu0 %v10473_v43, %s16487_s4  ;;  %8465 = vmatprep.subr.mxu0 %v13660_v35  ;;  %v10483_v56 = vpack.i.bf16 %v16570_v57, %v13373_v20  ;;  %16571 = vst [vmem:[#allocation38_spill] sm:$0xff] %v13671_v60  ;;  %v13682_v20 = vld [vmem:[%s16474_s7 + $0x88] sm:$0xff]  ;;  %v4403_v57 = vsel %vm2345_vm2, %v16573_v29, %v10206_v40 }
 0x5e6   : > { %8466 = vmatpush3.msra.mxu0 %v13671_v60  ;;  %v13674_v43 = vpop.f32.mrf.mxu1  ;;  %16572 = vst [vmem:[#allocation85_spill] sm:$0xff] %v13682_v20  ;;  %v4386_v35 = vsel %vm2378_vm3, %v4378_v22, %v10202_v12  ;;  %v16574_v60 = vld [vmem:[#allocation39_spill] sm:$0xff]  ;;  %v4379_v40 = vsel %vm2345_vm2, %v16576_v3, %v10207_v9  ;;  %v10217_v22 = vunpack.i.h.bf16 %v13424_v48  ;;  %v10221_v12 = vunpack.i.l.bf16 %v13426_v10  ;;  %v13716_v48 = vld [vmem:[%s16474_s7] sm:$0xff] }
 0x5e7   : > { %8467 = vmatprep.subr.mxu0 %v13682_v20  ;;  %v10498_v39 = vpack.i.bf16 %v16574_v60, %v13391_v14  ;;  %v10212_v20 = vunpack.i.h.bf16 %v13397_v1  ;;  %v13706_v14 = vld [vmem:[%s16474_s7 + $0x80] sm:$0xff]  ;;  %v10252_v1 = vunpack.i.h.bf16 %v13542_v28  ;;  %16578 = vst [vmem:[#allocation19_spill] sm:$0xff] %v13716_v48  ;;  %v4411_v3 = vsel %vm2378_vm3, %v4403_v57, %v10211_v19  ;;  %v16579_v9 = vld [vmem:[#allocation35_spill] sm:$0xff]  ;;  %v16583_v57 = vld [vmem:[#allocation20_spill] sm:$0xff]  ;;  %v13736_v4 = vpop.permute.xlu0 %10279 }
 0x5e8   : > { %8468 = vmatpush3.msra.mxu0 %v13693_v16  ;;  %10484 = vrot.lane.b32.xlu1 %v10483_v56, %s16496_s28  ;;  %v3638_v32 = vpop.f32.mrf.mxu1  ;;  %16577 = vst [vmem:[#allocation39_spill] sm:$0xff] %v13706_v14  ;;  %v13711_v56 = vpop.permute.xlu1 %10284  ;;  %v16580_v29 = vld [vmem:[#allocation62_spill] sm:$0xff]  ;;  %v10226_v28 = vunpack.i.l.bf16 %v13459_v31  ;;  %v4419_v16 = vsel %vm2411_vm4, %v4411_v3, %v10251_v58  ;;  %v10241_v10 = vunpack.i.l.bf16 %v13532_v23 }
 0x5e9   : > { %10489 = vrot.lane.b32.xlu0 %v10488_v8, %s16502_s27  ;;  %8469 = vmatprep.subr.mxu0 %v13706_v14  ;;  %v4394_v32 = vsel %vm2411_vm4, %v4386_v35, %v10237_v47  ;;  %v4404_v8 = vsel %vm2345_vm2, %v16579_v9, %v10216_v6  ;;  %v16581_v35 = vld [vmem:[#allocation63_spill] sm:$0xff]  ;;  %v10261_v14 = vunpack.i.l.bf16 %v13569_v49  ;;  %v4380_v9 = vsel %vm2345_vm2, %v16583_v57, %v10217_v22 }
 0x5ea   : > { %8470 = vmatpush3.msra.mxu0 %v13716_v48  ;;  %v13722_v60 = vpop.f32.mrf.mxu1  ;;  %v10493_v47 = vpack.i.bf16 %v16581_v35, %v16580_v29  ;;  %v16582_v48 = vld [vmem:[#allocation40_spill] sm:$0xff]  ;;  %v4387_v58 = vsel %vm2378_vm3, %v4379_v40, %v10212_v20  ;;  %v10246_v57 = vunpack.i.l.bf16 %v13495_v27 }
 0x5eb   : > { %4515 = vmatmul.mubr.f32.vlgmr.msra.gmra.mxu0 %v4394_v32  ;;  %9570 = vmatprep.subr.mxu0 %v12944_v2  ;;  %v10503_v19 = vpack.i.bf16 %v16582_v48, %v13412_v17  ;;  %v4412_v32 = vsel %vm2378_vm3, %v4404_v8, %v10221_v12  ;;  %v10231_v17 = vunpack.i.l.bf16 %v13457_v33  ;;  %v4395_v22 = vsel %vm2411_vm4, %v4387_v58, %v10252_v1  ;;  %v16584_v40 = vld [vmem:[#allocation36_spill] sm:$0xff] }
 0x5ec   : > { %4519 = vmatprep.mubr.f32.mxu0 %v4419_v16  ;;  %10499 = vrot.lane.b32.xlu1 %v10498_v39, %s16496_s28  ;;  %v3643_v6 = vpop.f32.mrf.mxu1  ;;  %v10227_v16 = vunpack.i.h.bf16 %v13459_v31  ;;  %v10262_v39 = vunpack.i.h.bf16 %v13569_v49  ;;  %v10271_v48 = vunpack.i.l.bf16 %v13642_v13  ;;  %v4420_v20 = vsel %vm2411_vm4, %v4412_v32, %v10261_v14  ;;  %v13752_v12 = vpop.permute.xlu1 %10289  ;;  %v16585_v14 = vld [vmem:[#allocation21_spill] sm:$0xff] }
 0x5ed   : > { %10494 = vrot.lane.b32.xlu0 %v10493_v47, %s16487_s4  ;;  %9571 = vmatpush3.msra.mxu0 %v12944_v2  ;;  %v4405_v2 = vsel %vm2345_vm2, %v16584_v40, %v10226_v28  ;;  %v10232_v31 = vunpack.i.h.bf16 %v13457_v33  ;;  %v10242_v49 = vunpack.i.h.bf16 %v13532_v23  ;;  %v4388_v1 = vsel %vm2378_vm3, %v4380_v9, %v10222_v18  ;;  %v13768_v23 = vpop.permute.xlu0 %10299 }
 0x5ee   : > { %9572 = vmatprep.subr.mxu0 %v13187_v7  ;;  %v4381_v3 = vsel %vm2345_vm2, %v16585_v14, %v10227_v16  ;;  %v10272_v8 = vunpack.i.h.bf16 %v13642_v13  ;;  %v4396_v47 = vsel %vm2411_vm4, %v4388_v1, %v10262_v39  ;;  %v4413_v28 = vsel %vm2378_vm3, %v4405_v2, %v10231_v17  ;;  %v16587_v13 = vld [vmem:[#allocation22_spill] sm:$0xff] }
 0x5ef   : > { %4520 = vmatmul.mubr.f32.gmra.mxu0 %v4395_v22  ;;  %v10276_v33 = vunpack.i.l.bf16 %v13677_v25  ;;  %v4421_v18 = vsel %vm2411_vm4, %v4413_v28, %v10271_v48  ;;  %v4382_v9 = vsel %vm2345_vm2, %v16587_v13, %v10242_v49  ;;  %v10256_v58 = vunpack.i.l.bf16 %v13589_v52 }
 0x5f0   : > { %4524 = vmatprep.mubr.f32.mxu0 %v4420_v20  ;;  %10504 = vrot.lane.b32.xlu1 %v10503_v19, %s16496_s28  ;;  %v16586_v19 = vld [vmem:[#allocation37_spill] sm:$0xff]  ;;  %v4389_v32 = vsel %vm2378_vm3, %v4381_v3, %v10232_v31  ;;  %v10266_v17 = vunpack.i.l.bf16 %v13620_v50  ;;  %v10277_v16 = vunpack.i.h.bf16 %v13677_v25  ;;  %v10295_v39 = vpop.permute.xlu1 %10294  ;;  %v10247_v48 = vunpack.i.h.bf16 %v13495_v27 }
 0x5f1   : > { %5202 = vrot.lane.b32.xlu0 %v13674_v43, %s16502_s27  ;;  %9573 = vmatpush3.msra.mxu0 %v13187_v7  ;;  %v4406_v6 = vsel %vm2345_vm2, %v16586_v19, %v10241_v10  ;;  %v4397_v22 = vsel %vm2411_vm4, %v4389_v32, %v10272_v8  ;;  %v10281_v20 = vunpack.i.l.bf16 %v13736_v4  ;;  %v10291_v40 = vunpack.i.l.bf16 %v13752_v12  ;;  %v16588_v31 = vld [vmem:[#allocation13_spill] sm:$0xff]  ;;  %v10305_v3 = vpop.permute.xlu0 %10304  ;;  %v16590_v32 = vld [vmem:[#allocation24_spill] sm:$0xff] }
 0x5f2   : > { %9574 = vmatprep.subr.mxu0 %v13206_v37  ;;  %v4414_v10 = vsel %vm2378_vm3, %v4406_v6, %v10246_v57  ;;  %v10257_v25 = vunpack.i.h.bf16 %v13589_v52  ;;  %v13793_v49 = vpop.f32.mrf.mxu1  ;;  %v10267_v1 = vunpack.i.h.bf16 %v13620_v50  ;;  %v10282_v14 = vunpack.i.h.bf16 %v13736_v4  ;;  %v16589_v6 = vld [vmem:[#allocation23_spill] sm:$0xff] }
 0x5f3   : > { %4525 = vmatmul.mubr.f32.gmra.mxu0 %v4396_v47  ;;  %v4422_v2 = vsel %vm2411_vm4, %v4414_v10, %v10276_v33  ;;  %v4390_v27 = vsel %vm2378_vm3, %v4382_v9, %v10247_v48  ;;  %v4407_v8 = vsel %vm2345_vm2, %v12714_v26, %v10256_v58  ;;  %v10292_v47 = vunpack.i.h.bf16 %v13752_v12 }
 0x5f4   : > { %4529 = vmatprep.mubr.f32.mxu0 %v4421_v18  ;;  %9575 = vmatpush3.msra.mxu0 %v13206_v37  ;;  %v4398_v28 = vsel %vm2411_vm4, %v4390_v27, %v10277_v16  ;;  %v4415_v33 = vsel %vm2378_vm3, %v4407_v8, %v10266_v17  ;;  %v3648_v52 = vpop.f32.mrf.mxu1  ;;  %v10296_v18 = vunpack.i.l.bf16 %v10295_v39  ;;  %v10301_v19 = vunpack.i.l.bf16 %v13768_v23  ;;  %v10310_v13 = vpop.permute.xlu1 %10309 }
 0x5f5   : > { %5204 = vrot.lane.b32.xlu0 %v13722_v60, %s16502_s27  ;;  %9576 = vmatprep.subr.mxu0 %v13229_v59  ;;  %v4423_v50 = vsel %vm2411_vm4, %v4415_v33, %v10291_v40  ;;  %v4408_v4 = vsel %vm2345_vm2, %v12722_v53, %v10281_v20  ;;  %v4383_v57 = vsel %vm2345_vm2, %v16589_v6, %v10257_v25  ;;  %v10286_v26 = vunpack.i.l.bf16 %v13711_v56 }
 0x5f6   : > { %9577 = vmatpush3.msra.mxu0 %v13229_v59  ;;  %v10306_v12 = vunpack.i.l.bf16 %v10305_v3  ;;  %v10287_v58 = vunpack.i.h.bf16 %v13711_v56  ;;  %v4384_v17 = vsel %vm2345_vm2, %v16590_v32, %v10282_v14  ;;  %v4391_v16 = vsel %vm2378_vm3, %v4383_v57, %v10267_v1  ;;  %v16600_v32 = vld [vmem:[#allocation74_spill] sm:$0xff] }
 0x5f7   : > { %4530 = vmatmul.mubr.f32.gmra.mxu0 %v4397_v22  ;;  %8507 = vmatprep.subr.mxu0 %v16588_v31  ;;  %v13810_v9 = vpop.f32.mrf.mxu1  ;;  %v10297_v22 = vunpack.i.h.bf16 %v10295_v39  ;;  %v10302_v53 = vunpack.i.h.bf16 %v13768_v23  ;;  %v4399_v10 = vsel %vm2411_vm4, %v4391_v16, %v10292_v47  ;;  %v4416_v48 = vsel %vm2378_vm3, %v4408_v4, %v10286_v26  ;;  %v16592_v39 = vld [vmem:[#allocation25_spill] sm:$0xff]  ;;  %v16598_v26 = vld [vmem:[#allocation71_spill] sm:$0xff] }
 0x5f8   : > { %4534 = vmatprep.mubr.f32.mxu0 %v4422_v2  ;;  %v10307_v40 = vunpack.i.h.bf16 %v10305_v3  ;;  %v10311_v2 = vunpack.i.l.bf16 %v10310_v13  ;;  %v4424_v25 = vsel %vm2411_vm4, %v4416_v48, %v10301_v19  ;;  %v4409_v56 = vsel %vm2345_vm2, %v12730_v42, %v10296_v18  ;;  %v16604_v48 = vld [vmem:[#allocation79_spill] sm:$0xff] }
 0x5f9   : > { %v3653_v20 = vpop.f32.mrf.mxu1  ;;  %v4417_v14 = vsel %vm2378_vm3, %v4409_v56, %v10306_v12  ;;  %v4392_v23 = vsel %vm2378_vm3, %v4384_v17, %v10287_v58  ;;  %v4385_v27 = vsel %vm2345_vm2, %v16592_v39, %v10297_v22  ;;  %v10312_v8 = vunpack.i.h.bf16 %v10310_v13  ;;  %v16599_v58 = vld [vmem:[#allocation73_spill] sm:$0xff]  ;;  %v16601_v17 = vld [vmem:[#allocation75_spill] sm:$0xff] }
 0x5fa   : > { %v4400_v3 = vsel %vm2411_vm4, %v4392_v23, %v10302_v53  ;;  %v4393_v33 = vsel %vm2378_vm3, %v4385_v27, %v10307_v40  ;;  %v16603_v53 = vld [vmem:[#allocation78_spill] sm:$0xff]  ;;  %v16605_v40 = vld [vmem:[#allocation80_spill] sm:$0xff]  ;;  %v16607_v39 = vld [vmem:[#allocation83_spill] sm:$0xff] }
 0x5fb   : > { %4535 = vmatmul.mubr.f32.gmra.mxu0 %v4398_v28  ;;  %v13823_v1 = vpop.f32.mrf.mxu1  ;;  %v4425_v28 = vsel %vm2411_vm4, %v4417_v14, %v10311_v2  ;;  %v4401_v52 = vsel %vm2411_vm4, %v4393_v33, %v10312_v8  ;;  %v16608_v8 = vld [vmem:[#allocation84_spill] sm:$0xff] }
 0x5fc   : > { %4539 = vmatprep.mubr.f32.mxu0 %v4423_v50  ;;  %16591 = vst [vmem:[#allocation35_spill] sm:$0xff] %v13823_v1 }
 0x5fd   : > { %v3658_v47 = vpop.f32.mrf.mxu1 }
 0x5ff   : > { %4540 = vmatmul.mubr.f32.gmra.mxu0 %v4399_v10  ;;  %v13831_v42 = vpop.f32.mrf.mxu1 }
 0x600   : > { %4544 = vmatprep.mubr.f32.mxu0 %v4424_v25  ;;  %16593 = vst [vmem:[#allocation62_spill] sm:$0xff] %v13831_v42  ;;  %v16606_v25 = vld [vmem:[#allocation81_spill] sm:$0xff] }
 0x601   : > { %v3663_v18 = vpop.f32.mrf.mxu1 }
 0x602   : > { %v16610_v18 = vld [vmem:[#allocation18_spill] sm:$0xff] }
 0x603   : > { %4545 = vmatmul.mubr.f32.gmra.mxu0 %v4400_v3  ;;  %v13836_v19 = vpop.f32.mrf.mxu1 }
 0x604   : > { %4549 = vmatprep.mubr.f32.mxu0 %v4425_v28  ;;  %16594 = vst [vmem:[#allocation63_spill] sm:$0xff] %v13836_v19  ;;  %v16609_v28 = vld [vmem:[#allocation46_spill] sm:$0xff] }
 0x605   : > { %v3668_v50 = vpop.f32.mrf.mxu1 }
 0x607   : > { %4550 = vmatmul.mubr.f32.gmra.mxu0 %v4401_v52  ;;  %v13843_v4 = vpop.f32.mrf.mxu1 }
 0x608   : > { %9578 = vmatprep.mubr.msk.f32.mxu0 %vm2345_vm2, %v13081_v51  ;;  %16595 = vst [vmem:[#allocation40_spill] sm:$0xff] %v13843_v4  ;;  %v10315_v51 = vpop.permute.xlu0 %10314  ;;  %v16614_v4 = vld [vmem:[#allocation47_spill] sm:$0xff] }
 0x609   : > { %v3673_v6 = vpop.f32.mrf.mxu1  ;;  %v10316_v10 = vunpack.i.l.bf16 %v10315_v51  ;;  %v10317_v2 = vunpack.i.h.bf16 %v10315_v51 }
 0x60a   : > { %v16611_v6 = vld [vmem:[#allocation26_spill] sm:$0xff] }
 0x60b   : > { %9579 = vmatmul.mubr.msk.f32.vlgmr.msra.gmra.mxu0 %vm2345_vm2, %v13092_v44  ;;  %v13853_v44 = vpop.permute.xlu1 %10319  ;;  %v4852_v33 = vsel %vm2345_vm2, %v16609_v28, %v10316_v10  ;;  %v4828_v51 = vsel %vm2345_vm2, %v16611_v6, %v10317_v2 }
 0x60c   : > { %9581 = vmatprep.mubr.msk.f32.mxu0 %vm2345_vm2, %v13103_v62  ;;  %8508 = vmatpush3.msra.mxu0 %v13407_v41  ;;  %v10321_v56 = vunpack.i.l.bf16 %v13853_v44 }
 0x60d   : > { %8509 = vmatprep.subr.mxu0 %v13421_v55 }
 0x60e   : > { %8510 = vmatpush3.msra.mxu0 %v13433_v0  ;;  %v13857_v62 = vpop.f32.mrf.mxu1 }
 0x60f   : > { %9582 = vmatmul.mubr.msk.f32.gmra.mxu0 %vm2345_vm2, %v13114_v38  ;;  %8511 = vmatprep.subr.mxu0 %v13439_v34  ;;  %16596 = vst [vmem:[#allocation20_spill] sm:$0xff] %v13857_v62  ;;  %v13869_v57 = vpop.permute.xlu1 %10329  ;;  %v16613_v62 = vld [vmem:[#allocation85_spill] sm:$0xff] }
 0x610   : > { %9584 = vmatprep.mubr.msk.f32.mxu0 %vm2345_vm2, %v13125_v46  ;;  %8512 = vmatpush3.msra.mxu0 %v13447_v24  ;;  %v3678_v38 = vpop.f32.mrf.mxu1  ;;  %v13866_v46 = vpop.permute.xlu0 %10324 }
 0x611   : > { %8513 = vmatprep.subr.mxu0 %v13464_v61  ;;  %v10322_v38 = vunpack.i.h.bf16 %v13853_v44  ;;  %v10326_v2 = vunpack.i.l.bf16 %v13866_v46  ;;  %v10327_v19 = vunpack.i.h.bf16 %v13866_v46 }
 0x612   : > { %8514 = vmatpush3.msra.mxu0 %v13472_v30 }
 0x613   : > { %9585 = vmatmul.mubr.msk.f32.gmra.mxu0 %vm2345_vm2, %v13129_v11  ;;  %8515 = vmatprep.subr.mxu0 %v13481_v45  ;;  %v13874_v11 = vpop.f32.mrf.mxu1  ;;  %v10335_v12 = vpop.permute.xlu1 %10334 }
 0x614   : > { %9587 = vmatprep.mubr.msk.f32.mxu0 %vm2345_vm2, %v16580_v29  ;;  %8516 = vmatpush3.msra.mxu0 %v13491_v21  ;;  %16597 = vst [vmem:[#allocation36_spill] sm:$0xff] %v13874_v11  ;;  %v10340_v13 = vpop.permute.xlu0 %10339  ;;  %v10336_v20 = vunpack.i.l.bf16 %v10335_v12  ;;  %v10337_v14 = vunpack.i.h.bf16 %v10335_v12 }
 0x615   : > { %8517 = vmatprep.subr.mxu0 %v13510_v5  ;;  %v3683_v29 = vpop.f32.mrf.mxu1  ;;  %v10341_v52 = vunpack.i.l.bf16 %v10340_v13 }
 0x616   : > { %8518 = vmatpush3.msra.mxu0 %v13518_v36  ;;  %v4860_v50 = vsel %vm2378_vm3, %v4852_v33, %v10336_v20  ;;  %v16612_v29 = vld [vmem:[#allocation38_spill] sm:$0xff]  ;;  %v4836_v11 = vsel %vm2378_vm3, %v4828_v51, %v10337_v14  ;;  %v4853_v20 = vsel %vm2345_vm2, %v16614_v4, %v10321_v56  ;;  %v16617_v51 = vld [vmem:[#allocation27_spill] sm:$0xff] }
 0x617   : > { %9588 = vmatmul.mubr.msk.f32.gmra.mxu0 %vm2345_vm2, %v16581_v35  ;;  %8519 = vmatprep.subr.mxu0 %v13527_v54  ;;  %v16602_v35 = vld [vmem:[#allocation76_spill] sm:$0xff]  ;;  %v13883_v16 = vpop.permute.xlu1 %10344  ;;  %v16615_v33 = vld [vmem:[#allocation34_spill] sm:$0xff]  ;;  %v16618_v4 = vld [vmem:[#allocation19_spill] sm:$0xff] }
 0x618   : > { %8520 = vmatpush3.msra.mxu0 %v13538_v63  ;;  %v13885_v22 = vpop.permute.xlu0 %10349  ;;  %v10346_v14 = vunpack.i.l.bf16 %v13883_v16 }
 0x619   : > { %8521 = vmatprep.subr.mxu0 %v13548_v15 }
 0x61a   : > { %8522 = vmatpush3.msra.mxu0 %v16598_v26 }
 0x61b   : > { %8523 = vmatprep.subr.mxu0 %v16599_v58  ;;  %v13892_v23 = vpop.permute.xlu1 %10364 }
 0x61c   : > { %8524 = vmatpush3.msra.mxu0 %v16600_v32 }
 0x61d   : > { %8525 = vmatprep.subr.mxu0 %v16601_v17 }
 0x61e   : > { %8526 = vmatpush3.msra.mxu0 %v16602_v35 }
 0x61f   : > { %8527 = vmatprep.subr.mxu0 %v16603_v53 }
 0x620   : > { %8528 = vmatpush3.msra.mxu0 %v16604_v48 }
 0x621   : > { %8529 = vmatprep.subr.mxu0 %v16605_v40 }
 0x622   : > { %8530 = vmatpush3.msra.mxu0 %v16606_v25 }
 0x623   : > { %8531 = vmatprep.subr.mxu0 %v16607_v39  ;;  %v10355_v27 = vpop.permute.xlu0 %10354 }
 0x624   : > { %8532 = vmatpush3.msra.mxu0 %v16608_v8  ;;  %v10357_v3 = vunpack.i.h.bf16 %v10355_v27  ;;  %v10356_v47 = vunpack.i.l.bf16 %v10355_v27  ;;  %v10342_v27 = vunpack.i.h.bf16 %v10340_v13  ;;  %v16616_v13 = vld [vmem:[#allocation39_spill] sm:$0xff] }
 0x625   : > { %8533 = vmatprep.subr.mxu0 %v16610_v18 }
 0x626   : > { %8534 = vmatpush3.msra.mxu0 %v16612_v29  ;;  %v4868_v12 = vsel %vm2411_vm4, %v4860_v50, %v10356_v47  ;;  %v4844_v44 = vsel %vm2411_vm4, %v4836_v11, %v10357_v3  ;;  %v4861_v50 = vsel %vm2378_vm3, %v4853_v20, %v10341_v52  ;;  %v10331_v11 = vunpack.i.l.bf16 %v13869_v57  ;;  %v13930_v52 = vld [vmem:[%s16474_s7 + $0x118] sm:$0xff] }
 0x627   : > { %8535 = vmatprep.subr.mxu0 %v16613_v62  ;;  %v13907_v10 = vpop.permute.xlu0 %10359  ;;  %4964 = vmatprep.mubr.f32.mxu0 %v4868_v12  ;;  %v10370_v28 = vpop.permute.xlu1 %10369  ;;  %v4829_v12 = vsel %vm2345_vm2, %v16617_v51, %v10322_v38  ;;  %v10347_v3 = vunpack.i.h.bf16 %v13883_v16 }
 0x628   : > { %8536 = vmatpush3.msra.mxu0 %v16615_v33  ;;  %v10372_v6 = vunpack.i.h.bf16 %v10370_v28  ;;  %v10371_v47 = vunpack.i.l.bf16 %v10370_v28  ;;  %v4837_v1 = vsel %vm2378_vm3, %v4829_v12, %v10342_v27  ;;  %v10332_v12 = vunpack.i.h.bf16 %v13869_v57 }
 0x629   : > { %8537 = vmatprep.subr.mxu0 %v16616_v13 }
 0x62a   : > { %8538 = vmatpush3.msra.mxu0 %v16618_v4  ;;  %v4869_v56 = vsel %vm2411_vm4, %v4861_v50, %v10371_v47  ;;  %v4845_v20 = vsel %vm2411_vm4, %v4837_v1, %v10372_v6  ;;  %v16619_v47 = vld [vmem:[#allocation48_spill] sm:$0xff] }
 0x62b   : > { %4965 = vmatmul.mubr.f32.vlgmr.msra.gmra.mxu0 %v4844_v44  ;;  %v13924_v28 = vpop.permute.xlu1 %10374  ;;  %v10380_v42 = vpop.permute.xlu0 %10379  ;;  %9590 = vmatprep.subr.mxu0 %v13930_v52  ;;  %v4854_v16 = vsel %vm2345_vm2, %v16619_v47, %v10326_v2  ;;  %v10351_v44 = vunpack.i.l.bf16 %v13885_v22  ;;  %v16620_v50 = vld [vmem:[#allocation28_spill] sm:$0xff]  ;;  %v10352_v2 = vunpack.i.h.bf16 %v13885_v22  ;;  %v16621_v47 = vld [vmem:[#allocation49_spill] sm:$0xff] }
 0x62c   : > { %4969 = vmatprep.mubr.f32.mxu0 %v4869_v56  ;;  %v10382_v46 = vunpack.i.h.bf16 %v10380_v42  ;;  %v10381_v38 = vunpack.i.l.bf16 %v10380_v42  ;;  %9591 = vmatpush3.msra.mxu0 %v13930_v52  ;;  %v4862_v27 = vsel %vm2378_vm3, %v4854_v16, %v10346_v14  ;;  %v4830_v51 = vsel %vm2345_vm2, %v16620_v50, %v10327_v19  ;;  %v16622_v22 = vld [vmem:[#allocation29_spill] sm:$0xff] }
 0x62d   : > { %9592 = vmatprep.subr.mxu0 %v13187_v7  ;;  %v10361_v42 = vunpack.i.l.bf16 %v13907_v10  ;;  %v4838_v14 = vsel %vm2378_vm3, %v4830_v51, %v10347_v3  ;;  %v4855_v16 = vsel %vm2345_vm2, %v16621_v47, %v10331_v11  ;;  %v10362_v19 = vunpack.i.h.bf16 %v13907_v10 }
 0x62e   : > { %v4870_v1 = vsel %vm2411_vm4, %v4862_v27, %v10381_v38  ;;  %9593 = vmatpush3.msra.mxu0 %v13187_v7  ;;  %v4846_v38 = vsel %vm2411_vm4, %v4838_v14, %v10382_v46  ;;  %v4863_v7 = vsel %vm2378_vm3, %v4855_v16, %v10351_v44  ;;  %v4831_v3 = vsel %vm2345_vm2, %v16622_v22, %v10332_v12  ;;  %v16624_v44 = vld [vmem:[#allocation30_spill] sm:$0xff] }
 0x62f   : > { %4970 = vmatmul.mubr.f32.gmra.mxu0 %v4845_v20  ;;  %v10385_v6 = vpop.permute.xlu0 %10384  ;;  %v10390_v56 = vpop.permute.xlu1 %10389  ;;  %9594 = vmatprep.subr.mxu0 %v13206_v37  ;;  %v16623_v20 = vld [vmem:[#allocation50_spill] sm:$0xff]  ;;  %v10366_v10 = vunpack.i.l.bf16 %v13892_v23  ;;  %v10377_v16 = vunpack.i.h.bf16 %v13924_v28 }
 0x630   : > { %4974 = vmatprep.mubr.f32.mxu0 %v4870_v1  ;;  %v10392_v57 = vunpack.i.h.bf16 %v10390_v56  ;;  %v10391_v50 = vunpack.i.l.bf16 %v10390_v56  ;;  %9595 = vmatpush3.msra.mxu0 %v13206_v37  ;;  %v4856_v27 = vsel %vm2345_vm2, %v16623_v20, %v10361_v42  ;;  %v4839_v37 = vsel %vm2378_vm3, %v4831_v3, %v10352_v2  ;;  %v16625_v20 = vld [vmem:[#allocation51_spill] sm:$0xff] }
 0x631   : > { %9596 = vmatprep.subr.mxu0 %v13229_v59  ;;  %v4832_v1 = vsel %vm2345_vm2, %v16624_v44, %v10362_v19  ;;  %v10367_v42 = vunpack.i.h.bf16 %v13892_v23  ;;  %v4864_v47 = vsel %vm2378_vm3, %v4856_v27, %v10366_v10 }
 0x632   : > { %v4871_v11 = vsel %vm2411_vm4, %v4863_v7, %v10391_v50  ;;  %9597 = vmatpush3.msra.mxu0 %v13229_v59  ;;  %v4847_v14 = vsel %vm2411_vm4, %v4839_v37, %v10392_v57  ;;  %v10376_v59 = vunpack.i.l.bf16 %v13924_v28  ;;  %v10386_v50 = vunpack.i.l.bf16 %v10385_v6  ;;  %v16626_v28 = vld [vmem:[#allocation31_spill] sm:$0xff] }
 0x633   : > { %4975 = vmatmul.mubr.f32.gmra.mxu0 %v4846_v38  ;;  %v10405_v46 = vpop.permute.xlu1 %10404  ;;  %v10395_v51 = vpop.permute.xlu0 %10394  ;;  %8575 = vmatprep.subr.mxu0 %v16588_v31  ;;  %v10387_v31 = vunpack.i.h.bf16 %v10385_v6  ;;  %v4840_v19 = vsel %vm2378_vm3, %v4832_v1, %v10367_v42  ;;  %v4833_v10 = vsel %vm2345_vm2, %v16626_v28, %v10377_v16  ;;  %v16629_v28 = vld [vmem:[#allocation33_spill] sm:$0xff] }
 0x634   : > { %4979 = vmatprep.mubr.f32.mxu0 %v4871_v11  ;;  %v10397_v12 = vunpack.i.h.bf16 %v10395_v51  ;;  %v10396_v56 = vunpack.i.l.bf16 %v10395_v51  ;;  %v4857_v27 = vsel %vm2345_vm2, %v16625_v20, %v10376_v59  ;;  %v16627_v51 = vld [vmem:[#allocation52_spill] sm:$0xff]  ;;  %v10406_v44 = vunpack.i.l.bf16 %v10405_v46 }
 0x635   : > { %v4865_v6 = vsel %vm2378_vm3, %v4857_v27, %v10386_v50  ;;  %v10407_v50 = vunpack.i.h.bf16 %v10405_v46 }
 0x636   : > { %v4872_v2 = vsel %vm2411_vm4, %v4864_v47, %v10396_v56  ;;  %v4848_v23 = vsel %vm2411_vm4, %v4840_v19, %v10397_v12  ;;  %v4841_v12 = vsel %vm2378_vm3, %v4833_v10, %v10387_v31 }
 0x637   : > { %4980 = vmatmul.mubr.f32.gmra.mxu0 %v4847_v14  ;;  %v10400_v38 = vpop.permute.xlu0 %10399  ;;  %v16628_v14 = vld [vmem:[#allocation32_spill] sm:$0xff] }
 0x638   : > { %v10402_v7 = vunpack.i.h.bf16 %v10400_v38  ;;  %v10401_v22 = vunpack.i.l.bf16 %v10400_v38  ;;  %4984 = vmatprep.mubr.f32.mxu0 %v4872_v2  ;;  %v10410_v57 = vpop.permute.xlu1 %10409 }
 0x639   : > { %v10412_v3 = vunpack.i.h.bf16 %v10410_v57  ;;  %v10411_v11 = vunpack.i.l.bf16 %v10410_v57 }
 0x63a   : > { %v4858_v37 = vsel %vm2345_vm2, %v16627_v51, %v10401_v22  ;;  %v4834_v42 = vsel %vm2345_vm2, %v16628_v14, %v10402_v7 }
 0x63b   : > { %4985 = vmatmul.mubr.f32.gmra.mxu0 %v4848_v23  ;;  %v4873_v1 = vsel %vm2411_vm4, %v4865_v6, %v10411_v11  ;;  %v10420_v56 = vpop.permute.xlu0 %10419  ;;  %v4849_v16 = vsel %vm2411_vm4, %v4841_v12, %v10412_v3  ;;  %v4866_v38 = vsel %vm2378_vm3, %v4858_v37, %v10406_v44  ;;  %v4842_v23 = vsel %vm2378_vm3, %v4834_v42, %v10407_v50  ;;  %v16630_v6 = vld [vmem:[#allocation53_spill] sm:$0xff] }
 0x63c   : > { %v10415_v47 = vpop.permute.xlu1 %10414  ;;  %4989 = vmatprep.mubr.f32.mxu0 %v4873_v1  ;;  %v10422_v59 = vunpack.i.h.bf16 %v10420_v56  ;;  %v10421_v2 = vunpack.i.l.bf16 %v10420_v56  ;;  %v16631_v12 = vld [vmem:[#allocation17_spill] sm:$0xff] }
 0x63d   : > { %v10417_v19 = vunpack.i.h.bf16 %v10415_v47  ;;  %v10416_v22 = vunpack.i.l.bf16 %v10415_v47  ;;  %v16632_v42 = vld [vmem:[#allocation69_spill] sm:$0xff]  ;;  %v16633_v47 = vld [vmem:[#allocation70_spill] sm:$0xff] }
 0x63e   : > { %v4874_v57 = vsel %vm2411_vm4, %v4866_v38, %v10421_v2  ;;  %v4850_v7 = vsel %vm2411_vm4, %v4842_v23, %v10422_v59  ;;  %v16635_v38 = vld [vmem:[#allocation77_spill] sm:$0xff] }
 0x63f   : > { %4990 = vmatmul.mubr.f32.gmra.mxu0 %v4849_v16  ;;  %v4835_v3 = vsel %vm2345_vm2, %v16629_v28, %v10417_v19  ;;  %v4859_v51 = vsel %vm2345_vm2, %v16630_v6, %v10416_v22  ;;  %v16634_v16 = vld [vmem:[#allocation72_spill] sm:$0xff] }
 0x640   : > { %v10425_v31 = vpop.permute.xlu0 %10424  ;;  %4994 = vmatprep.mubr.f32.mxu0 %v4874_v57  ;;  %v16642_v57 = vld [vmem:[#allocation66_spill] sm:$0xff] }
 0x641   : > { %v10427_v11 = vunpack.i.h.bf16 %v10425_v31  ;;  %v10426_v20 = vunpack.i.l.bf16 %v10425_v31  ;;  %v10430_v27 = vpop.permute.xlu1 %10429 }
 0x642   : > { %v10432_v46 = vunpack.i.h.bf16 %v10430_v27  ;;  %v10431_v10 = vunpack.i.l.bf16 %v10430_v27 }
 0x643   : > { %4995 = vmatmul.mubr.f32.gmra.mxu0 %v4850_v7  ;;  %v4867_v37 = vsel %vm2378_vm3, %v4859_v51, %v10426_v20  ;;  %v4843_v44 = vsel %vm2378_vm3, %v4835_v3, %v10427_v11  ;;  %v16643_v7 = vld [vmem:[#allocation56_spill] sm:$0xff] }
 0x644   : > { %v4875_v1 = vsel %vm2411_vm4, %v4867_v37, %v10431_v10  ;;  %v4851_v56 = vsel %vm2411_vm4, %v4843_v44, %v10432_v46  ;;  %v10666_v3 = vld [vmem:[%s16474_s7 + $0x110] sm:$0xff]  ;;  %v16644_v10 = vld [vmem:[#allocation65_spill] sm:$0xff] }
 0x645   : > { %4999 = vmatprep.mubr.f32.mxu0 %v4875_v1  ;;  %v10435_v14 = vpop.permute.xlu0 %10434  ;;  %v16645_v6 = vunpack.i.l.bf16 %v16644_v10  ;;  %v16646_v1 = vld [vmem:[#allocation67_spill] sm:$0xff] }
 0x646   : > { %v10436_v59 = vunpack.i.l.bf16 %v10435_v14  ;;  %v10440_v2 = vpop.permute.xlu1 %10439 }
 0x647   : > { %5000 = vmatmul.mubr.f32.gmra.mxu0 %v4851_v56 }
 0x648   : > { %9598 = vmatprep.mubr.msk.f32.mxu0 %vm2345_vm2, %v16631_v12 }
 0x64b   : > { %9599 = vmatmul.mubr.msk.f32.vlgmr.msra.gmra.mxu0 %vm2345_vm2, %v16632_v42  ;;  %v14011_v50 = vpop.permute.xlu0 %10449  ;;  %v16647_v42 = vld [vmem:[#allocation57_spill] sm:$0xff] }
 0x64c   : > { %8576 = vmatpush3.msra.mxu0 %v13407_v41  ;;  %9601 = vmatprep.mubr.msk.f32.mxu0 %vm2345_vm2, %v16633_v47  ;;  %v10441_v41 = vunpack.i.l.bf16 %v10440_v2 }
 0x64d   : > { %8577 = vmatprep.subr.mxu0 %v13421_v55  ;;  %v10451_v55 = vunpack.i.l.bf16 %v14011_v50 }
 0x64e   : > { %8578 = vmatpush3.msra.mxu0 %v13433_v0  ;;  %v16636_v0 = vld [vmem:[#allocation82_spill] sm:$0xff] }
 0x64f   : > { %8579 = vmatprep.subr.mxu0 %v13439_v34  ;;  %9602 = vmatmul.mubr.msk.f32.gmra.mxu0 %vm2345_vm2, %v16634_v16  ;;  %v16637_v34 = vld [vmem:[#allocation54_spill] sm:$0xff] }
 0x650   : > { %8580 = vmatpush3.msra.mxu0 %v13447_v24  ;;  %9604 = vmatprep.mubr.msk.f32.mxu0 %vm2345_vm2, %v16635_v38  ;;  %v5230_v19 = vsel %vm2345_vm2, %v16637_v34, %v10436_v59  ;;  %v10445_v24 = vpop.permute.xlu1 %10444  ;;  %v10667_v59 = vld [vmem:[%s16474_s7 + $0x108] sm:$0xff] }
 0x651   : > { %8581 = vmatprep.subr.mxu0 %v13464_v61  ;;  %v5238_v61 = vsel %vm2378_vm3, %v5230_v19, %v10441_v41 }
 0x652   : > { %8582 = vmatpush3.msra.mxu0 %v13472_v30 }
 0x653   : > { %8583 = vmatprep.subr.mxu0 %v13481_v45  ;;  %9605 = vmatmul.mubr.msk.f32.gmra.mxu0 %vm2345_vm2, %v16636_v0  ;;  %v5246_v45 = vsel %vm2411_vm4, %v5238_v61, %v10451_v55  ;;  %v16648_v0 = vld [vmem:[#allocation11_spill] sm:$0xff]  ;;  %v16650_v61 = vld [vmem:[#allocation41_spill] sm:$0xff] }
 0x654   : > { %8584 = vmatpush3.msra.mxu0 %v13491_v21  ;;  %9607 = vmatprep.mubr.msk.f32.mxu0 %vm2345_vm2, %v13674_v43  ;;  %v14036_v21 = vpop.permute.xlu0 %10454  ;;  %v10460_v30 = vpop.permute.xlu1 %10459  ;;  %v10447_v43 = vunpack.i.h.bf16 %v10445_v24  ;;  %v16649_v34 = vunpack.i.l.bf16 %v16648_v0 }
 0x655   : > { %8585 = vmatprep.subr.mxu0 %v13510_v5  ;;  %v10442_v5 = vunpack.i.h.bf16 %v10440_v2 }
 0x656   : > { %8586 = vmatpush3.msra.mxu0 %v13518_v36  ;;  %v10446_v36 = vunpack.i.l.bf16 %v10445_v24  ;;  %v5215_v23 = vsel %vm2378_vm3, %v16642_v57, %v10447_v43 }
 0x657   : > { %8587 = vmatprep.subr.mxu0 %v13527_v54  ;;  %9608 = vmatmul.mubr.msk.f32.gmra.mxu0 %vm2345_vm2, %v13722_v60  ;;  %v5223_v51 = vsel %vm2411_vm4, %v5215_v23, %v16645_v6  ;;  %v16659_v6 = vld [vmem:[#allocation43_spill] sm:$0xff] }
 0x658   : > { %8588 = vmatpush3.msra.mxu0 %v13538_v63  ;;  %5342 = vmatprep.mubr.f32.mxu0 %v5246_v45  ;;  %v14044_v54 = vpop.permute.xlu0 %10469  ;;  %v14047_v63 = vpop.permute.xlu1 %10464 }
 0x659   : > { %8589 = vmatprep.subr.mxu0 %v13548_v15  ;;  %v10437_v15 = vunpack.i.h.bf16 %v10435_v14  ;;  %v10471_v31 = vunpack.i.l.bf16 %v14044_v54  ;;  %v10467_v46 = vunpack.i.h.bf16 %v14047_v63  ;;  %v10472_v56 = vunpack.i.h.bf16 %v14044_v54 }
 0x65a   : > { %8590 = vmatpush3.msra.mxu0 %v16598_v26  ;;  %v16638_v26 = vld [vmem:[#allocation64_spill] sm:$0xff] }
 0x65b   : > { %8591 = vmatprep.subr.mxu0 %v16599_v58  ;;  %v5214_v58 = vsel %vm2378_vm3, %v16638_v26, %v10442_v5  ;;  %v5217_v45 = vsel %vm2378_vm3, %v16650_v61, %v10467_v46 }
 0x65c   : > { %8592 = vmatpush3.msra.mxu0 %v16600_v32  ;;  %v14054_v60 = vpop.permute.xlu0 %10474  ;;  %v10452_v32 = vunpack.i.h.bf16 %v14011_v50  ;;  %v10668_v50 = vld [vmem:[%s16474_s7 + $0x100] sm:$0xff] }
 0x65d   : > { %8593 = vmatprep.subr.mxu0 %v16601_v17  ;;  %v10456_v17 = vunpack.i.l.bf16 %v14036_v21  ;;  %v10476_v12 = vunpack.i.l.bf16 %v14054_v60 }
 0x65e   : > { %8594 = vmatpush3.msra.mxu0 %v16602_v35  ;;  %v14061_v35 = vpop.permute.xlu1 %10479 }
 0x65f   : > { %8595 = vmatprep.subr.mxu0 %v16603_v53  ;;  %v16639_v53 = vld [vmem:[#allocation55_spill] sm:$0xff]  ;;  %v5232_v11 = vsel %vm2345_vm2, %v16643_v7, %v10456_v17  ;;  %v10482_v38 = vunpack.i.h.bf16 %v14061_v35  ;;  %v10481_v41 = vunpack.i.l.bf16 %v14061_v35 }
 0x660   : > { %8596 = vmatpush3.msra.mxu0 %v16604_v48  ;;  %v5231_v48 = vsel %vm2345_vm2, %v16639_v53, %v10437_v15  ;;  %v14086_v20 = vpop.permute.xlu0 %10489  ;;  %v16651_v15 = vld [vmem:[#allocation58_spill] sm:$0xff]  ;;  %v16654_v53 = vld [vmem:[#allocation68_spill] sm:$0xff] }
 0x661   : > { %8597 = vmatprep.subr.mxu0 %v16605_v40  ;;  %v5234_v5 = vsel %vm2345_vm2, %v16651_v15, %v10476_v12 }
 0x662   : > { %8598 = vmatpush3.msra.mxu0 %v16606_v25  ;;  %v5239_v25 = vsel %vm2378_vm3, %v5231_v48, %v10446_v36  ;;  %v14091_v28 = vpop.permute.xlu1 %10484  ;;  %v5218_v48 = vsel %vm2378_vm3, %v16654_v53, %v10482_v38  ;;  %v16663_v38 = vld [vmem:[#allocation61_spill] sm:$0xff] }
 0x663   : > { %8599 = vmatprep.subr.mxu0 %v16607_v39  ;;  %v10462_v39 = vunpack.i.h.bf16 %v10460_v30  ;;  %v10486_v36 = vunpack.i.l.bf16 %v14091_v28 }
 0x664   : > { %8600 = vmatpush3.msra.mxu0 %v16608_v8  ;;  %v10461_v8 = vunpack.i.l.bf16 %v10460_v30  ;;  %v10495_v55 = vpop.permute.xlu0 %10494  ;;  %v10491_v30 = vunpack.i.l.bf16 %v14086_v20 }
 0x665   : > { %8601 = vmatprep.subr.mxu0 %v16610_v18  ;;  %v16640_v18 = vld [vmem:[#allocation10_spill] sm:$0xff]  ;;  %v10496_v26 = vunpack.i.l.bf16 %v10495_v55  ;;  %v10497_v46 = vunpack.i.h.bf16 %v10495_v55 }
 0x666   : > { %8602 = vmatpush3.msra.mxu0 %v16612_v29  ;;  %v16641_v29 = vunpack.i.l.bf16 %v16640_v18  ;;  %v5240_v37 = vsel %vm2378_vm3, %v5232_v11, %v10461_v8  ;;  %v10500_v54 = vpop.permute.xlu1 %10499  ;;  %v16655_v18 = vld [vmem:[#allocation59_spill] sm:$0xff]  ;;  %v16657_v11 = vld [vmem:[#allocation14_spill] sm:$0xff] }
 0x667   : > { %8603 = vmatprep.subr.mxu0 %v16613_v62  ;;  %v5248_v14 = vsel %vm2411_vm4, %v5240_v37, %v10471_v31  ;;  %v16656_v31 = vld [vmem:[#allocation60_spill] sm:$0xff] }
 0x668   : > { %8604 = vmatpush3.msra.mxu0 %v16615_v33  ;;  %v14067_v40 = vpop.f32.mrf.mxu0  ;;  %v5222_v22 = vsel %vm2411_vm4, %v5214_v58, %v16641_v29  ;;  %v10457_v33 = vunpack.i.h.bf16 %v14036_v21  ;;  %v10477_v21 = vunpack.i.h.bf16 %v14054_v60  ;;  %v16652_v58 = vld [vmem:[#allocation12_spill] sm:$0xff]  ;;  %v5242_v60 = vsel %vm2378_vm3, %v5234_v5, %v10481_v41  ;;  %v5203_v7 = vpop.permute.xlu0 %5202 }
 0x669   : > { %8605 = vmatprep.subr.mxu0 %v16616_v13  ;;  %v5247_v13 = vsel %vm2411_vm4, %v5239_v25, %v10452_v32  ;;  %v16653_v32 = vunpack.i.l.bf16 %v16652_v58  ;;  %v10487_v25 = vunpack.i.h.bf16 %v14091_v28  ;;  %v5250_v8 = vsel %vm2411_vm4, %v5242_v60, %v10491_v30 }
 0x66a   : > { %8606 = vmatpush3.msra.mxu0 %v16618_v4  ;;  %v14075_v62 = vpop.f32.mrf.mxu0  ;;  %v10466_v4 = vunpack.i.l.bf16 %v14047_v63  ;;  %v5233_v47 = vsel %vm2345_vm2, %v16647_v42, %v10457_v33  ;;  %v5235_v29 = vsel %vm2345_vm2, %v16655_v18, %v10477_v21  ;;  %v10505_v33 = vpop.permute.xlu1 %10504  ;;  %v5237_v41 = vsel %vm2345_vm2, %v16663_v38, %v10497_v46 }
 0x66b   : > { %5343 = vmatmul.mubr.f32.vlgmr.msra.gmra.mxu0 %v5222_v22  ;;  %9610 = vmatprep.subr.mxu0 %v13930_v52  ;;  %v5225_v17 = vsel %vm2411_vm4, %v5217_v45, %v16653_v32  ;;  %v10501_v22 = vunpack.i.l.bf16 %v10500_v54  ;;  %v5243_v23 = vsel %vm2378_vm3, %v5235_v29, %v10486_v36  ;;  %v10506_v37 = vunpack.i.l.bf16 %v10505_v33  ;;  %v16667_v36 = vld [vmem:[#allocation44_spill] sm:$0xff]  ;;  %v16671_v29 = vld [vmem:[#allocation63_spill] sm:$0xff] }
 0x66c   : > { %5347 = vmatprep.mubr.f32.mxu0 %v5247_v13  ;;  %v14088_v27 = vpop.f32.mrf.mxu0  ;;  %9611 = vmatpush3.msra.mxu0 %v13930_v52  ;;  %v5216_v52 = vsel %vm2378_vm3, %v16646_v1, %v10462_v39  ;;  %v5241_v16 = vsel %vm2378_vm3, %v5233_v47, %v10466_v4  ;;  %v10492_v39 = vunpack.i.h.bf16 %v14086_v20  ;;  %v5236_v13 = vsel %vm2345_vm2, %v16656_v31, %v10496_v26  ;;  %v5205_v55 = vpop.permute.xlu0 %5204 }
 0x66d   : > { %9612 = vmatprep.subr.mxu0 %v10666_v3  ;;  %v5224_v19 = vsel %vm2411_vm4, %v5216_v52, %v16649_v34  ;;  %v5249_v63 = vsel %vm2411_vm4, %v5241_v16, %v10472_v56  ;;  %v16658_v4 = vunpack.i.l.bf16 %v16657_v11  ;;  %v5244_v52 = vsel %vm2378_vm3, %v5236_v13, %v10501_v22  ;;  %v16660_v56 = vld [vmem:[#allocation42_spill] sm:$0xff]  ;;  %v16662_v16 = vld [vmem:[#allocation15_spill] sm:$0xff] }
 0x66e   : > { %v14101_v44 = vpop.f32.mrf.mxu0  ;;  %9613 = vmatpush3.msra.mxu0 %v10666_v3  ;;  %v10502_v3 = vunpack.i.h.bf16 %v10500_v54  ;;  %v5251_v10 = vsel %vm2411_vm4, %v5243_v23, %v10492_v39  ;;  %v16661_v12 = vunpack.i.l.bf16 %v16660_v56  ;;  %v10507_v47 = vunpack.i.h.bf16 %v10505_v33  ;;  %v16666_v54 = vld [vmem:[#allocation45_spill] sm:$0xff]  ;;  %v16672_v33 = vld [vmem:[#allocation40_spill] sm:$0xff] }
 0x66f   : > { %5348 = vmatmul.mubr.f32.gmra.mxu0 %v5223_v51  ;;  %9614 = vmatprep.subr.mxu0 %v10667_v59  ;;  %v5226_v20 = vsel %vm2411_vm4, %v5218_v48, %v16658_v4  ;;  %v5219_v51 = vsel %vm2378_vm3, %v16659_v6, %v10487_v25  ;;  %v5245_v34 = vsel %vm2378_vm3, %v5237_v41, %v10506_v37  ;;  %v16668_v26 = vunpack.i.l.bf16 %v16667_v36  ;;  %v16669_v25 = vld [vmem:[#allocation35_spill] sm:$0xff]  ;;  %v16674_v4 = vld [vmem:[#allocation36_spill] sm:$0xff] }
 0x670   : > { %5352 = vmatprep.mubr.f32.mxu0 %v5248_v14  ;;  %v14113_v2 = vpop.f32.mrf.mxu0  ;;  %9615 = vmatpush3.msra.mxu0 %v10667_v59  ;;  %v5227_v14 = vsel %vm2411_vm4, %v5219_v51, %v16661_v12  ;;  %v5252_v59 = vsel %vm2411_vm4, %v5244_v52, %v5203_v7  ;;  %v5253_v30 = vsel %vm2411_vm4, %v5245_v34, %v5205_v55  ;;  %v16673_v7 = vld [vmem:[#allocation20_spill] sm:$0xff] }
 0x671   : > { %9616 = vmatprep.subr.mxu0 %v10668_v50  ;;  %v8408_v15 = vadd.f32 %v14101_v44, %v14088_v27 }
 0x672   : > { %v14124_v24 = vpop.f32.mrf.mxu0  ;;  %9617 = vmatpush3.msra.mxu0 %v10668_v50  ;;  %v5220_v50 = vsel %vm2378_vm3, %v16662_v16, %v10502_v3 }
 0x673   : > { %5353 = vmatmul.mubr.f32.gmra.mxu0 %v5224_v19  ;;  %v16664_v19 = vld [vmem:[#allocation16_spill] sm:$0xff] }
 0x674   : > { %5357 = vmatprep.mubr.f32.mxu0 %v5249_v63  ;;  %v8412_v43 = vpop.f32.mrf.mxu0  ;;  %v16665_v61 = vunpack.i.l.bf16 %v16664_v19  ;;  %v5221_v63 = vsel %vm2378_vm3, %v16666_v54, %v10507_v47 }
 0x675   : > { %v5229_v58 = vsel %vm2411_vm4, %v5221_v63, %v16668_v26 }
 0x676   : > { %v8413_v35 = vpop.f32.mrf.mxu0  ;;  %v5228_v45 = vsel %vm2411_vm4, %v5220_v50, %v16665_v61 }
 0x677   : > { %5358 = vmatmul.mubr.f32.gmra.mxu0 %v5225_v17  ;;  %v14186_v17 = vld [vmem:[%s16182_s8] ss:$0 sm:$0xff]  ;;  %v8414_v60 = vadd.f32 %v8413_v35, %v8412_v43 }
 0x678   : > { %5362 = vmatprep.mubr.f32.mxu0 %v5250_v8  ;;  %v14145_v57 = vpop.f32.mrf.mxu0  ;;  %v4064_v53 = vadd.f32 %v8408_v15, %v14186_v17 }
 0x679   : > { %v4074_v39 = vadd.f32 %v8414_v60, %v14186_v17 }
 0x67a   : > { %v14153_v28 = vpop.f32.mrf.mxu0 }
 0x67b   : > { %5363 = vmatmul.mubr.f32.gmra.mxu0 %v5226_v20 }
 0x67c   : > { %5367 = vmatprep.mubr.f32.mxu0 %v5251_v10  ;;  %v8418_v1 = vpop.f32.mrf.mxu0 }
 0x67e   : > { %v8419_v42 = vpop.f32.mrf.mxu0 }
 0x67f   : > { %5368 = vmatmul.mubr.f32.gmra.mxu0 %v5227_v14  ;;  %v8420_v8 = vadd.f32 %v8419_v42, %v8418_v1 }
 0x680   : > { %5372 = vmatprep.mubr.f32.mxu0 %v5252_v59  ;;  %v14167_v0 = vpop.f32.mrf.mxu0 }
 0x682   : > { %v14173_v21 = vpop.f32.mrf.mxu0 }
 0x683   : > { %5373 = vmatmul.mubr.f32.gmra.mxu0 %v5228_v45 }
 0x684   : > { %5377 = vmatprep.mubr.f32.mxu0 %v5253_v30 }
 0x685   : > { %v8424_v5 = vpop.f32.mrf.mxu0 }
 0x687   : > { %5378 = vmatmul.mubr.f32.gmra.mxu0 %v5229_v58  ;;  %v8425_v32 = vpop.f32.mrf.mxu0 }
 0x688   : > { %9618 = vmatprep.mubr.msk.f32.mxu0 %vm2345_vm2, %v13793_v49  ;;  %v16670_v49 = vld [vmem:[#allocation62_spill] sm:$0xff]  ;;  %v8426_v22 = vadd.f32 %v8425_v32, %v8424_v5 }
 0x689   : > { %v9560_v27 = vpop.f32.mrf.mxu0 }
 0x68a   : > { %v14191_v44 = vadd.f32 %v9560_v27, %v4064_v53  ;;  %v4094_v11 = vadd.f32 %v8426_v22, %v14186_v17  ;;  %v5589_v22 = vld [vmem:[%s16183_s9 + $0x68] sm:$0xff] }
 0x68b   : > { %9619 = vmatmul.mubr.msk.f32.vlgmr.msra.gmra.mxu0 %vm2345_vm2, %v13810_v9  ;;  %v14195_v48 = vpop.f32.mrf.mxu0  ;;  %v4084_v9 = vadd.f32 %v8420_v8, %v14186_v17  ;;  %v5607_v8 = vld [vmem:[%s16183_s9 + $0xf8] sm:$0xff] }
 0x68c   : > { %9621 = vmatprep.mubr.msk.f32.mxu0 %vm2345_vm2, %v16669_v25  ;;  %8643 = vmatprep.subr.mxu0 %v5607_v8 }
 0x68d   : > { %v9563_v43 = vpop.f32.mrf.mxu0 }
 0x68e   : > { %v14200_v35 = vadd.f32 %v9563_v43, %v4074_v39  ;;  %v5591_v43 = vld [vmem:[%s16183_s9 + $0x78] sm:$0xff] }
 0x68f   : > { %9622 = vmatmul.mubr.msk.f32.gmra.mxu0 %vm2345_vm2, %v16670_v49  ;;  %v14204_v18 = vpop.f32.mrf.mxu0  ;;  %v5606_v49 = vld [vmem:[%s16183_s9 + $0xf0] sm:$0xff] }
 0x690   : > { %9624 = vmatprep.mubr.msk.f32.mxu0 %vm2345_vm2, %v16671_v29  ;;  %v5590_v29 = vld [vmem:[%s16183_s9 + $0x70] sm:$0xff]  ;;  %8644 = vmatpush3.msra.mxu0 %v5591_v43  ;;  %v5579_v43 = vld [vmem:[%s16183_s9 + $0x18] sm:$0xff] }
 0x691   : > { %8645 = vmatprep.subr.mxu0 %v5606_v49 }
 0x692   : > { %v9566_v23 = vpop.f32.mrf.mxu0  ;;  %8646 = vmatpush3.msra.mxu0 %v5590_v29 }
 0x693   : > { %9625 = vmatmul.mubr.msk.f32.gmra.mxu0 %vm2345_vm2, %v16672_v33  ;;  %v14211_v31 = vadd.f32 %v9566_v23, %v4084_v9  ;;  %v5605_v9 = vld [vmem:[%s16183_s9 + $0xe8] sm:$0xff]  ;;  %v5604_v23 = vld [vmem:[%s16183_s9 + $0xe0] sm:$0xff] }
 0x694   : > { %v14213_v13 = vpop.f32.mrf.mxu0  ;;  %9627 = vmatprep.mubr.msk.f32.mxu0 %vm2345_vm2, %v16673_v7  ;;  %8647 = vmatprep.subr.mxu0 %v5605_v9  ;;  %v5588_v33 = vld [vmem:[%s16183_s9 + $0x60] sm:$0xff]  ;;  %v5603_v7 = vld [vmem:[%s16183_s9 + $0xd8] sm:$0xff] }
 0x695   : > { %8648 = vmatpush3.msra.mxu0 %v5589_v22 }
 0x696   : > { %8649 = vmatprep.subr.mxu0 %v5604_v23 }
 0x697   : > { %9628 = vmatmul.mubr.msk.f32.gmra.mxu0 %vm2345_vm2, %v16674_v4  ;;  %v9569_v20 = vpop.f32.mrf.mxu0  ;;  %v5602_v4 = vld [vmem:[%s16183_s9 + $0xd0] sm:$0xff] }
 0x698   : > { %v14220_v3 = vadd.f32 %v9569_v20, %v4094_v11  ;;  %v5587_v11 = vld [vmem:[%s16183_s9 + $0x58] sm:$0xff]  ;;  %8650 = vmatpush3.msra.mxu0 %v5588_v33 }
 0x699   : > { %v14222_v46 = vpop.f32.mrf.mxu0  ;;  %8651 = vmatprep.subr.mxu0 %v5603_v7 }
 0x69a   : > { %16675 = vst [vmem:[#allocation21_spill] sm:$0xff] %v14220_v3  ;;  %8652 = vmatpush3.msra.mxu0 %v5587_v11 }
 0x69b   : > { %8653 = vmatprep.subr.mxu0 %v5602_v4 }
 0x6ab   : > { %v14224_v10 = vpop.f32.mrf.mxu0 }
 0x6ad   : > { %v14226_v6 = vpop.f32.mrf.mxu0 }
 0x6af   : > { %v8474_v51 = vpop.f32.mrf.mxu0 }
 0x6b1   : > { %v8475_v37 = vpop.f32.mrf.mxu0 }
 0x6b2   : > { %v8476_v38 = vadd.f32 %v8475_v37, %v8474_v51  ;;  %v5586_v51 = vld [vmem:[%s16183_s9 + $0x50] sm:$0xff]  ;;  %v5601_v37 = vld [vmem:[%s16183_s9 + $0xc8] sm:$0xff] }
 0x6b3   : > { %v14228_v1 = vpop.f32.mrf.mxu0  ;;  %8654 = vmatpush3.msra.mxu0 %v5586_v51 }
 0x6b4   : > { %v4522_v19 = vadd.f32 %v8476_v38, %v14186_v17  ;;  %8655 = vmatprep.subr.mxu0 %v5601_v37  ;;  %v5584_v38 = vld [vmem:[%s16183_s9 + $0x40] sm:$0xff] }
 0x6b5   : > { %v14230_v52 = vpop.f32.mrf.mxu0 }
 0x6b7   : > { %v8480_v56 = vpop.f32.mrf.mxu0 }
 0x6b9   : > { %v8481_v12 = vpop.f32.mrf.mxu0 }
 0x6ba   : > { %v8482_v34 = vadd.f32 %v8481_v12, %v8480_v56  ;;  %v5585_v12 = vld [vmem:[%s16183_s9 + $0x48] sm:$0xff] }
 0x6bb   : > { %v14232_v14 = vpop.f32.mrf.mxu0  ;;  %8656 = vmatpush3.msra.mxu0 %v5585_v12 }
 0x6bc   : > { %v4532_v63 = vadd.f32 %v8482_v34, %v14186_v17  ;;  %v5583_v34 = vld [vmem:[%s16183_s9 + $0x38] sm:$0xff] }
 0x6bd   : > { %v14234_v42 = vpop.f32.mrf.mxu0 }
 0x6bf   : > { %v8486_v47 = vpop.f32.mrf.mxu0 }
 0x6c1   : > { %v8487_v59 = vpop.f32.mrf.mxu0 }
 0x6c2   : > { %v8488_v54 = vadd.f32 %v8487_v59, %v8486_v47  ;;  %v5600_v47 = vld [vmem:[%s16183_s9 + $0xc0] sm:$0xff] }
 0x6c3   : > { %v14236_v16 = vpop.f32.mrf.mxu0  ;;  %8657 = vmatprep.subr.mxu0 %v5600_v47 }
 0x6c4   : > { %v4542_v58 = vadd.f32 %v8488_v54, %v14186_v17  ;;  %8658 = vmatpush3.msra.mxu0 %v5584_v38  ;;  %v5582_v54 = vld [vmem:[%s16183_s9 + $0x30] sm:$0xff] }
 0x6c5   : > { %v14238_v50 = vpop.f32.mrf.mxu0 }
 0x6c7   : > { %v8492_v41 = vpop.f32.mrf.mxu0 }
 0x6c9   : > { %v8493_v55 = vpop.f32.mrf.mxu0 }
 0x6ca   : > { %v8494_v26 = vadd.f32 %v8493_v55, %v8492_v41  ;;  %v5599_v41 = vld [vmem:[%s16183_s9 + $0xb8] sm:$0xff] }
 0x6cb   : > { %v9580_v61 = vpop.f32.mrf.mxu0  ;;  %8659 = vmatprep.subr.mxu0 %v5599_v41 }
 0x6cc   : > { %v14241_v45 = vadd.f32 %v9580_v61, %v4522_v19  ;;  %v4552_v27 = vadd.f32 %v8494_v26, %v14186_v17  ;;  %v5598_v19 = vld [vmem:[%s16183_s9 + $0xb0] sm:$0xff]  ;;  %8660 = vmatpush3.msra.mxu0 %v5583_v34  ;;  %v5581_v26 = vld [vmem:[%s16183_s9 + $0x28] sm:$0xff] }
 0x6cd   : > { %v14243_v30 = vpop.f32.mrf.mxu0  ;;  %8661 = vmatprep.subr.mxu0 %v5598_v19 }
 0x6ce   : > { %8662 = vmatpush3.msra.mxu0 %v5582_v54 }
 0x6cf   : > { %v9583_v15 = vpop.f32.mrf.mxu0 }
 0x6d0   : > { %v14246_v5 = vadd.f32 %v9583_v15, %v4532_v63  ;;  %v5597_v63 = vld [vmem:[%s16183_s9 + $0xa8] sm:$0xff] }
 0x6d1   : > { %v14248_v36 = vpop.f32.mrf.mxu0  ;;  %8663 = vmatprep.subr.mxu0 %v5597_v63 }
 0x6d2   : > { %8664 = vmatpush3.msra.mxu0 %v5581_v26 }
 0x6d3   : > { %v9586_v32 = vpop.f32.mrf.mxu0 }
 0x6d4   : > { %v14251_v60 = vadd.f32 %v9586_v32, %v4542_v58  ;;  %v5596_v58 = vld [vmem:[%s16183_s9 + $0xa0] sm:$0xff] }
 0x6d5   : > { %v14253_v53 = vpop.f32.mrf.mxu0  ;;  %8665 = vmatprep.subr.mxu0 %v5596_v58 }
 0x6d7   : > { %v9589_v25 = vpop.f32.mrf.mxu0 }
 0x6d8   : > { %v14256_v39 = vadd.f32 %v9589_v25, %v4552_v27  ;;  %v5580_v27 = vld [vmem:[%s16183_s9 + $0x20] sm:$0xff]  ;;  %v5595_v25 = vld [vmem:[%s16183_s9 + $0x98] sm:$0xff] }
 0x6d9   : > { %v14291_v20 = vpop.f32.mrf.mxu0  ;;  %8666 = vmatpush3.msra.mxu0 %v5580_v27 }
 0x6da   : > { %8667 = vmatprep.subr.mxu0 %v5595_v25 }
 0x6db   : > { %8668 = vmatpush3.msra.mxu0 %v5579_v43 }
 0x6eb   : > { %v8539_v56 = vpop.f32.mrf.mxu0 }
 0x6ed   : > { %v8540_v59 = vpop.f32.mrf.mxu0 }
 0x6ee   : > { %v8541_v12 = vadd.f32 %v8540_v59, %v8539_v56 }
 0x6ef   : > { %v8542_v55 = vpop.f32.mrf.mxu0 }
 0x6f0   : > { %v4967_v26 = vadd.f32 %v8541_v12, %v14186_v17 }
 0x6f1   : > { %v8543_v61 = vpop.f32.mrf.mxu0 }
 0x6f2   : > { %v8544_v4 = vadd.f32 %v8543_v61, %v8542_v55 }
 0x6f3   : > { %v8545_v15 = vpop.f32.mrf.mxu0 }
 0x6f4   : > { %v4972_v34 = vadd.f32 %v8544_v4, %v14186_v17 }
 0x6f5   : > { %v8546_v32 = vpop.f32.mrf.mxu0 }
 0x6f6   : > { %v8547_v54 = vadd.f32 %v8546_v32, %v8545_v15 }
 0x6f7   : > { %v8548_v8 = vpop.f32.mrf.mxu0 }
 0x6f8   : > { %v4977_v56 = vadd.f32 %v8547_v54, %v14186_v17 }
 0x6f9   : > { %v8549_v49 = vpop.f32.mrf.mxu0 }
 0x6fa   : > { %v8550_v38 = vadd.f32 %v8549_v49, %v8548_v8 }
 0x6fb   : > { %v8551_v29 = vpop.f32.mrf.mxu0 }
 0x6fc   : > { %v4982_v25 = vadd.f32 %v8550_v38, %v14186_v17 }
 0x6fd   : > { %v8552_v9 = vpop.f32.mrf.mxu0 }
 0x6fe   : > { %v8553_v61 = vadd.f32 %v8552_v9, %v8551_v29 }
 0x6ff   : > { %v8554_v22 = vpop.f32.mrf.mxu0 }
 0x701   : > { %v8555_v23 = vpop.f32.mrf.mxu0 }
 0x702   : > { %v8556_v33 = vadd.f32 %v8555_v23, %v8554_v22  ;;  %v4987_v22 = vadd.f32 %v8553_v61, %v14186_v17 }
 0x703   : > { %v8557_v7 = vpop.f32.mrf.mxu0 }
 0x704   : > { %v4992_v15 = vadd.f32 %v8556_v33, %v14186_v17 }
 0x705   : > { %v8558_v11 = vpop.f32.mrf.mxu0 }
 0x706   : > { %v8559_v51 = vadd.f32 %v8558_v11, %v8557_v7 }
 0x707   : > { %v8560_v37 = vpop.f32.mrf.mxu0 }
 0x708   : > { %v4997_v4 = vadd.f32 %v8559_v51, %v14186_v17 }
 0x709   : > { %v8561_v47 = vpop.f32.mrf.mxu0 }
 0x70a   : > { %v8562_v41 = vadd.f32 %v8561_v47, %v8560_v37 }
 0x70b   : > { %v9600_v19 = vpop.f32.mrf.mxu0 }
 0x70c   : > { %v14339_v63 = vadd.f32 %v9600_v19, %v4972_v34  ;;  %v5002_v11 = vadd.f32 %v8562_v41, %v14186_v17 }
 0x70d   : > { %v5071_v58 = vpop.f32.mrf.mxu0 }
 0x70e   : > { %v14342_v27 = vadd.f32 %v5071_v58, %v4967_v26 }
 0x70f   : > { %v9603_v55 = vpop.f32.mrf.mxu0 }
 0x710   : > { %v14345_v43 = vadd.f32 %v9603_v55, %v4982_v25 }
 0x711   : > { %v5081_v59 = vpop.f32.mrf.mxu0 }
 0x712   : > { %v14348_v8 = vadd.f32 %v5081_v59, %v4977_v56  ;;  %v8473_v59 = vadd.f32 %v14226_v6, %v14224_v10  ;;  %v5577_v10 = vld [vmem:[%s16183_s9 + $0x8] sm:$0xff]  ;;  %v8479_v6 = vadd.f32 %v14230_v52, %v14228_v1 }
 0x713   : > { %v9606_v32 = vpop.f32.mrf.mxu0 }
 0x714   : > { %v14351_v49 = vadd.f32 %v9606_v32, %v4992_v15  ;;  %v5594_v15 = vld [vmem:[%s16183_s9 + $0x90] sm:$0xff] }
 0x715   : > { %v5091_v23 = vpop.f32.mrf.mxu0  ;;  %v5578_v32 = vld [vmem:[%s16183_s9 + $0x10] sm:$0xff]  ;;  %8669 = vmatprep.subr.mxu0 %v5594_v15 }
 0x716   : > { %v14354_v7 = vadd.f32 %v5091_v23, %v4987_v22  ;;  %8670 = vmatpush3.msra.mxu0 %v5578_v32 }
 0x717   : > { %v9609_v29 = vpop.f32.mrf.mxu0 }
 0x718   : > { %v14357_v9 = vadd.f32 %v9609_v29, %v5002_v11  ;;  %v5593_v11 = vld [vmem:[%s16183_s9 + $0x88] sm:$0xff] }
 0x719   : > { %v5101_v37 = vpop.f32.mrf.mxu0  ;;  %8671 = vmatprep.subr.mxu0 %v5593_v11  ;;  %v8485_v11 = vadd.f32 %v14234_v42, %v14232_v14  ;;  %v8491_v42 = vadd.f32 %v14238_v50, %v14236_v16 }
 0x71a   : > { %16676 = vst [vmem:[#allocation37_spill] sm:$0xff] %v14357_v9  ;;  %v14360_v12 = vadd.f32 %v5101_v37, %v4997_v4  ;;  %v4517_v4 = vadd.f32 %v8473_v59, %v14186_v17  ;;  %8672 = vmatpush3.msra.mxu0 %v5577_v10  ;;  %v4527_v10 = vadd.f32 %v8479_v6, %v14186_v17 }
 0x71c   : > { %v4622_v15 = vadd.f32 %v14243_v30, %v4517_v4  ;;  %v4632_v4 = vadd.f32 %v14248_v36, %v4527_v10 }
 0x71e   : > { %v4660_v30 = vmax.f32 %v4622_v15, 0.0 }
 0x72b   : > { %v8607_v47 = vpop.f32.mrf.mxu0 }
 0x72d   : > { %v8608_v33 = vpop.f32.mrf.mxu0 }
 0x72e   : > { %v8609_v29 = vadd.f32 %v8608_v33, %v8607_v47  ;;  %v5576_v47 = vld [vmem:[%s16183_s9] sm:$0xff] }
 0x72f   : > { %v8610_v38 = vpop.f32.mrf.mxu0 }
 0x730   : > { %v5345_v59 = vadd.f32 %v8609_v29, %v14186_v17 }
 0x731   : > { %v8611_v34 = vpop.f32.mrf.mxu0 }
 0x732   : > { %v8612_v22 = vadd.f32 %v8611_v34, %v8610_v38  ;;  %v5592_v38 = vld [vmem:[%s16183_s9 + $0x80] sm:$0xff] }
 0x733   : > { %v8613_v19 = vpop.f32.mrf.mxu0  ;;  %8673 = vmatprep.subr.mxu0 %v5592_v38 }
 0x734   : > { %v5350_v34 = vadd.f32 %v8612_v22, %v14186_v17  ;;  %8674 = vmatpush3.msra.mxu0 %v5576_v47 }
 0x735   : > { %v8614_v54 = vpop.f32.mrf.mxu0 }
 0x736   : > { %v8615_v1 = vadd.f32 %v8614_v54, %v8613_v19 }
 0x737   : > { %v8616_v26 = vpop.f32.mrf.mxu0 }
 0x738   : > { %v5355_v14 = vadd.f32 %v8615_v1, %v14186_v17 }
 0x739   : > { %v8617_v58 = vpop.f32.mrf.mxu0 }
 0x73a   : > { %v8618_v33 = vadd.f32 %v8617_v58, %v8616_v26  ;;  %v4661_v26 = vmax.f32 %v14241_v45, 0.0  ;;  %v4537_v45 = vadd.f32 %v8485_v11, %v14186_v17 }
 0x73b   : > { %v8619_v25 = vpop.f32.mrf.mxu0 }
 0x73c   : > { %v5360_v38 = vadd.f32 %v8618_v33, %v14186_v17  ;;  %v4642_v15 = vadd.f32 %v14253_v53, %v4537_v45  ;;  %v14435_v45 = vld [vmem:[%s16185_s11 + $0x70] sm:$0xff] }
 0x73d   : > { %v8620_v55 = vpop.f32.mrf.mxu0 }
 0x73e   : > { %v8621_v19 = vadd.f32 %v8620_v55, %v8619_v25  ;;  %v4662_v55 = vmax.f32 %v4632_v4, 0.0  ;;  %v4667_v4 = vmax.f32 %v14256_v39, 0.0  ;;  %v14424_v39 = vld [vmem:[%s16185_s11 + $0x78] sm:$0xff] }
 0x73f   : > { %v8622_v61 = vpop.f32.mrf.mxu0 }
 0x740   : > { %v5365_v1 = vadd.f32 %v8621_v19, %v14186_v17 }
 0x741   : > { %v8623_v41 = vpop.f32.mrf.mxu0 }
 0x742   : > { %v8624_v3 = vadd.f32 %v8623_v41, %v8622_v61  ;;  %v4663_v61 = vmax.f32 %v14246_v5, 0.0 }
 0x743   : > { %v8625_v56 = vpop.f32.mrf.mxu0 }
 0x744   : > { %v5370_v41 = vadd.f32 %v8624_v3, %v14186_v17  ;;  %v4665_v3 = vmax.f32 %v14251_v60, 0.0 }
 0x745   : > { %v8626_v51 = vpop.f32.mrf.mxu0 }
 0x746   : > { %v8627_v16 = vadd.f32 %v8626_v51, %v8625_v56 }
 0x747   : > { %v8628_v23 = vpop.f32.mrf.mxu0 }
 0x748   : > { %v5375_v60 = vadd.f32 %v8627_v16, %v14186_v17 }
 0x749   : > { %v8629_v37 = vpop.f32.mrf.mxu0 }
 0x74a   : > { %v8630_v6 = vadd.f32 %v8629_v37, %v8628_v23  ;;  %v4547_v23 = vadd.f32 %v8491_v42, %v14186_v17  ;;  %v14419_v42 = vld [vmem:[%s16185_s11 + $0xf8] sm:$0xff] }
 0x74b   : > { %v9620_v32 = vpop.f32.mrf.mxu0  ;;  %8739 = vmatprep.subr.mxu1 %v14419_v42 }
 0x74c   : > { %v5455_v52 = vadd.f32 %v9620_v32, %v5350_v34  ;;  %v5380_v53 = vadd.f32 %v8630_v6, %v14186_v17  ;;  %v4652_v56 = vadd.f32 %v14291_v20, %v4547_v23  ;;  %8740 = vmatpush3.msra.mxu1 %v14424_v39  ;;  %v8405_v6 = vadd.f32 %v14075_v62, %v14067_v40 }
 0x74d   : > { %v5449_v9 = vpop.f32.mrf.mxu0 }
 0x74e   : > { %v5489_v58 = vmax.f32 %v5455_v52, 0.0  ;;  %v5450_v22 = vadd.f32 %v5449_v9, %v5345_v59 }
 0x74f   : > { %v9623_v54 = vpop.f32.mrf.mxu0 }
 0x750   : > { %v10513_v47 = vpack.i.bf16 %v4661_v26, %v5489_v58  ;;  %v5488_v29 = vmax.f32 %v5450_v22, 0.0  ;;  %v5465_v34 = vadd.f32 %v9623_v54, %v5360_v38  ;;  %v4664_v26 = vmax.f32 %v4642_v15, 0.0 }
 0x751   : > { %v5459_v9 = vpop.f32.mrf.mxu0 }
 0x752   : > { %v10508_v33 = vpack.i.bf16 %v4660_v30, %v5488_v29  ;;  %v5491_v36 = vmax.f32 %v5465_v34, 0.0  ;;  %v5460_v25 = vadd.f32 %v5459_v9, %v5355_v14  ;;  %10514 = vrot.lane.b32.xlu0 %v10513_v47, %s16496_s28  ;;  %v4666_v29 = vmax.f32 %v4652_v56, 0.0  ;;  %v14441_v9 = vld [vmem:[%s16185_s11 + $0xe8] sm:$0xff] }
 0x753   : > { %v9626_v32 = vpop.f32.mrf.mxu0 }
 0x754   : > { %v10523_v50 = vpack.i.bf16 %v4663_v61, %v5491_v36  ;;  %v5490_v5 = vmax.f32 %v5460_v25, 0.0  ;;  %v5475_v52 = vadd.f32 %v9626_v32, %v5370_v41  ;;  %10509 = vrot.lane.b32.xlu1 %v10508_v33, %s16496_s28  ;;  %v14429_v61 = vld [vmem:[%s16185_s11 + $0xf0] sm:$0xff]  ;;  %v14447_v41 = vld [vmem:[%s16185_s11 + $0x68] sm:$0xff]  ;;  %v4059_v33 = vadd.f32 %v8405_v6, %v14186_v17 }
 0x755   : > { %v5469_v37 = vpop.f32.mrf.mxu0  ;;  %8741 = vmatprep.subr.mxu1 %v14429_v61 }
 0x756   : > { %v10518_v59 = vpack.i.bf16 %v4662_v55, %v5490_v5  ;;  %v5493_v11 = vmax.f32 %v5475_v52, 0.0  ;;  %v5470_v10 = vadd.f32 %v5469_v37, %v5365_v1  ;;  %10524 = vrot.lane.b32.xlu0 %v10523_v50, %s16496_s28  ;;  %8742 = vmatpush3.msra.mxu1 %v14435_v45  ;;  %v4164_v36 = vadd.f32 %v14195_v48, %v4059_v33 }
 0x757   : > { %v9629_v51 = vpop.f32.mrf.mxu0  ;;  %8743 = vmatprep.subr.mxu1 %v14441_v9  ;;  %v8411_v55 = vadd.f32 %v14124_v24, %v14113_v2  ;;  %v5110_v1 = vmax.f32 %v14342_v27, 0.0  ;;  %v5111_v52 = vmax.f32 %v14339_v63, 0.0  ;;  %v4203_v24 = vmax.f32 %v14191_v44, 0.0 }
 0x758   : > { %v10533_v58 = vpack.i.bf16 %v4665_v3, %v5493_v11  ;;  %v5492_v22 = vmax.f32 %v5470_v10, 0.0  ;;  %v5485_v38 = vadd.f32 %v9629_v51, %v5380_v53  ;;  %10519 = vrot.lane.b32.xlu1 %v10518_v59, %s16496_s28  ;;  %8744 = vmatpush3.msra.mxu1 %v14447_v41  ;;  %v4202_v15 = vmax.f32 %v4164_v36, 0.0 }
 0x759   : > { %v5479_v30 = vpop.f32.mrf.mxu0  ;;  %v4069_v62 = vadd.f32 %v8411_v55, %v14186_v17  ;;  %v5112_v63 = vmax.f32 %v14348_v8, 0.0  ;;  %v8417_v11 = vadd.f32 %v14153_v28, %v14145_v57  ;;  %v5113_v44 = vmax.f32 %v14345_v43, 0.0 }
 0x75a   : > { %v10528_v19 = vpack.i.bf16 %v4664_v26, %v5492_v22  ;;  %v5495_v54 = vmax.f32 %v5485_v38, 0.0  ;;  %v5480_v47 = vadd.f32 %v5479_v30, %v5375_v60  ;;  %10534 = vrot.lane.b32.xlu0 %v10533_v58, %s16496_s28  ;;  %v4205_v28 = vmax.f32 %v14200_v35, 0.0 }
 0x75b   : > { %v4174_v27 = vadd.f32 %v14204_v18, %v4069_v62  ;;  %v4079_v18 = vadd.f32 %v8417_v11, %v14186_v17  ;;  %v8423_v43 = vadd.f32 %v14173_v21, %v14167_v0  ;;  %v5115_v35 = vmax.f32 %v14351_v49, 0.0  ;;  %v14511_v62 = vld [vmem:[%s16185_s11 + $0xd8] sm:$0xff] }
 0x75c   : > { %v10543_v34 = vpack.i.bf16 %v4667_v4, %v5495_v54  ;;  %v5494_v14 = vmax.f32 %v5480_v47, 0.0  ;;  %10529 = vrot.lane.b32.xlu1 %v10528_v19, %s16496_s28  ;;  %v5114_v4 = vmax.f32 %v14354_v7, 0.0  ;;  %v4207_v21 = vmax.f32 %v14211_v31, 0.0  ;;  %v14561_v11 = vld [vmem:[%s16185_s11 + $0xb8] sm:$0xff] }
 0x75d   : > { %v4204_v51 = vmax.f32 %v4174_v27, 0.0  ;;  %v4184_v60 = vadd.f32 %v14213_v13, %v4079_v18  ;;  %v4089_v13 = vadd.f32 %v8423_v43, %v14186_v17  ;;  %v14544_v27 = vld [vmem:[%s16185_s11 + $0x48] sm:$0xff] }
 0x75e   : > { %v10538_v20 = vpack.i.bf16 %v4666_v29, %v5494_v14  ;;  %10544 = vrot.lane.b32.xlu0 %v10543_v34, %s16496_s28 }
 0x75f   : > { %v4206_v34 = vmax.f32 %v4184_v60, 0.0  ;;  %v4194_v33 = vadd.f32 %v14222_v46, %v4089_v13  ;;  %v8143_v13 = vld [vmem:[%s16184_s10] ss:$0 sm:$0xff] }
 0x760   : > { %10539 = vrot.lane.b32.xlu1 %v10538_v20, %s16496_s28 }
 0x7c4   : > { %v10515_v25 = vpop.permute.xlu0 %10514 }
 0x7c5   : > { %v10516_v16 = vunpack.i.l.bf16 %v10515_v25  ;;  %v10517_v48 = vunpack.i.h.bf16 %v10515_v25  ;;  %v5116_v25 = vmax.f32 %v14360_v12, 0.0 }
 0x7c6   : > { %v10510_v32 = vpop.permute.xlu1 %10509 }
 0x7c7   : > { %v10512_v50 = vunpack.i.h.bf16 %v10510_v32  ;;  %v10511_v5 = vunpack.i.l.bf16 %v10510_v32  ;;  %v5569_v2 = vsel %vm2378_vm3, %v5111_v52, %v10516_v16  ;;  %v5561_v53 = vsel %vm2378_vm3, %v4203_v24, %v10517_v48  ;;  %v14516_v48 = vld [vmem:[%s16185_s11 + $0x58] sm:$0xff]  ;;  %v14539_v24 = vld [vmem:[%s16185_s11 + $0xc8] sm:$0xff] }
 0x7c8   : > { %v10525_v59 = vpop.permute.xlu0 %10524  ;;  %v4208_v32 = vmax.f32 %v4194_v33, 0.0 }
 0x7c9   : > { %v5560_v3 = vsel %vm2378_vm3, %v4202_v15, %v10512_v50  ;;  %v5568_v40 = vsel %vm2378_vm3, %v5110_v1, %v10511_v5  ;;  %v10526_v26 = vunpack.i.l.bf16 %v10525_v59  ;;  %v10527_v22 = vunpack.i.h.bf16 %v10525_v59  ;;  %v16677_v1 = vld [vmem:[#allocation37_spill] sm:$0xff] }
 0x7ca   : > { %v10520_v23 = vpop.permute.xlu1 %10519  ;;  %5679 = vmatprep.mubr.f32.mxu0 %v5568_v40  ;;  %v5117_v16 = vmax.f32 %v16677_v1, 0.0  ;;  %v16678_v5 = vld [vmem:[#allocation21_spill] sm:$0xff] }
 0x7cb   : > { %v10521_v37 = vunpack.i.l.bf16 %v10520_v23  ;;  %5680 = vmatmul.mubr.f32.vlgmr.msra.gmra.mxu0 %v5560_v3  ;;  %v10522_v10 = vunpack.i.h.bf16 %v10520_v23  ;;  %v5571_v57 = vsel %vm2378_vm3, %v5113_v44, %v10526_v26  ;;  %v5563_v54 = vsel %vm2378_vm3, %v4205_v28, %v10527_v22  ;;  %v14499_v3 = vld [vmem:[%s16185_s11 + $0xe0] sm:$0xff]  ;;  %v14579_v26 = vld [vmem:[%s16185_s11 + $0x30] sm:$0xff] }
 0x7cc   : > { %5684 = vmatprep.mubr.f32.mxu0 %v5569_v2  ;;  %v10535_v30 = vpop.permute.xlu0 %10534  ;;  %v4209_v52 = vmax.f32 %v16678_v5, 0.0  ;;  %8745 = vmatprep.subr.mxu1 %v14499_v3  ;;  %v14505_v40 = vld [vmem:[%s16185_s11 + $0x60] sm:$0xff]  ;;  %v14532_v2 = vld [vmem:[%s16185_s11 + $0x50] sm:$0xff]  ;;  %16681 = vst [vmem:[#allocation13_spill] sm:$0xff] %v14579_v26 }
 0x7cd   : > { %v5570_v56 = vsel %vm2378_vm3, %v5112_v63, %v10521_v37  ;;  %v5562_v8 = vsel %vm2378_vm3, %v4204_v51, %v10522_v10  ;;  %v10536_v47 = vunpack.i.l.bf16 %v10535_v30  ;;  %v10537_v20 = vunpack.i.h.bf16 %v10535_v30  ;;  %8746 = vmatpush3.msra.mxu1 %v14505_v40  ;;  %v5728_v23 = vld [vmem:[%s16679_s25] sm:$0xff]  ;;  %v14527_v37 = vld [vmem:[%s16185_s11 + $0xd0] sm:$0xff]  ;;  %v14567_v10 = vld [vmem:[%s16185_s11 + $0x38] sm:$0xff] }
 0x7ce   : > { %v10530_v58 = vpop.permute.xlu1 %10529  ;;  %8747 = vmatprep.subr.mxu1 %v14511_v62  ;;  %v14551_v59 = vld [vmem:[%s16185_s11 + $0xc0] sm:$0xff]  ;;  %v14591_v51 = vld [vmem:[%s16185_s11 + $0x28] sm:$0xff] }
 0x7cf   : > { %5685 = vmatmul.mubr.f32.gmra.mxu0 %v5561_v53  ;;  %v10531_v38 = vunpack.i.l.bf16 %v10530_v58  ;;  %v10532_v19 = vunpack.i.h.bf16 %v10530_v58  ;;  %v5573_v0 = vsel %vm2378_vm3, %v5115_v35, %v10536_v47  ;;  %v5565_v49 = vsel %vm2378_vm3, %v4207_v21, %v10537_v20  ;;  %8748 = vmatpush3.msra.mxu1 %v14516_v48  ;;  %v14556_v63 = vld [vmem:[%s16185_s11 + $0x40] sm:$0xff]  ;;  %v14573_v53 = vld [vmem:[%s16185_s11 + $0xb0] sm:$0xff]  ;;  %16683 = vst [vmem:[#allocation24_spill] sm:$0xff] %v14591_v51 }
 0x7d0   : > { %5689 = vmatprep.mubr.f32.mxu0 %v5570_v56  ;;  %v10545_v36 = vpop.permute.xlu0 %10544  ;;  %8749 = vmatprep.subr.mxu1 %v14527_v37  ;;  %16680 = vst [vmem:[#allocation22_spill] sm:$0xff] %v14573_v53  ;;  %v14585_v56 = vld [vmem:[%s16185_s11 + $0xa8] sm:$0xff] }
 0x7d1   : > { %v5572_v29 = vsel %vm2378_vm3, %v5114_v4, %v10531_v38  ;;  %v5564_v7 = vsel %vm2378_vm3, %v4206_v34, %v10532_v19  ;;  %v10546_v15 = vunpack.i.l.bf16 %v10545_v36  ;;  %v10547_v50 = vunpack.i.h.bf16 %v10545_v36  ;;  %8750 = vmatpush3.msra.mxu1 %v14532_v2  ;;  %16682 = vst [vmem:[#allocation23_spill] sm:$0xff] %v14585_v56 }
 0x7d2   : > { %v10540_v14 = vpop.permute.xlu1 %10539  ;;  %8751 = vmatprep.subr.mxu1 %v14539_v24 }
 0x7d3   : > { %5690 = vmatmul.mubr.f32.gmra.mxu0 %v5562_v8  ;;  %v10541_v6 = vunpack.i.l.bf16 %v10540_v14  ;;  %v10542_v55 = vunpack.i.h.bf16 %v10540_v14  ;;  %v5575_v46 = vsel %vm2378_vm3, %v5117_v16, %v10546_v15  ;;  %v5567_v12 = vsel %vm2378_vm3, %v4209_v52, %v10547_v50  ;;  %8752 = vmatpush3.msra.mxu1 %v14544_v27 }
 0x7d4   : > { %5694 = vmatprep.mubr.f32.mxu0 %v5571_v57  ;;  %8753 = vmatprep.subr.mxu1 %v14551_v59 }
 0x7d5   : > { %v5574_v17 = vsel %vm2378_vm3, %v5116_v25, %v10541_v6  ;;  %v5566_v31 = vsel %vm2378_vm3, %v4208_v32, %v10542_v55  ;;  %8754 = vmatpush3.msra.mxu1 %v14556_v63 }
 0x7d6   : > { %8755 = vmatprep.subr.mxu1 %v14561_v11 }
 0x7d7   : > { %5695 = vmatmul.mubr.f32.gmra.mxu0 %v5563_v54  ;;  %8756 = vmatpush3.msra.mxu1 %v14567_v10 }
 0x7d8   : > { %5699 = vmatprep.mubr.f32.mxu0 %v5572_v29  ;;  %8757 = vmatprep.subr.mxu1 %v14573_v53 }
 0x7d9   : > { %8758 = vmatpush3.msra.mxu1 %v14579_v26 }
 0x7da   : > { %8759 = vmatprep.subr.mxu1 %v14585_v56 }
 0x7db   : > { %5700 = vmatmul.mubr.f32.gmra.mxu0 %v5564_v7  ;;  %8760 = vmatpush3.msra.mxu1 %v14591_v51 }
 0x7dc   : > { %5704 = vmatprep.mubr.f32.mxu0 %v5573_v0 }
 0x7df   : > { %5705 = vmatmul.mubr.f32.gmra.mxu0 %v5565_v49 }
 0x7e0   : > { %5709 = vmatprep.mubr.f32.mxu0 %v5574_v17 }
 0x7e3   : > { %5710 = vmatmul.mubr.f32.gmra.mxu0 %v5566_v31 }
 0x7e4   : > { %5714 = vmatprep.mubr.f32.mxu0 %v5575_v46 }
 0x7e7   : > { %5715 = vmatmul.mubr.f32.gmra.mxu0 %v5567_v12 }
 0x7e8   : > { %9646 = vmatprep.mubr.msk.f32.mxu0 %vm2378_vm3, %v5728_v23  ;;  %v5729_v23 = vld [vmem:[%s16679_s25 + $0x8] sm:$0xff] }
 0x88b   : > { %v8675_v58 = vpop.f32.mrf.mxu0 }
 0x88d   : > { %v8676_v44 = vpop.f32.mrf.mxu0 }
 0x88e   : > { %v8677_v32 = vadd.f32 %v8676_v44, %v8675_v58  ;;  %v5730_v58 = vld [vmem:[%s16679_s25 + $0x10] sm:$0xff]  ;;  %v5731_v44 = vld [vmem:[%s16679_s25 + $0x18] sm:$0xff] }
 0x88f   : > { %v8678_v18 = vpop.f32.mrf.mxu0 }
 0x890   : > { %v5682_v46 = vadd.f32 %v8677_v32, %v8143_v13  ;;  %v14742_v32 = vld [vmem:[%s16185_s11 + $0x90] sm:$0xff] }
 0x891   : > { %v8679_v22 = vpop.f32.mrf.mxu0  ;;  %16688 = vst [vmem:[#allocation75_spill] sm:$0xff] %v14742_v32 }
 0x892   : > { %v8680_v49 = vadd.f32 %v8679_v22, %v8678_v18  ;;  %v5720_v12 = vmax.f32 %v5682_v46, 0.0  ;;  %v5732_v18 = vld [vmem:[%s16679_s25 + $0x20] sm:$0xff]  ;;  %v5733_v22 = vld [vmem:[%s16679_s25 + $0x28] sm:$0xff] }
 0x893   : > { %v8681_v8 = vpop.f32.mrf.mxu0  ;;  %v14765_v46 = vld [vmem:[%s16185_s11 + $0x8] sm:$0xff] }
 0x894   : > { %v5687_v50 = vadd.f32 %v8680_v49, %v8143_v13  ;;  %v14723_v49 = vld [vmem:[%s16185_s11 + $0x20] sm:$0xff]  ;;  %16691 = vst [vmem:[#allocation79_spill] sm:$0xff] %v14765_v46 }
 0x895   : > { %v8682_v38 = vpop.f32.mrf.mxu0  ;;  %16685 = vst [vmem:[#allocation71_spill] sm:$0xff] %v14723_v49 }
 0x896   : > { %v8683_v36 = vadd.f32 %v8682_v38, %v8681_v8  ;;  %v5721_v52 = vmax.f32 %v5687_v50, 0.0  ;;  %v5734_v8 = vld [vmem:[%s16679_s25 + $0x30] sm:$0xff]  ;;  %v5735_v38 = vld [vmem:[%s16679_s25 + $0x38] sm:$0xff] }
 0x897   : > { %v8684_v57 = vpop.f32.mrf.mxu0  ;;  %v5759_v50 = vld [vmem:[%s16679_s25 + $0xf8] sm:$0xff] }
 0x898   : > { %v5692_v1 = vadd.f32 %v8683_v36, %v8143_v13  ;;  %v5756_v36 = vld [vmem:[%s16679_s25 + $0xe0] sm:$0xff] }
 0x899   : > { %v8685_v28 = vpop.f32.mrf.mxu0 }
 0x89a   : > { %v8686_v0 = vadd.f32 %v8685_v28, %v8684_v57  ;;  %v5722_v5 = vmax.f32 %v5692_v1, 0.0  ;;  %v5736_v57 = vld [vmem:[%s16679_s25 + $0x40] sm:$0xff]  ;;  %v5737_v28 = vld [vmem:[%s16679_s25 + $0x48] sm:$0xff]  ;;  %v14747_v1 = vld [vmem:[%s16185_s11 + $0x10] sm:$0xff] }
 0x89b   : > { %v8687_v60 = vpop.f32.mrf.mxu0  ;;  %16689 = vst [vmem:[#allocation76_spill] sm:$0xff] %v14747_v1 }
 0x89c   : > { %v5697_v15 = vadd.f32 %v8686_v0, %v8143_v13  ;;  %v5753_v0 = vld [vmem:[%s16679_s25 + $0xc8] sm:$0xff] }
 0x89d   : > { %v8688_v30 = vpop.f32.mrf.mxu0 }
 0x89e   : > { %v8689_v20 = vadd.f32 %v8688_v30, %v8687_v60  ;;  %v5723_v31 = vmax.f32 %v5697_v15, 0.0  ;;  %v5738_v60 = vld [vmem:[%s16679_s25 + $0x50] sm:$0xff]  ;;  %v5739_v30 = vld [vmem:[%s16679_s25 + $0x58] sm:$0xff] }
 0x89f   : > { %v8690_v4 = vpop.f32.mrf.mxu0  ;;  %v14730_v15 = vld [vmem:[%s16185_s11 + $0x98] sm:$0xff] }
 0x8a0   : > { %v5702_v25 = vadd.f32 %v8689_v20, %v8143_v13  ;;  %v5750_v20 = vld [vmem:[%s16679_s25 + $0xb0] sm:$0xff]  ;;  %16686 = vst [vmem:[#allocation73_spill] sm:$0xff] %v14730_v15 }
 0x8a1   : > { %v8691_v43 = vpop.f32.mrf.mxu0 }
 0x8a2   : > { %v8692_v14 = vadd.f32 %v8691_v43, %v8690_v4  ;;  %v5724_v16 = vmax.f32 %v5702_v25, 0.0  ;;  %v5740_v4 = vld [vmem:[%s16679_s25 + $0x60] sm:$0xff]  ;;  %v5741_v43 = vld [vmem:[%s16679_s25 + $0x68] sm:$0xff] }
 0x8a3   : > { %v8693_v19 = vpop.f32.mrf.mxu0  ;;  %v5757_v25 = vld [vmem:[%s16679_s25 + $0xe8] sm:$0xff] }
 0x8a4   : > { %v5707_v21 = vadd.f32 %v8692_v14, %v8143_v13  ;;  %v5747_v14 = vld [vmem:[%s16679_s25 + $0x98] sm:$0xff] }
 0x8a5   : > { %v8694_v54 = vpop.f32.mrf.mxu0 }
 0x8a6   : > { %v8695_v29 = vadd.f32 %v8694_v54, %v8693_v19  ;;  %v5725_v17 = vmax.f32 %v5707_v21, 0.0  ;;  %v5742_v19 = vld [vmem:[%s16679_s25 + $0x70] sm:$0xff]  ;;  %v5743_v54 = vld [vmem:[%s16679_s25 + $0x78] sm:$0xff] }
 0x8a7   : > { %v8696_v47 = vpop.f32.mrf.mxu0  ;;  %v5754_v21 = vld [vmem:[%s16679_s25 + $0xd0] sm:$0xff] }
 0x8a8   : > { %v5712_v7 = vadd.f32 %v8695_v29, %v8143_v13  ;;  %v5745_v29 = vld [vmem:[%s16679_s25 + $0x88] sm:$0xff] }
 0x8a9   : > { %v8697_v34 = vpop.f32.mrf.mxu0 }
 0x8aa   : > { %v8698_v35 = vadd.f32 %v8697_v34, %v8696_v47  ;;  %v5726_v55 = vmax.f32 %v5712_v7, 0.0  ;;  %v5744_v47 = vld [vmem:[%s16679_s25 + $0x80] sm:$0xff]  ;;  %v5746_v34 = vld [vmem:[%s16679_s25 + $0x90] sm:$0xff]  ;;  %v5751_v7 = vld [vmem:[%s16679_s25 + $0xb8] sm:$0xff] }
 0x8ac   : > { %v5717_v6 = vadd.f32 %v8698_v35, %v8143_v13  ;;  %v5748_v35 = vld [vmem:[%s16679_s25 + $0xa0] sm:$0xff]  ;;  %v5749_v13 = vld [vmem:[%s16679_s25 + $0xa8] sm:$0xff] }
 0x8ae   : > { %v5727_v33 = vmax.f32 %v5717_v6, 0.0  ;;  %v5752_v6 = vld [vmem:[%s16679_s25 + $0xc0] sm:$0xff] }
 0x8b0   : > { %9630 = vmatprep.subr.mxu0 %v5727_v33 }
 0x8b1   : > { %9631 = vmatpush3.msra.mxu0 %v5727_v33  ;;  %v5755_v33 = vld [vmem:[%s16679_s25 + $0xd8] sm:$0xff] }
 0x8b2   : > { %9632 = vmatprep.subr.mxu0 %v5726_v55 }
 0x8b3   : > { %9633 = vmatpush3.msra.mxu0 %v5726_v55  ;;  %v14718_v55 = vld [vmem:[%s16185_s11 + $0xa0] sm:$0xff] }
 0x8b4   : > { %9634 = vmatprep.subr.mxu0 %v5725_v17  ;;  %16684 = vst [vmem:[#allocation25_spill] sm:$0xff] %v14718_v55  ;;  %8761 = vmatprep.subr.mxu1 %v14718_v55 }
 0x8b5   : > { %9635 = vmatpush3.msra.mxu0 %v5725_v17  ;;  %8762 = vmatpush3.msra.mxu1 %v14723_v49  ;;  %v14735_v17 = vld [vmem:[%s16185_s11 + $0x18] sm:$0xff] }
 0x8b6   : > { %9636 = vmatprep.subr.mxu0 %v5724_v16  ;;  %16687 = vst [vmem:[#allocation74_spill] sm:$0xff] %v14735_v17  ;;  %8763 = vmatprep.subr.mxu1 %v14730_v15 }
 0x8b7   : > { %9637 = vmatpush3.msra.mxu0 %v5724_v16  ;;  %8764 = vmatpush3.msra.mxu1 %v14735_v17  ;;  %v5758_v16 = vld [vmem:[%s16679_s25 + $0xf0] sm:$0xff] }
 0x8b8   : > { %9638 = vmatprep.subr.mxu0 %v5723_v31  ;;  %8765 = vmatprep.subr.mxu1 %v14742_v32  ;;  %v14973_v32 = vld [vmem:[%s16185_s11 + $0x118] sm:$0xff]  ;;  %v14988_v17 = vld [vmem:[%s16185_s11 + $0x110] sm:$0xff] }
 0x8b9   : > { %9639 = vmatpush3.msra.mxu0 %v5723_v31  ;;  %v14760_v31 = vld [vmem:[%s16185_s11 + $0x88] sm:$0xff]  ;;  %8766 = vmatpush3.msra.mxu1 %v14747_v1  ;;  %16711 = vst [vmem:[#allocation30_spill] sm:$0xff] %v14973_v32  ;;  %16714 = vst [vmem:[#allocation52_spill] sm:$0xff] %v14988_v17 }
 0x8ba   : > { %9640 = vmatprep.subr.mxu0 %v5722_v5  ;;  %16690 = vst [vmem:[#allocation78_spill] sm:$0xff] %v14760_v31  ;;  %8767 = vmatprep.subr.mxu1 %v14760_v31 }
 0x8bb   : > { %9641 = vmatpush3.msra.mxu0 %v5722_v5  ;;  %v14772_v5 = vld [vmem:[%s16185_s11 + $0x1f8] sm:$0xff]  ;;  %8768 = vmatpush3.msra.mxu1 %v14765_v46  ;;  %v14957_v46 = vld [vmem:[%s16185_s11 + $0x120] sm:$0xff] }
 0x8bc   : > { %9642 = vmatprep.subr.mxu0 %v5721_v52  ;;  %16708 = vst [vmem:[#allocation49_spill] sm:$0xff] %v14957_v46 }
 0x8bd   : > { %9643 = vmatpush3.msra.mxu0 %v5721_v52  ;;  %v14777_v52 = vld [vmem:[%s16185_s11 + $0x178] sm:$0xff] }
 0x8be   : > { %9644 = vmatprep.subr.mxu0 %v5720_v12 }
 0x8bf   : > { %9645 = vmatpush3.msra.mxu0 %v5720_v12  ;;  %v14782_v12 = vld [vmem:[%s16185_s11 + $0x1f0] sm:$0xff] }
 0x8c0   : > { %9647 = vmatmul.mubr.msk.f32.vlgmr.msra.gmra.mxu0 %vm2378_vm3, %v5729_v23  ;;  %8777 = vmatprep.subr.mxu0 %v14772_v5  ;;  %v14789_v23 = vld [vmem:[%s16185_s11 + $0x170] sm:$0xff] }
 0x8c1   : > { %9649 = vmatprep.mubr.msk.f32.mxu0 %vm2378_vm3, %v5730_v58  ;;  %8778 = vmatpush3.msra.mxu0 %v14777_v52  ;;  %v14796_v58 = vld [vmem:[%s16185_s11 + $0x1e8] sm:$0xff] }
 0x8c2   : > { %8779 = vmatprep.subr.mxu0 %v14782_v12 }
 0x8c3   : > { %8780 = vmatpush3.msra.mxu0 %v14789_v23 }
 0x8c4   : > { %9650 = vmatmul.mubr.msk.f32.gmra.mxu0 %vm2378_vm3, %v5731_v44  ;;  %v14802_v44 = vld [vmem:[%s16185_s11 + $0x168] sm:$0xff]  ;;  %8781 = vmatprep.subr.mxu0 %v14796_v58 }
 0x8c5   : > { %9652 = vmatprep.mubr.msk.f32.mxu0 %vm2378_vm3, %v5732_v18  ;;  %v14808_v18 = vld [vmem:[%s16185_s11 + $0x1e0] sm:$0xff]  ;;  %8782 = vmatpush3.msra.mxu0 %v14802_v44 }
 0x8c6   : > { %8783 = vmatprep.subr.mxu0 %v14808_v18 }
 0x8c8   : > { %9653 = vmatmul.mubr.msk.f32.gmra.mxu0 %vm2378_vm3, %v5733_v22  ;;  %v14814_v22 = vld [vmem:[%s16185_s11 + $0x160] sm:$0xff] }
 0x8c9   : > { %9655 = vmatprep.mubr.msk.f32.mxu0 %vm2378_vm3, %v5734_v8  ;;  %v14820_v8 = vld [vmem:[%s16185_s11 + $0x1d8] sm:$0xff]  ;;  %8784 = vmatpush3.msra.mxu0 %v14814_v22 }
 0x8ca   : > { %8785 = vmatprep.subr.mxu0 %v14820_v8 }
 0x8cc   : > { %9656 = vmatmul.mubr.msk.f32.gmra.mxu0 %vm2378_vm3, %v5735_v38  ;;  %v14826_v38 = vld [vmem:[%s16185_s11 + $0x158] sm:$0xff] }
 0x8cd   : > { %9658 = vmatprep.mubr.msk.f32.mxu0 %vm2378_vm3, %v5736_v57  ;;  %v14832_v57 = vld [vmem:[%s16185_s11 + $0x1d0] sm:$0xff]  ;;  %8786 = vmatpush3.msra.mxu0 %v14826_v38 }
 0x8ce   : > { %8787 = vmatprep.subr.mxu0 %v14832_v57 }
 0x8d0   : > { %9659 = vmatmul.mubr.msk.f32.gmra.mxu0 %vm2378_vm3, %v5737_v28  ;;  %v14838_v28 = vld [vmem:[%s16185_s11 + $0x150] sm:$0xff] }
 0x8d1   : > { %9661 = vmatprep.mubr.msk.f32.mxu0 %vm2378_vm3, %v5738_v60  ;;  %8788 = vmatpush3.msra.mxu0 %v14838_v28 }
 0x8d4   : > { %9662 = vmatmul.mubr.msk.f32.gmra.mxu0 %vm2378_vm3, %v5739_v30 }
 0x8d5   : > { %9664 = vmatprep.mubr.msk.f32.mxu0 %vm2378_vm3, %v5740_v4 }
 0x8d8   : > { %9665 = vmatmul.mubr.msk.f32.gmra.mxu0 %vm2378_vm3, %v5741_v43 }
 0x8d9   : > { %9667 = vmatprep.mubr.msk.f32.mxu0 %vm2378_vm3, %v5742_v19 }
 0x8dc   : > { %9668 = vmatmul.mubr.msk.f32.gmra.mxu0 %vm2378_vm3, %v5743_v54  ;;  %v14856_v54 = vld [vmem:[%s16185_s11 + $0x80] sm:$0xff] }
 0x8dd   : > { %9670 = vmatprep.mubr.msk.f32.mxu0 %vm2378_vm3, %v5744_v47  ;;  %16694 = vst [vmem:[#allocation83_spill] sm:$0xff] %v14856_v54  ;;  %8769 = vmatprep.subr.mxu1 %v14856_v54  ;;  %v14942_v54 = vld [vmem:[%s16185_s11 + $0x128] sm:$0xff] }
 0x8de   : > { %16706 = vst [vmem:[#allocation48_spill] sm:$0xff] %v14942_v54 }
 0x8e0   : > { %9671 = vmatmul.mubr.msk.f32.gmra.mxu0 %vm2378_vm3, %v5745_v29  ;;  %v14863_v29 = vld [vmem:[%s16185_s11 + $0x1c8] sm:$0xff] }
 0x8e1   : > { %9673 = vmatprep.mubr.msk.f32.mxu0 %vm2378_vm3, %v5746_v34  ;;  %v14869_v34 = vld [vmem:[%s16185_s11 + $0x148] sm:$0xff]  ;;  %8789 = vmatprep.subr.mxu0 %v14863_v29 }
 0x8e2   : > { %8790 = vmatpush3.msra.mxu0 %v14869_v34 }
 0x8e4   : > { %9674 = vmatmul.mubr.msk.f32.gmra.mxu0 %vm2378_vm3, %v5747_v14  ;;  %v14874_v14 = vld [vmem:[%s16185_s11] sm:$0xff] }
 0x8e5   : > { %9676 = vmatprep.mubr.msk.f32.mxu0 %vm2378_vm3, %v5748_v35  ;;  %16695 = vst [vmem:[#allocation84_spill] sm:$0xff] %v14874_v14  ;;  %8770 = vmatpush3.msra.mxu1 %v14874_v14  ;;  %v14881_v35 = vld [vmem:[%s16185_s11 + $0x238] sm:$0xff] }
 0x8e6   : > { %9694 = vmatprep.subr.mxu1 %v14881_v35 }
 0x8e8   : > { %9677 = vmatmul.mubr.msk.f32.gmra.mxu0 %vm2378_vm3, %v5749_v13 }
 0x8e9   : > { %9679 = vmatprep.mubr.msk.f32.mxu0 %vm2378_vm3, %v5750_v20  ;;  %v14890_v20 = vld [vmem:[%s16185_s11 + $0x1c0] sm:$0xff] }
 0x8ea   : > { %16697 = vst [vmem:[#allocation18_spill] sm:$0xff] %v14890_v20  ;;  %8791 = vmatprep.subr.mxu0 %v14890_v20 }
 0x8ec   : > { %9680 = vmatmul.mubr.msk.f32.gmra.mxu0 %vm2378_vm3, %v5751_v7  ;;  %v14896_v7 = vld [vmem:[%s16185_s11 + $0x140] sm:$0xff] }
 0x8ed   : > { %9682 = vmatprep.mubr.msk.f32.mxu0 %vm2378_vm3, %v5752_v6  ;;  %16698 = vst [vmem:[#allocation26_spill] sm:$0xff] %v14896_v7  ;;  %8792 = vmatpush3.msra.mxu0 %v14896_v7 }
 0x8f0   : > { %9683 = vmatmul.mubr.msk.f32.gmra.mxu0 %vm2378_vm3, %v5753_v0  ;;  %v14904_v0 = vld [vmem:[%s16185_s11 + $0x1b8] sm:$0xff] }
 0x8f1   : > { %9685 = vmatprep.mubr.msk.f32.mxu0 %vm2378_vm3, %v5754_v21  ;;  %16699 = vst [vmem:[#allocation38_spill] sm:$0xff] %v14904_v0  ;;  %8793 = vmatprep.subr.mxu0 %v14904_v0 }
 0x8f4   : > { %9686 = vmatmul.mubr.msk.f32.gmra.mxu0 %vm2378_vm3, %v5755_v33  ;;  %v14912_v33 = vld [vmem:[%s16185_s11 + $0x138] sm:$0xff] }
 0x8f5   : > { %9688 = vmatprep.mubr.msk.f32.mxu0 %vm2378_vm3, %v5756_v36  ;;  %16701 = vst [vmem:[#allocation47_spill] sm:$0xff] %v14912_v33  ;;  %8794 = vmatpush3.msra.mxu0 %v14912_v33  ;;  %v14918_v36 = vld [vmem:[%s16185_s11 + $0x1b0] sm:$0xff] }
 0x8f6   : > { %16702 = vst [vmem:[#allocation34_spill] sm:$0xff] %v14918_v36  ;;  %8795 = vmatprep.subr.mxu0 %v14918_v36 }
 0x8f8   : > { %9689 = vmatmul.mubr.msk.f32.gmra.mxu0 %vm2378_vm3, %v5757_v25 }
 0x8f9   : > { %9691 = vmatprep.mubr.msk.f32.mxu0 %vm2378_vm3, %v5758_v16  ;;  %v14926_v16 = vld [vmem:[%s16185_s11 + $0x130] sm:$0xff] }
 0x8fa   : > { %16704 = vst [vmem:[#allocation27_spill] sm:$0xff] %v14926_v16  ;;  %8796 = vmatpush3.msra.mxu0 %v14926_v16 }
 0x8fc   : > { %9692 = vmatmul.mubr.msk.f32.gmra.mxu0 %vm2378_vm3, %v5759_v50 }
 0x980   : > { %v14843_v60 = vpop.f32.mrf.mxu0 }
 0x982   : > { %v14845_v30 = vpop.f32.mrf.mxu0 }
 0x984   : > { %v14847_v4 = vpop.f32.mrf.mxu0 }
 0x985   : > { %16692 = vst [vmem:[#allocation80_spill] sm:$0xff] %v14847_v4 }
 0x986   : > { %v14849_v43 = vpop.f32.mrf.mxu0 }
 0x987   : > { %16693 = vst [vmem:[#allocation81_spill] sm:$0xff] %v14849_v43 }
 0x988   : > { %v14851_v19 = vpop.f32.mrf.mxu0 }
 0x98a   : > { %v14858_v47 = vpop.f32.mrf.mxu0 }
 0x98c   : > { %v14883_v13 = vpop.f32.mrf.mxu0 }
 0x98d   : > { %16696 = vst [vmem:[#allocation46_spill] sm:$0xff] %v14883_v13  ;;  %v14934_v13 = vld [vmem:[%s16185_s11 + $0x1a8] sm:$0xff] }
 0x98e   : > { %v14898_v6 = vpop.f32.mrf.mxu0  ;;  %16705 = vst [vmem:[#allocation19_spill] sm:$0xff] %v14934_v13  ;;  %8797 = vmatprep.subr.mxu0 %v14934_v13 }
 0x98f   : > { %8798 = vmatpush3.msra.mxu0 %v14942_v54 }
 0x990   : > { %v14906_v21 = vpop.f32.mrf.mxu0 }
 0x991   : > { %16700 = vst [vmem:[#allocation85_spill] sm:$0xff] %v14906_v21  ;;  %v10558_v31 = vpack.i.bf16 %v14847_v4, %v14906_v21  ;;  %v14980_v21 = vld [vmem:[%s16185_s11 + $0x190] sm:$0xff] }
 0x992   : > { %v14920_v25 = vpop.f32.mrf.mxu0  ;;  %16712 = vst [vmem:[#allocation51_spill] sm:$0xff] %v14980_v21 }
 0x993   : > { %16703 = vst [vmem:[#allocation39_spill] sm:$0xff] %v14920_v25  ;;  %v10548_v50 = vpack.i.bf16 %v14849_v43, %v14920_v25  ;;  %v14949_v25 = vld [vmem:[%s16185_s11 + $0x1a0] sm:$0xff] }
 0x994   : > { %v14936_v14 = vpop.f32.mrf.mxu0  ;;  %16707 = vst [vmem:[#allocation28_spill] sm:$0xff] %v14949_v25  ;;  %8799 = vmatprep.subr.mxu0 %v14949_v25 }
 0x995   : > { %10549 = vrot.lane.b32.xlu1 %v10548_v50, %s16496_s28  ;;  %8800 = vmatpush3.msra.mxu0 %v14957_v46  ;;  %v14965_v50 = vld [vmem:[%s16185_s11 + $0x198] sm:$0xff] }
 0x996   : > { %v14951_v43 = vpop.f32.mrf.mxu0  ;;  %16709 = vst [vmem:[#allocation29_spill] sm:$0xff] %v14965_v50  ;;  %8801 = vmatprep.subr.mxu0 %v14965_v50 }
 0x997   : > { %8802 = vmatpush3.msra.mxu0 %v14973_v32  ;;  %v10568_v15 = vpack.i.bf16 %v14858_v47, %v14951_v43 }
 0x998   : > { %v14967_v1 = vpop.f32.mrf.mxu0  ;;  %8803 = vmatprep.subr.mxu0 %v14980_v21  ;;  %v15004_v21 = vld [vmem:[%s16185_s11 + $0x108] sm:$0xff] }
 0x999   : > { %16710 = vst [vmem:[#allocation50_spill] sm:$0xff] %v14967_v1  ;;  %10559 = vrot.lane.b32.xlu1 %v10558_v31, %s16496_s28  ;;  %8804 = vmatpush3.msra.mxu0 %v14988_v17  ;;  %v14996_v31 = vld [vmem:[%s16185_s11 + $0x188] sm:$0xff]  ;;  %16717 = vst [vmem:[#allocation53_spill] sm:$0xff] %v15004_v21  ;;  %v15011_v17 = vld [vmem:[%s16185_s11 + $0x180] sm:$0xff] }
 0x99a   : > { %v14982_v4 = vpop.f32.mrf.mxu0  ;;  %16715 = vst [vmem:[#allocation32_spill] sm:$0xff] %v14996_v31  ;;  %8805 = vmatprep.subr.mxu0 %v14996_v31  ;;  %16718 = vst [vmem:[#allocation17_spill] sm:$0xff] %v15011_v17  ;;  %v15019_v31 = vld [vmem:[%s16185_s11 + $0x100] sm:$0xff] }
 0x99b   : > { %16713 = vst [vmem:[#allocation31_spill] sm:$0xff] %v14982_v4  ;;  %8806 = vmatpush3.msra.mxu0 %v15004_v21  ;;  %16720 = vst [vmem:[#allocation70_spill] sm:$0xff] %v15019_v31 }
 0x99c   : > { %v14998_v49 = vpop.f32.mrf.mxu0  ;;  %8807 = vmatprep.subr.mxu0 %v15011_v17 }
 0x99d   : > { %16716 = vst [vmem:[#allocation33_spill] sm:$0xff] %v14998_v49  ;;  %10569 = vrot.lane.b32.xlu1 %v10568_v15, %s16496_s28  ;;  %8808 = vmatpush3.msra.mxu0 %v15019_v31 }
 0x99e   : > { %v15013_v55 = vpop.f32.mrf.mxu0  ;;  %8825 = vmatprep.subr.mxu0 %v14419_v42 }
 0x99f   : > { %16719 = vst [vmem:[#allocation69_spill] sm:$0xff] %v15013_v55  ;;  %v10578_v32 = vpack.i.bf16 %v15013_v55, %v14851_v19 }
 0x9a0   : > { %v15024_v15 = vpop.f32.mrf.mxu0 }
 0x9a1   : > { %10579 = vrot.lane.b32.xlu1 %v10578_v32, %s16496_s28 }
 0x9a2   : > { %v15028_v21 = vpop.f32.mrf.mxu0 }
 0x9a4   : > { %v15030_v51 = vpop.f32.mrf.mxu0 }
 0x9a5   : > { %16721 = vst [vmem:[#allocation72_spill] sm:$0xff] %v15030_v51  ;;  %6706 = vrot.lane.b32.xlu1 %v15028_v21, %s16496_s28  ;;  %v10563_v32 = vpack.i.bf16 %v14967_v1, %v15030_v51 }
 0x9a6   : > { %v15034_v17 = vpop.f32.mrf.mxu0 }
 0x9a7   : > { %v10553_v55 = vpack.i.bf16 %v14982_v4, %v15034_v17 }
 0x9a8   : > { %v15038_v50 = vpop.f32.mrf.mxu0 }
 0x9a9   : > { %16722 = vst [vmem:[#allocation77_spill] sm:$0xff] %v15038_v50  ;;  %6708 = vrot.lane.b32.xlu1 %v15024_v15, %s16496_s28  ;;  %10554 = vrot.lane.b32.xlu0 %v10553_v55, %s16496_s28  ;;  %v10583_v55 = vpack.i.bf16 %v14998_v49, %v15038_v50 }
 0x9aa   : > { %v15043_v42 = vpop.f32.mrf.mxu0 }
 0x9ab   : > { %16723 = vst [vmem:[#allocation82_spill] sm:$0xff] %v15043_v42  ;;  %v10573_v4 = vpack.i.bf16 %v15043_v42, %v14936_v14 }
 0x9ac   : > { %v15047_v31 = vpop.f32.mrf.mxu0 }
 0x9ad   : > { %10564 = vrot.lane.b32.xlu0 %v10563_v32, %s16496_s28 }
 0x9ae   : > { %v15050_v56 = vpop.f32.mrf.mxu0 }
 0x9b0   : > { %v15054_v46 = vpop.f32.mrf.mxu0 }
 0x9b1   : > { %16724 = vst [vmem:[#allocation54_spill] sm:$0xff] %v15054_v46  ;;  %10574 = vrot.lane.b32.xlu0 %v10573_v4, %s16496_s28 }
 0x9b2   : > { %v15057_v26 = vpop.f32.mrf.mxu0 }
 0x9b3   : > { %16725 = vst [vmem:[#allocation64_spill] sm:$0xff] %v15057_v26 }
 0x9b4   : > { %v15061_v25 = vpop.f32.mrf.mxu0 }
 0x9b5   : > { %16726 = vst [vmem:[#allocation55_spill] sm:$0xff] %v15061_v25  ;;  %10584 = vrot.lane.b32.xlu0 %v10583_v55, %s16496_s28 }
 0x9b6   : > { %v15064_v1 = vpop.f32.mrf.mxu0 }
 0x9b7   : > { %16727 = vst [vmem:[#allocation10_spill] sm:$0xff] %v15064_v1 }
 0x9b8   : > { %v15066_v32 = vpop.f32.mrf.mxu0 }
 0x9b9   : > { %16728 = vst [vmem:[#allocation66_spill] sm:$0xff] %v15066_v32  ;;  %6714 = vrot.lane.b32.xlu0 %v15064_v1, %s16496_s28  ;;  %v10593_v46 = vpack.i.bf16 %v15047_v31, %v15066_v32  ;;  %v15087_v32 = vld [vmem:[%s16185_s11 + $0x230] sm:$0xff] }
 0x9ba   : > { %v15070_v51 = vpop.f32.mrf.mxu0 }
 0x9bb   : > { %16729 = vst [vmem:[#allocation56_spill] sm:$0xff] %v15070_v51  ;;  %v10588_v4 = vpack.i.bf16 %v15050_v56, %v15070_v51 }
 0x9bd   : > { %6716 = vrot.lane.b32.xlu0 %v15061_v25, %s16496_s28  ;;  %10589 = vrot.lane.b32.xlu1 %v10588_v4, %s16496_s28 }
 0x9c1   : > { %10594 = vrot.lane.b32.xlu0 %v10593_v46, %s16496_s28  ;;  %v15093_v46 = vld [vmem:[%s16185_s11 + $0x228] sm:$0xff] }
 0xa07   : > { %v10550_v55 = vpop.permute.xlu1 %10549 }
 0xa08   : > { %v10552_v49 = vunpack.i.h.bf16 %v10550_v55  ;;  %v10551_v26 = vunpack.i.l.bf16 %v10550_v55 }
 0xa0a   : > { %v6113_v1 = vsel %vm2378_vm3, %v14845_v30, %v10552_v49  ;;  %v6115_v53 = vsel %vm2378_vm3, %v14858_v47, %v10551_v26  ;;  %v15113_v49 = vld [vmem:[%s16185_s11 + $0x218] sm:$0xff]  ;;  %v15134_v30 = vld [vmem:[%s16185_s11 + $0x200] sm:$0xff] }
 0xa0b   : > { %v10560_v51 = vpop.permute.xlu1 %10559  ;;  %6270 = vmatprep.mubr.f32.mxu1 %v6115_v53 }
 0xa0c   : > { %v10562_v25 = vunpack.i.h.bf16 %v10560_v51  ;;  %v10561_v4 = vunpack.i.l.bf16 %v10560_v51  ;;  %6271 = vmatmul.mubr.f32.vlgmr.msra.gmra.mxu1 %v6113_v1  ;;  %v15104_v51 = vld [vmem:[%s16185_s11 + $0x220] sm:$0xff]  ;;  %v15120_v1 = vld [vmem:[%s16185_s11 + $0x210] sm:$0xff] }
 0xa0d   : > { %9695 = vmatpush3.msra.mxu1 %v14881_v35 }
 0xa0e   : > { %9696 = vmatprep.subr.mxu1 %v15087_v32  ;;  %v6116_v53 = vsel %vm2378_vm3, %v14851_v19, %v10561_v4  ;;  %v6114_v26 = vsel %vm2378_vm3, %v14843_v60, %v10562_v25  ;;  %v15127_v60 = vld [vmem:[%s16185_s11 + $0x208] sm:$0xff] }
 0xa0f   : > { %9697 = vmatpush3.msra.mxu1 %v15087_v32  ;;  %6275 = vmatprep.mubr.f32.mxu1 %v6116_v53  ;;  %v15157_v53 = vpop.permute.xlu1 %10569 }
 0xa10   : > { %9698 = vmatprep.subr.mxu1 %v15093_v46  ;;  %6276 = vmatmul.mubr.f32.gmra.mxu1 %v6114_v26 }
 0xa11   : > { %9699 = vmatpush3.msra.mxu1 %v15093_v46  ;;  %9710 = vmatprep.mubr.msk.f32.mxu1 %vm2378_vm3, %v15043_v42 }
 0xa12   : > { %9700 = vmatprep.subr.mxu1 %v15104_v51 }
 0xa13   : > { %9701 = vmatpush3.msra.mxu1 %v15104_v51 }
 0xa14   : > { %9702 = vmatprep.subr.mxu1 %v15113_v49 }
 0xa15   : > { %9703 = vmatpush3.msra.mxu1 %v15113_v49 }
 0xa16   : > { %9704 = vmatprep.subr.mxu1 %v15120_v1 }
 0xa17   : > { %9705 = vmatpush3.msra.mxu1 %v15120_v1 }
 0xa18   : > { %9706 = vmatprep.subr.mxu1 %v15127_v60 }
 0xa19   : > { %9707 = vmatpush3.msra.mxu1 %v15127_v60 }
 0xa1a   : > { %9708 = vmatprep.subr.mxu1 %v15134_v30 }
 0xa1b   : > { %9709 = vmatpush3.msra.mxu1 %v15134_v30  ;;  %v15140_v19 = vpop.permute.xlu0 %10554 }
 0xa1c   : > { %16730 = vst [vmem:[#allocation65_spill] sm:$0xff] %v15140_v19  ;;  %8863 = vmatprep.subr.mxu1 %v14772_v5  ;;  %v10557_v47 = vunpack.i.h.bf16 %v15140_v19  ;;  %v16387_v25 = vunpack.i.l.bf16 %v15140_v19  ;;  %9711 = vmatmul.mubr.msk.f32.vlgmr.msra.gmra.mxu1 %vm2378_vm3, %v15038_v50  ;;  %v16748_v19 = vld [vmem:[#allocation32_spill] sm:$0xff] }
 0xa1d   : > { %8864 = vmatpush3.msra.mxu1 %v14777_v52 }
 0xa1e   : > { %v15150_v55 = vsel %vm2378_vm3, %v14951_v43, %v10557_v47  ;;  %8865 = vmatprep.subr.mxu1 %v14782_v12  ;;  %v6119_v4 = vsel %vm2378_vm3, %v15028_v21, %v16387_v25  ;;  %v16388_v43 = vunpack.i.l.bf16 %v15157_v53  ;;  %v16744_v25 = vld [vmem:[#allocation51_spill] sm:$0xff] }
 0xa1f   : > { %16731 = vst [vmem:[#allocation67_spill] sm:$0xff] %v15150_v55  ;;  %8866 = vmatpush3.msra.mxu1 %v14789_v23  ;;  %v15160_v26 = vpop.permute.xlu0 %10564  ;;  %6345 = vmatprep.mubr.f32.mxu0 %v6119_v4  ;;  %v16740_v4 = vld [vmem:[#allocation29_spill] sm:$0xff] }
 0xa20   : > { %16732 = vst [vmem:[#allocation57_spill] sm:$0xff] %v15160_v26  ;;  %v10567_v50 = vunpack.i.h.bf16 %v15160_v26  ;;  %v16386_v42 = vunpack.i.l.bf16 %v15160_v26  ;;  %8867 = vmatprep.subr.mxu1 %v14796_v58  ;;  %6346 = vmatmul.mubr.f32.vlgmr.msra.gmra.mxu0 %v15150_v55  ;;  %v16746_v26 = vld [vmem:[#allocation52_spill] sm:$0xff]  ;;  %v16747_v55 = vld [vmem:[#allocation73_spill] sm:$0xff] }
 0xa21   : > { %8826 = vmatpush3.msra.mxu0 %v14424_v39  ;;  %8868 = vmatpush3.msra.mxu1 %v14802_v44 }
 0xa22   : > { %8827 = vmatprep.subr.mxu0 %v14429_v61  ;;  %8869 = vmatprep.subr.mxu1 %v14808_v18  ;;  %v6120_v21 = vsel %vm2378_vm3, %v15024_v15, %v16386_v42  ;;  %v15177_v47 = vsel %vm2378_vm3, %v14936_v14, %v10567_v50  ;;  %v16737_v14 = vld [vmem:[#allocation13_spill] sm:$0xff]  ;;  %v10580_v50 = vpop.permute.xlu1 %10579  ;;  %v16739_v15 = vld [vmem:[#allocation23_spill] sm:$0xff] }
 0xa23   : > { %16733 = vst [vmem:[#allocation11_spill] sm:$0xff] %v15177_v47  ;;  %8828 = vmatpush3.msra.mxu0 %v14435_v45  ;;  %8870 = vmatpush3.msra.mxu1 %v14814_v22  ;;  %v15181_v39 = vpop.permute.xlu0 %10574  ;;  %v6465_v45 = vsel %vm2378_vm3, %v14898_v6, %v16388_v43  ;;  %v16738_v6 = vld [vmem:[#allocation49_spill] sm:$0xff]  ;;  %v10582_v43 = vunpack.i.h.bf16 %v10580_v50 }
 0xa24   : > { %6350 = vmatprep.mubr.f32.mxu0 %v6120_v21  ;;  %8829 = vmatprep.subr.mxu0 %v14441_v9  ;;  %v10577_v61 = vunpack.i.h.bf16 %v15181_v39  ;;  %v16741_v21 = vld [vmem:[#allocation24_spill] sm:$0xff]  ;;  %v16743_v42 = vld [vmem:[#allocation25_spill] sm:$0xff] }
 0xa25   : > { %8871 = vmatprep.subr.mxu1 %v14820_v8  ;;  %6351 = vmatmul.mubr.f32.gmra.mxu0 %v15177_v47  ;;  %v16745_v47 = vld [vmem:[#allocation71_spill] sm:$0xff] }
 0xa26   : > { %8830 = vmatpush3.msra.mxu0 %v14447_v41  ;;  %8872 = vmatpush3.msra.mxu1 %v14826_v38  ;;  %v15196_v9 = vsel %vm2378_vm3, %v15034_v17, %v10577_v61  ;;  %v16735_v41 = vld [vmem:[#allocation22_spill] sm:$0xff]  ;;  %v16736_v17 = vld [vmem:[#allocation28_spill] sm:$0xff] }
 0xa27   : > { %8831 = vmatprep.subr.mxu0 %v14499_v3  ;;  %6541 = vmatprep.mubr.f32.mxu0 %v6465_v45  ;;  %16734 = vst [vmem:[#allocation41_spill] sm:$0xff] %v15196_v9  ;;  %v16742_v61 = vld [vmem:[#allocation30_spill] sm:$0xff]  ;;  %v10585_v45 = vpop.permute.xlu0 %10584 }
 0xa28   : > { %8873 = vmatprep.subr.mxu1 %v14832_v57  ;;  %8832 = vmatpush3.msra.mxu0 %v14505_v40 }
 0xa29   : > { %8874 = vmatpush3.msra.mxu1 %v14838_v28  ;;  %8833 = vmatprep.subr.mxu0 %v14511_v62 }
 0xa2a   : > { %8875 = vmatprep.subr.mxu1 %v14863_v29  ;;  %6616 = vmatprep.mubr.f32.mxu1 %v15196_v9  ;;  %v10586_v9 = vunpack.i.l.bf16 %v10585_v45 }
 0xa2b   : > { %8834 = vmatpush3.msra.mxu0 %v14516_v48  ;;  %8876 = vmatpush3.msra.mxu1 %v14869_v34 }
 0xa2c   : > { %8835 = vmatprep.subr.mxu0 %v14527_v37  ;;  %8877 = vmatprep.subr.mxu1 %v14890_v20  ;;  %v10581_v20 = vunpack.i.l.bf16 %v10580_v50 }
 0xa2d   : > { %8836 = vmatpush3.msra.mxu0 %v14532_v2  ;;  %8878 = vmatpush3.msra.mxu1 %v14896_v7 }
 0xa2e   : > { %8837 = vmatprep.subr.mxu0 %v14539_v24  ;;  %8879 = vmatprep.subr.mxu1 %v14904_v0  ;;  %v15278_v0 = vld [vmem:[%s16185_s11 + $0x70] sm:$0xff] }
 0xa2f   : > { %8838 = vmatpush3.msra.mxu0 %v14544_v27  ;;  %8880 = vmatpush3.msra.mxu1 %v14912_v33  ;;  %v16759_v33 = vld [vmem:[#allocation72_spill] sm:$0xff]  ;;  %16766 = vst [vmem:[#allocation60_spill] sm:$0xff] %v15278_v0 }
 0xa30   : > { %8839 = vmatprep.subr.mxu0 %v14551_v59  ;;  %8881 = vmatprep.subr.mxu1 %v14918_v36  ;;  %v10587_v36 = vunpack.i.h.bf16 %v10585_v45  ;;  %v16762_v45 = vld [vmem:[#allocation83_spill] sm:$0xff] }
 0xa31   : > { %8840 = vmatpush3.msra.mxu0 %v14556_v63  ;;  %8882 = vmatpush3.msra.mxu1 %v14926_v16  ;;  %v10572_v16 = vunpack.i.h.bf16 %v15157_v53 }
 0xa32   : > { %8841 = vmatprep.subr.mxu0 %v14561_v11  ;;  %8883 = vmatprep.subr.mxu1 %v14934_v13  ;;  %v16755_v13 = vld [vmem:[#allocation31_spill] sm:$0xff] }
 0xa33   : > { %8842 = vmatpush3.msra.mxu0 %v14567_v10  ;;  %8884 = vmatpush3.msra.mxu1 %v14942_v54  ;;  %v16753_v54 = vld [vmem:[#allocation76_spill] sm:$0xff] }
 0xa34   : > { %8843 = vmatprep.subr.mxu0 %v16735_v41  ;;  %8885 = vmatprep.subr.mxu1 %v16736_v17  ;;  %v16752_v17 = vld [vmem:[#allocation17_spill] sm:$0xff] }
 0xa35   : > { %8844 = vmatpush3.msra.mxu0 %v16737_v14  ;;  %8886 = vmatpush3.msra.mxu1 %v16738_v6  ;;  %v16750_v6 = vld [vmem:[#allocation53_spill] sm:$0xff] }
 0xa36   : > { %8845 = vmatprep.subr.mxu0 %v16739_v15  ;;  %8887 = vmatprep.subr.mxu1 %v16740_v4  ;;  %v16749_v4 = vld [vmem:[#allocation74_spill] sm:$0xff] }
 0xa37   : > { %8846 = vmatpush3.msra.mxu0 %v16741_v21  ;;  %8888 = vmatpush3.msra.mxu1 %v16742_v61  ;;  %v16751_v61 = vld [vmem:[#allocation75_spill] sm:$0xff] }
 0xa38   : > { %8847 = vmatprep.subr.mxu0 %v16743_v42  ;;  %8889 = vmatprep.subr.mxu1 %v16744_v25  ;;  %v16754_v25 = vld [vmem:[#allocation70_spill] sm:$0xff] }
 0xa39   : > { %8848 = vmatpush3.msra.mxu0 %v16745_v47  ;;  %8890 = vmatpush3.msra.mxu1 %v16746_v26  ;;  %v6467_v26 = vsel %vm2378_vm3, %v16755_v13, %v10582_v43  ;;  %v6707_v43 = vpop.permute.xlu1 %6706 }
 0xa3a   : > { %8849 = vmatprep.subr.mxu0 %v16747_v55  ;;  %8891 = vmatprep.subr.mxu1 %v16748_v19  ;;  %v16756_v19 = vld [vmem:[#allocation78_spill] sm:$0xff] }
 0xa3b   : > { %8850 = vmatpush3.msra.mxu0 %v16749_v4  ;;  %8892 = vmatpush3.msra.mxu1 %v16750_v6  ;;  %v15249_v6 = vld [vmem:[%s16185_s11 + $0xf8] sm:$0xff] }
 0xa3c   : > { %8851 = vmatprep.subr.mxu0 %v16751_v61  ;;  %8893 = vmatprep.subr.mxu1 %v16752_v17  ;;  %16757 = vst [vmem:[#allocation58_spill] sm:$0xff] %v15249_v6  ;;  %v16758_v17 = vld [vmem:[#allocation79_spill] sm:$0xff] }
 0xa3d   : > { %8852 = vmatpush3.msra.mxu0 %v16753_v54  ;;  %8894 = vmatpush3.msra.mxu1 %v16754_v25  ;;  %v15255_v25 = vsel %vm2378_vm3, %v16759_v33, %v10586_v9  ;;  %v16764_v33 = vld [vmem:[#allocation81_spill] sm:$0xff] }
 0xa3e   : > { %8853 = vmatprep.subr.mxu0 %v16756_v19  ;;  %6617 = vmatmul.mubr.f32.vlgmr.msra.gmra.mxu1 %v6467_v26  ;;  %16760 = vst [vmem:[#allocation12_spill] sm:$0xff] %v15255_v25  ;;  %v15262_v26 = vld [vmem:[%s16185_s11 + $0x78] sm:$0xff]  ;;  %v6463_v9 = vsel %vm2378_vm3, %v16764_v33, %v10572_v16  ;;  %v15287_v16 = vld [vmem:[%s16185_s11 + $0xe8] sm:$0xff]  ;;  %v16768_v33 = vunpack.i.l.bf16 %v15181_v39 }
 0xa3f   : > { %8911 = vmatprep.subr.mxu1 %v15249_v6  ;;  %8854 = vmatpush3.msra.mxu0 %v16758_v17  ;;  %16761 = vst [vmem:[#allocation68_spill] sm:$0xff] %v15262_v26  ;;  %v15269_v6 = vld [vmem:[%s16185_s11 + $0xf0] sm:$0xff] }
 0xa40   : > { %6621 = vmatprep.mubr.f32.mxu1 %v15255_v25  ;;  %8912 = vmatpush3.msra.mxu1 %v15262_v26  ;;  %16763 = vst [vmem:[#allocation59_spill] sm:$0xff] %v15269_v6  ;;  %v16765_v25 = vld [vmem:[#allocation84_spill] sm:$0xff]  ;;  %v16767_v26 = vld [vmem:[#allocation50_spill] sm:$0xff]  ;;  %v16782_v39 = vld [vmem:[#allocation27_spill] sm:$0xff] }
 0xa41   : > { %8855 = vmatprep.subr.mxu0 %v16762_v45  ;;  %8913 = vmatprep.subr.mxu1 %v15269_v6  ;;  %v6468_v7 = vsel %vm2378_vm3, %v16767_v26, %v10587_v36  ;;  %v16769_v6 = vld [vmem:[#allocation46_spill] sm:$0xff] }
 0xa42   : > { %8856 = vmatpush3.msra.mxu0 %v16765_v25  ;;  %8914 = vmatpush3.msra.mxu1 %v15278_v0  ;;  %v6466_v0 = vsel %vm2378_vm3, %v16769_v6, %v16768_v33  ;;  %v15300_v36 = vld [vmem:[%s16185_s11 + $0x68] sm:$0xff] }
 0xa43   : > { %6542 = vmatmul.mubr.f32.vlgmr.msra.gmra.mxu0 %v6463_v9  ;;  %6622 = vmatmul.mubr.f32.gmra.mxu1 %v6468_v7  ;;  %v6722_v7 = vsel %vm2378_vm3, %v16755_v13, %v6707_v43  ;;  %v16778_v13 = vld [vmem:[#allocation38_spill] sm:$0xff]  ;;  %v16787_v43 = vld [vmem:[#allocation29_spill] sm:$0xff] }
 0xa44   : > { %9713 = vmatprep.subr.mxu0 %v14881_v35  ;;  %8915 = vmatprep.subr.mxu1 %v15287_v16  ;;  %v16788_v9 = vld [vmem:[#allocation30_spill] sm:$0xff] }
 0xa45   : > { %6546 = vmatprep.mubr.f32.mxu0 %v6466_v0  ;;  %9714 = vmatpush3.msra.mxu0 %v14881_v35  ;;  %v16770_v0 = vld [vmem:[#allocation80_spill] sm:$0xff] }
 0xa46   : > { %8916 = vmatpush3.msra.mxu1 %v15300_v36  ;;  %6796 = vmatprep.mubr.f32.mxu1 %v6722_v7  ;;  %v6464_v6 = vsel %vm2378_vm3, %v16770_v0, %v10581_v20  ;;  %v16779_v20 = vld [vmem:[#allocation47_spill] sm:$0xff]  ;;  %v16790_v7 = vld [vmem:[#allocation52_spill] sm:$0xff] }
 0xa47   : > { %9715 = vmatprep.subr.mxu0 %v15087_v32  ;;  %8917 = vmatprep.subr.mxu1 %v14499_v3  ;;  %v6715_v3 = vpop.permute.xlu0 %6714  ;;  %v16791_v0 = vld [vmem:[#allocation32_spill] sm:$0xff] }
 0xa48   : > { %9716 = vmatpush3.msra.mxu0 %v15087_v32  ;;  %8918 = vmatpush3.msra.mxu1 %v14505_v40  ;;  %v16771_v40 = vld [vmem:[#allocation64_spill] sm:$0xff] }
 0xa49   : > { %6547 = vmatmul.mubr.f32.gmra.mxu0 %v6464_v6  ;;  %9717 = vmatprep.subr.mxu0 %v15093_v46  ;;  %v16792_v6 = vld [vmem:[#allocation66_spill] sm:$0xff] }
 0xa4a   : > { %8919 = vmatprep.subr.mxu1 %v14511_v62  ;;  %9718 = vmatpush3.msra.mxu0 %v15093_v46  ;;  %v6724_v62 = vsel %vm2378_vm3, %v16771_v40, %v6715_v3  ;;  %v16793_v3 = vld [vmem:[#allocation53_spill] sm:$0xff]  ;;  %v16794_v40 = vld [vmem:[#allocation10_spill] sm:$0xff] }
 0xa4b   : > { %9729 = vmatprep.mubr.msk.f32.mxu0 %vm2378_vm3, %v15050_v56  ;;  %8920 = vmatpush3.msra.mxu1 %v14516_v48  ;;  %v6709_v48 = vpop.permute.xlu1 %6708 }
 0xa4c   : > { %9719 = vmatprep.subr.mxu0 %v15104_v51  ;;  %8921 = vmatprep.subr.mxu1 %v14527_v37  ;;  %v16772_v37 = vunpack.i.l.bf16 %v15157_v53  ;;  %v16781_v53 = vld [vmem:[#allocation34_spill] sm:$0xff] }
 0xa4d   : > { %9720 = vmatpush3.msra.mxu0 %v15104_v51  ;;  %8922 = vmatpush3.msra.mxu1 %v14532_v2  ;;  %v16773_v2 = vld [vmem:[#allocation39_spill] sm:$0xff] }
 0xa4e   : > { %9721 = vmatprep.subr.mxu0 %v15113_v49  ;;  %8923 = vmatprep.subr.mxu1 %v14539_v24  ;;  %v6720_v24 = vsel %vm2378_vm3, %v16773_v2, %v16772_v37  ;;  %v16795_v37 = vld [vmem:[#allocation17_spill] sm:$0xff]  ;;  %v16796_v2 = vld [vmem:[#allocation70_spill] sm:$0xff] }
 0xa4f   : > { %9722 = vmatpush3.msra.mxu0 %v15113_v49  ;;  %8924 = vmatpush3.msra.mxu1 %v14544_v27  ;;  %v6723_v27 = vsel %vm2378_vm3, %v16767_v26, %v6709_v48  ;;  %v15395_v50 = vpop.permute.xlu1 %10589  ;;  %v6717_v48 = vpop.permute.xlu0 %6716 }
 0xa50   : > { %9723 = vmatprep.subr.mxu0 %v15120_v1  ;;  %8925 = vmatprep.subr.mxu1 %v14551_v59  ;;  %v16774_v59 = vld [vmem:[#allocation18_spill] sm:$0xff]  ;;  %v10591_v26 = vunpack.i.l.bf16 %v15395_v50 }
 0xa51   : > { %9724 = vmatpush3.msra.mxu0 %v15120_v1  ;;  %8926 = vmatpush3.msra.mxu1 %v14556_v63  ;;  %v16775_v63 = vld [vmem:[#allocation26_spill] sm:$0xff] }
 0xa52   : > { %9725 = vmatprep.subr.mxu0 %v15127_v60  ;;  %8927 = vmatprep.subr.mxu1 %v14561_v11  ;;  %v16776_v11 = vmov %v16768_v33  ;;  %v16789_v33 = vld [vmem:[#allocation51_spill] sm:$0xff] }
 0xa53   : > { %9726 = vmatpush3.msra.mxu0 %v15127_v60  ;;  %8928 = vmatpush3.msra.mxu1 %v14567_v10  ;;  %v16777_v10 = vld [vmem:[#allocation85_spill] sm:$0xff] }
 0xa54   : > { %9727 = vmatprep.subr.mxu0 %v15134_v30  ;;  %8929 = vmatprep.subr.mxu1 %v16735_v41  ;;  %v6721_v56 = vsel %vm2378_vm3, %v16777_v10, %v16776_v11  ;;  %v16783_v41 = vld [vmem:[#allocation19_spill] sm:$0xff] }
 0xa55   : > { %9728 = vmatpush3.msra.mxu0 %v15134_v30  ;;  %8930 = vmatpush3.msra.mxu1 %v16737_v14  ;;  %v16784_v14 = vld [vmem:[#allocation48_spill] sm:$0xff]  ;;  %v16801_v10 = vld [vmem:[#allocation59_spill] sm:$0xff] }
 0xa56   : > { %9730 = vmatmul.mubr.msk.f32.vlgmr.msra.gmra.mxu0 %vm2378_vm3, %v15047_v31  ;;  %8931 = vmatprep.subr.mxu1 %v16739_v15  ;;  %v16780_v31 = vld [vmem:[#allocation56_spill] sm:$0xff] }
 0xa57   : > { %8949 = vmatprep.subr.mxu0 %v14772_v5  ;;  %8932 = vmatpush3.msra.mxu1 %v16741_v21  ;;  %v16785_v15 = vld [vmem:[#allocation28_spill] sm:$0xff]  ;;  %v16786_v21 = vld [vmem:[#allocation49_spill] sm:$0xff] }
 0xa58   : > { %8950 = vmatpush3.msra.mxu0 %v14777_v52  ;;  %6871 = vmatprep.mubr.f32.mxu0 %v6724_v62  ;;  %v6975_v62 = vsel %vm2378_vm3, %v16794_v40, %v10591_v26  ;;  %v16811_v26 = vld [vmem:[#allocation57_spill] sm:$0xff] }
 0xa59   : > { %8933 = vmatprep.subr.mxu1 %v16743_v42  ;;  %8951 = vmatprep.subr.mxu0 %v14782_v12 }
 0xa5a   : > { %8934 = vmatpush3.msra.mxu1 %v16745_v47  ;;  %8952 = vmatpush3.msra.mxu0 %v14789_v23 }
 0xa5b   : > { %8935 = vmatprep.subr.mxu1 %v16747_v55  ;;  %8953 = vmatprep.subr.mxu0 %v14796_v58 }
 0xa5c   : > { %8936 = vmatpush3.msra.mxu1 %v16749_v4  ;;  %8954 = vmatpush3.msra.mxu0 %v14802_v44 }
 0xa5d   : > { %8937 = vmatprep.subr.mxu1 %v16751_v61  ;;  %8955 = vmatprep.subr.mxu0 %v14808_v18 }
 0xa5e   : > { %8938 = vmatpush3.msra.mxu1 %v16753_v54  ;;  %8956 = vmatpush3.msra.mxu0 %v14814_v22 }
 0xa5f   : > { %8939 = vmatprep.subr.mxu1 %v16756_v19  ;;  %8957 = vmatprep.subr.mxu0 %v14820_v8 }
 0xa60   : > { %8940 = vmatpush3.msra.mxu1 %v16758_v17  ;;  %8958 = vmatpush3.msra.mxu0 %v14826_v38 }
 0xa61   : > { %8941 = vmatprep.subr.mxu1 %v16762_v45  ;;  %8959 = vmatprep.subr.mxu0 %v14832_v57 }
 0xa62   : > { %8942 = vmatpush3.msra.mxu1 %v16765_v25  ;;  %8960 = vmatpush3.msra.mxu0 %v14838_v28 }
 0xa63   : > { %6797 = vmatmul.mubr.f32.vlgmr.msra.gmra.mxu1 %v6720_v24  ;;  %8961 = vmatprep.subr.mxu0 %v14863_v29  ;;  %v16797_v24 = vld [vmem:[#allocation41_spill] sm:$0xff] }
 0xa64   : > { %9732 = vmatprep.subr.mxu1 %v14881_v35  ;;  %6801 = vmatprep.mubr.f32.mxu1 %v6723_v27  ;;  %v16799_v27 = vld [vmem:[#allocation54_spill] sm:$0xff] }
 0xa65   : > { %8962 = vmatpush3.msra.mxu0 %v14869_v34  ;;  %9733 = vmatpush3.msra.mxu1 %v14881_v35  ;;  %v6725_v11 = vsel %vm2378_vm3, %v16799_v27, %v6717_v48 }
 0xa66   : > { %8963 = vmatprep.subr.mxu0 %v16774_v59  ;;  %9734 = vmatprep.subr.mxu1 %v15087_v32 }
 0xa67   : > { %8964 = vmatpush3.msra.mxu0 %v16775_v63  ;;  %9735 = vmatpush3.msra.mxu1 %v15087_v32 }
 0xa68   : > { %6802 = vmatmul.mubr.f32.gmra.mxu1 %v6721_v56  ;;  %8965 = vmatprep.subr.mxu0 %v16778_v13 }
 0xa69   : > { %9736 = vmatprep.subr.mxu1 %v15093_v46  ;;  %8966 = vmatpush3.msra.mxu0 %v16779_v20 }
 0xa6a   : > { %9737 = vmatpush3.msra.mxu1 %v15093_v46  ;;  %9748 = vmatprep.mubr.msk.f32.mxu1 %vm2378_vm3, %v16780_v31  ;;  %v16806_v31 = vld [vmem:[#allocation69_spill] sm:$0xff] }
 0xa6b   : > { %8967 = vmatprep.subr.mxu0 %v16781_v53  ;;  %9738 = vmatprep.subr.mxu1 %v15104_v51 }
 0xa6c   : > { %8968 = vmatpush3.msra.mxu0 %v16782_v39  ;;  %9739 = vmatpush3.msra.mxu1 %v15104_v51 }
 0xa6d   : > { %8969 = vmatprep.subr.mxu0 %v16783_v41  ;;  %9740 = vmatprep.subr.mxu1 %v15113_v49 }
 0xa6e   : > { %8970 = vmatpush3.msra.mxu0 %v16784_v14  ;;  %9741 = vmatpush3.msra.mxu1 %v15113_v49 }
 0xa6f   : > { %8971 = vmatprep.subr.mxu0 %v16785_v15  ;;  %9742 = vmatprep.subr.mxu1 %v15120_v1 }
 0xa70   : > { %8972 = vmatpush3.msra.mxu0 %v16786_v21  ;;  %9743 = vmatpush3.msra.mxu1 %v15120_v1 }
 0xa71   : > { %8973 = vmatprep.subr.mxu0 %v16787_v43  ;;  %9744 = vmatprep.subr.mxu1 %v15127_v60 }
 0xa72   : > { %8974 = vmatpush3.msra.mxu0 %v16788_v9  ;;  %9745 = vmatpush3.msra.mxu1 %v15127_v60 }
 0xa73   : > { %8975 = vmatprep.subr.mxu0 %v16789_v33  ;;  %9746 = vmatprep.subr.mxu1 %v15134_v30 }
 0xa74   : > { %8976 = vmatpush3.msra.mxu0 %v16790_v7  ;;  %9747 = vmatpush3.msra.mxu1 %v15134_v30 }
 0xa75   : > { %8977 = vmatprep.subr.mxu0 %v16791_v0  ;;  %9749 = vmatmul.mubr.msk.f32.vlgmr.msra.gmra.mxu1 %vm2378_vm3, %v16792_v6 }
 0xa76   : > { %9035 = vmatprep.subr.mxu1 %v14772_v5  ;;  %8978 = vmatpush3.msra.mxu0 %v16793_v3  ;;  %v16798_v5 = vld [vmem:[#allocation58_spill] sm:$0xff] }
 0xa77   : > { %9036 = vmatpush3.msra.mxu1 %v14777_v52  ;;  %7122 = vmatprep.mubr.f32.mxu1 %v6975_v62  ;;  %v16800_v52 = vld [vmem:[#allocation68_spill] sm:$0xff] }
 0xa78   : > { %8979 = vmatprep.subr.mxu0 %v16795_v37  ;;  %9037 = vmatprep.subr.mxu1 %v14782_v12  ;;  %v16802_v12 = vld [vmem:[#allocation60_spill] sm:$0xff] }
 0xa79   : > { %8980 = vmatpush3.msra.mxu0 %v16796_v2  ;;  %9038 = vmatpush3.msra.mxu1 %v14789_v23  ;;  %v16803_v23 = vld [vmem:[#allocation12_spill] sm:$0xff] }
 0xa7a   : > { %6872 = vmatmul.mubr.f32.vlgmr.msra.gmra.mxu0 %v16797_v24  ;;  %8997 = vmatprep.subr.mxu0 %v16798_v5 }
 0xa7b   : > { %9039 = vmatprep.subr.mxu1 %v14796_v58  ;;  %6876 = vmatprep.mubr.f32.mxu0 %v6725_v11  ;;  %v16804_v58 = vld [vmem:[#allocation65_spill] sm:$0xff] }
 0xa7c   : > { %8998 = vmatpush3.msra.mxu0 %v16800_v52  ;;  %9040 = vmatpush3.msra.mxu1 %v14802_v44  ;;  %v16805_v56 = vunpack.i.l.bf16 %v16804_v58  ;;  %v7261_v11 = vld [vmem:[%s16187_s13 + $0xf8] sm:$0xff]  ;;  %v7243_v58 = vld [vmem:[%s16187_s13 + $0x68] sm:$0xff] }
 0xa7d   : > { %8999 = vmatprep.subr.mxu0 %v16801_v10  ;;  %9041 = vmatprep.subr.mxu1 %v14808_v18  ;;  %v10675_v18 = vld [vmem:[%s16185_s11 + $0xe0] sm:$0xff]  ;;  %v7245_v52 = vld [vmem:[%s16187_s13 + $0x78] sm:$0xff]  ;;  %v7260_v10 = vld [vmem:[%s16187_s13 + $0xf0] sm:$0xff] }
 0xa7e   : > { %9000 = vmatpush3.msra.mxu0 %v16802_v12  ;;  %9042 = vmatpush3.msra.mxu1 %v14814_v22  ;;  %v6971_v44 = vsel %vm2378_vm3, %v16806_v31, %v16805_v56  ;;  %v10676_v22 = vld [vmem:[%s16185_s11 + $0x60] sm:$0xff]  ;;  %v7244_v12 = vld [vmem:[%s16187_s13 + $0x70] sm:$0xff] }
 0xa7f   : > { %6877 = vmatmul.mubr.f32.gmra.mxu0 %v16803_v23  ;;  %9001 = vmatprep.subr.mxu0 %v15287_v16  ;;  %v10683_v16 = vld [vmem:[%s16185_s11 + $0xc0] sm:$0xff]  ;;  %v7259_v23 = vld [vmem:[%s16187_s13 + $0xe8] sm:$0xff] }
 0xa80   : > { %9043 = vmatprep.subr.mxu1 %v14820_v8  ;;  %9002 = vmatpush3.msra.mxu0 %v15300_v36  ;;  %v10677_v8 = vld [vmem:[%s16185_s11 + $0xd8] sm:$0xff]  ;;  %v10684_v36 = vld [vmem:[%s16185_s11 + $0x40] sm:$0xff] }
 0xa81   : > { %7047 = vmatprep.mubr.f32.mxu0 %v6971_v44  ;;  %9044 = vmatpush3.msra.mxu1 %v14826_v38  ;;  %v10678_v38 = vld [vmem:[%s16185_s11 + $0x58] sm:$0xff]  ;;  %v7258_v56 = vld [vmem:[%s16187_s13 + $0xe0] sm:$0xff] }
 0xa82   : > { %9003 = vmatprep.subr.mxu0 %v10675_v18  ;;  %9045 = vmatprep.subr.mxu1 %v14832_v57  ;;  %v10679_v57 = vld [vmem:[%s16185_s11 + $0xd0] sm:$0xff]  ;;  %v7242_v31 = vld [vmem:[%s16187_s13 + $0x60] sm:$0xff]  ;;  %v7257_v44 = vld [vmem:[%s16187_s13 + $0xd8] sm:$0xff] }
 0xa83   : > { %9004 = vmatpush3.msra.mxu0 %v10676_v22  ;;  %9046 = vmatpush3.msra.mxu1 %v14838_v28  ;;  %v10680_v28 = vld [vmem:[%s16185_s11 + $0x50] sm:$0xff]  ;;  %v7241_v18 = vld [vmem:[%s16187_s13 + $0x58] sm:$0xff] }
 0xa84   : > { %9005 = vmatprep.subr.mxu0 %v10677_v8  ;;  %9047 = vmatprep.subr.mxu1 %v14863_v29  ;;  %v10681_v29 = vld [vmem:[%s16185_s11 + $0xc8] sm:$0xff]  ;;  %v7256_v22 = vld [vmem:[%s16187_s13 + $0xd0] sm:$0xff] }
 0xa85   : > { %9006 = vmatpush3.msra.mxu0 %v10678_v38  ;;  %9048 = vmatpush3.msra.mxu1 %v14869_v34  ;;  %v10682_v34 = vld [vmem:[%s16185_s11 + $0x48] sm:$0xff]  ;;  %v7240_v8 = vld [vmem:[%s16187_s13 + $0x50] sm:$0xff] }
 0xa86   : > { %9007 = vmatprep.subr.mxu0 %v10679_v57  ;;  %9049 = vmatprep.subr.mxu1 %v16774_v59  ;;  %v10685_v59 = vld [vmem:[%s16185_s11 + $0xb8] sm:$0xff]  ;;  %v7255_v38 = vld [vmem:[%s16187_s13 + $0xc8] sm:$0xff] }
 0xa87   : > { %9008 = vmatpush3.msra.mxu0 %v10680_v28  ;;  %9050 = vmatpush3.msra.mxu1 %v16775_v63  ;;  %v10686_v63 = vld [vmem:[%s16185_s11 + $0x38] sm:$0xff]  ;;  %v7239_v57 = vld [vmem:[%s16187_s13 + $0x48] sm:$0xff]  ;;  %v7254_v28 = vld [vmem:[%s16187_s13 + $0xc0] sm:$0xff] }
 0xa88   : > { %9009 = vmatprep.subr.mxu0 %v10681_v29  ;;  %9051 = vmatprep.subr.mxu1 %v16778_v13  ;;  %v10687_v13 = vld [vmem:[%s16185_s11 + $0xb0] sm:$0xff]  ;;  %v7238_v29 = vld [vmem:[%s16187_s13 + $0x40] sm:$0xff] }
 0xa89   : > { %9010 = vmatpush3.msra.mxu0 %v10682_v34  ;;  %9052 = vmatpush3.msra.mxu1 %v16779_v20  ;;  %v10688_v20 = vld [vmem:[%s16185_s11 + $0x30] sm:$0xff]  ;;  %v7253_v34 = vld [vmem:[%s16187_s13 + $0xb8] sm:$0xff] }
 0xa8a   : > { %9011 = vmatprep.subr.mxu0 %v10683_v16  ;;  %9053 = vmatprep.subr.mxu1 %v16781_v53  ;;  %v10689_v53 = vld [vmem:[%s16185_s11 + $0xa8] sm:$0xff]  ;;  %v7237_v16 = vld [vmem:[%s16187_s13 + $0x38] sm:$0xff] }
 0xa8b   : > { %9012 = vmatpush3.msra.mxu0 %v10684_v36  ;;  %9054 = vmatpush3.msra.mxu1 %v16782_v39  ;;  %v10595_v39 = vpop.permute.xlu0 %10594  ;;  %v7252_v36 = vld [vmem:[%s16187_s13 + $0xb0] sm:$0xff] }
 0xa8c   : > { %9013 = vmatprep.subr.mxu0 %v10685_v59  ;;  %9055 = vmatprep.subr.mxu1 %v16783_v41  ;;  %v10690_v41 = vld [vmem:[%s16185_s11 + $0x28] sm:$0xff]  ;;  %v7236_v59 = vld [vmem:[%s16187_s13 + $0x30] sm:$0xff] }
 0xa8d   : > { %9014 = vmatpush3.msra.mxu0 %v10686_v63  ;;  %9056 = vmatpush3.msra.mxu1 %v16784_v14  ;;  %v10592_v14 = vunpack.i.h.bf16 %v15395_v50  ;;  %v7251_v63 = vld [vmem:[%s16187_s13 + $0xa8] sm:$0xff] }
 0xa8e   : > { %9015 = vmatprep.subr.mxu0 %v10687_v13  ;;  %9057 = vmatprep.subr.mxu1 %v16785_v15  ;;  %v10596_v15 = vunpack.i.l.bf16 %v10595_v39  ;;  %v7235_v13 = vld [vmem:[%s16187_s13 + $0x28] sm:$0xff] }
 0xa8f   : > { %9016 = vmatpush3.msra.mxu0 %v10688_v20  ;;  %9058 = vmatpush3.msra.mxu1 %v16786_v21  ;;  %v9693_v21 = vpop.f32.mrf.mxu0  ;;  %v7250_v20 = vld [vmem:[%s16187_s13 + $0xa0] sm:$0xff] }
 0xa90   : > { %9017 = vmatprep.subr.mxu0 %v10689_v53  ;;  %9059 = vmatprep.subr.mxu1 %v16787_v43  ;;  %v16810_v43 = vld [vmem:[#allocation67_spill] sm:$0xff]  ;;  %v7234_v53 = vld [vmem:[%s16187_s13 + $0x20] sm:$0xff] }
 0xa91   : > { %9018 = vmatpush3.msra.mxu0 %v10690_v41  ;;  %9060 = vmatpush3.msra.mxu1 %v16788_v9  ;;  %v16813_v9 = vld [vmem:[#allocation33_spill] sm:$0xff] }
 0xa92   : > { %9019 = vmatprep.subr.mxu0 %v16743_v42  ;;  %9061 = vmatprep.subr.mxu1 %v16789_v33  ;;  %v10597_v42 = vunpack.i.h.bf16 %v10595_v39  ;;  %v7249_v39 = vld [vmem:[%s16187_s13 + $0x98] sm:$0xff] }
 0xa93   : > { %9020 = vmatpush3.msra.mxu0 %v16745_v47  ;;  %9062 = vmatpush3.msra.mxu1 %v16790_v7  ;;  %v16807_v47 = vld [vmem:[#allocation82_spill] sm:$0xff]  ;;  %v7233_v41 = vld [vmem:[%s16187_s13 + $0x18] sm:$0xff] }
 0xa94   : > { %9021 = vmatprep.subr.mxu0 %v16747_v55  ;;  %9063 = vmatprep.subr.mxu1 %v16791_v0  ;;  %v6973_v50 = vsel %vm2378_vm3, %v16807_v47, %v10592_v14  ;;  %v16808_v55 = vld [vmem:[#allocation55_spill] sm:$0xff] }
 0xa95   : > { %9022 = vmatpush3.msra.mxu0 %v16749_v4  ;;  %9064 = vmatpush3.msra.mxu1 %v16793_v3  ;;  %v6976_v4 = vsel %vm2378_vm3, %v16808_v55, %v10596_v15 }
 0xa96   : > { %9023 = vmatprep.subr.mxu0 %v16751_v61  ;;  %9065 = vmatprep.subr.mxu1 %v16795_v37  ;;  %v16809_v61 = vld [vmem:[#allocation77_spill] sm:$0xff] }
 0xa97   : > { %9024 = vmatpush3.msra.mxu0 %v16753_v54  ;;  %9066 = vmatpush3.msra.mxu1 %v16796_v2  ;;  %v6974_v54 = vsel %vm2378_vm3, %v16809_v61, %v10597_v42 }
 0xa98   : > { %9025 = vmatprep.subr.mxu0 %v16756_v19  ;;  %7123 = vmatmul.mubr.f32.vlgmr.msra.gmra.mxu1 %v6973_v50  ;;  %v16812_v19 = vunpack.i.l.bf16 %v16811_v26 }
 0xa99   : > { %9026 = vmatpush3.msra.mxu0 %v16758_v17  ;;  %7127 = vmatprep.mubr.f32.mxu1 %v6976_v4  ;;  %v16814_v17 = vld [vmem:[#allocation11_spill] sm:$0xff] }
 0xa9a   : > { %9027 = vmatprep.subr.mxu0 %v16762_v45  ;;  %v6972_v33 = vsel %vm2378_vm3, %v16813_v9, %v16812_v19  ;;  %9083 = vmatprep.subr.mxu1 %v7261_v11 }
 0xa9b   : > { %9028 = vmatpush3.msra.mxu0 %v16765_v25  ;;  %v6072_v25 = vpop.f32.mrf.mxu0  ;;  %9084 = vmatpush3.msra.mxu1 %v7245_v52 }
 0xa9c   : > { %7048 = vmatmul.mubr.f32.vlgmr.msra.gmra.mxu0 %v16810_v43  ;;  %7128 = vmatmul.mubr.f32.gmra.mxu1 %v6974_v54 }
 0xa9d   : > { %9751 = vmatprep.subr.mxu0 %v14881_v35  ;;  %7052 = vmatprep.mubr.f32.mxu0 %v6972_v33 }
 0xa9e   : > { %9752 = vmatpush3.msra.mxu0 %v14881_v35  ;;  %9085 = vmatprep.subr.mxu1 %v7260_v10 }
 0xa9f   : > { %9753 = vmatprep.subr.mxu0 %v15087_v32  ;;  %9086 = vmatpush3.msra.mxu1 %v7244_v12 }
 0xaa0   : > { %9754 = vmatpush3.msra.mxu0 %v15087_v32  ;;  %9087 = vmatprep.subr.mxu1 %v7259_v23 }
 0xaa1   : > { %7053 = vmatmul.mubr.f32.gmra.mxu0 %v16814_v17  ;;  %9755 = vmatprep.subr.mxu0 %v15093_v46 }
 0xaa2   : > { %9756 = vmatpush3.msra.mxu0 %v15093_v46  ;;  %9767 = vmatprep.mubr.msk.f32.mxu0 %vm2378_vm3, %v6072_v25 }
 0xaa3   : > { %9757 = vmatprep.subr.mxu0 %v15104_v51  ;;  %9088 = vmatpush3.msra.mxu1 %v7243_v58 }
 0xaa4   : > { %9758 = vmatpush3.msra.mxu0 %v15104_v51  ;;  %9089 = vmatprep.subr.mxu1 %v7258_v56 }
 0xaa5   : > { %9759 = vmatprep.subr.mxu0 %v15113_v49  ;;  %9090 = vmatpush3.msra.mxu1 %v7242_v31  ;;  %v7248_v31 = vld [vmem:[%s16187_s13 + $0x90] sm:$0xff] }
 0xaa6   : > { %9760 = vmatpush3.msra.mxu0 %v15113_v49  ;;  %9091 = vmatprep.subr.mxu1 %v7257_v44 }
 0xaa7   : > { %9761 = vmatprep.subr.mxu0 %v15120_v1  ;;  %9092 = vmatpush3.msra.mxu1 %v7241_v18  ;;  %v7232_v18 = vld [vmem:[%s16187_s13 + $0x10] sm:$0xff] }
 0xaa8   : > { %9762 = vmatpush3.msra.mxu0 %v15120_v1  ;;  %v15556_v1 = vld [vmem:[%s16186_s12] ss:$0 sm:$0xff]  ;;  %9093 = vmatprep.subr.mxu1 %v7256_v22 }
 0xaa9   : > { %9763 = vmatprep.subr.mxu0 %v15127_v60  ;;  %9094 = vmatpush3.msra.mxu1 %v7240_v8 }
 0xaaa   : > { %9764 = vmatpush3.msra.mxu0 %v15127_v60  ;;  %9095 = vmatprep.subr.mxu1 %v7255_v38 }
 0xaab   : > { %9765 = vmatprep.subr.mxu0 %v15134_v30  ;;  %9096 = vmatpush3.msra.mxu1 %v7239_v57  ;;  %v7247_v57 = vld [vmem:[%s16187_s13 + $0x88] sm:$0xff] }
 0xaac   : > { %9766 = vmatpush3.msra.mxu0 %v15134_v30  ;;  %9097 = vmatprep.subr.mxu1 %v7254_v28  ;;  %v7231_v28 = vld [vmem:[%s16187_s13 + $0x8] sm:$0xff] }
 0xaad   : > { %9768 = vmatmul.mubr.msk.f32.vlgmr.msra.gmra.mxu0 %vm2378_vm3, %v9693_v21  ;;  %9098 = vmatpush3.msra.mxu1 %v7238_v29 }
 0xaae   : > { %9099 = vmatprep.subr.mxu1 %v7253_v34 }
 0xaaf   : > { %9100 = vmatpush3.msra.mxu1 %v7237_v16 }
 0xab0   : > { %9101 = vmatprep.subr.mxu1 %v7252_v36 }
 0xab1   : > { %9102 = vmatpush3.msra.mxu1 %v7236_v59  ;;  %v7246_v59 = vld [vmem:[%s16187_s13 + $0x80] sm:$0xff] }
 0xab2   : > { %9103 = vmatprep.subr.mxu1 %v7251_v63  ;;  %v7230_v63 = vld [vmem:[%s16187_s13] sm:$0xff] }
 0xab3   : > { %9104 = vmatpush3.msra.mxu1 %v7235_v13 }
 0xab4   : > { %9105 = vmatprep.subr.mxu1 %v7250_v20 }
 0xab5   : > { %9106 = vmatpush3.msra.mxu1 %v7234_v53 }
 0xab6   : > { %9107 = vmatprep.subr.mxu1 %v7249_v39 }
 0xab7   : > { %9108 = vmatpush3.msra.mxu1 %v7233_v41 }
 0xab8   : > { %9109 = vmatprep.subr.mxu1 %v7248_v31  ;;  %v7426_v31 = vld [vmem:[%s16189_s15 + $0xd0] sm:$0xff] }
 0xab9   : > { %9110 = vmatpush3.msra.mxu1 %v7232_v18  ;;  %v7410_v18 = vld [vmem:[%s16189_s15 + $0x50] sm:$0xff] }
 0xaba   : > { %9111 = vmatprep.subr.mxu1 %v7247_v57  ;;  %v7409_v57 = vld [vmem:[%s16189_s15 + $0x48] sm:$0xff] }
 0xabb   : > { %9112 = vmatpush3.msra.mxu1 %v7231_v28  ;;  %v7441_v28 = vld [vmem:[%s16189_s15 + $0x148] sm:$0xff] }
 0xabc   : > { %9113 = vmatprep.subr.mxu1 %v7246_v59  ;;  %v7423_v59 = vld [vmem:[%s16189_s15 + $0xb8] sm:$0xff] }
 0xabd   : > { %9114 = vmatpush3.msra.mxu1 %v7230_v63  ;;  %v7455_v63 = vld [vmem:[%s16189_s15 + $0x1b8] sm:$0xff] }
 0xacc   : > { %v8771_v35 = vpop.f32.mrf.mxu1 }
 0xace   : > { %v8772_v32 = vpop.f32.mrf.mxu1 }
 0xacf   : > { %v8773_v46 = vadd.f32 %v8772_v32, %v8771_v35 }
 0xad0   : > { %v8774_v51 = vpop.f32.mrf.mxu1 }
 0xad1   : > { %v6273_v6 = vadd.f32 %v8773_v46, %v15556_v1 }
 0xad2   : > { %v8775_v45 = vpop.f32.mrf.mxu1 }
 0xad3   : > { %v8776_v49 = vadd.f32 %v8775_v45, %v8774_v51 }
 0xad5   : > { %v6278_v2 = vadd.f32 %v8776_v49, %v15556_v1 }
 0xadc   : > { %v9712_v0 = vpop.f32.mrf.mxu1 }
 0xade   : > { %v6422_v62 = vpop.f32.mrf.mxu1 }
 0xae0   : > { %v8809_v7 = vpop.f32.mrf.mxu0 }
 0xae2   : > { %v8810_v60 = vpop.f32.mrf.mxu0 }
 0xae3   : > { %v8811_v3 = vadd.f32 %v8810_v60, %v8809_v7 }
 0xae5   : > { %v6348_v30 = vadd.f32 %v8811_v3, %v6273_v6  ;;  %v8812_v40 = vpop.f32.mrf.mxu0 }
 0xae7   : > { %v15559_v48 = vadd.f32 %v6422_v62, %v6348_v30  ;;  %v8813_v37 = vpop.f32.mrf.mxu0 }
 0xae8   : > { %v8814_v24 = vadd.f32 %v8813_v37, %v8812_v40 }
 0xaea   : > { %v6353_v5 = vadd.f32 %v8814_v24, %v6278_v2 }
 0xaec   : > { %v15562_v27 = vadd.f32 %v9712_v0, %v6353_v5 }
 0xafe   : > { %v8895_v14 = vpop.f32.mrf.mxu1 }
 0xb00   : > { %v8896_v15 = vpop.f32.mrf.mxu1 }
 0xb01   : > { %v8897_v29 = vadd.f32 %v8896_v15, %v8895_v14 }
 0xb03   : > { %v8898_v42 = vpop.f32.mrf.mxu1  ;;  %v8857_v4 = vpop.f32.mrf.mxu0 }
 0xb05   : > { %v8899_v47 = vpop.f32.mrf.mxu1  ;;  %v8858_v21 = vpop.f32.mrf.mxu0 }
 0xb06   : > { %v8859_v12 = vadd.f32 %v8858_v21, %v8857_v4  ;;  %v8900_v8 = vadd.f32 %v8899_v47, %v8898_v42 }
 0xb08   : > { %v6544_v22 = vadd.f32 %v8859_v12, %v15556_v1  ;;  %v7427_v12 = vld [vmem:[%s16189_s15 + $0xd8] sm:$0xff] }
 0xb09   : > { %v8860_v19 = vpop.f32.mrf.mxu0 }
 0xb0a   : > { %v6619_v20 = vadd.f32 %v8897_v29, %v6544_v22  ;;  %v7442_v22 = vld [vmem:[%s16189_s15 + $0x150] sm:$0xff]  ;;  %v7424_v29 = vld [vmem:[%s16189_s15 + $0xc0] sm:$0xff] }
 0xb0b   : > { %v8861_v9 = vpop.f32.mrf.mxu0 }
 0xb0c   : > { %v8862_v11 = vadd.f32 %v8861_v9, %v8860_v19 }
 0xb0e   : > { %v6549_v58 = vadd.f32 %v8862_v11, %v15556_v1  ;;  %v7460_v11 = vld [vmem:[%s16189_s15 + $0x1e0] sm:$0xff] }
 0xb10   : > { %v6624_v34 = vadd.f32 %v8900_v8, %v6549_v58  ;;  %v7411_v58 = vld [vmem:[%s16189_s15 + $0x58] sm:$0xff]  ;;  %v7425_v8 = vld [vmem:[%s16189_s15 + $0xc8] sm:$0xff] }
 0xb16   : > { %v9731_v33 = vpop.f32.mrf.mxu0 }
 0xb17   : > { %v6699_v13 = vadd.f32 %v9731_v33, %v6624_v34  ;;  %v7456_v34 = vld [vmem:[%s16189_s15 + $0x1c0] sm:$0xff] }
 0xb18   : > { %v6693_v25 = vpop.f32.mrf.mxu0 }
 0xb19   : > { %v6694_v14 = vadd.f32 %v6693_v25, %v6619_v20  ;;  %v6703_v47 = vmax.f32 %v6699_v13, 0.0  ;;  %v7407_v13 = vld [vmem:[%s16189_s15 + $0x38] sm:$0xff] }
 0xb1a   : > { %v7439_v20 = vld [vmem:[%s16189_s15 + $0x138] sm:$0xff] }
 0xb1b   : > { %v6702_v4 = vmax.f32 %v6694_v14, 0.0  ;;  %v7438_v14 = vld [vmem:[%s16189_s15 + $0x130] sm:$0xff] }
 0xb23   : > { %v8943_v50 = vpop.f32.mrf.mxu1 }
 0xb25   : > { %v8944_v55 = vpop.f32.mrf.mxu1 }
 0xb26   : > { %v8945_v61 = vadd.f32 %v8944_v55, %v8943_v50 }
 0xb28   : > { %v8946_v54 = vpop.f32.mrf.mxu1  ;;  %v6799_v46 = vadd.f32 %v8945_v61, %v15556_v1 }
 0xb2a   : > { %v8947_v43 = vpop.f32.mrf.mxu1 }
 0xb2b   : > { %v8948_v26 = vadd.f32 %v8947_v43, %v8946_v54 }
 0xb2d   : > { %v6804_v6 = vadd.f32 %v8948_v26, %v15556_v1  ;;  %v6431_v26 = vmax.f32 %v15559_v48, 0.0 }
 0xb35   : > { %v9750_v35 = vpop.f32.mrf.mxu1 }
 0xb37   : > { %v6948_v7 = vpop.f32.mrf.mxu1 }
 0xb3a   : > { %v8981_v17 = vpop.f32.mrf.mxu0 }
 0xb3c   : > { %v8982_v32 = vpop.f32.mrf.mxu0 }
 0xb3d   : > { %v8983_v51 = vadd.f32 %v8982_v32, %v8981_v17 }
 0xb3f   : > { %v6874_v45 = vadd.f32 %v8983_v51, %v6799_v46  ;;  %v8984_v49 = vpop.f32.mrf.mxu0 }
 0xb41   : > { %v15643_v0 = vadd.f32 %v6948_v7, %v6874_v45  ;;  %v8985_v60 = vpop.f32.mrf.mxu0  ;;  %v7431_v7 = vld [vmem:[%s16189_s15 + $0xf8] sm:$0xff] }
 0xb42   : > { %v8986_v3 = vadd.f32 %v8985_v60, %v8984_v49  ;;  %v6432_v49 = vmax.f32 %v15562_v27, 0.0  ;;  %v7415_v60 = vld [vmem:[%s16189_s15 + $0x78] sm:$0xff]  ;;  %9121 = vmatprep.subr.mxu0 %v7431_v7 }
 0xb43   : > { %v6957_v9 = vmax.f32 %v15643_v0, 0.0  ;;  %v7463_v0 = vld [vmem:[%s16189_s15 + $0x1f8] sm:$0xff]  ;;  %9122 = vmatpush3.msra.mxu0 %v7415_v60  ;;  %v7432_v60 = vld [vmem:[%s16189_s15 + $0x100] sm:$0xff] }
 0xb44   : > { %v6879_v30 = vadd.f32 %v8986_v3, %v6804_v6  ;;  %9156 = vmatprep.subr.mxu1 %v7463_v0  ;;  %v7447_v27 = vld [vmem:[%s16189_s15 + $0x178] sm:$0xff]  ;;  %v7430_v6 = vld [vmem:[%s16189_s15 + $0xf0] sm:$0xff]  ;;  %v7400_v0 = vld [vmem:[%s16189_s15] sm:$0xff] }
 0xb45   : > { %v7462_v3 = vld [vmem:[%s16189_s15 + $0x1f0] sm:$0xff]  ;;  %9123 = vmatprep.subr.mxu0 %v7430_v6 }
 0xb46   : > { %v15646_v40 = vadd.f32 %v9750_v35, %v6879_v30  ;;  %v7414_v30 = vld [vmem:[%s16189_s15 + $0x70] sm:$0xff] }
 0xb47   : > { %9124 = vmatpush3.msra.mxu0 %v7414_v30 }
 0xb48   : > { %v6958_v35 = vmax.f32 %v15646_v40, 0.0  ;;  %v7446_v40 = vld [vmem:[%s16189_s15 + $0x170] sm:$0xff] }
 0xb58   : > { %v9067_v62 = vpop.f32.mrf.mxu1 }
 0xb5a   : > { %v9068_v24 = vpop.f32.mrf.mxu1 }
 0xb5b   : > { %v9069_v53 = vadd.f32 %v9068_v24, %v9067_v62  ;;  %v7429_v62 = vld [vmem:[%s16189_s15 + $0xe8] sm:$0xff] }
 0xb5c   : > { %v9029_v37 = vpop.f32.mrf.mxu0  ;;  %v9070_v52 = vpop.f32.mrf.mxu1  ;;  %v7445_v24 = vld [vmem:[%s16189_s15 + $0x168] sm:$0xff]  ;;  %9125 = vmatprep.subr.mxu0 %v7429_v62 }
 0xb5e   : > { %v9030_v2 = vpop.f32.mrf.mxu0  ;;  %v9071_v44 = vpop.f32.mrf.mxu1 }
 0xb5f   : > { %v9031_v56 = vadd.f32 %v9030_v2, %v9029_v37  ;;  %v9072_v36 = vadd.f32 %v9071_v44, %v9070_v52  ;;  %v7461_v37 = vld [vmem:[%s16189_s15 + $0x1e8] sm:$0xff]  ;;  %v7412_v52 = vld [vmem:[%s16189_s15 + $0x60] sm:$0xff]  ;;  %v7458_v44 = vld [vmem:[%s16189_s15 + $0x1d0] sm:$0xff] }
 0xb60   : > { %v7413_v2 = vld [vmem:[%s16189_s15 + $0x68] sm:$0xff] }
 0xb61   : > { %v9032_v5 = vpop.f32.mrf.mxu0  ;;  %v7050_v16 = vadd.f32 %v9031_v56, %v15556_v1  ;;  %9126 = vmatpush3.msra.mxu0 %v7413_v2  ;;  %v7443_v56 = vld [vmem:[%s16189_s15 + $0x158] sm:$0xff] }
 0xb63   : > { %v9033_v10 = vpop.f32.mrf.mxu0 }
 0xb64   : > { %v9034_v23 = vadd.f32 %v9033_v10, %v9032_v5  ;;  %v7428_v5 = vld [vmem:[%s16189_s15 + $0xe0] sm:$0xff] }
 0xb65   : > { %v7444_v10 = vld [vmem:[%s16189_s15 + $0x160] sm:$0xff]  ;;  %9127 = vmatprep.subr.mxu0 %v7428_v5 }
 0xb66   : > { %v7055_v38 = vadd.f32 %v9034_v23, %v15556_v1  ;;  %v7125_v1 = vadd.f32 %v9069_v53, %v7050_v16  ;;  %v7459_v23 = vld [vmem:[%s16189_s15 + $0x1d8] sm:$0xff]  ;;  %9128 = vmatpush3.msra.mxu0 %v7412_v52  ;;  %v7408_v16 = vld [vmem:[%s16189_s15 + $0x40] sm:$0xff]  ;;  %v7422_v53 = vld [vmem:[%s16189_s15 + $0xb0] sm:$0xff] }
 0xb67   : > { %9129 = vmatprep.subr.mxu0 %v7427_v12 }
 0xb68   : > { %v7130_v39 = vadd.f32 %v9072_v36, %v7055_v38  ;;  %9130 = vmatpush3.msra.mxu0 %v7411_v58  ;;  %v7457_v38 = vld [vmem:[%s16189_s15 + $0x1c8] sm:$0xff]  ;;  %v7440_v36 = vld [vmem:[%s16189_s15 + $0x140] sm:$0xff] }
 0xb69   : > { %9131 = vmatprep.subr.mxu0 %v7426_v31 }
 0xb6a   : > { %9132 = vmatpush3.msra.mxu0 %v7410_v18 }
 0xb6b   : > { %9133 = vmatprep.subr.mxu0 %v7425_v8 }
 0xb6c   : > { %9134 = vmatpush3.msra.mxu0 %v7409_v57 }
 0xb6d   : > { %v9769_v41 = vpop.f32.mrf.mxu0  ;;  %9135 = vmatprep.subr.mxu0 %v7424_v29 }
 0xb6e   : > { %v7205_v15 = vadd.f32 %v9769_v41, %v7130_v39  ;;  %9136 = vmatpush3.msra.mxu0 %v7408_v16  ;;  %v7454_v39 = vld [vmem:[%s16189_s15 + $0x1b0] sm:$0xff] }
 0xb6f   : > { %v7199_v42 = vpop.f32.mrf.mxu0  ;;  %9137 = vmatprep.subr.mxu0 %v7423_v59  ;;  %v7406_v41 = vld [vmem:[%s16189_s15 + $0x30] sm:$0xff] }
 0xb70   : > { %v7209_v50 = vmax.f32 %v7205_v15, 0.0  ;;  %v7200_v55 = vadd.f32 %v7199_v42, %v7125_v1  ;;  %9138 = vmatpush3.msra.mxu0 %v7407_v13  ;;  %v7421_v15 = vld [vmem:[%s16189_s15 + $0xa8] sm:$0xff] }
 0xb71   : > { %v7453_v1 = vld [vmem:[%s16189_s15 + $0x1a8] sm:$0xff]  ;;  %9139 = vmatprep.subr.mxu0 %v7422_v53  ;;  %v7511_v53 = vld [vmem:[%s16189_s15 + $0x378] sm:$0xff] }
 0xb72   : > { %v10603_v61 = vpack.i.bf16 %v6703_v47, %v7209_v50  ;;  %v7208_v54 = vmax.f32 %v7200_v55, 0.0  ;;  %v7405_v42 = vld [vmem:[%s16189_s15 + $0x28] sm:$0xff]  ;;  %9140 = vmatpush3.msra.mxu0 %v7406_v41  ;;  %v7420_v50 = vld [vmem:[%s16189_s15 + $0xa0] sm:$0xff] }
 0xb73   : > { %v7437_v47 = vld [vmem:[%s16189_s15 + $0x128] sm:$0xff]  ;;  %v7452_v55 = vld [vmem:[%s16189_s15 + $0x1a0] sm:$0xff]  ;;  %9141 = vmatprep.subr.mxu0 %v7421_v15  ;;  %v7479_v15 = vld [vmem:[%s16189_s15 + $0x278] sm:$0xff] }
 0xb74   : > { %v10598_v21 = vpack.i.bf16 %v6702_v4, %v7208_v54  ;;  %10604 = vrot.lane.b32.xlu0 %v10603_v61, %s16496_s28  ;;  %v7404_v4 = vld [vmem:[%s16189_s15 + $0x20] sm:$0xff]  ;;  %9142 = vmatpush3.msra.mxu0 %v7405_v42  ;;  %v7419_v54 = vld [vmem:[%s16189_s15 + $0x98] sm:$0xff] }
 0xb75   : > { %v7436_v61 = vld [vmem:[%s16189_s15 + $0x120] sm:$0xff]  ;;  %9143 = vmatprep.subr.mxu0 %v7420_v50  ;;  %v7494_v50 = vld [vmem:[%s16189_s15 + $0x2f0] sm:$0xff] }
 0xb76   : > { %10599 = vrot.lane.b32.xlu1 %v10598_v21, %s16496_s28  ;;  %v7451_v21 = vld [vmem:[%s16189_s15 + $0x198] sm:$0xff]  ;;  %9144 = vmatpush3.msra.mxu0 %v7404_v4 }
 0xb77   : > { %9145 = vmatprep.subr.mxu0 %v7419_v54 }
 0xbe6   : > { %v10605_v43 = vpop.permute.xlu0 %10604 }
 0xbe7   : > { %v10606_v33 = vunpack.i.l.bf16 %v10605_v43  ;;  %v10607_v51 = vunpack.i.h.bf16 %v10605_v43  ;;  %v7403_v43 = vld [vmem:[%s16189_s15 + $0x18] sm:$0xff] }
 0xbe8   : > { %v10600_v19 = vpop.permute.xlu1 %10599  ;;  %9146 = vmatpush3.msra.mxu0 %v7403_v43  ;;  %v7493_v43 = vld [vmem:[%s16189_s15 + $0x2e8] sm:$0xff] }
 0xbe9   : > { %v10602_v25 = vunpack.i.h.bf16 %v10600_v19  ;;  %v10601_v17 = vunpack.i.l.bf16 %v10600_v19  ;;  %v7229_v45 = vsel %vm2378_vm3, %v6958_v35, %v10606_v33  ;;  %v7227_v48 = vsel %vm2378_vm3, %v6432_v49, %v10607_v51  ;;  %v7418_v19 = vld [vmem:[%s16189_s15 + $0x90] sm:$0xff]  ;;  %v7449_v35 = vld [vmem:[%s16189_s15 + $0x188] sm:$0xff]  ;;  %v7416_v49 = vld [vmem:[%s16189_s15 + $0x80] sm:$0xff] }
 0xbea   : > { %v7402_v33 = vld [vmem:[%s16189_s15 + $0x10] sm:$0xff]  ;;  %9147 = vmatprep.subr.mxu0 %v7418_v19  ;;  %v7433_v51 = vld [vmem:[%s16189_s15 + $0x108] sm:$0xff] }
 0xbeb   : > { %v7226_v32 = vsel %vm2378_vm3, %v6431_v26, %v10602_v25  ;;  %v7228_v46 = vsel %vm2378_vm3, %v6957_v9, %v10601_v17  ;;  %v7435_v26 = vld [vmem:[%s16189_s15 + $0x118] sm:$0xff]  ;;  %v7450_v9 = vld [vmem:[%s16189_s15 + $0x190] sm:$0xff]  ;;  %v7417_v17 = vld [vmem:[%s16189_s15 + $0x88] sm:$0xff]  ;;  %9148 = vmatpush3.msra.mxu0 %v7402_v33 }
 0xbec   : > { %7333 = vmatprep.mubr.f32.mxu1 %v7228_v46  ;;  %v7434_v25 = vld [vmem:[%s16189_s15 + $0x110] sm:$0xff]  ;;  %9149 = vmatprep.subr.mxu0 %v7417_v17  ;;  %v7401_v46 = vld [vmem:[%s16189_s15 + $0x8] sm:$0xff]  ;;  %v7492_v17 = vld [vmem:[%s16189_s15 + $0x2e0] sm:$0xff] }
 0xbed   : > { %7334 = vmatmul.mubr.f32.vlgmr.msra.gmra.mxu1 %v7226_v32  ;;  %9150 = vmatpush3.msra.mxu0 %v7401_v46  ;;  %v7477_v33 = vld [vmem:[%s16189_s15 + $0x268] sm:$0xff]  ;;  %v7508_v46 = vld [vmem:[%s16189_s15 + $0x360] sm:$0xff] }
 0xbee   : > { %7338 = vmatprep.mubr.f32.mxu1 %v7229_v45  ;;  %9157 = vmatpush3.msra.mxu1 %v7447_v27  ;;  %v8185_v45 = vld [vmem:[%s16188_s14] ss:$0 sm:$0xff]  ;;  %v7495_v27 = vld [vmem:[%s16189_s15 + $0x2f8] sm:$0xff] }
 0xbef   : > { %9158 = vmatprep.subr.mxu1 %v7462_v3  ;;  %9151 = vmatprep.subr.mxu0 %v7416_v49  ;;  %v7527_v3 = vld [vmem:[%s16189_s15 + $0x3f8] sm:$0xff] }
 0xbf0   : > { %9159 = vmatpush3.msra.mxu1 %v7446_v40  ;;  %9152 = vmatpush3.msra.mxu0 %v7400_v0  ;;  %v7475_v49 = vld [vmem:[%s16189_s15 + $0x258] sm:$0xff]  ;;  %v7522_v0 = vld [vmem:[%s16189_s15 + $0x3d0] sm:$0xff] }
 0xbf1   : > { %7339 = vmatmul.mubr.f32.gmra.mxu1 %v7227_v48  ;;  %9160 = vmatprep.subr.mxu1 %v7461_v37  ;;  %v7448_v48 = vld [vmem:[%s16189_s15 + $0x180] sm:$0xff] }
 0xbf2   : > { %9161 = vmatpush3.msra.mxu1 %v7445_v24  ;;  %9191 = vmatprep.subr.mxu0 %v7495_v27  ;;  %v7506_v27 = vld [vmem:[%s16189_s15 + $0x350] sm:$0xff] }
 0xbf3   : > { %9162 = vmatprep.subr.mxu1 %v7460_v11 }
 0xbf4   : > { %9163 = vmatpush3.msra.mxu1 %v7444_v10 }
 0xbf5   : > { %9164 = vmatprep.subr.mxu1 %v7459_v23 }
 0xbf6   : > { %9165 = vmatpush3.msra.mxu1 %v7443_v56 }
 0xbf7   : > { %9166 = vmatprep.subr.mxu1 %v7458_v44 }
 0xbf8   : > { %9167 = vmatpush3.msra.mxu1 %v7442_v22 }
 0xbf9   : > { %9168 = vmatprep.subr.mxu1 %v7457_v38 }
 0xbfa   : > { %9169 = vmatpush3.msra.mxu1 %v7441_v28 }
 0xbfb   : > { %9170 = vmatprep.subr.mxu1 %v7456_v34 }
 0xbfc   : > { %9171 = vmatpush3.msra.mxu1 %v7440_v36 }
 0xbfd   : > { %9172 = vmatprep.subr.mxu1 %v7455_v63 }
 0xbfe   : > { %9173 = vmatpush3.msra.mxu1 %v7439_v20 }
 0xbff   : > { %9174 = vmatprep.subr.mxu1 %v7454_v39 }
 0xc00   : > { %9175 = vmatpush3.msra.mxu1 %v7438_v14 }
 0xc01   : > { %9176 = vmatprep.subr.mxu1 %v7453_v1  ;;  %v7526_v1 = vld [vmem:[%s16189_s15 + $0x3f0] sm:$0xff] }
 0xc02   : > { %9177 = vmatpush3.msra.mxu1 %v7437_v47 }
 0xc03   : > { %9178 = vmatprep.subr.mxu1 %v7452_v55  ;;  %v7510_v55 = vld [vmem:[%s16189_s15 + $0x370] sm:$0xff] }
 0xc04   : > { %9179 = vmatpush3.msra.mxu1 %v7436_v61  ;;  %v7478_v61 = vld [vmem:[%s16189_s15 + $0x270] sm:$0xff] }
 0xc05   : > { %9180 = vmatprep.subr.mxu1 %v7451_v21 }
 0xc06   : > { %9181 = vmatpush3.msra.mxu1 %v7435_v26  ;;  %v7525_v26 = vld [vmem:[%s16189_s15 + $0x3e8] sm:$0xff] }
 0xc07   : > { %9182 = vmatprep.subr.mxu1 %v7450_v9 }
 0xc08   : > { %9183 = vmatpush3.msra.mxu1 %v7434_v25  ;;  %v7509_v25 = vld [vmem:[%s16189_s15 + $0x368] sm:$0xff] }
 0xc09   : > { %9184 = vmatprep.subr.mxu1 %v7449_v35  ;;  %v7524_v35 = vld [vmem:[%s16189_s15 + $0x3e0] sm:$0xff] }
 0xc0a   : > { %9185 = vmatpush3.msra.mxu1 %v7433_v51  ;;  %v7491_v51 = vld [vmem:[%s16189_s15 + $0x2d8] sm:$0xff] }
 0xc0b   : > { %9186 = vmatprep.subr.mxu1 %v7448_v48  ;;  %v7507_v48 = vld [vmem:[%s16189_s15 + $0x358] sm:$0xff] }
 0xc0c   : > { %9187 = vmatpush3.msra.mxu1 %v7432_v60  ;;  %v7474_v60 = vld [vmem:[%s16189_s15 + $0x250] sm:$0xff] }
 0xc0d   : > { %9226 = vmatprep.subr.mxu1 %v7527_v3  ;;  %v7521_v3 = vld [vmem:[%s16189_s15 + $0x3c8] sm:$0xff] }
 0xcad   : > { %v9115_v32 = vpop.f32.mrf.mxu1 }
 0xcaf   : > { %v9116_v7 = vpop.f32.mrf.mxu1 }
 0xcb0   : > { %v9117_v6 = vadd.f32 %v9116_v7, %v9115_v32  ;;  %v7476_v32 = vld [vmem:[%s16189_s15 + $0x260] sm:$0xff]  ;;  %v7490_v7 = vld [vmem:[%s16189_s15 + $0x2d0] sm:$0xff] }
 0xcb1   : > { %v9118_v30 = vpop.f32.mrf.mxu1 }
 0xcb2   : > { %v7336_v40 = vadd.f32 %v9117_v6, %v8185_v45  ;;  %v7489_v6 = vld [vmem:[%s16189_s15 + $0x2c8] sm:$0xff] }
 0xcb3   : > { %v9119_v62 = vpop.f32.mrf.mxu1 }
 0xcb4   : > { %v7344_v37 = vmax.f32 %v7336_v40, 0.0  ;;  %v9120_v2 = vadd.f32 %v9119_v62, %v9118_v30  ;;  %v7473_v30 = vld [vmem:[%s16189_s15 + $0x248] sm:$0xff]  ;;  %v7488_v62 = vld [vmem:[%s16189_s15 + $0x2c0] sm:$0xff] }
 0xcb5   : > { %v7505_v40 = vld [vmem:[%s16189_s15 + $0x348] sm:$0xff] }
 0xcb6   : > { %v7341_v24 = vadd.f32 %v9120_v2, %v8185_v45  ;;  %v7359_v5 = vrot.slane %v7344_v37, 5  ;;  %v7365_v11 = vrot.slane %v7344_v37, 7  ;;  %v7347_v52 = vrot.slane %v7344_v37, 1  ;;  %v7523_v45 = vld [vmem:[%s16189_s15 + $0x3d8] sm:$0xff]  ;;  %v7472_v2 = vld [vmem:[%s16189_s15 + $0x240] sm:$0xff] }
 0xcb7   : > { %v7353_v10 = vrot.slane %v7344_v37, 3  ;;  %v7357_v29 = vrot.slane %v7344_v37, 4  ;;  %v7363_v16 = vrot.slane %v7344_v37, 6  ;;  %v7351_v63 = vrot.slane %v7344_v37, 2 }
 0xcb8   : > { %v15881_v12 = vmax.f32 %v7341_v24, 0.0  ;;  %v10613_v23 = vpack.i.bf16 %v7359_v5, %v7365_v11  ;;  %v7504_v24 = vld [vmem:[%s16189_s15 + $0x340] sm:$0xff]  ;;  %v7487_v5 = vld [vmem:[%s16189_s15 + $0x2b8] sm:$0xff] }
 0xcb9   : > { %v10608_v58 = vpack.i.bf16 %v7347_v52, %v7353_v10  ;;  %v7519_v11 = vld [vmem:[%s16189_s15 + $0x3b8] sm:$0xff] }
 0xcba   : > { %10614 = vrot.lane.b32.xlu0 %v10613_v23, %s16496_s28  ;;  %v7382_v56 = vrot.slane %v15881_v12, 5  ;;  %v7388_v31 = vrot.slane %v15881_v12, 7  ;;  %v7370_v44 = vrot.slane %v15881_v12, 1  ;;  %v7376_v18 = vrot.slane %v15881_v12, 3  ;;  %v7471_v52 = vld [vmem:[%s16189_s15 + $0x238] sm:$0xff]  ;;  %v7486_v23 = vld [vmem:[%s16189_s15 + $0x2b0] sm:$0xff] }
 0xcbb   : > { %10609 = vrot.lane.b32.xlu1 %v10608_v58, %s16496_s28  ;;  %v7374_v54 = vrot.slane %v15881_v12, 2  ;;  %v7386_v21 = vrot.slane %v15881_v12, 6  ;;  %v7503_v10 = vld [vmem:[%s16189_s15 + $0x338] sm:$0xff]  ;;  %v7518_v58 = vld [vmem:[%s16189_s15 + $0x3b0] sm:$0xff] }
 0xcbc   : > { %v10623_v22 = vpack.i.bf16 %v7382_v56, %v7388_v31  ;;  %v10618_v8 = vpack.i.bf16 %v7370_v44, %v7376_v18  ;;  %v7470_v56 = vld [vmem:[%s16189_s15 + $0x230] sm:$0xff]  ;;  %v7485_v44 = vld [vmem:[%s16189_s15 + $0x2a8] sm:$0xff] }
 0xcbd   : > { %v7502_v31 = vld [vmem:[%s16189_s15 + $0x330] sm:$0xff]  ;;  %v7517_v18 = vld [vmem:[%s16189_s15 + $0x3a8] sm:$0xff] }
 0xcbe   : > { %10624 = vrot.lane.b32.xlu0 %v10623_v22, %s16496_s28  ;;  %v7469_v22 = vld [vmem:[%s16189_s15 + $0x228] sm:$0xff] }
 0xcbf   : > { %10619 = vrot.lane.b32.xlu1 %v10618_v8, %s16496_s28  ;;  %v7501_v8 = vld [vmem:[%s16189_s15 + $0x328] sm:$0xff]  ;;  %s8187_s28 = sshll.u32 %s10880_s1, 4  ;;  %s10697_s1 = scalar_lea.vmem %s10696_s6, 32 }
 0xcc0   : > { %s7916_s24 = scalar_lea.hbm %s16193_s19, %s8187_s28  ;;  %p10699_p1 = scmp.lt.s32.totalorder %s10697_s1, %s10691_s22 }
 0xcc2   : > { %p10700_p2 = por %p10699_p1, %p10698_p0 }
 0xcc4   : > { %p10701_p3 = pnand %p10700_p2, %p10694_p13 }
 0xd2c   : > { %v10615_v38 = vpop.permute.xlu0 %10614 }
 0xd2d   : > { %v10617_v57 = vunpack.i.h.bf16 %v10615_v38  ;;  %v10616_v28 = vunpack.i.l.bf16 %v10615_v38  ;;  %v10610_v34 = vpop.permute.xlu1 %10609  ;;  %v7484_v38 = vld [vmem:[%s16189_s15 + $0x2a0] sm:$0xff] }
 0xd2e   : > { %v10612_v36 = vunpack.i.h.bf16 %v10610_v34  ;;  %v10611_v59 = vunpack.i.l.bf16 %v10610_v34  ;;  %v7483_v34 = vld [vmem:[%s16189_s15 + $0x298] sm:$0xff] }
 0xd2f   : > { %v7394_v13 = vsel %vm2378_vm3, %v7357_v29, %v10617_v57  ;;  %v7395_v20 = vsel %vm2378_vm3, %v7363_v16, %v10616_v28  ;;  %v7516_v57 = vld [vmem:[%s16189_s15 + $0x3a0] sm:$0xff]  ;;  %v7515_v16 = vld [vmem:[%s16189_s15 + $0x398] sm:$0xff] }
 0xd30   : > { %v15896_v39 = vpop.permute.xlu0 %10624  ;;  %7663 = vmatprep.mubr.f32.mxu1 %v7395_v20  ;;  %v7393_v41 = vsel %vm2378_vm3, %v7351_v63, %v10611_v59  ;;  %v7392_v14 = vsel %vm2378_vm3, %v7344_v37, %v10612_v36  ;;  %v7520_v37 = vld [vmem:[%s16189_s15 + $0x3c0] sm:$0xff]  ;;  %v7467_v36 = vld [vmem:[%s16189_s15 + $0x218] sm:$0xff]  ;;  %v7482_v63 = vld [vmem:[%s16189_s15 + $0x290] sm:$0xff] }
 0xd31   : > { %v10626_v42 = vunpack.i.l.bf16 %v15896_v39  ;;  %v15907_v47 = vpop.permute.xlu1 %10619  ;;  %7593 = vmatprep.mubr.f32.mxu0 %v7393_v41  ;;  %7664 = vmatmul.mubr.f32.vlgmr.msra.gmra.mxu1 %v7394_v13  ;;  %v7468_v28 = vld [vmem:[%s16189_s15 + $0x220] sm:$0xff]  ;;  %v7499_v59 = vld [vmem:[%s16189_s15 + $0x318] sm:$0xff]  ;;  %v7514_v13 = vld [vmem:[%s16189_s15 + $0x390] sm:$0xff] }
 0xd32   : > { %v10621_v4 = vunpack.i.l.bf16 %v15907_v47  ;;  %7594 = vmatmul.mubr.f32.vlgmr.msra.gmra.mxu0 %v7392_v14  ;;  %9227 = vmatpush3.msra.mxu1 %v7511_v53  ;;  %v7500_v29 = vld [vmem:[%s16189_s15 + $0x320] sm:$0xff]  ;;  %v7466_v20 = vld [vmem:[%s16189_s15 + $0x210] sm:$0xff]  ;;  %v7481_v41 = vld [vmem:[%s16189_s15 + $0x288] sm:$0xff] }
 0xd33   : > { %9192 = vmatpush3.msra.mxu0 %v7479_v15  ;;  %9228 = vmatprep.subr.mxu1 %v7526_v1  ;;  %v7399_v9 = vsel %vm2378_vm3, %v7386_v21, %v10626_v42  ;;  %v7498_v53 = vld [vmem:[%s16189_s15 + $0x310] sm:$0xff]  ;;  %v7513_v14 = vld [vmem:[%s16189_s15 + $0x388] sm:$0xff]  ;;  %v10622_v1 = vunpack.i.h.bf16 %v15907_v47  ;;  %v7464_v47 = vld [vmem:[%s16189_s15 + $0x200] sm:$0xff] }
 0xd34   : > { %9193 = vmatprep.subr.mxu0 %v7494_v50  ;;  %9229 = vmatpush3.msra.mxu1 %v7510_v55  ;;  %v7397_v19 = vsel %vm2378_vm3, %v7374_v54, %v10621_v4  ;;  %v7465_v15 = vld [vmem:[%s16189_s15 + $0x208] sm:$0xff]  ;;  %v7480_v50 = vld [vmem:[%s16189_s15 + $0x280] sm:$0xff]  ;;  %v10627_v55 = vunpack.i.h.bf16 %v15896_v39  ;;  %v7380_v39 = vrot.slane %v15881_v12, 4 }
 0xd35   : > { %9194 = vmatpush3.msra.mxu0 %v7478_v61  ;;  %7733 = vmatprep.mubr.f32.mxu0 %v7397_v19  ;;  %v7497_v42 = vld [vmem:[%s16189_s15 + $0x308] sm:$0xff]  ;;  %v7512_v4 = vld [vmem:[%s16189_s15 + $0x380] sm:$0xff]  ;;  %v7396_v54 = vsel %vm2378_vm3, %v15881_v12, %v10622_v1  ;;  %v7816_v19 = vld [vmem:[%s16191_s17 + $0x30] sm:$0xff] }
 0xd36   : > { %9195 = vmatprep.subr.mxu0 %v7493_v43  ;;  %9230 = vmatprep.subr.mxu1 %v7525_v26  ;;  %v7496_v61 = vld [vmem:[%s16189_s15 + $0x300] sm:$0xff]  ;;  %v7398_v21 = vsel %vm2378_vm3, %v7380_v39, %v10627_v55  ;;  %v16815_v43 = vmov 0.0   ;;  %v7817_v26 = vld [vmem:[%s16191_s17 + $0x38] sm:$0xff]  ;;  %v7815_v12 = vld [vmem:[%s16191_s17 + $0x28] sm:$0xff] }
 0xd37   : > { %7803 = vmatprep.mubr.f32.mxu1 %v7399_v9  ;;  %9196 = vmatpush3.msra.mxu0 %v7477_v33  ;;  %v7814_v9 = vld [vmem:[%s16191_s17 + $0x20] sm:$0xff]  ;;  %v7813_v33 = vld [vmem:[%s16191_s17 + $0x18] sm:$0xff] }
 0xd38   : > { %9231 = vmatpush3.msra.mxu1 %v7509_v25  ;;  %9197 = vmatprep.subr.mxu0 %v7492_v17  ;;  %v7812_v25 = vld [vmem:[%s16191_s17 + $0x10] sm:$0xff]  ;;  %v7811_v17 = vld [vmem:[%s16191_s17 + $0x8] sm:$0xff] }
 0xd39   : > { %9232 = vmatprep.subr.mxu1 %v7524_v35  ;;  %9198 = vmatpush3.msra.mxu0 %v7476_v32  ;;  %v7810_v35 = vld [vmem:[%s16191_s17] sm:$0xff] }
 0xd3a   : > { %9233 = vmatpush3.msra.mxu1 %v7508_v46  ;;  %9199 = vmatprep.subr.mxu0 %v7491_v51 }
 0xd3b   : > { %9234 = vmatprep.subr.mxu1 %v7523_v45  ;;  %9200 = vmatpush3.msra.mxu0 %v7475_v49  ;;  %v7528_v49 = vld [vmem:[%s16190_s16] sm:$0x1] }
 0xd3c   : > { %9235 = vmatpush3.msra.mxu1 %v7507_v48  ;;  %9201 = vmatprep.subr.mxu0 %v7490_v7 }
 0xd3d   : > { %9236 = vmatprep.subr.mxu1 %v7522_v0  ;;  %9202 = vmatpush3.msra.mxu0 %v7474_v60 }
 0xd3e   : > { %9237 = vmatpush3.msra.mxu1 %v7506_v27  ;;  %9203 = vmatprep.subr.mxu0 %v7489_v6 }
 0xd3f   : > { %9238 = vmatprep.subr.mxu1 %v7521_v3  ;;  %9204 = vmatpush3.msra.mxu0 %v7473_v30 }
 0xd40   : > { %9239 = vmatpush3.msra.mxu1 %v7505_v40  ;;  %9205 = vmatprep.subr.mxu0 %v7488_v62 }
 0xd41   : > { %9240 = vmatprep.subr.mxu1 %v7520_v37  ;;  %9206 = vmatpush3.msra.mxu0 %v7472_v2 }
 0xd42   : > { %9241 = vmatpush3.msra.mxu1 %v7504_v24  ;;  %9207 = vmatprep.subr.mxu0 %v7487_v5  ;;  %v7818_v5 = vld [vmem:[%s16192_s18] sm:$0x1] }
 0xd43   : > { %9242 = vmatprep.subr.mxu1 %v7519_v11  ;;  %9208 = vmatpush3.msra.mxu0 %v7471_v52 }
 0xd44   : > { %9243 = vmatpush3.msra.mxu1 %v7503_v10  ;;  %9209 = vmatprep.subr.mxu0 %v7486_v23 }
 0xd45   : > { %9244 = vmatprep.subr.mxu1 %v7518_v58  ;;  %9210 = vmatpush3.msra.mxu0 %v7470_v56 }
 0xd46   : > { %9245 = vmatpush3.msra.mxu1 %v7502_v31  ;;  %9211 = vmatprep.subr.mxu0 %v7485_v44 }
 0xd47   : > { %9246 = vmatprep.subr.mxu1 %v7517_v18  ;;  %9212 = vmatpush3.msra.mxu0 %v7469_v22 }
 0xd48   : > { %9247 = vmatpush3.msra.mxu1 %v7501_v8  ;;  %9213 = vmatprep.subr.mxu0 %v7484_v38 }
 0xd49   : > { %9248 = vmatprep.subr.mxu1 %v7516_v57  ;;  %9214 = vmatpush3.msra.mxu0 %v7468_v28 }
 0xd4a   : > { %9249 = vmatpush3.msra.mxu1 %v7500_v29  ;;  %9215 = vmatprep.subr.mxu0 %v7483_v34 }
 0xd4b   : > { %9250 = vmatprep.subr.mxu1 %v7515_v16  ;;  %9216 = vmatpush3.msra.mxu0 %v7467_v36 }
 0xd4c   : > { %9251 = vmatpush3.msra.mxu1 %v7499_v59  ;;  %9217 = vmatprep.subr.mxu0 %v7482_v63 }
 0xd4d   : > { %9252 = vmatprep.subr.mxu1 %v7514_v13  ;;  %9218 = vmatpush3.msra.mxu0 %v7466_v20 }
 0xd4e   : > { %9253 = vmatpush3.msra.mxu1 %v7498_v53  ;;  %9219 = vmatprep.subr.mxu0 %v7481_v41 }
 0xd4f   : > { %9254 = vmatprep.subr.mxu1 %v7513_v14  ;;  %9220 = vmatpush3.msra.mxu0 %v7465_v15 }
 0xd50   : > { %9255 = vmatpush3.msra.mxu1 %v7497_v42  ;;  %9221 = vmatprep.subr.mxu0 %v7480_v50 }
 0xd51   : > { %9256 = vmatprep.subr.mxu1 %v7512_v4  ;;  %9222 = vmatpush3.msra.mxu0 %v7464_v47 }
 0xd52   : > { %9257 = vmatpush3.msra.mxu1 %v7496_v61  ;;  %7734 = vmatmul.mubr.f32.vlgmr.msra.gmra.mxu0 %v7396_v54 }
 0xd53   : > { %7804 = vmatmul.mubr.f32.vlgmr.msra.gmra.mxu1 %v7398_v21  ;;  %9770 = vmatprep.subr.mxu0 %v16815_v43 }
 0xd54   : > { %9771 = vmatpush3.msra.mxu0 %v7817_v26  ;;  %9786 = vmatprep.mubr.msk.f32.mxu0 %vm10757_vm5, %v16815_v43 }
 0xd55   : > { %9772 = vmatprep.subr.mxu0 %v16815_v43 }
 0xd56   : > { %9773 = vmatpush3.msra.mxu0 %v7816_v19 }
 0xd57   : > { %9774 = vmatprep.subr.mxu0 %v16815_v43 }
 0xd58   : > { %9775 = vmatpush3.msra.mxu0 %v7815_v12 }
 0xd59   : > { %9776 = vmatprep.subr.mxu0 %v16815_v43 }
 0xd5a   : > { %9777 = vmatpush3.msra.mxu0 %v7814_v9 }
 0xd5b   : > { %9778 = vmatprep.subr.mxu0 %v16815_v43 }
 0xd5c   : > { %9779 = vmatpush3.msra.mxu0 %v7813_v33 }
 0xd5d   : > { %9780 = vmatprep.subr.mxu0 %v16815_v43 }
 0xd5e   : > { %9781 = vmatpush3.msra.mxu0 %v7812_v25 }
 0xd5f   : > { %9782 = vmatprep.subr.mxu0 %v16815_v43 }
 0xd60   : > { %9783 = vmatpush3.msra.mxu0 %v7811_v17 }
 0xd61   : > { %9784 = vmatprep.subr.mxu0 %v16815_v43 }
 0xd62   : > { %9785 = vmatpush3.msra.mxu0 %v7810_v35 }
 0xdf1   : > { %v9188_v51 = vpop.f32.mrf.mxu1 }
 0xdf2   : > { %v9153_v32 = vpop.f32.mrf.mxu0 }
 0xdf3   : > { %v9189_v48 = vpop.f32.mrf.mxu1 }
 0xdf4   : > { %v9154_v46 = vpop.f32.mrf.mxu0  ;;  %v9190_v60 = vadd.f32 %v9189_v48, %v9188_v51 }
 0xdf5   : > { %v9155_v45 = vadd.f32 %v9154_v46, %v9153_v32 }
 0xdf7   : > { %v7596_v7 = vadd.f32 %v9155_v45, %v7528_v49 }
 0xdf9   : > { %v7666_v3 = vadd.f32 %v9190_v60, %v7596_v7 }
 0xe12   : > { %v9223_v0 = vpop.f32.mrf.mxu0 }
 0xe13   : > { %v9258_v27 = vpop.f32.mrf.mxu1 }
 0xe14   : > { %v9224_v6 = vpop.f32.mrf.mxu0 }
 0xe15   : > { %v9225_v30 = vadd.f32 %v9224_v6, %v9223_v0  ;;  %v9259_v40 = vpop.f32.mrf.mxu1 }
 0xe16   : > { %v9260_v37 = vadd.f32 %v9259_v40, %v9258_v27 }
 0xe17   : > { %v7736_v62 = vadd.f32 %v9225_v30, %v7666_v3 }
 0xe19   : > { %v7806_v2 = vadd.f32 %v9260_v37, %v7736_v62 }
 0xe1b   : > { %v7809_v24 = vmax.f32 %v7806_v2, 0.0 }
 0xe1d   : > { %9787 = vmatmul.mubr.msk.f32.vlgmr.msra.gmra.mxu0 %vm2378_vm3, %v7809_v24 }
 0xedd   : > { %v7888_v11 = vpop.f32.mrf.mxu0 }
 0xede   : > { %v7889_v52 = vadd.f32 %v7888_v11, %v7818_v5 }
 0xedf   : > { %v9788_v10 = vpop.f32.mrf.mxu0 }
 0xee0   : > { %v7893_v23 = vsel %vm7892_vm6, %v7889_v52, -inf }
 0xee1   : > { %7894 = vmax.xlane.f32.xlu1 %v7893_v23 }
 0xf6a   : > { %v7895_v58 = vpop.xlane.xlu1 %7894 }
 0xf6b   : > { %v7896_v56 = vsub.f32 %v7889_v52, %v7895_v58 }
 0xf6d   : > { %v7897_v31 = vmul.f32 1.442695, %v7896_v56 }
 0xf6f   : > { %10628 = vpow2.f32 %v7897_v31 }
 0xf7c   : > { %v10629_v44 = vpop.eup %10628 }
 0xf7d   : > { %v7899_v18 = vsel %vm7892_vm6, %v10629_v44, 0.0 }
 0xf7e   : > { %7900 = vadd.xlane.f32.xlu0 %v7899_v18 }
0x1007   : > { %v7901_v22 = vpop.xlane.xlu0 %7900 }
0x1008   : > { %10630 = vrcp.f32 %v7901_v22 }
0x1015   : > { %v10631_v8 = vpop.eup %10630 }
0x1016   : > { %v7903_v38 = vmul.f32 %v10631_v8, %v10629_v44 }
0x1018   : > { %7904 = vst.msk [vmem:[%s594_s26] sm:$0x1] %vm7892_vm6, %v7903_v38 }
0x1019   : > { %10704 = shalt.err (!%p10701_p3)
}
0x101a   : > { %s10705_s4 = scalar_lea.hbm %s7916_s24, 16  ;;  %s10709_s26 = scalar_lea.hbm %s16193_s19, 32 }
0x101b   : > { %p10706_p4 = scmp.ne.s32.totalorder %s7916_s24, %s10705_s4  ;;  %p10710_p9 = scmp.lt.s32.totalorder %s7916_s24, %s16193_s19 }
0x101c   : > { %p10711_p10 = scmp.lt.s32.totalorder %s10709_s26, %s10705_s4 }
0x101d   : > { %p10707_p7 = pnand %p10706_p4, %p10897_p5 }
0x101e   : > { %p10712_p11 = por %p10711_p10, %p10710_p9 }
0x101f   : > { %p10708_p8 = pneg %p10707_p7 }
0x1021   : > { %p10713_p12 = pnand %p10712_p11, %p10708_p8 }
0x1023   : > { %10716 = shalt.err (!%p10713_p12)
}
0x1024   : > { %9789 = dma.vmem_to_hbm [thread:$0]  (%p10897_p5), %s7919_s5, 16, %s7916_s24, %s7906_s0  }
0x1025 PF: > { %s16816_s22 = sld [smem:[#allocation5_spill]]  ;;  %p9795_p13 = scmp.ge.s32.totalorder %s10751_s21, 2 }
0x1027   : > { %p9792_p0 = pnand %p9795_p13, %p10901_p6 }
0x1029   : > { %p9793_p1 = pneg %p9792_p0 }
0x102b   : > { %s7930_s6 = sand.u32 1, %s16816_s22  }
0x102c   : > { %s7931_s1 = scalar_lea.sflag [#allocation3], %s7930_s6 }
0x102d   : > { %10734 = dma.done.wait (%p9793_p1), %s7931_s1, 16  }
0x102e   : > { %10736 = vsyncadd (%p9793_p1), %s7931_s1, 4294967280  ;;  %s16818_s21 = sld [smem:[#allocation7_spill]]  ;;  %s16821_s0 = smov %s10743_s30 }
0x102f   : > { %s16819_s7 = sld [smem:[#allocation6_spill]] }
0x1030   : > { %s16820_s20 = sld [smem:[#allocation8_spill]] }
0x1034   : > { %p29_p2 = scmp.ge.s32.totalorder %s16818_s21, 4  }
0x1035   : > { %s16822_s30 = smov %s16819_s7 }
0x1036   :  { %31 = sbr.rel (!%p29_p2) target bundleno = 12 (0xc), region = 131 }
0x103b   :  { %7935 = vsyncpa [#allocation3], 1 }
0x103c   :  { %7937 = vsyncpa [#allocation3 + $0x1], 1 }

</bundles_post_ra>
